<compile_context>
chip_gen: v7x
topology: tpu7x:2x2x1
jax: 0.10.0
libtpu: 0.0.40
codegen_flags: <defaults>
</compile_context>

<pallas_src>
import math
from functools import partial

import jax
import jax.numpy as jnp
from jax import lax
from jax.experimental import pallas as pl
from jax.experimental.pallas import tpu as pltpu

EPS = 1e-15        # PyG dense_diff_pool epsilon
BN_EPS = 1e-5      # torch BatchNorm eps


def _round_up(x, m):
    return ((x + m - 1) // m) * m


# ----------------------------------------------------------------------------
# Pallas kernels
# ----------------------------------------------------------------------------
def _fused_matmul_kernel(a_ref, w_ref, scale_ref, shift_ref, o_ref, *, relu):
    """o = maybe_relu((a @ w) * scale + shift)   (conv-as-matmul with folded bias+BN)."""
    acc = jnp.dot(a_ref[...], w_ref[...], preferred_element_type=jnp.float32)
    out = acc * scale_ref[...] + shift_ref[...]
    if relu:
        out = jnp.maximum(out, 0.0)
    o_ref[...] = out


def fused_matmul(a, w, scale, shift, relu=False, tm=128):
    """a:(M,K) @ w:(K,N) with per-output-channel scale/shift; bf16 MXU inputs."""
    m, k = a.shape
    n = w.shape[1]
    tm = min(tm, _round_up(m, 8))                 # MXU-sized tiles, always a multiple of 8
    grid_m = pl.cdiv(m, tm)
    mp = grid_m * tm
    a = a.astype(jnp.bfloat16)                    # bf16 for the MXU, f32 accumulation
    if mp != m:
        a = jnp.pad(a, ((0, mp - m), (0, 0)))     # pad only the ragged tail, no full copy
    # NOTE: for large K raise vmem_limit_bytes via CompilerParams (v5e default 16 MiB).
    out = pl.pallas_call(
        partial(_fused_matmul_kernel, relu=relu),
        out_shape=jax.ShapeDtypeStruct((mp, n), jnp.float32),
        grid=(grid_m,),
        in_specs=[
            pl.BlockSpec((tm, k), lambda i: (i, 0)),
            pl.BlockSpec((k, n), lambda i: (0, 0)),
            pl.BlockSpec((1, n), lambda i: (0, 0)),
            pl.BlockSpec((1, n), lambda i: (0, 0)),
        ],
        out_specs=pl.BlockSpec((tm, n), lambda i: (i, 0)),
        compiler_params=pltpu.CompilerParams(dimension_semantics=("parallel",)),
    )(a, w.astype(jnp.bfloat16),
      scale.reshape(1, n).astype(jnp.float32),
      shift.reshape(1, n).astype(jnp.float32))
    return out[:m] if mp != m else out


def _edge_conv_kernel(x_ref, idx_ref, wi_ref, wj_ref, scale_ref, shift_ref, o_ref):
    """Fused EdgeConv2d:  max_j relu(BN(W [x_i ; x_j - x_i] + b))  (+ outer F.relu).

    Uses the split-weight identity so only two (N,C)@(C,D) matmuls are needed;
    the neighbour gather runs on the VMEM-resident D-wide projections via a
    one-hot MXU matmul, and the max-over-k reduction stays in VMEM.
    """
    x = x_ref[0]                                           # (N, C) bf16
    pi = jnp.dot(x, wi_ref[...], preferred_element_type=jnp.float32)   # x_i @ (W_top - W_bot)
    pj = jnp.dot(x, wj_ref[...], preferred_element_type=jnp.float32)   # x   @  W_bot
    idx = idx_ref[0]                                       # (N, K) neighbour ids
    n, kk = idx.shape
    d = pi.shape[-1]
    onehot = (idx[:, :, None] ==
              lax.broadcasted_iota(jnp.int32, (n, kk, n), 2)).astype(jnp.float32)
    pj_g = jnp.dot(onehot.reshape(n * kk, n), pj,
                   preferred_element_type=jnp.float32).reshape(n, kk, d)
    h = (pi[:, None, :] + pj_g) * scale_ref[...] + shift_ref[...]       # folded bias+BN
    h = jnp.maximum(h, 0.0)                                # EdgeConv inner ReLU
    o_ref[0] = jnp.maximum(jnp.max(h, axis=1), 0.0)        # max over k, then outer F.relu


def edge_conv_fused(feat, nn_idx, w_i, w_j, scale, shift):
    b, n, c = feat.shape
    k = nn_idx.shape[-1]
    d = w_i.shape[-1]
    return pl.pallas_call(
        _edge_conv_kernel,
        out_shape=jax.ShapeDtypeStruct((b, n, d), jnp.float32),
        grid=(b,),
        in_specs=[
            pl.BlockSpec((1, n, c), lambda i: (i, 0, 0)),
            pl.BlockSpec((1, n, k), lambda i: (i, 0, 0)),
            pl.BlockSpec((c, d), lambda i: (0, 0)),
            pl.BlockSpec((c, d), lambda i: (0, 0)),
            pl.BlockSpec((1, d), lambda i: (0, 0)),
            pl.BlockSpec((1, d), lambda i: (0, 0)),
        ],
        out_specs=pl.BlockSpec((1, n, d), lambda i: (i, 0, 0)),
        compiler_params=pltpu.CompilerParams(dimension_semantics=("parallel",)),
    )(feat.astype(jnp.bfloat16), nn_idx.astype(jnp.int32),
      w_i.astype(jnp.bfloat16), w_j.astype(jnp.bfloat16),
      scale.reshape(1, d).astype(jnp.float32), shift.reshape(1, d).astype(jnp.float32))


def _neg_sqdist_kernel(x_ref, o_ref):
    x = x_ref[...]                                         # (B, N, C)
    inner = jnp.einsum('bnc,bmc->bnm', x, x, preferred_element_type=jnp.float32)
    sq_row = jnp.sum(x * x, axis=-1, keepdims=True)        # (B, N, 1)
    sq_col = jnp.sum(x * x, axis=-1)[:, None, :]           # (B, 1, N)
    o_ref[...] = 2.0 * inner - sq_row - sq_col             # = -||xi - xj||^2


def pairwise_neg_sqdist(feat):
    # Whole batch per invocation: per-batch work is tiny vs the ~600-cycle grid-step cost.
    b, n, _ = feat.shape
    return pl.pallas_call(
        _neg_sqdist_kernel,
        out_shape=jax.ShapeDtypeStruct((b, n, n), jnp.float32),
    )(feat.astype(jnp.float32))


def _diff_pool_kernel(x_ref, adj_ref, s_ref, out_ref, oadj_ref, link_ref, ent_ref):
    x = x_ref[0]                                           # (N, F)
    adj = adj_ref[0]                                       # (N, N)
    s_raw = s_ref[0]                                       # (N, C)
    s_shift = s_raw - jnp.max(s_raw, axis=-1, keepdims=True)
    e = jnp.exp(s_shift)
    s = e / jnp.sum(e, axis=-1, keepdims=True)             # softmax over clusters
    st = s.T                                               # single tiny transpose, reused 3x
    out_ref[0] = jnp.dot(st, x, preferred_element_type=jnp.float32)
    sta = jnp.dot(st, adj, preferred_element_type=jnp.float32)
    oadj_ref[0] = jnp.dot(sta, s, preferred_element_type=jnp.float32)
    link = adj - jnp.dot(s, st, preferred_element_type=jnp.float32)
    link_ref[...] = jnp.sum(link * link).reshape(1, 1, 1)
    ent_ref[...] = jnp.sum(-s * jnp.log(s + EPS)).reshape(1, 1, 1)


def dense_diff_pool(x, adj, s):
    b, n, f = x.shape
    c = s.shape[-1]
    out, out_adj, link_sq, ent_sum = pl.pallas_call(
        _diff_pool_kernel,
        out_shape=(
            jax.ShapeDtypeStruct((b, c, f), jnp.float32),
            jax.ShapeDtypeStruct((b, c, c), jnp.float32),
            jax.ShapeDtypeStruct((b, 1, 1), jnp.float32),
            jax.ShapeDtypeStruct((b, 1, 1), jnp.float32),
        ),
        grid=(b,),
        in_specs=[
            pl.BlockSpec((1, n, f), lambda i: (i, 0, 0)),
            pl.BlockSpec((1, n, n), lambda i: (i, 0, 0)),
            pl.BlockSpec((1, n, c), lambda i: (i, 0, 0)),
        ],
        out_specs=(
            pl.BlockSpec((1, c, f), lambda i: (i, 0, 0)),
            pl.BlockSpec((1, c, c), lambda i: (i, 0, 0)),
            pl.BlockSpec((1, 1, 1), lambda i: (i, 0, 0)),
            pl.BlockSpec((1, 1, 1), lambda i: (i, 0, 0)),
        ),
        compiler_params=pltpu.CompilerParams(dimension_semantics=("parallel",)),
    )(x, adj, s)
    link_loss = jnp.sqrt(jnp.sum(link_sq)) / (b * n * n)    # torch.norm(..., p=2)/adj.numel()
    ent_loss = jnp.sum(ent_sum) / (b * n)                   # (-s*log s).sum(-1).mean()
    return out, out_adj, link_loss, ent_loss


def _head_kernel(x_ref, w1_ref, b1_ref, w2_ref, b2_ref, o_ref):
    xm = jnp.mean(x_ref[...], axis=1)                      # mean over nodes (axis reduce)
    h = jnp.dot(xm, w1_ref[...], preferred_element_type=jnp.float32) + b1_ref[...]
    h = jnp.maximum(h, 0.0)                                # relu(lin1)
    logits = jnp.dot(h, w2_ref[...], preferred_element_type=jnp.float32) + b2_ref[...]
    z = logits - jnp.max(logits, axis=-1, keepdims=True)   # log_softmax
    o_ref[...] = z - jnp.log(jnp.sum(jnp.exp(z), axis=-1, keepdims=True))


def head_forward(x, w1, b1, w2, b2):
    bsz = x.shape[0]
    nc = w2.shape[1]
    return pl.pallas_call(
        _head_kernel,
        out_shape=jax.ShapeDtypeStruct((bsz, nc), jnp.float32),
    )(x, w1, b1.reshape(1, -1), w2, b2.reshape(1, -1))


# ----------------------------------------------------------------------------
# Glue (reshapes, im2col, parameter setup)
# ----------------------------------------------------------------------------
def bn_fold(bias, gamma, beta):
    # TODO(synk): BatchNorm applied in eval mode (running mean=0, var=1);
    # training-mode batch statistics are not reproduced.
    scale = gamma / jnp.sqrt(1.0 + BN_EPS)
    shift = beta + bias * scale
    return scale, shift


def im2col(x_nhwc, ksize, stride, pad):
    """NHWC im2col emitting channel-major (C, k*k) patch rows directly (no 5-D transpose)."""
    b, h, w, c = x_nhwc.shape
    xp = jnp.pad(x_nhwc, ((0, 0), (pad, pad), (pad, pad), (0, 0)))
    ho = (h + 2 * pad - ksize) // stride + 1
    wo = (w + 2 * pad - ksize) // stride + 1
    cols = [xp[:, i:i + stride * ho:stride, j:j + stride * wo:stride, :]
            for i in range(ksize) for j in range(ksize)]
    patches = jnp.stack(cols, axis=-1)                     # (B, Ho, Wo, C, k*k)
    return patches.reshape(b * ho * wo, c * ksize * ksize), ho, wo


def conv_bn(x_nhwc, p, stride, relu):
    b = x_nhwc.shape[0]
    o = p["w"].shape[0]
    ks = p["w"].shape[-1]
    a, ho, wo = im2col(x_nhwc, ks, stride, 1)
    wmat = p["w"].reshape(o, -1).T                         # (C*k*k, O) matches torch flatten
    scale, shift = bn_fold(p["b"], p["gamma"], p["beta"])
    y = fused_matmul(a, wmat, scale, shift, relu=relu)     # Pallas matmul + BN (+ReLU)
    return y.reshape(b, ho, wo, o)                         # NHWC


def stem_forward(params, img_nchw):
    x = jnp.transpose(img_nchw, (0, 2, 3, 1))              # NCHW -> NHWC once
    x = conv_bn(x, params["stem1"], stride=2, relu=True)
    x = conv_bn(x, params["stem2"], stride=1, relu=False)
    return jnp.transpose(x, (0, 3, 1, 2))                  # back to NCHW (torch layout)


def dense_knn_matrix(x, k):
    # x: (B, C, N, 1) -> edge_index (2, B, N, k); [0]=neighbour idx, [1]=centre idx.
    b, c, n, _ = x.shape
    k = min(k, n)  # TODO(synk): original always uses k=16; clamp for small pooled graphs
    feat = jnp.transpose(x[..., 0], (0, 2, 1))             # (B, N, C)
    neg_dist = pairwise_neg_sqdist(feat)                   # Pallas pairwise -||xi-xj||^2
    _, nn_idx = lax.top_k(neg_dist, k)                     # TODO(synk): top-k stays in XLA glue
    center = jnp.broadcast_to(jnp.arange(n, dtype=nn_idx.dtype)[None, :, None], (b, n, k))
    return jnp.stack([nn_idx, center], axis=0)


def edge_conv2d(layer, x, edge_index):
    # EdgeConv2d: max_j relu(BN(W [x_i ; x_j - x_i] + b)); fused single Pallas kernel.
    b, c, n, _ = x.shape
    feat = jnp.transpose(x[..., 0], (0, 2, 1))             # (B, N, C)
    w = layer["w"]                                         # (2C, Cout)
    w_i = w[:c] - w[c:]                                    # split-weight identity
    w_j = w[c:]
    scale, shift = bn_fold(layer["b"], layer["gamma"], layer["beta"])
    m = edge_conv_fused(feat, edge_index[0], w_i, w_j, scale, shift)   # (B, N, Cout)
    return jnp.transpose(m, (0, 2, 1))[..., None]          # (B, Cout, N, 1)


def dgnn_forward(layers, x, edge_index):
    for layer in layers:
        x = edge_conv2d(layer, x, edge_index)              # outer F.relu fused in-kernel
    return x


def init_params(key, num_classes, k1, k2):
    it = iter(jax.random.split(key, 40))

    def rnd(shape, scale=0.05):
        return jax.random.normal(next(it), shape, jnp.float32) * scale

    def conv_block(cin, cout, ks):
        return dict(w=rnd((cout, cin, ks, ks)), b=rnd((cout,)),
                    gamma=jnp.ones((cout,), jnp.float32),
                    beta=jnp.zeros((cout,), jnp.float32))

    def edge_layer(cin, cout):
        return dict(w=rnd((2 * cin, cout)), b=rnd((cout,)),
                    gamma=jnp.ones((cout,), jnp.float32),
                    beta=jnp.zeros((cout,), jnp.float32))

    def dgnn(cin, ch, cout):
        return [edge_layer(cin, ch), edge_layer(ch, ch), edge_layer(ch, cout)]

    return dict(
        stem1=conv_block(3, 128, 3),
        stem2=conv_block(128, 128, 3),
        # TODO(synk): original builds gnn1_* with in_channels=dataset.num_features(=3)
        # but feeds the 128-channel stem output; 128 is used here for consistency.
        gnn1_pool=dgnn(128, 64, k1),
        gnn1_embed=dgnn(128, 64, 64),
        gnn2_pool=dgnn(64, 64, k2),
        gnn2_embed=dgnn(64, 64, 64),
        gnn3_embed=dgnn(64, 64, 64),
        lin1_w=rnd((64, 64)), lin1_b=rnd((64,)),
        lin2_w=rnd((64, num_classes)), lin2_b=rnd((num_classes,)),
    )


def dyn_diff_pool_forward(params, x, adj):
    b, n, f = x.shape
    side = int(round(math.sqrt(n)))
    img = x.reshape(b, 3, side, -1)                        # torch: x.view(b, 3, sqrt(n), -1)
    h = stem_forward(params, img)                          # (B, 128, side/2, side/2)
    x_stem = h  # kept to mirror the reference (unused when return_clusters=False)
    h = h.reshape(b, 128, -1, 1)                           # (B, 128, N1, 1)
    n1 = h.shape[2]

    ad = dense_knn_matrix(h, 16)
    s1 = dgnn_forward(params["gnn1_pool"], h, ad)          # (B, K1, N1, 1)
    h = dgnn_forward(params["gnn1_embed"], h, ad)          # (B, 64, N1, 1)

    # TODO(synk): original reshapes s1 to (b, n, -1) and reuses the pre-stem adj,
    # which is shape-inconsistent with dense_diff_pool; post-stem node count used.
    h, adj, l1, e1 = dense_diff_pool(h.reshape(b, -1, 64), adj, s1.reshape(b, n1, -1))

    # TODO(synk): original reshapes to (b, 128, -1, 1) while gnn2_* are declared with
    # in_channels=64; 64 channels are kept here so layer shapes stay consistent.
    h = h.reshape(b, 64, -1, 1)                            # (B, 64, K1, 1)
    n2 = h.shape[2]
    ad = dense_knn_matrix(h, 16)
    s2 = dgnn_forward(params["gnn2_pool"], h, ad)          # (B, K2, K1, 1)
    h = dgnn_forward(params["gnn2_embed"], h, ad)          # (B, 64, K1, 1)
    h, adj, l2, e2 = dense_diff_pool(h.reshape(b, -1, 64), adj, s2.reshape(b, n2, -1))

    # TODO(synk): original calls gnn3_embed(x, adj) passing a dense adjacency where an
    # edge_index is expected; a kNN edge_index over the pooled nodes is built instead.
    h = h.reshape(b, 64, -1, 1)                            # (B, 64, K2, 1)
    ad = dense_knn_matrix(h, 16)
    h = dgnn_forward(params["gnn3_embed"], h, ad)          # (B, 64, K2, 1)
    h = h.reshape(b, -1, 64)                               # (B, K2, 64)

    logp = head_forward(h, params["lin1_w"], params["lin1_b"],
                        params["lin2_w"], params["lin2_b"])
    return logp, l1 + l2, e1 + e2


if __name__ == "__main__":
    B, NNODES, F_IN = 2, 64, 3                 # x: (b, n, f) with f=3 (RGB-like features)
    SIDE = int(math.sqrt(NNODES))              # 8x8 image after the .view
    N1 = (SIDE // 2) ** 2                      # nodes after the stride-2 stem = 16
    MAX_NODES = 64                             # small synthetic stand-in for nodes*batch
    K1 = math.ceil(0.25 * MAX_NODES)           # 16
    K2 = math.ceil(0.25 * K1)                  # 4
    NUM_CLASSES = 9                            # pathmnist

    key = jax.random.PRNGKey(0)
    kx, ka, kp = jax.random.split(key, 3)
    x = jax.random.normal(kx, (B, NNODES, F_IN), jnp.float32)
    adj = (jax.random.uniform(ka, (B, N1, N1)) > 0.5).astype(jnp.float32)
    adj = jnp.maximum(adj, jnp.swapaxes(adj, 1, 2))        # symmetric dense adjacency

    params = init_params(kp, NUM_CLASSES, K1, K2)
    fwd = jax.jit(dyn_diff_pool_forward)
    logp, link_loss, ent_loss = fwd(params, x, adj)
    jax.block_until_ready((logp, link_loss, ent_loss))
    print("KERNEL_OK")
</pallas_src>

<mosaic_0001>
module attributes {stable_mosaic.version = 11 : i64} {
  func.func @_fused_matmul_kernel(%arg0: i32, %arg1: memref<32x27xbf16, #tpu.memory_space<vmem>>, %arg2: memref<27x128xbf16, #tpu.memory_space<vmem>>, %arg3: memref<1x128xf32, #tpu.memory_space<vmem>>, %arg4: memref<1x128xf32, #tpu.memory_space<vmem>>, %arg5: memref<32x128xf32, #tpu.memory_space<vmem>>) attributes {dimension_semantics = [#tpu.dimension_semantics<parallel>], iteration_bounds = array<i64: 1>, scalar_prefetch = 0 : i64, scratch_operands = 0 : i64, tpu.core_type = #tpu.core_type<tc>, window_params = [{transform_indices = @transform_0, window_bounds = array<i64: 32, 27>}, {pipeline_mode = #tpu.pipeline_mode<synchronous>, transform_indices = @transform_1, window_bounds = array<i64: 27, 128>}, {pipeline_mode = #tpu.pipeline_mode<synchronous>, transform_indices = @transform_2, window_bounds = array<i64: 1, 128>}, {pipeline_mode = #tpu.pipeline_mode<synchronous>, transform_indices = @transform_3, window_bounds = array<i64: 1, 128>}, {transform_indices = @transform_4, window_bounds = array<i64: 32, 128>}]} {
    %c0 = arith.constant 0 : index
    %c0_0 = arith.constant 0 : index
    %0 = vector.load %arg1[%c0, %c0_0] : memref<32x27xbf16, #tpu.memory_space<vmem>>, vector<32x27xbf16>
    %c0_1 = arith.constant 0 : index
    %c0_2 = arith.constant 0 : index
    %1 = vector.load %arg2[%c0_1, %c0_2] : memref<27x128xbf16, #tpu.memory_space<vmem>>, vector<27x128xbf16>
    %cst = arith.constant dense<0.000000e+00> : vector<32x128xf32>
    %2 = tpu.matmul %0, %1, %cst {dimension_numbers = #tpu.dot_dimension_numbers<[1], [0], [0], [1], [0, 0, 1, 1], [], []>} : vector<32x27xbf16>, vector<27x128xbf16>, vector<32x128xf32> -> vector<32x128xf32>
    %c0_3 = arith.constant 0 : index
    %c0_4 = arith.constant 0 : index
    %3 = vector.load %arg3[%c0_3, %c0_4] : memref<1x128xf32, #tpu.memory_space<vmem>>, vector<1x128xf32>
    %4 = vector.broadcast %3 : vector<1x128xf32> to vector<32x128xf32>
    %5 = arith.mulf %2, %4 : vector<32x128xf32>
    %c0_5 = arith.constant 0 : index
    %c0_6 = arith.constant 0 : index
    %6 = vector.load %arg4[%c0_5, %c0_6] : memref<1x128xf32, #tpu.memory_space<vmem>>, vector<1x128xf32>
    %7 = vector.broadcast %6 : vector<1x128xf32> to vector<32x128xf32>
    %8 = arith.addf %5, %7 : vector<32x128xf32>
    %cst_7 = arith.constant 0.000000e+00 : f32
    %9 = vector.broadcast %cst_7 : f32 to vector<32x128xf32>
    %10 = arith.maximumf %8, %9 : vector<32x128xf32>
    %c0_8 = arith.constant 0 : index
    %c0_9 = arith.constant 0 : index
    %11 = vector.load %arg5[%c0_8, %c0_9] : memref<32x128xf32, #tpu.memory_space<vmem>>, vector<32x128xf32>
    tpu.vector_store %arg5[%c0_8, %c0_9], %10 {strides = array<i32>} : memref<32x128xf32, #tpu.memory_space<vmem>>, vector<32x128xf32>,
    return
  }
  func.func @transform_0(%arg0: i32) -> (i32, i32) {
    %c0_i32 = arith.constant 0 : i32
    %c0_i32_0 = arith.constant 0 : i32
    return %arg0, %c0_i32 : i32, i32
  }
  func.func @transform_1(%arg0: i32) -> (i32, i32) {
    %c0_i32 = arith.constant 0 : i32
    %c0_i32_0 = arith.constant 0 : i32
    %c0_i32_1 = arith.constant 0 : i32
    return %c0_i32, %c0_i32_0 : i32, i32
  }
  func.func @transform_2(%arg0: i32) -> (i32, i32) {
    %c0_i32 = arith.constant 0 : i32
    %c0_i32_0 = arith.constant 0 : i32
    %c0_i32_1 = arith.constant 0 : i32
    return %c0_i32, %c0_i32_0 : i32, i32
  }
  func.func @transform_3(%arg0: i32) -> (i32, i32) {
    %c0_i32 = arith.constant 0 : i32
    %c0_i32_0 = arith.constant 0 : i32
    %c0_i32_1 = arith.constant 0 : i32
    return %c0_i32, %c0_i32_0 : i32, i32
  }
  func.func @transform_4(%arg0: i32) -> (i32, i32) {
    %c0_i32 = arith.constant 0 : i32
    %c0_i32_0 = arith.constant 0 : i32
    return %arg0, %c0_i32 : i32, i32
  }
}

module attributes {stable_mosaic.version = 11 : i64} {
  func.func @_fused_matmul_kernel(%arg0: i32, %arg1: memref<32x1152xbf16, #tpu.memory_space<vmem>>, %arg2: memref<1152x128xbf16, #tpu.memory_space<vmem>>, %arg3: memref<1x128xf32, #tpu.memory_space<vmem>>, %arg4: memref<1x128xf32, #tpu.memory_space<vmem>>, %arg5: memref<32x128xf32, #tpu.memory_space<vmem>>) attributes {dimension_semantics = [#tpu.dimension_semantics<parallel>], iteration_bounds = array<i64: 1>, scalar_prefetch = 0 : i64, scratch_operands = 0 : i64, tpu.core_type = #tpu.core_type<tc>, window_params = [{transform_indices = @transform_0, window_bounds = array<i64: 32, 1152>}, {pipeline_mode = #tpu.pipeline_mode<synchronous>, transform_indices = @transform_1, window_bounds = array<i64: 1152, 128>}, {pipeline_mode = #tpu.pipeline_mode<synchronous>, transform_indices = @transform_2, window_bounds = array<i64: 1, 128>}, {pipeline_mode = #tpu.pipeline_mode<synchronous>, transform_indices = @transform_3, window_bounds = array<i64: 1, 128>}, {transform_indices = @transform_4, window_bounds = array<i64: 32, 128>}]} {
    %c0 = arith.constant 0 : index
    %c0_0 = arith.constant 0 : index
    %0 = vector.load %arg1[%c0, %c0_0] : memref<32x1152xbf16, #tpu.memory_space<vmem>>, vector<32x1152xbf16>
    %c0_1 = arith.constant 0 : index
    %c0_2 = arith.constant 0 : index
    %1 = vector.load %arg2[%c0_1, %c0_2] : memref<1152x128xbf16, #tpu.memory_space<vmem>>, vector<1152x128xbf16>
    %cst = arith.constant dense<0.000000e+00> : vector<32x128xf32>
    %2 = tpu.matmul %0, %1, %cst {dimension_numbers = #tpu.dot_dimension_numbers<[1], [0], [0], [1], [0, 0, 1, 1], [], []>} : vector<32x1152xbf16>, vector<1152x128xbf16>, vector<32x128xf32> -> vector<32x128xf32>
    %c0_3 = arith.constant 0 : index
    %c0_4 = arith.constant 0 : index
    %3 = vector.load %arg3[%c0_3, %c0_4] : memref<1x128xf32, #tpu.memory_space<vmem>>, vector<1x128xf32>
    %4 = vector.broadcast %3 : vector<1x128xf32> to vector<32x128xf32>
    %5 = arith.mulf %2, %4 : vector<32x128xf32>
    %c0_5 = arith.constant 0 : index
    %c0_6 = arith.constant 0 : index
    %6 = vector.load %arg4[%c0_5, %c0_6] : memref<1x128xf32, #tpu.memory_space<vmem>>, vector<1x128xf32>
    %7 = vector.broadcast %6 : vector<1x128xf32> to vector<32x128xf32>
    %8 = arith.addf %5, %7 : vector<32x128xf32>
    %c0_7 = arith.constant 0 : index
    %c0_8 = arith.constant 0 : index
    %9 = vector.load %arg5[%c0_7, %c0_8] : memref<32x128xf32, #tpu.memory_space<vmem>>, vector<32x128xf32>
    tpu.vector_store %arg5[%c0_7, %c0_8], %8 {strides = array<i32>} : memref<32x128xf32, #tpu.memory_space<vmem>>, vector<32x128xf32>,
    return
  }
  func.func @transform_0(%arg0: i32) -> (i32, i32) {
    %c0_i32 = arith.constant 0 : i32
    %c0_i32_0 = arith.constant 0 : i32
    return %arg0, %c0_i32 : i32, i32
  }
  func.func @transform_1(%arg0: i32) -> (i32, i32) {
    %c0_i32 = arith.constant 0 : i32
    %c0_i32_0 = arith.constant 0 : i32
    %c0_i32_1 = arith.constant 0 : i32
    return %c0_i32, %c0_i32_0 : i32, i32
  }
  func.func @transform_2(%arg0: i32) -> (i32, i32) {
    %c0_i32 = arith.constant 0 : i32
    %c0_i32_0 = arith.constant 0 : i32
    %c0_i32_1 = arith.constant 0 : i32
    return %c0_i32, %c0_i32_0 : i32, i32
  }
  func.func @transform_3(%arg0: i32) -> (i32, i32) {
    %c0_i32 = arith.constant 0 : i32
    %c0_i32_0 = arith.constant 0 : i32
    %c0_i32_1 = arith.constant 0 : i32
    return %c0_i32, %c0_i32_0 : i32, i32
  }
  func.func @transform_4(%arg0: i32) -> (i32, i32) {
    %c0_i32 = arith.constant 0 : i32
    %c0_i32_0 = arith.constant 0 : i32
    return %arg0, %c0_i32 : i32, i32
  }
}

module attributes {stable_mosaic.version = 11 : i64} {
  func.func @_neg_sqdist_kernel(%arg0: memref<2x16x128xf32, #tpu.memory_space<vmem>>, %arg1: memref<2x16x16xf32, #tpu.memory_space<vmem>>) attributes {dimension_semantics = [], scalar_prefetch = 0 : i64, scratch_operands = 0 : i64, tpu.core_type = #tpu.core_type<tc>} {
    %c0 = arith.constant 0 : index
    %c0_0 = arith.constant 0 : index
    %c0_1 = arith.constant 0 : index
    %0 = vector.load %arg0[%c0, %c0_0, %c0_1] : memref<2x16x128xf32, #tpu.memory_space<vmem>>, vector<2x16x128xf32>
    "tpu.trace_start"() <{level = 10 : i32, message = "bnc,bmc->bnm"}> : () -> ()
    %cst = arith.constant dense<0.000000e+00> : vector<2x16x16xf32>
    %1 = tpu.matmul %0, %0, %cst {dimension_numbers = #tpu.dot_dimension_numbers<[2], [2], [1], [1], [0, 0, 0, 1, 1, 1], [0], [0]>} : vector<2x16x128xf32>, vector<2x16x128xf32>, vector<2x16x16xf32> -> vector<2x16x16xf32>
    "tpu.trace_stop"() : () -> ()
    %2 = arith.mulf %0, %0 : vector<2x16x128xf32>
    %cst_2 = arith.constant dense<0.000000e+00> : vector<2x16xf32>
    %3 = vector.multi_reduction <add>, %2, %cst_2 [2] : vector<2x16x128xf32> to vector<2x16xf32>
    %4 = vector.shape_cast %3 : vector<2x16xf32> to vector<2x16x1xf32>
    %5 = arith.mulf %0, %0 : vector<2x16x128xf32>
    %cst_3 = arith.constant dense<0.000000e+00> : vector<2x16xf32>
    %6 = vector.multi_reduction <add>, %5, %cst_3 [2] : vector<2x16x128xf32> to vector<2x16xf32>
    %7 = vector.shape_cast %6 : vector<2x16xf32> to vector<2x1x16xf32>
    %cst_4 = arith.constant 2.000000e+00 : f32
    %8 = vector.broadcast %cst_4 : f32 to vector<2x16x16xf32>
    %9 = arith.mulf %8, %1 : vector<2x16x16xf32>
    %10 = vector.broadcast %4 : vector<2x16x1xf32> to vector<2x16x16xf32>
    %11 = arith.subf %9, %10 : vector<2x16x16xf32>
    %12 = vector.broadcast %7 : vector<2x1x16xf32> to vector<2x16x16xf32>
    %13 = arith.subf %11, %12 : vector<2x16x16xf32>
    %c0_5 = arith.constant 0 : index
    %c0_6 = arith.constant 0 : index
    %c0_7 = arith.constant 0 : index
    %14 = vector.load %arg1[%c0_5, %c0_6, %c0_7] : memref<2x16x16xf32, #tpu.memory_space<vmem>>, vector<2x16x16xf32>
    tpu.vector_store %arg1[%c0_5, %c0_6, %c0_7], %13 {strides = array<i32>} : memref<2x16x16xf32, #tpu.memory_space<vmem>>, vector<2x16x16xf32>,
    return
  }
}

module attributes {stable_mosaic.version = 11 : i64} {
  func.func @_edge_conv_kernel(%arg0: i32, %arg1: memref<1x16x128xbf16, #tpu.memory_space<vmem>>, %arg2: memref<1x16x16xi32, #tpu.memory_space<vmem>>, %arg3: memref<128x64xbf16, #tpu.memory_space<vmem>>, %arg4: memref<128x64xbf16, #tpu.memory_space<vmem>>, %arg5: memref<1x64xf32, #tpu.memory_space<vmem>>, %arg6: memref<1x64xf32, #tpu.memory_space<vmem>>, %arg7: memref<1x16x64xf32, #tpu.memory_space<vmem>>) attributes {dimension_semantics = [#tpu.dimension_semantics<parallel>], iteration_bounds = array<i64: 2>, scalar_prefetch = 0 : i64, scratch_operands = 0 : i64, tpu.core_type = #tpu.core_type<tc>, window_params = [{transform_indices = @transform_0, window_bounds = array<i64: 1, 16, 128>}, {transform_indices = @transform_1, window_bounds = array<i64: 1, 16, 16>}, {pipeline_mode = #tpu.pipeline_mode<synchronous>, transform_indices = @transform_2, window_bounds = array<i64: 128, 64>}, {pipeline_mode = #tpu.pipeline_mode<synchronous>, transform_indices = @transform_3, window_bounds = array<i64: 128, 64>}, {pipeline_mode = #tpu.pipeline_mode<synchronous>, transform_indices = @transform_4, window_bounds = array<i64: 1, 64>}, {pipeline_mode = #tpu.pipeline_mode<synchronous>, transform_indices = @transform_5, window_bounds = array<i64: 1, 64>}, {transform_indices = @transform_6, window_bounds = array<i64: 1, 16, 64>}]} {
    %c0 = arith.constant 0 : index
    %c0_0 = arith.constant 0 : index
    %c0_1 = arith.constant 0 : index
    %0 = vector.load %arg1[%c0, %c0_0, %c0_1] : memref<1x16x128xbf16, #tpu.memory_space<vmem>>, vector<1x16x128xbf16>
    %1 = vector.shape_cast %0 : vector<1x16x128xbf16> to vector<16x128xbf16>
    %c0_2 = arith.constant 0 : index
    %c0_3 = arith.constant 0 : index
    %2 = vector.load %arg3[%c0_2, %c0_3] : memref<128x64xbf16, #tpu.memory_space<vmem>>, vector<128x64xbf16>
    %cst = arith.constant dense<0.000000e+00> : vector<16x64xf32>
    %3 = tpu.matmul %1, %2, %cst {dimension_numbers = #tpu.dot_dimension_numbers<[1], [0], [0], [1], [0, 0, 1, 1], [], []>} : vector<16x128xbf16>, vector<128x64xbf16>, vector<16x64xf32> -> vector<16x64xf32>
    %c0_4 = arith.constant 0 : index
    %c0_5 = arith.constant 0 : index
    %4 = vector.load %arg4[%c0_4, %c0_5] : memref<128x64xbf16, #tpu.memory_space<vmem>>, vector<128x64xbf16>
    %cst_6 = arith.constant dense<0.000000e+00> : vector<16x64xf32>
    %5 = tpu.matmul %1, %4, %cst_6 {dimension_numbers = #tpu.dot_dimension_numbers<[1], [0], [0], [1], [0, 0, 1, 1], [], []>} : vector<16x128xbf16>, vector<128x64xbf16>, vector<16x64xf32> -> vector<16x64xf32>
    %c0_7 = arith.constant 0 : index
    %c0_8 = arith.constant 0 : index
    %c0_9 = arith.constant 0 : index
    %6 = vector.load %arg2[%c0_7, %c0_8, %c0_9] : memref<1x16x16xi32, #tpu.memory_space<vmem>>, vector<1x16x16xi32>
    %7 = vector.shape_cast %6 : vector<1x16x16xi32> to vector<16x16xi32>
    %8 = vector.shape_cast %7 : vector<16x16xi32> to vector<16x16x1xi32>
    %9 = tpu.iota {dimensions = array<i32: 2>} : vector<16x16x16xi32>
    %10 = vector.broadcast %8 : vector<16x16x1xi32> to vector<16x16x16xi32>
    %11 = arith.cmpi eq, %10, %9 : vector<16x16x16xi32>
    %12 = arith.extui %11 : vector<16x16x16xi1> to vector<16x16x16xi32>
    %13 = arith.sitofp %12 : vector<16x16x16xi32> to vector<16x16x16xf32>
    %14 = vector.shape_cast %13 : vector<16x16x16xf32> to vector<256x16xf32>
    %cst_10 = arith.constant dense<0.000000e+00> : vector<256x64xf32>
    %15 = tpu.matmul %14, %5, %cst_10 {dimension_numbers = #tpu.dot_dimension_numbers<[1], [0], [0], [1], [0, 0, 1, 1], [], []>} : vector<256x16xf32>, vector<16x64xf32>, vector<256x64xf32> -> vector<256x64xf32>
    %16 = vector.shape_cast %15 : vector<256x64xf32> to vector<16x16x64xf32>
    %17 = vector.shape_cast %3 : vector<16x64xf32> to vector<16x1x64xf32>
    %18 = vector.broadcast %17 : vector<16x1x64xf32> to vector<16x16x64xf32>
    %19 = arith.addf %18, %16 : vector<16x16x64xf32>
    %c0_11 = arith.constant 0 : index
    %c0_12 = arith.constant 0 : index
    %20 = vector.load %arg5[%c0_11, %c0_12] : memref<1x64xf32, #tpu.memory_space<vmem>>, vector<1x64xf32>
    %21 = vector.shape_cast %20 : vector<1x64xf32> to vector<1x1x64xf32>
    %22 = vector.broadcast %21 : vector<1x1x64xf32> to vector<16x16x64xf32>
    %23 = arith.mulf %19, %22 : vector<16x16x64xf32>
    %c0_13 = arith.constant 0 : index
    %c0_14 = arith.constant 0 : index
    %24 = vector.load %arg6[%c0_13, %c0_14] : memref<1x64xf32, #tpu.memory_space<vmem>>, vector<1x64xf32>
    %25 = vector.shape_cast %24 : vector<1x64xf32> to vector<1x1x64xf32>
    %26 = vector.broadcast %25 : vector<1x1x64xf32> to vector<16x16x64xf32>
    %27 = arith.addf %23, %26 : vector<16x16x64xf32>
    %cst_15 = arith.constant 0.000000e+00 : f32
    %28 = vector.broadcast %cst_15 : f32 to vector<16x16x64xf32>
    %29 = arith.maximumf %27, %28 : vector<16x16x64xf32>
    %cst_16 = arith.constant dense<0xFF800000> : vector<16x64xf32>
    %30 = vector.multi_reduction <maximumf>, %29, %cst_16 [1] : vector<16x16x64xf32> to vector<16x64xf32>
    %cst_17 = arith.constant 0.000000e+00 : f32
    %31 = vector.broadcast %cst_17 : f32 to vector<16x64xf32>
    %32 = arith.maximumf %30, %31 : vector<16x64xf32>
    %c0_18 = arith.constant 0 : index
    %c0_19 = arith.constant 0 : index
    %c0_20 = arith.constant 0 : index
    %33 = vector.load %arg7[%c0_18, %c0_19, %c0_20] : memref<1x16x64xf32, #tpu.memory_space<vmem>>, vector<1x16x64xf32>
    %34 = vector.shape_cast %33 : vector<1x16x64xf32> to vector<16x64xf32>
    %35 = vector.shape_cast %32 : vector<16x64xf32> to vector<1x16x64xf32>
    tpu.vector_store %arg7[%c0_18, %c0_19, %c0_20], %35 {strides = array<i32>} : memref<1x16x64xf32, #tpu.memory_space<vmem>>, vector<1x16x64xf32>,
    return
  }
  func.func @transform_0(%arg0: i32) -> (i32, i32, i32) {
    %c0_i32 = arith.constant 0 : i32
    %c0_i32_0 = arith.constant 0 : i32
    %c0_i32_1 = arith.constant 0 : i32
    return %arg0, %c0_i32, %c0_i32_0 : i32, i32, i32
  }
  func.func @transform_1(%arg0: i32) -> (i32, i32, i32) {
    %c0_i32 = arith.constant 0 : i32
    %c0_i32_0 = arith.constant 0 : i32
    %c0_i32_1 = arith.constant 0 : i32
    return %arg0, %c0_i32, %c0_i32_0 : i32, i32, i32
  }
  func.func @transform_2(%arg0: i32) -> (i32, i32) {
    %c0_i32 = arith.constant 0 : i32
    %c0_i32_0 = arith.constant 0 : i32
    %c0_i32_1 = arith.constant 0 : i32
    return %c0_i32, %c0_i32_0 : i32, i32
  }
  func.func @transform_3(%arg0: i32) -> (i32, i32) {
    %c0_i32 = arith.constant 0 : i32
    %c0_i32_0 = arith.constant 0 : i32
    %c0_i32_1 = arith.constant 0 : i32
    return %c0_i32, %c0_i32_0 : i32, i32
  }
  func.func @transform_4(%arg0: i32) -> (i32, i32) {
    %c0_i32 = arith.constant 0 : i32
    %c0_i32_0 = arith.constant 0 : i32
    %c0_i32_1 = arith.constant 0 : i32
    return %c0_i32, %c0_i32_0 : i32, i32
  }
  func.func @transform_5(%arg0: i32) -> (i32, i32) {
    %c0_i32 = arith.constant 0 : i32
    %c0_i32_0 = arith.constant 0 : i32
    %c0_i32_1 = arith.constant 0 : i32
    return %c0_i32, %c0_i32_0 : i32, i32
  }
  func.func @transform_6(%arg0: i32) -> (i32, i32, i32) {
    %c0_i32 = arith.constant 0 : i32
    %c0_i32_0 = arith.constant 0 : i32
    %c0_i32_1 = arith.constant 0 : i32
    return %arg0, %c0_i32, %c0_i32_0 : i32, i32, i32
  }
}

module attributes {stable_mosaic.version = 11 : i64} {
  func.func @_edge_conv_kernel(%arg0: i32, %arg1: memref<1x16x64xbf16, #tpu.memory_space<vmem>>, %arg2: memref<1x16x16xi32, #tpu.memory_space<vmem>>, %arg3: memref<64x64xbf16, #tpu.memory_space<vmem>>, %arg4: memref<64x64xbf16, #tpu.memory_space<vmem>>, %arg5: memref<1x64xf32, #tpu.memory_space<vmem>>, %arg6: memref<1x64xf32, #tpu.memory_space<vmem>>, %arg7: memref<1x16x64xf32, #tpu.memory_space<vmem>>) attributes {dimension_semantics = [#tpu.dimension_semantics<parallel>], iteration_bounds = array<i64: 2>, scalar_prefetch = 0 : i64, scratch_operands = 0 : i64, tpu.core_type = #tpu.core_type<tc>, window_params = [{transform_indices = @transform_0, window_bounds = array<i64: 1, 16, 64>}, {transform_indices = @transform_1, window_bounds = array<i64: 1, 16, 16>}, {pipeline_mode = #tpu.pipeline_mode<synchronous>, transform_indices = @transform_2, window_bounds = array<i64: 64, 64>}, {pipeline_mode = #tpu.pipeline_mode<synchronous>, transform_indices = @transform_3, window_bounds = array<i64: 64, 64>}, {pipeline_mode = #tpu.pipeline_mode<synchronous>, transform_indices = @transform_4, window_bounds = array<i64: 1, 64>}, {pipeline_mode = #tpu.pipeline_mode<synchronous>, transform_indices = @transform_5, window_bounds = array<i64: 1, 64>}, {transform_indices = @transform_6, window_bounds = array<i64: 1, 16, 64>}]} {
    %c0 = arith.constant 0 : index
    %c0_0 = arith.constant 0 : index
    %c0_1 = arith.constant 0 : index
    %0 = vector.load %arg1[%c0, %c0_0, %c0_1] : memref<1x16x64xbf16, #tpu.memory_space<vmem>>, vector<1x16x64xbf16>
    %1 = vector.shape_cast %0 : vector<1x16x64xbf16> to vector<16x64xbf16>
    %c0_2 = arith.constant 0 : index
    %c0_3 = arith.constant 0 : index
    %2 = vector.load %arg3[%c0_2, %c0_3] : memref<64x64xbf16, #tpu.memory_space<vmem>>, vector<64x64xbf16>
    %cst = arith.constant dense<0.000000e+00> : vector<16x64xf32>
    %3 = tpu.matmul %1, %2, %cst {dimension_numbers = #tpu.dot_dimension_numbers<[1], [0], [0], [1], [0, 0, 1, 1], [], []>} : vector<16x64xbf16>, vector<64x64xbf16>, vector<16x64xf32> -> vector<16x64xf32>
    %c0_4 = arith.constant 0 : index
    %c0_5 = arith.constant 0 : index
    %4 = vector.load %arg4[%c0_4, %c0_5] : memref<64x64xbf16, #tpu.memory_space<vmem>>, vector<64x64xbf16>
    %cst_6 = arith.constant dense<0.000000e+00> : vector<16x64xf32>
    %5 = tpu.matmul %1, %4, %cst_6 {dimension_numbers = #tpu.dot_dimension_numbers<[1], [0], [0], [1], [0, 0, 1, 1], [], []>} : vector<16x64xbf16>, vector<64x64xbf16>, vector<16x64xf32> -> vector<16x64xf32>
    %c0_7 = arith.constant 0 : index
    %c0_8 = arith.constant 0 : index
    %c0_9 = arith.constant 0 : index
    %6 = vector.load %arg2[%c0_7, %c0_8, %c0_9] : memref<1x16x16xi32, #tpu.memory_space<vmem>>, vector<1x16x16xi32>
    %7 = vector.shape_cast %6 : vector<1x16x16xi32> to vector<16x16xi32>
    %8 = vector.shape_cast %7 : vector<16x16xi32> to vector<16x16x1xi32>
    %9 = tpu.iota {dimensions = array<i32: 2>} : vector<16x16x16xi32>
    %10 = vector.broadcast %8 : vector<16x16x1xi32> to vector<16x16x16xi32>
    %11 = arith.cmpi eq, %10, %9 : vector<16x16x16xi32>
    %12 = arith.extui %11 : vector<16x16x16xi1> to vector<16x16x16xi32>
    %13 = arith.sitofp %12 : vector<16x16x16xi32> to vector<16x16x16xf32>
    %14 = vector.shape_cast %13 : vector<16x16x16xf32> to vector<256x16xf32>
    %cst_10 = arith.constant dense<0.000000e+00> : vector<256x64xf32>
    %15 = tpu.matmul %14, %5, %cst_10 {dimension_numbers = #tpu.dot_dimension_numbers<[1], [0], [0], [1], [0, 0, 1, 1], [], []>} : vector<256x16xf32>, vector<16x64xf32>, vector<256x64xf32> -> vector<256x64xf32>
    %16 = vector.shape_cast %15 : vector<256x64xf32> to vector<16x16x64xf32>
    %17 = vector.shape_cast %3 : vector<16x64xf32> to vector<16x1x64xf32>
    %18 = vector.broadcast %17 : vector<16x1x64xf32> to vector<16x16x64xf32>
    %19 = arith.addf %18, %16 : vector<16x16x64xf32>
    %c0_11 = arith.constant 0 : index
    %c0_12 = arith.constant 0 : index
    %20 = vector.load %arg5[%c0_11, %c0_12] : memref<1x64xf32, #tpu.memory_space<vmem>>, vector<1x64xf32>
    %21 = vector.shape_cast %20 : vector<1x64xf32> to vector<1x1x64xf32>
    %22 = vector.broadcast %21 : vector<1x1x64xf32> to vector<16x16x64xf32>
    %23 = arith.mulf %19, %22 : vector<16x16x64xf32>
    %c0_13 = arith.constant 0 : index
    %c0_14 = arith.constant 0 : index
    %24 = vector.load %arg6[%c0_13, %c0_14] : memref<1x64xf32, #tpu.memory_space<vmem>>, vector<1x64xf32>
    %25 = vector.shape_cast %24 : vector<1x64xf32> to vector<1x1x64xf32>
    %26 = vector.broadcast %25 : vector<1x1x64xf32> to vector<16x16x64xf32>
    %27 = arith.addf %23, %26 : vector<16x16x64xf32>
    %cst_15 = arith.constant 0.000000e+00 : f32
    %28 = vector.broadcast %cst_15 : f32 to vector<16x16x64xf32>
    %29 = arith.maximumf %27, %28 : vector<16x16x64xf32>
    %cst_16 = arith.constant dense<0xFF800000> : vector<16x64xf32>
    %30 = vector.multi_reduction <maximumf>, %29, %cst_16 [1] : vector<16x16x64xf32> to vector<16x64xf32>
    %cst_17 = arith.constant 0.000000e+00 : f32
    %31 = vector.broadcast %cst_17 : f32 to vector<16x64xf32>
    %32 = arith.maximumf %30, %31 : vector<16x64xf32>
    %c0_18 = arith.constant 0 : index
    %c0_19 = arith.constant 0 : index
    %c0_20 = arith.constant 0 : index
    %33 = vector.load %arg7[%c0_18, %c0_19, %c0_20] : memref<1x16x64xf32, #tpu.memory_space<vmem>>, vector<1x16x64xf32>
    %34 = vector.shape_cast %33 : vector<1x16x64xf32> to vector<16x64xf32>
    %35 = vector.shape_cast %32 : vector<16x64xf32> to vector<1x16x64xf32>
    tpu.vector_store %arg7[%c0_18, %c0_19, %c0_20], %35 {strides = array<i32>} : memref<1x16x64xf32, #tpu.memory_space<vmem>>, vector<1x16x64xf32>,
    return
  }
  func.func @transform_0(%arg0: i32) -> (i32, i32, i32) {
    %c0_i32 = arith.constant 0 : i32
    %c0_i32_0 = arith.constant 0 : i32
    %c0_i32_1 = arith.constant 0 : i32
    return %arg0, %c0_i32, %c0_i32_0 : i32, i32, i32
  }
  func.func @transform_1(%arg0: i32) -> (i32, i32, i32) {
    %c0_i32 = arith.constant 0 : i32
    %c0_i32_0 = arith.constant 0 : i32
    %c0_i32_1 = arith.constant 0 : i32
    return %arg0, %c0_i32, %c0_i32_0 : i32, i32, i32
  }
  func.func @transform_2(%arg0: i32) -> (i32, i32) {
    %c0_i32 = arith.constant 0 : i32
    %c0_i32_0 = arith.constant 0 : i32
    %c0_i32_1 = arith.constant 0 : i32
    return %c0_i32, %c0_i32_0 : i32, i32
  }
  func.func @transform_3(%arg0: i32) -> (i32, i32) {
    %c0_i32 = arith.constant 0 : i32
    %c0_i32_0 = arith.constant 0 : i32
    %c0_i32_1 = arith.constant 0 : i32
    return %c0_i32, %c0_i32_0 : i32, i32
  }
  func.func @transform_4(%arg0: i32) -> (i32, i32) {
    %c0_i32 = arith.constant 0 : i32
    %c0_i32_0 = arith.constant 0 : i32
    %c0_i32_1 = arith.constant 0 : i32
    return %c0_i32, %c0_i32_0 : i32, i32
  }
  func.func @transform_5(%arg0: i32) -> (i32, i32) {
    %c0_i32 = arith.constant 0 : i32
    %c0_i32_0 = arith.constant 0 : i32
    %c0_i32_1 = arith.constant 0 : i32
    return %c0_i32, %c0_i32_0 : i32, i32
  }
  func.func @transform_6(%arg0: i32) -> (i32, i32, i32) {
    %c0_i32 = arith.constant 0 : i32
    %c0_i32_0 = arith.constant 0 : i32
    %c0_i32_1 = arith.constant 0 : i32
    return %arg0, %c0_i32, %c0_i32_0 : i32, i32, i32
  }
}

module attributes {stable_mosaic.version = 11 : i64} {
  func.func @_edge_conv_kernel(%arg0: i32, %arg1: memref<1x16x64xbf16, #tpu.memory_space<vmem>>, %arg2: memref<1x16x16xi32, #tpu.memory_space<vmem>>, %arg3: memref<64x16xbf16, #tpu.memory_space<vmem>>, %arg4: memref<64x16xbf16, #tpu.memory_space<vmem>>, %arg5: memref<1x16xf32, #tpu.memory_space<vmem>>, %arg6: memref<1x16xf32, #tpu.memory_space<vmem>>, %arg7: memref<1x16x16xf32, #tpu.memory_space<vmem>>) attributes {dimension_semantics = [#tpu.dimension_semantics<parallel>], iteration_bounds = array<i64: 2>, scalar_prefetch = 0 : i64, scratch_operands = 0 : i64, tpu.core_type = #tpu.core_type<tc>, window_params = [{transform_indices = @transform_0, window_bounds = array<i64: 1, 16, 64>}, {transform_indices = @transform_1, window_bounds = array<i64: 1, 16, 16>}, {pipeline_mode = #tpu.pipeline_mode<synchronous>, transform_indices = @transform_2, window_bounds = array<i64: 64, 16>}, {pipeline_mode = #tpu.pipeline_mode<synchronous>, transform_indices = @transform_3, window_bounds = array<i64: 64, 16>}, {pipeline_mode = #tpu.pipeline_mode<synchronous>, transform_indices = @transform_4, window_bounds = array<i64: 1, 16>}, {pipeline_mode = #tpu.pipeline_mode<synchronous>, transform_indices = @transform_5, window_bounds = array<i64: 1, 16>}, {transform_indices = @transform_6, window_bounds = array<i64: 1, 16, 16>}]} {
    %c0 = arith.constant 0 : index
    %c0_0 = arith.constant 0 : index
    %c0_1 = arith.constant 0 : index
    %0 = vector.load %arg1[%c0, %c0_0, %c0_1] : memref<1x16x64xbf16, #tpu.memory_space<vmem>>, vector<1x16x64xbf16>
    %1 = vector.shape_cast %0 : vector<1x16x64xbf16> to vector<16x64xbf16>
    %c0_2 = arith.constant 0 : index
    %c0_3 = arith.constant 0 : index
    %2 = vector.load %arg3[%c0_2, %c0_3] : memref<64x16xbf16, #tpu.memory_space<vmem>>, vector<64x16xbf16>
    %cst = arith.constant dense<0.000000e+00> : vector<16x16xf32>
    %3 = tpu.matmul %1, %2, %cst {dimension_numbers = #tpu.dot_dimension_numbers<[1], [0], [0], [1], [0, 0, 1, 1], [], []>} : vector<16x64xbf16>, vector<64x16xbf16>, vector<16x16xf32> -> vector<16x16xf32>
    %c0_4 = arith.constant 0 : index
    %c0_5 = arith.constant 0 : index
    %4 = vector.load %arg4[%c0_4, %c0_5] : memref<64x16xbf16, #tpu.memory_space<vmem>>, vector<64x16xbf16>
    %cst_6 = arith.constant dense<0.000000e+00> : vector<16x16xf32>
    %5 = tpu.matmul %1, %4, %cst_6 {dimension_numbers = #tpu.dot_dimension_numbers<[1], [0], [0], [1], [0, 0, 1, 1], [], []>} : vector<16x64xbf16>, vector<64x16xbf16>, vector<16x16xf32> -> vector<16x16xf32>
    %c0_7 = arith.constant 0 : index
    %c0_8 = arith.constant 0 : index
    %c0_9 = arith.constant 0 : index
    %6 = vector.load %arg2[%c0_7, %c0_8, %c0_9] : memref<1x16x16xi32, #tpu.memory_space<vmem>>, vector<1x16x16xi32>
    %7 = vector.shape_cast %6 : vector<1x16x16xi32> to vector<16x16xi32>
    %8 = vector.shape_cast %7 : vector<16x16xi32> to vector<16x16x1xi32>
    %9 = tpu.iota {dimensions = array<i32: 2>} : vector<16x16x16xi32>
    %10 = vector.broadcast %8 : vector<16x16x1xi32> to vector<16x16x16xi32>
    %11 = arith.cmpi eq, %10, %9 : vector<16x16x16xi32>
    %12 = arith.extui %11 : vector<16x16x16xi1> to vector<16x16x16xi32>
    %13 = arith.sitofp %12 : vector<16x16x16xi32> to vector<16x16x16xf32>
    %14 = vector.shape_cast %13 : vector<16x16x16xf32> to vector<256x16xf32>
    %cst_10 = arith.constant dense<0.000000e+00> : vector<256x16xf32>
    %15 = tpu.matmul %14, %5, %cst_10 {dimension_numbers = #tpu.dot_dimension_numbers<[1], [0], [0], [1], [0, 0, 1, 1], [], []>} : vector<256x16xf32>, vector<16x16xf32>, vector<256x16xf32> -> vector<256x16xf32>
    %16 = vector.shape_cast %15 : vector<256x16xf32> to vector<16x16x16xf32>
    %17 = vector.shape_cast %3 : vector<16x16xf32> to vector<16x1x16xf32>
    %18 = vector.broadcast %17 : vector<16x1x16xf32> to vector<16x16x16xf32>
    %19 = arith.addf %18, %16 : vector<16x16x16xf32>
    %c0_11 = arith.constant 0 : index
    %c0_12 = arith.constant 0 : index
    %20 = vector.load %arg5[%c0_11, %c0_12] : memref<1x16xf32, #tpu.memory_space<vmem>>, vector<1x16xf32>
    %21 = vector.shape_cast %20 : vector<1x16xf32> to vector<1x1x16xf32>
    %22 = vector.broadcast %21 : vector<1x1x16xf32> to vector<16x16x16xf32>
    %23 = arith.mulf %19, %22 : vector<16x16x16xf32>
    %c0_13 = arith.constant 0 : index
    %c0_14 = arith.constant 0 : index
    %24 = vector.load %arg6[%c0_13, %c0_14] : memref<1x16xf32, #tpu.memory_space<vmem>>, vector<1x16xf32>
    %25 = vector.shape_cast %24 : vector<1x16xf32> to vector<1x1x16xf32>
    %26 = vector.broadcast %25 : vector<1x1x16xf32> to vector<16x16x16xf32>
    %27 = arith.addf %23, %26 : vector<16x16x16xf32>
    %cst_15 = arith.constant 0.000000e+00 : f32
    %28 = vector.broadcast %cst_15 : f32 to vector<16x16x16xf32>
    %29 = arith.maximumf %27, %28 : vector<16x16x16xf32>
    %cst_16 = arith.constant dense<0xFF800000> : vector<16x16xf32>
    %30 = vector.multi_reduction <maximumf>, %29, %cst_16 [1] : vector<16x16x16xf32> to vector<16x16xf32>
    %cst_17 = arith.constant 0.000000e+00 : f32
    %31 = vector.broadcast %cst_17 : f32 to vector<16x16xf32>
    %32 = arith.maximumf %30, %31 : vector<16x16xf32>
    %c0_18 = arith.constant 0 : index
    %c0_19 = arith.constant 0 : index
    %c0_20 = arith.constant 0 : index
    %33 = vector.load %arg7[%c0_18, %c0_19, %c0_20] : memref<1x16x16xf32, #tpu.memory_space<vmem>>, vector<1x16x16xf32>
    %34 = vector.shape_cast %33 : vector<1x16x16xf32> to vector<16x16xf32>
    %35 = vector.shape_cast %32 : vector<16x16xf32> to vector<1x16x16xf32>
    tpu.vector_store %arg7[%c0_18, %c0_19, %c0_20], %35 {strides = array<i32>} : memref<1x16x16xf32, #tpu.memory_space<vmem>>, vector<1x16x16xf32>,
    return
  }
  func.func @transform_0(%arg0: i32) -> (i32, i32, i32) {
    %c0_i32 = arith.constant 0 : i32
    %c0_i32_0 = arith.constant 0 : i32
    %c0_i32_1 = arith.constant 0 : i32
    return %arg0, %c0_i32, %c0_i32_0 : i32, i32, i32
  }
  func.func @transform_1(%arg0: i32) -> (i32, i32, i32) {
    %c0_i32 = arith.constant 0 : i32
    %c0_i32_0 = arith.constant 0 : i32
    %c0_i32_1 = arith.constant 0 : i32
    return %arg0, %c0_i32, %c0_i32_0 : i32, i32, i32
  }
  func.func @transform_2(%arg0: i32) -> (i32, i32) {
    %c0_i32 = arith.constant 0 : i32
    %c0_i32_0 = arith.constant 0 : i32
    %c0_i32_1 = arith.constant 0 : i32
    return %c0_i32, %c0_i32_0 : i32, i32
  }
  func.func @transform_3(%arg0: i32) -> (i32, i32) {
    %c0_i32 = arith.constant 0 : i32
    %c0_i32_0 = arith.constant 0 : i32
    %c0_i32_1 = arith.constant 0 : i32
    return %c0_i32, %c0_i32_0 : i32, i32
  }
  func.func @transform_4(%arg0: i32) -> (i32, i32) {
    %c0_i32 = arith.constant 0 : i32
    %c0_i32_0 = arith.constant 0 : i32
    %c0_i32_1 = arith.constant 0 : i32
    return %c0_i32, %c0_i32_0 : i32, i32
  }
  func.func @transform_5(%arg0: i32) -> (i32, i32) {
    %c0_i32 = arith.constant 0 : i32
    %c0_i32_0 = arith.constant 0 : i32
    %c0_i32_1 = arith.constant 0 : i32
    return %c0_i32, %c0_i32_0 : i32, i32
  }
  func.func @transform_6(%arg0: i32) -> (i32, i32, i32) {
    %c0_i32 = arith.constant 0 : i32
    %c0_i32_0 = arith.constant 0 : i32
    %c0_i32_1 = arith.constant 0 : i32
    return %arg0, %c0_i32, %c0_i32_0 : i32, i32, i32
  }
}

module attributes {stable_mosaic.version = 11 : i64} {
  func.func @_diff_pool_kernel(%arg0: i32, %arg1: memref<1x16x64xf32, #tpu.memory_space<vmem>>, %arg2: memref<1x16x16xf32, #tpu.memory_space<vmem>>, %arg3: memref<1x16x16xf32, #tpu.memory_space<vmem>>, %arg4: memref<1x16x64xf32, #tpu.memory_space<vmem>>, %arg5: memref<1x16x16xf32, #tpu.memory_space<vmem>>, %arg6: memref<1x1x1xf32, #tpu.memory_space<vmem>>, %arg7: memref<1x1x1xf32, #tpu.memory_space<vmem>>) attributes {dimension_semantics = [#tpu.dimension_semantics<parallel>], iteration_bounds = array<i64: 2>, scalar_prefetch = 0 : i64, scratch_operands = 0 : i64, tpu.core_type = #tpu.core_type<tc>, window_params = [{transform_indices = @transform_0, window_bounds = array<i64: 1, 16, 64>}, {transform_indices = @transform_1, window_bounds = array<i64: 1, 16, 16>}, {transform_indices = @transform_2, window_bounds = array<i64: 1, 16, 16>}, {transform_indices = @transform_3, window_bounds = array<i64: 1, 16, 64>}, {transform_indices = @transform_4, window_bounds = array<i64: 1, 16, 16>}, {transform_indices = @transform_5, window_bounds = array<i64: 1, 1, 1>}, {transform_indices = @transform_6, window_bounds = array<i64: 1, 1, 1>}]} {
    %c0 = arith.constant 0 : index
    %c0_0 = arith.constant 0 : index
    %c0_1 = arith.constant 0 : index
    %0 = vector.load %arg1[%c0, %c0_0, %c0_1] : memref<1x16x64xf32, #tpu.memory_space<vmem>>, vector<1x16x64xf32>
    %1 = vector.shape_cast %0 : vector<1x16x64xf32> to vector<16x64xf32>
    %c0_2 = arith.constant 0 : index
    %c0_3 = arith.constant 0 : index
    %c0_4 = arith.constant 0 : index
    %2 = vector.load %arg2[%c0_2, %c0_3, %c0_4] : memref<1x16x16xf32, #tpu.memory_space<vmem>>, vector<1x16x16xf32>
    %3 = vector.shape_cast %2 : vector<1x16x16xf32> to vector<16x16xf32>
    %c0_5 = arith.constant 0 : index
    %c0_6 = arith.constant 0 : index
    %c0_7 = arith.constant 0 : index
    %4 = vector.load %arg3[%c0_5, %c0_6, %c0_7] : memref<1x16x16xf32, #tpu.memory_space<vmem>>, vector<1x16x16xf32>
    %5 = vector.shape_cast %4 : vector<1x16x16xf32> to vector<16x16xf32>
    %cst = arith.constant dense<0xFF800000> : vector<16xf32>
    %6 = vector.multi_reduction <maximumf>, %5, %cst [1] : vector<16x16xf32> to vector<16xf32>
    %7 = vector.shape_cast %6 : vector<16xf32> to vector<16x1xf32>
    %8 = vector.broadcast %7 : vector<16x1xf32> to vector<16x16xf32>
    %9 = arith.subf %5, %8 : vector<16x16xf32>
    %10 = math.exp %9 : vector<16x16xf32>
    %cst_8 = arith.constant dense<0.000000e+00> : vector<16xf32>
    %11 = vector.multi_reduction <add>, %10, %cst_8 [1] : vector<16x16xf32> to vector<16xf32>
    %12 = vector.shape_cast %11 : vector<16xf32> to vector<16x1xf32>
    %13 = vector.broadcast %12 : vector<16x1xf32> to vector<16x16xf32>
    %14 = arith.divf %10, %13 : vector<16x16xf32>
    %15 = tpu.transpose %14, [1, 0] : vector<16x16xf32> -> vector<16x16xf32>
    %cst_9 = arith.constant dense<0.000000e+00> : vector<16x64xf32>
    %16 = tpu.matmul %15, %1, %cst_9 {dimension_numbers = #tpu.dot_dimension_numbers<[1], [0], [0], [1], [0, 0, 1, 1], [], []>} : vector<16x16xf32>, vector<16x64xf32>, vector<16x64xf32> -> vector<16x64xf32>
    %c0_10 = arith.constant 0 : index
    %c0_11 = arith.constant 0 : index
    %c0_12 = arith.constant 0 : index
    %17 = vector.load %arg4[%c0_10, %c0_11, %c0_12] : memref<1x16x64xf32, #tpu.memory_space<vmem>>, vector<1x16x64xf32>
    %18 = vector.shape_cast %17 : vector<1x16x64xf32> to vector<16x64xf32>
    %19 = vector.shape_cast %16 : vector<16x64xf32> to vector<1x16x64xf32>
    tpu.vector_store %arg4[%c0_10, %c0_11, %c0_12], %19 {strides = array<i32>} : memref<1x16x64xf32, #tpu.memory_space<vmem>>, vector<1x16x64xf32>,
    %cst_13 = arith.constant dense<0.000000e+00> : vector<16x16xf32>
    %20 = tpu.matmul %15, %3, %cst_13 {dimension_numbers = #tpu.dot_dimension_numbers<[1], [0], [0], [1], [0, 0, 1, 1], [], []>} : vector<16x16xf32>, vector<16x16xf32>, vector<16x16xf32> -> vector<16x16xf32>
    %cst_14 = arith.constant dense<0.000000e+00> : vector<16x16xf32>
    %21 = tpu.matmul %20, %14, %cst_14 {dimension_numbers = #tpu.dot_dimension_numbers<[1], [0], [0], [1], [0, 0, 1, 1], [], []>} : vector<16x16xf32>, vector<16x16xf32>, vector<16x16xf32> -> vector<16x16xf32>
    %c0_15 = arith.constant 0 : index
    %c0_16 = arith.constant 0 : index
    %c0_17 = arith.constant 0 : index
    %22 = vector.load %arg5[%c0_15, %c0_16, %c0_17] : memref<1x16x16xf32, #tpu.memory_space<vmem>>, vector<1x16x16xf32>
    %23 = vector.shape_cast %22 : vector<1x16x16xf32> to vector<16x16xf32>
    %24 = vector.shape_cast %21 : vector<16x16xf32> to vector<1x16x16xf32>
    tpu.vector_store %arg5[%c0_15, %c0_16, %c0_17], %24 {strides = array<i32>} : memref<1x16x16xf32, #tpu.memory_space<vmem>>, vector<1x16x16xf32>,
    %cst_18 = arith.constant dense<0.000000e+00> : vector<16x16xf32>
    %25 = tpu.matmul %14, %15, %cst_18 {dimension_numbers = #tpu.dot_dimension_numbers<[1], [0], [0], [1], [0, 0, 1, 1], [], []>} : vector<16x16xf32>, vector<16x16xf32>, vector<16x16xf32> -> vector<16x16xf32>
    %26 = arith.subf %3, %25 : vector<16x16xf32>
    %27 = arith.mulf %26, %26 : vector<16x16xf32>
    %28 = vector.shape_cast %27 : vector<16x16xf32> to vector<1x16x16xf32>
    %cst_19 = arith.constant dense<0.000000e+00> : vector<1xf32>
    %29 = vector.multi_reduction <add>, %28, %cst_19 [1, 2] : vector<1x16x16xf32> to vector<1xf32>
    %30 = vector.shape_cast %29 : vector<1xf32> to vector<1x1x1xf32>
    %31 = vector.extract %30[0, 0, 0] : f32 from vector<1x1x1xf32>
    %32 = vector.broadcast %31 : f32 to vector<1x1x1xf32>
    %c0_20 = arith.constant 0 : index
    %c0_21 = arith.constant 0 : index
    %c0_22 = arith.constant 0 : index
    %33 = vector.load %arg6[%c0_20, %c0_21, %c0_22] : memref<1x1x1xf32, #tpu.memory_space<vmem>>, vector<1x1x1xf32>
    tpu.vector_store %arg6[%c0_20, %c0_21, %c0_22], %32 {strides = array<i32>} : memref<1x1x1xf32, #tpu.memory_space<vmem>>, vector<1x1x1xf32>,
    %cst_23 = arith.constant 0.000000e+00 : f32
    %34 = vector.broadcast %cst_23 : f32 to vector<16x16xf32>
    %35 = arith.subf %34, %14 : vector<16x16xf32>
    %cst_24 = arith.constant 1.000000e-15 : f32
    %36 = vector.broadcast %cst_24 : f32 to vector<16x16xf32>
    %37 = arith.addf %14, %36 : vector<16x16xf32>
    %38 = math.log %37 : vector<16x16xf32>
    %39 = arith.mulf %35, %38 : vector<16x16xf32>
    %40 = vector.shape_cast %39 : vector<16x16xf32> to vector<1x16x16xf32>
    %cst_25 = arith.constant dense<0.000000e+00> : vector<1xf32>
    %41 = vector.multi_reduction <add>, %40, %cst_25 [1, 2] : vector<1x16x16xf32> to vector<1xf32>
    %42 = vector.shape_cast %41 : vector<1xf32> to vector<1x1x1xf32>
    %43 = vector.extract %42[0, 0, 0] : f32 from vector<1x1x1xf32>
    %44 = vector.broadcast %43 : f32 to vector<1x1x1xf32>
    %c0_26 = arith.constant 0 : index
    %c0_27 = arith.constant 0 : index
    %c0_28 = arith.constant 0 : index
    %45 = vector.load %arg7[%c0_26, %c0_27, %c0_28] : memref<1x1x1xf32, #tpu.memory_space<vmem>>, vector<1x1x1xf32>
    tpu.vector_store %arg7[%c0_26, %c0_27, %c0_28], %44 {strides = array<i32>} : memref<1x1x1xf32, #tpu.memory_space<vmem>>, vector<1x1x1xf32>,
    return
  }
  func.func @transform_0(%arg0: i32) -> (i32, i32, i32) {
    %c0_i32 = arith.constant 0 : i32
    %c0_i32_0 = arith.constant 0 : i32
    %c0_i32_1 = arith.constant 0 : i32
    return %arg0, %c0_i32, %c0_i32_0 : i32, i32, i32
  }
  func.func @transform_1(%arg0: i32) -> (i32, i32, i32) {
    %c0_i32 = arith.constant 0 : i32
    %c0_i32_0 = arith.constant 0 : i32
    %c0_i32_1 = arith.constant 0 : i32
    return %arg0, %c0_i32, %c0_i32_0 : i32, i32, i32
  }
  func.func @transform_2(%arg0: i32) -> (i32, i32, i32) {
    %c0_i32 = arith.constant 0 : i32
    %c0_i32_0 = arith.constant 0 : i32
    %c0_i32_1 = arith.constant 0 : i32
    return %arg0, %c0_i32, %c0_i32_0 : i32, i32, i32
  }
  func.func @transform_3(%arg0: i32) -> (i32, i32, i32) {
    %c0_i32 = arith.constant 0 : i32
    %c0_i32_0 = arith.constant 0 : i32
    %c0_i32_1 = arith.constant 0 : i32
    return %arg0, %c0_i32, %c0_i32_0 : i32, i32, i32
  }
  func.func @transform_4(%arg0: i32) -> (i32, i32, i32) {
    %c0_i32 = arith.constant 0 : i32
    %c0_i32_0 = arith.constant 0 : i32
    %c0_i32_1 = arith.constant 0 : i32
    return %arg0, %c0_i32, %c0_i32_0 : i32, i32, i32
  }
  func.func @transform_5(%arg0: i32) -> (i32, i32, i32) {
    %c0_i32 = arith.constant 0 : i32
    %c0_i32_0 = arith.constant 0 : i32
    %c0_i32_1 = arith.constant 0 : i32
    return %arg0, %c0_i32, %c0_i32_0 : i32, i32, i32
  }
  func.func @transform_6(%arg0: i32) -> (i32, i32, i32) {
    %c0_i32 = arith.constant 0 : i32
    %c0_i32_0 = arith.constant 0 : i32
    %c0_i32_1 = arith.constant 0 : i32
    return %arg0, %c0_i32, %c0_i32_0 : i32, i32, i32
  }
}

module attributes {stable_mosaic.version = 11 : i64} {
  func.func @_neg_sqdist_kernel(%arg0: memref<2x16x64xf32, #tpu.memory_space<vmem>>, %arg1: memref<2x16x16xf32, #tpu.memory_space<vmem>>) attributes {dimension_semantics = [], scalar_prefetch = 0 : i64, scratch_operands = 0 : i64, tpu.core_type = #tpu.core_type<tc>} {
    %c0 = arith.constant 0 : index
    %c0_0 = arith.constant 0 : index
    %c0_1 = arith.constant 0 : index
    %0 = vector.load %arg0[%c0, %c0_0, %c0_1] : memref<2x16x64xf32, #tpu.memory_space<vmem>>, vector<2x16x64xf32>
    "tpu.trace_start"() <{level = 10 : i32, message = "bnc,bmc->bnm"}> : () -> ()
    %cst = arith.constant dense<0.000000e+00> : vector<2x16x16xf32>
    %1 = tpu.matmul %0, %0, %cst {dimension_numbers = #tpu.dot_dimension_numbers<[2], [2], [1], [1], [0, 0, 0, 1, 1, 1], [0], [0]>} : vector<2x16x64xf32>, vector<2x16x64xf32>, vector<2x16x16xf32> -> vector<2x16x16xf32>
    "tpu.trace_stop"() : () -> ()
    %2 = arith.mulf %0, %0 : vector<2x16x64xf32>
    %cst_2 = arith.constant dense<0.000000e+00> : vector<2x16xf32>
    %3 = vector.multi_reduction <add>, %2, %cst_2 [2] : vector<2x16x64xf32> to vector<2x16xf32>
    %4 = vector.shape_cast %3 : vector<2x16xf32> to vector<2x16x1xf32>
    %5 = arith.mulf %0, %0 : vector<2x16x64xf32>
    %cst_3 = arith.constant dense<0.000000e+00> : vector<2x16xf32>
    %6 = vector.multi_reduction <add>, %5, %cst_3 [2] : vector<2x16x64xf32> to vector<2x16xf32>
    %7 = vector.shape_cast %6 : vector<2x16xf32> to vector<2x1x16xf32>
    %cst_4 = arith.constant 2.000000e+00 : f32
    %8 = vector.broadcast %cst_4 : f32 to vector<2x16x16xf32>
    %9 = arith.mulf %8, %1 : vector<2x16x16xf32>
    %10 = vector.broadcast %4 : vector<2x16x1xf32> to vector<2x16x16xf32>
    %11 = arith.subf %9, %10 : vector<2x16x16xf32>
    %12 = vector.broadcast %7 : vector<2x1x16xf32> to vector<2x16x16xf32>
    %13 = arith.subf %11, %12 : vector<2x16x16xf32>
    %c0_5 = arith.constant 0 : index
    %c0_6 = arith.constant 0 : index
    %c0_7 = arith.constant 0 : index
    %14 = vector.load %arg1[%c0_5, %c0_6, %c0_7] : memref<2x16x16xf32, #tpu.memory_space<vmem>>, vector<2x16x16xf32>
    tpu.vector_store %arg1[%c0_5, %c0_6, %c0_7], %13 {strides = array<i32>} : memref<2x16x16xf32, #tpu.memory_space<vmem>>, vector<2x16x16xf32>,
    return
  }
}

module attributes {stable_mosaic.version = 11 : i64} {
  func.func @_edge_conv_kernel(%arg0: i32, %arg1: memref<1x16x64xbf16, #tpu.memory_space<vmem>>, %arg2: memref<1x16x16xi32, #tpu.memory_space<vmem>>, %arg3: memref<64x4xbf16, #tpu.memory_space<vmem>>, %arg4: memref<64x4xbf16, #tpu.memory_space<vmem>>, %arg5: memref<1x4xf32, #tpu.memory_space<vmem>>, %arg6: memref<1x4xf32, #tpu.memory_space<vmem>>, %arg7: memref<1x16x4xf32, #tpu.memory_space<vmem>>) attributes {dimension_semantics = [#tpu.dimension_semantics<parallel>], iteration_bounds = array<i64: 2>, scalar_prefetch = 0 : i64, scratch_operands = 0 : i64, tpu.core_type = #tpu.core_type<tc>, window_params = [{transform_indices = @transform_0, window_bounds = array<i64: 1, 16, 64>}, {transform_indices = @transform_1, window_bounds = array<i64: 1, 16, 16>}, {pipeline_mode = #tpu.pipeline_mode<synchronous>, transform_indices = @transform_2, window_bounds = array<i64: 64, 4>}, {pipeline_mode = #tpu.pipeline_mode<synchronous>, transform_indices = @transform_3, window_bounds = array<i64: 64, 4>}, {pipeline_mode = #tpu.pipeline_mode<synchronous>, transform_indices = @transform_4, window_bounds = array<i64: 1, 4>}, {pipeline_mode = #tpu.pipeline_mode<synchronous>, transform_indices = @transform_5, window_bounds = array<i64: 1, 4>}, {transform_indices = @transform_6, window_bounds = array<i64: 1, 16, 4>}]} {
    %c0 = arith.constant 0 : index
    %c0_0 = arith.constant 0 : index
    %c0_1 = arith.constant 0 : index
    %0 = vector.load %arg1[%c0, %c0_0, %c0_1] : memref<1x16x64xbf16, #tpu.memory_space<vmem>>, vector<1x16x64xbf16>
    %1 = vector.shape_cast %0 : vector<1x16x64xbf16> to vector<16x64xbf16>
    %c0_2 = arith.constant 0 : index
    %c0_3 = arith.constant 0 : index
    %2 = vector.load %arg3[%c0_2, %c0_3] : memref<64x4xbf16, #tpu.memory_space<vmem>>, vector<64x4xbf16>
    %cst = arith.constant dense<0.000000e+00> : vector<16x4xf32>
    %3 = tpu.matmul %1, %2, %cst {dimension_numbers = #tpu.dot_dimension_numbers<[1], [0], [0], [1], [0, 0, 1, 1], [], []>} : vector<16x64xbf16>, vector<64x4xbf16>, vector<16x4xf32> -> vector<16x4xf32>
    %c0_4 = arith.constant 0 : index
    %c0_5 = arith.constant 0 : index
    %4 = vector.load %arg4[%c0_4, %c0_5] : memref<64x4xbf16, #tpu.memory_space<vmem>>, vector<64x4xbf16>
    %cst_6 = arith.constant dense<0.000000e+00> : vector<16x4xf32>
    %5 = tpu.matmul %1, %4, %cst_6 {dimension_numbers = #tpu.dot_dimension_numbers<[1], [0], [0], [1], [0, 0, 1, 1], [], []>} : vector<16x64xbf16>, vector<64x4xbf16>, vector<16x4xf32> -> vector<16x4xf32>
    %c0_7 = arith.constant 0 : index
    %c0_8 = arith.constant 0 : index
    %c0_9 = arith.constant 0 : index
    %6 = vector.load %arg2[%c0_7, %c0_8, %c0_9] : memref<1x16x16xi32, #tpu.memory_space<vmem>>, vector<1x16x16xi32>
    %7 = vector.shape_cast %6 : vector<1x16x16xi32> to vector<16x16xi32>
    %8 = vector.shape_cast %7 : vector<16x16xi32> to vector<16x16x1xi32>
    %9 = tpu.iota {dimensions = array<i32: 2>} : vector<16x16x16xi32>
    %10 = vector.broadcast %8 : vector<16x16x1xi32> to vector<16x16x16xi32>
    %11 = arith.cmpi eq, %10, %9 : vector<16x16x16xi32>
    %12 = arith.extui %11 : vector<16x16x16xi1> to vector<16x16x16xi32>
    %13 = arith.sitofp %12 : vector<16x16x16xi32> to vector<16x16x16xf32>
    %14 = vector.shape_cast %13 : vector<16x16x16xf32> to vector<256x16xf32>
    %cst_10 = arith.constant dense<0.000000e+00> : vector<256x4xf32>
    %15 = tpu.matmul %14, %5, %cst_10 {dimension_numbers = #tpu.dot_dimension_numbers<[1], [0], [0], [1], [0, 0, 1, 1], [], []>} : vector<256x16xf32>, vector<16x4xf32>, vector<256x4xf32> -> vector<256x4xf32>
    %16 = vector.shape_cast %15 : vector<256x4xf32> to vector<16x16x4xf32>
    %17 = vector.shape_cast %3 : vector<16x4xf32> to vector<16x1x4xf32>
    %18 = vector.broadcast %17 : vector<16x1x4xf32> to vector<16x16x4xf32>
    %19 = arith.addf %18, %16 : vector<16x16x4xf32>
    %c0_11 = arith.constant 0 : index
    %c0_12 = arith.constant 0 : index
    %20 = vector.load %arg5[%c0_11, %c0_12] : memref<1x4xf32, #tpu.memory_space<vmem>>, vector<1x4xf32>
    %21 = vector.shape_cast %20 : vector<1x4xf32> to vector<1x1x4xf32>
    %22 = vector.broadcast %21 : vector<1x1x4xf32> to vector<16x16x4xf32>
    %23 = arith.mulf %19, %22 : vector<16x16x4xf32>
    %c0_13 = arith.constant 0 : index
    %c0_14 = arith.constant 0 : index
    %24 = vector.load %arg6[%c0_13, %c0_14] : memref<1x4xf32, #tpu.memory_space<vmem>>, vector<1x4xf32>
    %25 = vector.shape_cast %24 : vector<1x4xf32> to vector<1x1x4xf32>
    %26 = vector.broadcast %25 : vector<1x1x4xf32> to vector<16x16x4xf32>
    %27 = arith.addf %23, %26 : vector<16x16x4xf32>
    %cst_15 = arith.constant 0.000000e+00 : f32
    %28 = vector.broadcast %cst_15 : f32 to vector<16x16x4xf32>
    %29 = arith.maximumf %27, %28 : vector<16x16x4xf32>
    %cst_16 = arith.constant dense<0xFF800000> : vector<16x4xf32>
    %30 = vector.multi_reduction <maximumf>, %29, %cst_16 [1] : vector<16x16x4xf32> to vector<16x4xf32>
    %cst_17 = arith.constant 0.000000e+00 : f32
    %31 = vector.broadcast %cst_17 : f32 to vector<16x4xf32>
    %32 = arith.maximumf %30, %31 : vector<16x4xf32>
    %c0_18 = arith.constant 0 : index
    %c0_19 = arith.constant 0 : index
    %c0_20 = arith.constant 0 : index
    %33 = vector.load %arg7[%c0_18, %c0_19, %c0_20] : memref<1x16x4xf32, #tpu.memory_space<vmem>>, vector<1x16x4xf32>
    %34 = vector.shape_cast %33 : vector<1x16x4xf32> to vector<16x4xf32>
    %35 = vector.shape_cast %32 : vector<16x4xf32> to vector<1x16x4xf32>
    tpu.vector_store %arg7[%c0_18, %c0_19, %c0_20], %35 {strides = array<i32>} : memref<1x16x4xf32, #tpu.memory_space<vmem>>, vector<1x16x4xf32>,
    return
  }
  func.func @transform_0(%arg0: i32) -> (i32, i32, i32) {
    %c0_i32 = arith.constant 0 : i32
    %c0_i32_0 = arith.constant 0 : i32
    %c0_i32_1 = arith.constant 0 : i32
    return %arg0, %c0_i32, %c0_i32_0 : i32, i32, i32
  }
  func.func @transform_1(%arg0: i32) -> (i32, i32, i32) {
    %c0_i32 = arith.constant 0 : i32
    %c0_i32_0 = arith.constant 0 : i32
    %c0_i32_1 = arith.constant 0 : i32
    return %arg0, %c0_i32, %c0_i32_0 : i32, i32, i32
  }
  func.func @transform_2(%arg0: i32) -> (i32, i32) {
    %c0_i32 = arith.constant 0 : i32
    %c0_i32_0 = arith.constant 0 : i32
    %c0_i32_1 = arith.constant 0 : i32
    return %c0_i32, %c0_i32_0 : i32, i32
  }
  func.func @transform_3(%arg0: i32) -> (i32, i32) {
    %c0_i32 = arith.constant 0 : i32
    %c0_i32_0 = arith.constant 0 : i32
    %c0_i32_1 = arith.constant 0 : i32
    return %c0_i32, %c0_i32_0 : i32, i32
  }
  func.func @transform_4(%arg0: i32) -> (i32, i32) {
    %c0_i32 = arith.constant 0 : i32
    %c0_i32_0 = arith.constant 0 : i32
    %c0_i32_1 = arith.constant 0 : i32
    return %c0_i32, %c0_i32_0 : i32, i32
  }
  func.func @transform_5(%arg0: i32) -> (i32, i32) {
    %c0_i32 = arith.constant 0 : i32
    %c0_i32_0 = arith.constant 0 : i32
    %c0_i32_1 = arith.constant 0 : i32
    return %c0_i32, %c0_i32_0 : i32, i32
  }
  func.func @transform_6(%arg0: i32) -> (i32, i32, i32) {
    %c0_i32 = arith.constant 0 : i32
    %c0_i32_0 = arith.constant 0 : i32
    %c0_i32_1 = arith.constant 0 : i32
    return %arg0, %c0_i32, %c0_i32_0 : i32, i32, i32
  }
}

module attributes {stable_mosaic.version = 11 : i64} {
  func.func @_diff_pool_kernel(%arg0: i32, %arg1: memref<1x16x64xf32, #tpu.memory_space<vmem>>, %arg2: memref<1x16x16xf32, #tpu.memory_space<vmem>>, %arg3: memref<1x16x4xf32, #tpu.memory_space<vmem>>, %arg4: memref<1x4x64xf32, #tpu.memory_space<vmem>>, %arg5: memref<1x4x4xf32, #tpu.memory_space<vmem>>, %arg6: memref<1x1x1xf32, #tpu.memory_space<vmem>>, %arg7: memref<1x1x1xf32, #tpu.memory_space<vmem>>) attributes {dimension_semantics = [#tpu.dimension_semantics<parallel>], iteration_bounds = array<i64: 2>, scalar_prefetch = 0 : i64, scratch_operands = 0 : i64, tpu.core_type = #tpu.core_type<tc>, window_params = [{transform_indices = @transform_0, window_bounds = array<i64: 1, 16, 64>}, {transform_indices = @transform_1, window_bounds = array<i64: 1, 16, 16>}, {transform_indices = @transform_2, window_bounds = array<i64: 1, 16, 4>}, {transform_indices = @transform_3, window_bounds = array<i64: 1, 4, 64>}, {transform_indices = @transform_4, window_bounds = array<i64: 1, 4, 4>}, {transform_indices = @transform_5, window_bounds = array<i64: 1, 1, 1>}, {transform_indices = @transform_6, window_bounds = array<i64: 1, 1, 1>}]} {
    %c0 = arith.constant 0 : index
    %c0_0 = arith.constant 0 : index
    %c0_1 = arith.constant 0 : index
    %0 = vector.load %arg1[%c0, %c0_0, %c0_1] : memref<1x16x64xf32, #tpu.memory_space<vmem>>, vector<1x16x64xf32>
    %1 = vector.shape_cast %0 : vector<1x16x64xf32> to vector<16x64xf32>
    %c0_2 = arith.constant 0 : index
    %c0_3 = arith.constant 0 : index
    %c0_4 = arith.constant 0 : index
    %2 = vector.load %arg2[%c0_2, %c0_3, %c0_4] : memref<1x16x16xf32, #tpu.memory_space<vmem>>, vector<1x16x16xf32>
    %3 = vector.shape_cast %2 : vector<1x16x16xf32> to vector<16x16xf32>
    %c0_5 = arith.constant 0 : index
    %c0_6 = arith.constant 0 : index
    %c0_7 = arith.constant 0 : index
    %4 = vector.load %arg3[%c0_5, %c0_6, %c0_7] : memref<1x16x4xf32, #tpu.memory_space<vmem>>, vector<1x16x4xf32>
    %5 = vector.shape_cast %4 : vector<1x16x4xf32> to vector<16x4xf32>
    %cst = arith.constant dense<0xFF800000> : vector<16xf32>
    %6 = vector.multi_reduction <maximumf>, %5, %cst [1] : vector<16x4xf32> to vector<16xf32>
    %7 = vector.shape_cast %6 : vector<16xf32> to vector<16x1xf32>
    %8 = vector.broadcast %7 : vector<16x1xf32> to vector<16x4xf32>
    %9 = arith.subf %5, %8 : vector<16x4xf32>
    %10 = math.exp %9 : vector<16x4xf32>
    %cst_8 = arith.constant dense<0.000000e+00> : vector<16xf32>
    %11 = vector.multi_reduction <add>, %10, %cst_8 [1] : vector<16x4xf32> to vector<16xf32>
    %12 = vector.shape_cast %11 : vector<16xf32> to vector<16x1xf32>
    %13 = vector.broadcast %12 : vector<16x1xf32> to vector<16x4xf32>
    %14 = arith.divf %10, %13 : vector<16x4xf32>
    %15 = tpu.transpose %14, [1, 0] : vector<16x4xf32> -> vector<4x16xf32>
    %cst_9 = arith.constant dense<0.000000e+00> : vector<4x64xf32>
    %16 = tpu.matmul %15, %1, %cst_9 {dimension_numbers = #tpu.dot_dimension_numbers<[1], [0], [0], [1], [0, 0, 1, 1], [], []>} : vector<4x16xf32>, vector<16x64xf32>, vector<4x64xf32> -> vector<4x64xf32>
    %c0_10 = arith.constant 0 : index
    %c0_11 = arith.constant 0 : index
    %c0_12 = arith.constant 0 : index
    %17 = vector.load %arg4[%c0_10, %c0_11, %c0_12] : memref<1x4x64xf32, #tpu.memory_space<vmem>>, vector<1x4x64xf32>
    %18 = vector.shape_cast %17 : vector<1x4x64xf32> to vector<4x64xf32>
    %19 = vector.shape_cast %16 : vector<4x64xf32> to vector<1x4x64xf32>
    tpu.vector_store %arg4[%c0_10, %c0_11, %c0_12], %19 {strides = array<i32>} : memref<1x4x64xf32, #tpu.memory_space<vmem>>, vector<1x4x64xf32>,
    %cst_13 = arith.constant dense<0.000000e+00> : vector<4x16xf32>
    %20 = tpu.matmul %15, %3, %cst_13 {dimension_numbers = #tpu.dot_dimension_numbers<[1], [0], [0], [1], [0, 0, 1, 1], [], []>} : vector<4x16xf32>, vector<16x16xf32>, vector<4x16xf32> -> vector<4x16xf32>
    %cst_14 = arith.constant dense<0.000000e+00> : vector<4x4xf32>
    %21 = tpu.matmul %20, %14, %cst_14 {dimension_numbers = #tpu.dot_dimension_numbers<[1], [0], [0], [1], [0, 0, 1, 1], [], []>} : vector<4x16xf32>, vector<16x4xf32>, vector<4x4xf32> -> vector<4x4xf32>
    %c0_15 = arith.constant 0 : index
    %c0_16 = arith.constant 0 : index
    %c0_17 = arith.constant 0 : index
    %22 = vector.load %arg5[%c0_15, %c0_16, %c0_17] : memref<1x4x4xf32, #tpu.memory_space<vmem>>, vector<1x4x4xf32>
    %23 = vector.shape_cast %22 : vector<1x4x4xf32> to vector<4x4xf32>
    %24 = vector.shape_cast %21 : vector<4x4xf32> to vector<1x4x4xf32>
    tpu.vector_store %arg5[%c0_15, %c0_16, %c0_17], %24 {strides = array<i32>} : memref<1x4x4xf32, #tpu.memory_space<vmem>>, vector<1x4x4xf32>,
    %cst_18 = arith.constant dense<0.000000e+00> : vector<16x16xf32>
    %25 = tpu.matmul %14, %15, %cst_18 {dimension_numbers = #tpu.dot_dimension_numbers<[1], [0], [0], [1], [0, 0, 1, 1], [], []>} : vector<16x4xf32>, vector<4x16xf32>, vector<16x16xf32> -> vector<16x16xf32>
    %26 = arith.subf %3, %25 : vector<16x16xf32>
    %27 = arith.mulf %26, %26 : vector<16x16xf32>
    %28 = vector.shape_cast %27 : vector<16x16xf32> to vector<1x16x16xf32>
    %cst_19 = arith.constant dense<0.000000e+00> : vector<1xf32>
    %29 = vector.multi_reduction <add>, %28, %cst_19 [1, 2] : vector<1x16x16xf32> to vector<1xf32>
    %30 = vector.shape_cast %29 : vector<1xf32> to vector<1x1x1xf32>
    %31 = vector.extract %30[0, 0, 0] : f32 from vector<1x1x1xf32>
    %32 = vector.broadcast %31 : f32 to vector<1x1x1xf32>
    %c0_20 = arith.constant 0 : index
    %c0_21 = arith.constant 0 : index
    %c0_22 = arith.constant 0 : index
    %33 = vector.load %arg6[%c0_20, %c0_21, %c0_22] : memref<1x1x1xf32, #tpu.memory_space<vmem>>, vector<1x1x1xf32>
    tpu.vector_store %arg6[%c0_20, %c0_21, %c0_22], %32 {strides = array<i32>} : memref<1x1x1xf32, #tpu.memory_space<vmem>>, vector<1x1x1xf32>,
    %cst_23 = arith.constant 0.000000e+00 : f32
    %34 = vector.broadcast %cst_23 : f32 to vector<16x4xf32>
    %35 = arith.subf %34, %14 : vector<16x4xf32>
    %cst_24 = arith.constant 1.000000e-15 : f32
    %36 = vector.broadcast %cst_24 : f32 to vector<16x4xf32>
    %37 = arith.addf %14, %36 : vector<16x4xf32>
    %38 = math.log %37 : vector<16x4xf32>
    %39 = arith.mulf %35, %38 : vector<16x4xf32>
    %40 = vector.shape_cast %39 : vector<16x4xf32> to vector<1x16x4xf32>
    %cst_25 = arith.constant dense<0.000000e+00> : vector<1xf32>
    %41 = vector.multi_reduction <add>, %40, %cst_25 [1, 2] : vector<1x16x4xf32> to vector<1xf32>
    %42 = vector.shape_cast %41 : vector<1xf32> to vector<1x1x1xf32>
    %43 = vector.extract %42[0, 0, 0] : f32 from vector<1x1x1xf32>
    %44 = vector.broadcast %43 : f32 to vector<1x1x1xf32>
    %c0_26 = arith.constant 0 : index
    %c0_27 = arith.constant 0 : index
    %c0_28 = arith.constant 0 : index
    %45 = vector.load %arg7[%c0_26, %c0_27, %c0_28] : memref<1x1x1xf32, #tpu.memory_space<vmem>>, vector<1x1x1xf32>
    tpu.vector_store %arg7[%c0_26, %c0_27, %c0_28], %44 {strides = array<i32>} : memref<1x1x1xf32, #tpu.memory_space<vmem>>, vector<1x1x1xf32>,
    return
  }
  func.func @transform_0(%arg0: i32) -> (i32, i32, i32) {
    %c0_i32 = arith.constant 0 : i32
    %c0_i32_0 = arith.constant 0 : i32
    %c0_i32_1 = arith.constant 0 : i32
    return %arg0, %c0_i32, %c0_i32_0 : i32, i32, i32
  }
  func.func @transform_1(%arg0: i32) -> (i32, i32, i32) {
    %c0_i32 = arith.constant 0 : i32
    %c0_i32_0 = arith.constant 0 : i32
    %c0_i32_1 = arith.constant 0 : i32
    return %arg0, %c0_i32, %c0_i32_0 : i32, i32, i32
  }
  func.func @transform_2(%arg0: i32) -> (i32, i32, i32) {
    %c0_i32 = arith.constant 0 : i32
    %c0_i32_0 = arith.constant 0 : i32
    %c0_i32_1 = arith.constant 0 : i32
    return %arg0, %c0_i32, %c0_i32_0 : i32, i32, i32
  }
  func.func @transform_3(%arg0: i32) -> (i32, i32, i32) {
    %c0_i32 = arith.constant 0 : i32
    %c0_i32_0 = arith.constant 0 : i32
    %c0_i32_1 = arith.constant 0 : i32
    return %arg0, %c0_i32, %c0_i32_0 : i32, i32, i32
  }
  func.func @transform_4(%arg0: i32) -> (i32, i32, i32) {
    %c0_i32 = arith.constant 0 : i32
    %c0_i32_0 = arith.constant 0 : i32
    %c0_i32_1 = arith.constant 0 : i32
    return %arg0, %c0_i32, %c0_i32_0 : i32, i32, i32
  }
  func.func @transform_5(%arg0: i32) -> (i32, i32, i32) {
    %c0_i32 = arith.constant 0 : i32
    %c0_i32_0 = arith.constant 0 : i32
    %c0_i32_1 = arith.constant 0 : i32
    return %arg0, %c0_i32, %c0_i32_0 : i32, i32, i32
  }
  func.func @transform_6(%arg0: i32) -> (i32, i32, i32) {
    %c0_i32 = arith.constant 0 : i32
    %c0_i32_0 = arith.constant 0 : i32
    %c0_i32_1 = arith.constant 0 : i32
    return %arg0, %c0_i32, %c0_i32_0 : i32, i32, i32
  }
}

module attributes {stable_mosaic.version = 11 : i64} {
  func.func @_neg_sqdist_kernel(%arg0: memref<2x4x64xf32, #tpu.memory_space<vmem>>, %arg1: memref<2x4x4xf32, #tpu.memory_space<vmem>>) attributes {dimension_semantics = [], scalar_prefetch = 0 : i64, scratch_operands = 0 : i64, tpu.core_type = #tpu.core_type<tc>} {
    %c0 = arith.constant 0 : index
    %c0_0 = arith.constant 0 : index
    %c0_1 = arith.constant 0 : index
    %0 = vector.load %arg0[%c0, %c0_0, %c0_1] : memref<2x4x64xf32, #tpu.memory_space<vmem>>, vector<2x4x64xf32>
    "tpu.trace_start"() <{level = 10 : i32, message = "bnc,bmc->bnm"}> : () -> ()
    %cst = arith.constant dense<0.000000e+00> : vector<2x4x4xf32>
    %1 = tpu.matmul %0, %0, %cst {dimension_numbers = #tpu.dot_dimension_numbers<[2], [2], [1], [1], [0, 0, 0, 1, 1, 1], [0], [0]>} : vector<2x4x64xf32>, vector<2x4x64xf32>, vector<2x4x4xf32> -> vector<2x4x4xf32>
    "tpu.trace_stop"() : () -> ()
    %2 = arith.mulf %0, %0 : vector<2x4x64xf32>
    %cst_2 = arith.constant dense<0.000000e+00> : vector<2x4xf32>
    %3 = vector.multi_reduction <add>, %2, %cst_2 [2] : vector<2x4x64xf32> to vector<2x4xf32>
    %4 = vector.shape_cast %3 : vector<2x4xf32> to vector<2x4x1xf32>
    %5 = arith.mulf %0, %0 : vector<2x4x64xf32>
    %cst_3 = arith.constant dense<0.000000e+00> : vector<2x4xf32>
    %6 = vector.multi_reduction <add>, %5, %cst_3 [2] : vector<2x4x64xf32> to vector<2x4xf32>
    %7 = vector.shape_cast %6 : vector<2x4xf32> to vector<2x1x4xf32>
    %cst_4 = arith.constant 2.000000e+00 : f32
    %8 = vector.broadcast %cst_4 : f32 to vector<2x4x4xf32>
    %9 = arith.mulf %8, %1 : vector<2x4x4xf32>
    %10 = vector.broadcast %4 : vector<2x4x1xf32> to vector<2x4x4xf32>
    %11 = arith.subf %9, %10 : vector<2x4x4xf32>
    %12 = vector.broadcast %7 : vector<2x1x4xf32> to vector<2x4x4xf32>
    %13 = arith.subf %11, %12 : vector<2x4x4xf32>
    %c0_5 = arith.constant 0 : index
    %c0_6 = arith.constant 0 : index
    %c0_7 = arith.constant 0 : index
    %14 = vector.load %arg1[%c0_5, %c0_6, %c0_7] : memref<2x4x4xf32, #tpu.memory_space<vmem>>, vector<2x4x4xf32>
    tpu.vector_store %arg1[%c0_5, %c0_6, %c0_7], %13 {strides = array<i32>} : memref<2x4x4xf32, #tpu.memory_space<vmem>>, vector<2x4x4xf32>,
    return
  }
}

module attributes {stable_mosaic.version = 11 : i64} {
  func.func @_edge_conv_kernel(%arg0: i32, %arg1: memref<1x4x64xbf16, #tpu.memory_space<vmem>>, %arg2: memref<1x4x4xi32, #tpu.memory_space<vmem>>, %arg3: memref<64x64xbf16, #tpu.memory_space<vmem>>, %arg4: memref<64x64xbf16, #tpu.memory_space<vmem>>, %arg5: memref<1x64xf32, #tpu.memory_space<vmem>>, %arg6: memref<1x64xf32, #tpu.memory_space<vmem>>, %arg7: memref<1x4x64xf32, #tpu.memory_space<vmem>>) attributes {dimension_semantics = [#tpu.dimension_semantics<parallel>], iteration_bounds = array<i64: 2>, scalar_prefetch = 0 : i64, scratch_operands = 0 : i64, tpu.core_type = #tpu.core_type<tc>, window_params = [{transform_indices = @transform_0, window_bounds = array<i64: 1, 4, 64>}, {transform_indices = @transform_1, window_bounds = array<i64: 1, 4, 4>}, {pipeline_mode = #tpu.pipeline_mode<synchronous>, transform_indices = @transform_2, window_bounds = array<i64: 64, 64>}, {pipeline_mode = #tpu.pipeline_mode<synchronous>, transform_indices = @transform_3, window_bounds = array<i64: 64, 64>}, {pipeline_mode = #tpu.pipeline_mode<synchronous>, transform_indices = @transform_4, window_bounds = array<i64: 1, 64>}, {pipeline_mode = #tpu.pipeline_mode<synchronous>, transform_indices = @transform_5, window_bounds = array<i64: 1, 64>}, {transform_indices = @transform_6, window_bounds = array<i64: 1, 4, 64>}]} {
    %c0 = arith.constant 0 : index
    %c0_0 = arith.constant 0 : index
    %c0_1 = arith.constant 0 : index
    %0 = vector.load %arg1[%c0, %c0_0, %c0_1] : memref<1x4x64xbf16, #tpu.memory_space<vmem>>, vector<1x4x64xbf16>
    %1 = vector.shape_cast %0 : vector<1x4x64xbf16> to vector<4x64xbf16>
    %c0_2 = arith.constant 0 : index
    %c0_3 = arith.constant 0 : index
    %2 = vector.load %arg3[%c0_2, %c0_3] : memref<64x64xbf16, #tpu.memory_space<vmem>>, vector<64x64xbf16>
    %cst = arith.constant dense<0.000000e+00> : vector<4x64xf32>
    %3 = tpu.matmul %1, %2, %cst {dimension_numbers = #tpu.dot_dimension_numbers<[1], [0], [0], [1], [0, 0, 1, 1], [], []>} : vector<4x64xbf16>, vector<64x64xbf16>, vector<4x64xf32> -> vector<4x64xf32>
    %c0_4 = arith.constant 0 : index
    %c0_5 = arith.constant 0 : index
    %4 = vector.load %arg4[%c0_4, %c0_5] : memref<64x64xbf16, #tpu.memory_space<vmem>>, vector<64x64xbf16>
    %cst_6 = arith.constant dense<0.000000e+00> : vector<4x64xf32>
    %5 = tpu.matmul %1, %4, %cst_6 {dimension_numbers = #tpu.dot_dimension_numbers<[1], [0], [0], [1], [0, 0, 1, 1], [], []>} : vector<4x64xbf16>, vector<64x64xbf16>, vector<4x64xf32> -> vector<4x64xf32>
    %c0_7 = arith.constant 0 : index
    %c0_8 = arith.constant 0 : index
    %c0_9 = arith.constant 0 : index
    %6 = vector.load %arg2[%c0_7, %c0_8, %c0_9] : memref<1x4x4xi32, #tpu.memory_space<vmem>>, vector<1x4x4xi32>
    %7 = vector.shape_cast %6 : vector<1x4x4xi32> to vector<4x4xi32>
    %8 = vector.shape_cast %7 : vector<4x4xi32> to vector<4x4x1xi32>
    %9 = tpu.iota {dimensions = array<i32: 2>} : vector<4x4x4xi32>
    %10 = vector.broadcast %8 : vector<4x4x1xi32> to vector<4x4x4xi32>
    %11 = arith.cmpi eq, %10, %9 : vector<4x4x4xi32>
    %12 = arith.extui %11 : vector<4x4x4xi1> to vector<4x4x4xi32>
    %13 = arith.sitofp %12 : vector<4x4x4xi32> to vector<4x4x4xf32>
    %14 = vector.shape_cast %13 : vector<4x4x4xf32> to vector<16x4xf32>
    %cst_10 = arith.constant dense<0.000000e+00> : vector<16x64xf32>
    %15 = tpu.matmul %14, %5, %cst_10 {dimension_numbers = #tpu.dot_dimension_numbers<[1], [0], [0], [1], [0, 0, 1, 1], [], []>} : vector<16x4xf32>, vector<4x64xf32>, vector<16x64xf32> -> vector<16x64xf32>
    %16 = vector.shape_cast %15 : vector<16x64xf32> to vector<4x4x64xf32>
    %17 = vector.shape_cast %3 : vector<4x64xf32> to vector<4x1x64xf32>
    %18 = vector.broadcast %17 : vector<4x1x64xf32> to vector<4x4x64xf32>
    %19 = arith.addf %18, %16 : vector<4x4x64xf32>
    %c0_11 = arith.constant 0 : index
    %c0_12 = arith.constant 0 : index
    %20 = vector.load %arg5[%c0_11, %c0_12] : memref<1x64xf32, #tpu.memory_space<vmem>>, vector<1x64xf32>
    %21 = vector.shape_cast %20 : vector<1x64xf32> to vector<1x1x64xf32>
    %22 = vector.broadcast %21 : vector<1x1x64xf32> to vector<4x4x64xf32>
    %23 = arith.mulf %19, %22 : vector<4x4x64xf32>
    %c0_13 = arith.constant 0 : index
    %c0_14 = arith.constant 0 : index
    %24 = vector.load %arg6[%c0_13, %c0_14] : memref<1x64xf32, #tpu.memory_space<vmem>>, vector<1x64xf32>
    %25 = vector.shape_cast %24 : vector<1x64xf32> to vector<1x1x64xf32>
    %26 = vector.broadcast %25 : vector<1x1x64xf32> to vector<4x4x64xf32>
    %27 = arith.addf %23, %26 : vector<4x4x64xf32>
    %cst_15 = arith.constant 0.000000e+00 : f32
    %28 = vector.broadcast %cst_15 : f32 to vector<4x4x64xf32>
    %29 = arith.maximumf %27, %28 : vector<4x4x64xf32>
    %cst_16 = arith.constant dense<0xFF800000> : vector<4x64xf32>
    %30 = vector.multi_reduction <maximumf>, %29, %cst_16 [1] : vector<4x4x64xf32> to vector<4x64xf32>
    %cst_17 = arith.constant 0.000000e+00 : f32
    %31 = vector.broadcast %cst_17 : f32 to vector<4x64xf32>
    %32 = arith.maximumf %30, %31 : vector<4x64xf32>
    %c0_18 = arith.constant 0 : index
    %c0_19 = arith.constant 0 : index
    %c0_20 = arith.constant 0 : index
    %33 = vector.load %arg7[%c0_18, %c0_19, %c0_20] : memref<1x4x64xf32, #tpu.memory_space<vmem>>, vector<1x4x64xf32>
    %34 = vector.shape_cast %33 : vector<1x4x64xf32> to vector<4x64xf32>
    %35 = vector.shape_cast %32 : vector<4x64xf32> to vector<1x4x64xf32>
    tpu.vector_store %arg7[%c0_18, %c0_19, %c0_20], %35 {strides = array<i32>} : memref<1x4x64xf32, #tpu.memory_space<vmem>>, vector<1x4x64xf32>,
    return
  }
  func.func @transform_0(%arg0: i32) -> (i32, i32, i32) {
    %c0_i32 = arith.constant 0 : i32
    %c0_i32_0 = arith.constant 0 : i32
    %c0_i32_1 = arith.constant 0 : i32
    return %arg0, %c0_i32, %c0_i32_0 : i32, i32, i32
  }
  func.func @transform_1(%arg0: i32) -> (i32, i32, i32) {
    %c0_i32 = arith.constant 0 : i32
    %c0_i32_0 = arith.constant 0 : i32
    %c0_i32_1 = arith.constant 0 : i32
    return %arg0, %c0_i32, %c0_i32_0 : i32, i32, i32
  }
  func.func @transform_2(%arg0: i32) -> (i32, i32) {
    %c0_i32 = arith.constant 0 : i32
    %c0_i32_0 = arith.constant 0 : i32
    %c0_i32_1 = arith.constant 0 : i32
    return %c0_i32, %c0_i32_0 : i32, i32
  }
  func.func @transform_3(%arg0: i32) -> (i32, i32) {
    %c0_i32 = arith.constant 0 : i32
    %c0_i32_0 = arith.constant 0 : i32
    %c0_i32_1 = arith.constant 0 : i32
    return %c0_i32, %c0_i32_0 : i32, i32
  }
  func.func @transform_4(%arg0: i32) -> (i32, i32) {
    %c0_i32 = arith.constant 0 : i32
    %c0_i32_0 = arith.constant 0 : i32
    %c0_i32_1 = arith.constant 0 : i32
    return %c0_i32, %c0_i32_0 : i32, i32
  }
  func.func @transform_5(%arg0: i32) -> (i32, i32) {
    %c0_i32 = arith.constant 0 : i32
    %c0_i32_0 = arith.constant 0 : i32
    %c0_i32_1 = arith.constant 0 : i32
    return %c0_i32, %c0_i32_0 : i32, i32
  }
  func.func @transform_6(%arg0: i32) -> (i32, i32, i32) {
    %c0_i32 = arith.constant 0 : i32
    %c0_i32_0 = arith.constant 0 : i32
    %c0_i32_1 = arith.constant 0 : i32
    return %arg0, %c0_i32, %c0_i32_0 : i32, i32, i32
  }
}

module attributes {stable_mosaic.version = 11 : i64} {
  func.func @_head_kernel(%arg0: memref<2x4x64xf32, #tpu.memory_space<vmem>>, %arg1: memref<64x64xf32, #tpu.memory_space<vmem>>, %arg2: memref<1x64xf32, #tpu.memory_space<vmem>>, %arg3: memref<64x9xf32, #tpu.memory_space<vmem>>, %arg4: memref<1x9xf32, #tpu.memory_space<vmem>>, %arg5: memref<2x9xf32, #tpu.memory_space<vmem>>) attributes {dimension_semantics = [], scalar_prefetch = 0 : i64, scratch_operands = 0 : i64, tpu.core_type = #tpu.core_type<tc>} {
    %c0 = arith.constant 0 : index
    %c0_0 = arith.constant 0 : index
    %c0_1 = arith.constant 0 : index
    %0 = vector.load %arg0[%c0, %c0_0, %c0_1] : memref<2x4x64xf32, #tpu.memory_space<vmem>>, vector<2x4x64xf32>
    %cst = arith.constant dense<0.000000e+00> : vector<2x64xf32>
    %1 = vector.multi_reduction <add>, %0, %cst [1] : vector<2x4x64xf32> to vector<2x64xf32>
    %cst_2 = arith.constant 4.000000e+00 : f32
    %2 = vector.broadcast %cst_2 : f32 to vector<2x64xf32>
    %3 = arith.divf %1, %2 : vector<2x64xf32>
    %c0_3 = arith.constant 0 : index
    %c0_4 = arith.constant 0 : index
    %4 = vector.load %arg1[%c0_3, %c0_4] : memref<64x64xf32, #tpu.memory_space<vmem>>, vector<64x64xf32>
    %cst_5 = arith.constant dense<0.000000e+00> : vector<2x64xf32>
    %5 = tpu.matmul %3, %4, %cst_5 {dimension_numbers = #tpu.dot_dimension_numbers<[1], [0], [0], [1], [0, 0, 1, 1], [], []>} : vector<2x64xf32>, vector<64x64xf32>, vector<2x64xf32> -> vector<2x64xf32>
    %c0_6 = arith.constant 0 : index
    %c0_7 = arith.constant 0 : index
    %6 = vector.load %arg2[%c0_6, %c0_7] : memref<1x64xf32, #tpu.memory_space<vmem>>, vector<1x64xf32>
    %7 = vector.broadcast %6 : vector<1x64xf32> to vector<2x64xf32>
    %8 = arith.addf %5, %7 : vector<2x64xf32>
    %cst_8 = arith.constant 0.000000e+00 : f32
    %9 = vector.broadcast %cst_8 : f32 to vector<2x64xf32>
    %10 = arith.maximumf %8, %9 : vector<2x64xf32>
    %c0_9 = arith.constant 0 : index
    %c0_10 = arith.constant 0 : index
    %11 = vector.load %arg3[%c0_9, %c0_10] : memref<64x9xf32, #tpu.memory_space<vmem>>, vector<64x9xf32>
    %cst_11 = arith.constant dense<0.000000e+00> : vector<2x9xf32>
    %12 = tpu.matmul %10, %11, %cst_11 {dimension_numbers = #tpu.dot_dimension_numbers<[1], [0], [0], [1], [0, 0, 1, 1], [], []>} : vector<2x64xf32>, vector<64x9xf32>, vector<2x9xf32> -> vector<2x9xf32>
    %c0_12 = arith.constant 0 : index
    %c0_13 = arith.constant 0 : index
    %13 = vector.load %arg4[%c0_12, %c0_13] : memref<1x9xf32, #tpu.memory_space<vmem>>, vector<1x9xf32>
    %14 = vector.broadcast %13 : vector<1x9xf32> to vector<2x9xf32>
    %15 = arith.addf %12, %14 : vector<2x9xf32>
    %cst_14 = arith.constant dense<0xFF800000> : vector<2xf32>
    %16 = vector.multi_reduction <maximumf>, %15, %cst_14 [1] : vector<2x9xf32> to vector<2xf32>
    %17 = vector.shape_cast %16 : vector<2xf32> to vector<2x1xf32>
    %18 = vector.broadcast %17 : vector<2x1xf32> to vector<2x9xf32>
    %19 = arith.subf %15, %18 : vector<2x9xf32>
    %20 = math.exp %19 : vector<2x9xf32>
    %cst_15 = arith.constant dense<0.000000e+00> : vector<2xf32>
    %21 = vector.multi_reduction <add>, %20, %cst_15 [1] : vector<2x9xf32> to vector<2xf32>
    %22 = vector.shape_cast %21 : vector<2xf32> to vector<2x1xf32>
    %23 = math.log %22 : vector<2x1xf32>
    %24 = vector.broadcast %23 : vector<2x1xf32> to vector<2x9xf32>
    %25 = arith.subf %19, %24 : vector<2x9xf32>
    %c0_16 = arith.constant 0 : index
    %c0_17 = arith.constant 0 : index
    %26 = vector.load %arg5[%c0_16, %c0_17] : memref<2x9xf32, #tpu.memory_space<vmem>>, vector<2x9xf32>
    tpu.vector_store %arg5[%c0_16, %c0_17], %25 {strides = array<i32>} : memref<2x9xf32, #tpu.memory_space<vmem>>, vector<2x9xf32>,
    return
  }
}

</mosaic_0001>

<bundles_post_ra>
// kernel: dyn_diff_pool_forward.23
= control target key start
LH: loop header
LB: loop body
LE: loop exit
PB: predicated region body
PF: predicated region fallthrough
CT: control target
= control target key end

     0   :  { %vm54_vm0 = vcmask 1044480   ;;  %vm55_vm1 = vcmask 1045504   ;;  %vm47_vm2 = vcmask 220160   ;;  %v169_v1 = vmov 65535   ;;  %s225_s1 = inlined_call_operand.vmem [shape: bf16[27,128], index: 1, kind: input, shape index: {}]   ;;  %s226_s0 = inlined_call_operand.vmem [shape: bf16[32,27], index: 0, kind: input, shape index: {}]   ;;  %s227_s2 = inlined_call_operand.vmem [shape: f32[1,128], index: 2, kind: input, shape index: {}]   ;;  %s228_s3 = inlined_call_operand.vmem [shape: f32[1,128], index: 3, kind: input, shape index: {}]   ;;  %s229_s4 = inlined_call_operand.vmem [shape: f32[32,128], index: 4, kind: output, shape index: {}]  }
   0x1   :  { %v165_v0 = vld [vmem:[%s225_s1] sm:$0xff]   ;;  %v56_v2 = vsel %vm54_vm0, 4294967295, %v169_v1  ;;  %v166_v3 = vld [vmem:[%s225_s1 + $0x8] sm:$0x3f]  }
   0x2   :  { %156 = vmatprep.subr.bf16.mxu0 %v165_v0  ;;  %v57_v4 = vsel %vm55_vm1, %v56_v2, 0  ;;  %v167_v5 = vld [vmem:[%s226_s0] sm:$0xff]   ;;  %v168_v7 = vld [vmem:[%s226_s0 + $0x8] sm:$0xff]  }
   0x3   :  { %157 = vmatpush3.bf16.msra.mxu0 %v165_v0  ;;  %v59_v6 = vand.u32 %v166_v3, %v57_v4  ;;  %160 = vmatprep.mubr.msk.bf16.mxu0 %vm47_vm2, %v167_v5  ;;  %v150_v8 = vld [vmem:[%s227_s2] ss:$0 sm:$0xff] }
   0x4   :  { %v151_v10 = vld [vmem:[%s228_s3] ss:$0 sm:$0xff] }
   0x5   :  { %158 = vmatprep.subr.bf16.mxu0 %v59_v6 }
   0x7   :  { %159 = vmatpush3.bf16.msra.mxu0 %v59_v6 }
   0xa   :  { %161 = vmatmul.mubr.msk.bf16.vlgmr.msra.gmra.mrb[0].mxu0 %vm47_vm2, %v168_v7 }
  0xdd   :  { %v162_v9 = vpop.f32.mrb[0].mxu0 }
  0xde   :  { %v119_v11 = vmul.f32 %v162_v9, %v150_v8  ;;  %v95_v12 = vpop.f32.mrb[1].mxu0 }
  0xdf   :  { %v117_v13 = vmul.f32 %v150_v8, %v95_v12  ;;  %v163_v14 = vpop.f32.mrb[2].mxu0 }
  0xe0   :  { %v130_v15 = vadd.f32 %v151_v10, %v119_v11  ;;  %v120_v16 = vmul.f32 %v163_v14, %v150_v8  ;;  %v98_v17 = vpop.f32.mrb[3].mxu0 }
  0xe1   :  { %v128_v18 = vadd.f32 %v151_v10, %v117_v13  ;;  %v118_v19 = vmul.f32 %v150_v8, %v98_v17 }
  0xe2   :  { %v134_v20 = vmax.f32 %v130_v15, 0.0  ;;  %v131_v21 = vadd.f32 %v151_v10, %v120_v16 }
  0xe3   :  { %v132_v22 = vmax.f32 %v128_v18, 0.0  ;;  %v129_v23 = vadd.f32 %v151_v10, %v118_v19 }
  0xe4   :  { %138 = vst [vmem:[%s229_s4 + $0x10] sm:$0xff] %v134_v20  ;;  %v135_v24 = vmax.f32 %v131_v21, 0.0 }
  0xe5   :  { %136 = vst [vmem:[%s229_s4] sm:$0xff] %v132_v22  ;;  %v133_v25 = vmax.f32 %v129_v23, 0.0 }
  0xe6   :  { %139 = vst [vmem:[%s229_s4 + $0x18] sm:$0xff] %v135_v24 }
  0xe7   :  { %137 = vst [vmem:[%s229_s4 + $0x8] sm:$0xff] %v133_v25 }

// kernel: dyn_diff_pool_forward.24
= control target key start
LH: loop header
LB: loop body
LE: loop exit
PB: predicated region body
PF: predicated region fallthrough
CT: control target
= control target key end

     0   :  { %s1626_s1 = inlined_call_operand.vmem [shape: bf16[1152,128], index: 1, kind: input, shape index: {}]   ;;  %s1627_s0 = inlined_call_operand.vmem [shape: bf16[32,1152], index: 0, kind: input, shape index: {}]   ;;  %s1628_s2 = inlined_call_operand.vmem [shape: f32[1,128], index: 2, kind: input, shape index: {}]   ;;  %s1629_s3 = inlined_call_operand.vmem [shape: f32[1,128], index: 3, kind: input, shape index: {}]   ;;  %s1630_s4 = inlined_call_operand.vmem [shape: f32[32,128], index: 4, kind: output, shape index: {}]  }
   0x1   :  { %v1215_v0 = vld [vmem:[%s1626_s1 + $0x40] sm:$0xff]   ;;  %v1219_v4 = vld [vmem:[%s1626_s1 + $0x48] sm:$0xff]   ;;  %v1223_v8 = vld [vmem:[%s1626_s1 + $0x50] sm:$0xff]  }
   0x2   :  { %v1216_v1 = vld [vmem:[%s1626_s1 + $0xc0] sm:$0xff]   ;;  %1073 = vmatprep.subr.bf16.mxu0 %v1215_v0  ;;  %v1220_v5 = vld [vmem:[%s1626_s1 + $0xc8] sm:$0xff]   ;;  %v1224_v9 = vld [vmem:[%s1626_s1 + $0xd0] sm:$0xff]  }
   0x3   :  { %v1217_v2 = vld [vmem:[%s1626_s1] sm:$0xff]   ;;  %1101 = vmatprep.subr.bf16.mxu1 %v1216_v1  ;;  %v1221_v6 = vld [vmem:[%s1626_s1 + $0x8] sm:$0xff]   ;;  %v1225_v10 = vld [vmem:[%s1626_s1 + $0x10] sm:$0xff]  }
   0x4   :  { %v1218_v3 = vld [vmem:[%s1626_s1 + $0x80] sm:$0xff]   ;;  %1074 = vmatpush3.bf16.msra.mxu0 %v1217_v2  ;;  %v1222_v7 = vld [vmem:[%s1626_s1 + $0x88] sm:$0xff]   ;;  %v1226_v11 = vld [vmem:[%s1626_s1 + $0x90] sm:$0xff]  }
   0x5   :  { %1102 = vmatpush3.bf16.msra.mxu1 %v1218_v3  ;;  %1075 = vmatprep.subr.bf16.mxu0 %v1219_v4  ;;  %v1227_v12 = vld [vmem:[%s1626_s1 + $0x58] sm:$0xff]   ;;  %v1231_v16 = vld [vmem:[%s1626_s1 + $0x60] sm:$0xff]   ;;  %v1235_v20 = vld [vmem:[%s1626_s1 + $0x68] sm:$0xff]  }
   0x6   :  { %1103 = vmatprep.subr.bf16.mxu1 %v1220_v5  ;;  %v1228_v13 = vld [vmem:[%s1626_s1 + $0xd8] sm:$0xff]   ;;  %v1232_v17 = vld [vmem:[%s1626_s1 + $0xe0] sm:$0xff]   ;;  %v1236_v21 = vld [vmem:[%s1626_s1 + $0xe8] sm:$0xff]  }
   0x7   :  { %v1229_v14 = vld [vmem:[%s1626_s1 + $0x18] sm:$0xff]   ;;  %v1233_v18 = vld [vmem:[%s1626_s1 + $0x20] sm:$0xff]   ;;  %v1237_v22 = vld [vmem:[%s1626_s1 + $0x28] sm:$0xff]  }
   0x8   :  { %1076 = vmatpush3.bf16.msra.mxu0 %v1221_v6  ;;  %v1230_v15 = vld [vmem:[%s1626_s1 + $0x98] sm:$0xff]   ;;  %v1234_v19 = vld [vmem:[%s1626_s1 + $0xa0] sm:$0xff]   ;;  %v1238_v23 = vld [vmem:[%s1626_s1 + $0xa8] sm:$0xff]  }
   0x9   :  { %1104 = vmatpush3.bf16.msra.mxu1 %v1222_v7  ;;  %1077 = vmatprep.subr.bf16.mxu0 %v1223_v8  ;;  %v1239_v24 = vld [vmem:[%s1626_s1 + $0x70] sm:$0xff]   ;;  %v1243_v28 = vld [vmem:[%s1626_s1 + $0x78] sm:$0xff]   ;;  %v1247_v32 = vld [vmem:[%s1627_s0] ss:$36 sps:$4 sm:$0xff]  }
   0xa   :  { %1105 = vmatprep.subr.bf16.mxu1 %v1224_v9  ;;  %v1240_v25 = vld [vmem:[%s1626_s1 + $0xf0] sm:$0xff]   ;;  %v1244_v29 = vld [vmem:[%s1626_s1 + $0xf8] sm:$0xff]   ;;  %v1249_v33 = vld [vmem:[%s1627_s0 + $0x4] ss:$36 sps:$4 sm:$0xff]  }
   0xb   :  { %v1241_v26 = vld [vmem:[%s1626_s1 + $0x30] sm:$0xff]   ;;  %v1245_v30 = vld [vmem:[%s1626_s1 + $0x38] sm:$0xff]   ;;  %v1250_v34 = vld [vmem:[%s1627_s0 + $0x8] ss:$36 sps:$4 sm:$0xff]   ;;  %738 = vmatprep.mubr.bf16.mxu0 %v1249_v33 }
   0xc   :  { %1078 = vmatpush3.bf16.msra.mxu0 %v1225_v10  ;;  %v1242_v27 = vld [vmem:[%s1626_s1 + $0xb0] sm:$0xff]   ;;  %v1246_v31 = vld [vmem:[%s1626_s1 + $0xb8] sm:$0xff]   ;;  %v1253_v36 = vld [vmem:[%s1626_s1 + $0x140] sm:$0xff]  }
   0xd   :  { %1106 = vmatpush3.bf16.msra.mxu1 %v1226_v11  ;;  %1079 = vmatprep.subr.bf16.mxu0 %v1227_v12  ;;  %v1252_v35 = vld [vmem:[%s1627_s0 + $0xc] ss:$36 sps:$4 sm:$0xff]   ;;  %v1254_v37 = vld [vmem:[%s1626_s1 + $0x100] sm:$0xff]   ;;  %v1265_v48 = vld [vmem:[%s1626_s1 + $0x158] sm:$0xff]  }
   0xe   :  { %1107 = vmatprep.subr.bf16.mxu1 %v1228_v13  ;;  %787 = vmatprep.mubr.bf16.mxu1 %v1252_v35  ;;  %v1255_v38 = vld [vmem:[%s1626_s1 + $0x1c0] sm:$0xff]   ;;  %v1257_v40 = vld [vmem:[%s1626_s1 + $0x148] sm:$0xff]   ;;  %v1261_v44 = vld [vmem:[%s1626_s1 + $0x150] sm:$0xff]  }
   0xf   :  { %v1256_v39 = vld [vmem:[%s1626_s1 + $0x180] sm:$0xff]   ;;  %v1258_v41 = vld [vmem:[%s1626_s1 + $0x108] sm:$0xff]   ;;  %v1262_v45 = vld [vmem:[%s1626_s1 + $0x110] sm:$0xff]  }
  0x10   :  { %1080 = vmatpush3.bf16.msra.mxu0 %v1229_v14  ;;  %v1259_v42 = vld [vmem:[%s1626_s1 + $0x1c8] sm:$0xff]   ;;  %v1263_v46 = vld [vmem:[%s1626_s1 + $0x1d0] sm:$0xff]   ;;  %v1266_v49 = vld [vmem:[%s1626_s1 + $0x118] sm:$0xff]  }
  0x11   :  { %1108 = vmatpush3.bf16.msra.mxu1 %v1230_v15  ;;  %1081 = vmatprep.subr.bf16.mxu0 %v1231_v16  ;;  %v1260_v43 = vld [vmem:[%s1626_s1 + $0x188] sm:$0xff]   ;;  %v1264_v47 = vld [vmem:[%s1626_s1 + $0x190] sm:$0xff]   ;;  %v1267_v50 = vld [vmem:[%s1626_s1 + $0x1d8] sm:$0xff]  }
  0x12   :  { %1109 = vmatprep.subr.bf16.mxu1 %v1232_v17  ;;  %v1268_v51 = vld [vmem:[%s1626_s1 + $0x198] sm:$0xff]   ;;  %v1269_v52 = vld [vmem:[%s1626_s1 + $0x160] sm:$0xff]   ;;  %v1273_v56 = vld [vmem:[%s1626_s1 + $0x168] sm:$0xff]  }
  0x13   :  { %v1270_v53 = vld [vmem:[%s1626_s1 + $0x120] sm:$0xff]   ;;  %v1274_v57 = vld [vmem:[%s1627_s0 + $0x4c] ss:$36 sps:$4 sm:$0xff]   ;;  %v1276_v58 = vld [vmem:[%s1627_s0 + $0x54] ss:$36 sps:$4 sm:$0xff]  }
  0x14   :  { %1082 = vmatpush3.bf16.msra.mxu0 %v1233_v18  ;;  %v1271_v54 = vld [vmem:[%s1626_s1 + $0x1e0] sm:$0xff]   ;;  %v1278_v59 = vld [vmem:[%s1626_s1 + $0x128] sm:$0xff]   ;;  %v1280_v61 = vld [vmem:[%s1627_s0 + $0x50] ss:$36 sps:$4 sm:$0xff]  }
  0x15   :  { %1110 = vmatpush3.bf16.msra.mxu1 %v1234_v19  ;;  %1083 = vmatprep.subr.bf16.mxu0 %v1235_v20  ;;  %v1272_v55 = vld [vmem:[%s1626_s1 + $0x1a0] sm:$0xff]   ;;  %v1279_v60 = vld [vmem:[%s1627_s0 + $0x48] ss:$36 sps:$4 sm:$0xff]   ;;  %v1283_v0 = vld [vmem:[%s1626_s1 + $0x170] sm:$0xff]  }
  0x16   :  { %1111 = vmatprep.subr.bf16.mxu1 %v1236_v21  ;;  %v1281_v62 = vld [vmem:[%s1626_s1 + $0x1e8] sm:$0xff]   ;;  %v1284_v1 = vld [vmem:[%s1626_s1 + $0x130] sm:$0xff]   ;;  %v1287_v4 = vld [vmem:[%s1626_s1 + $0x178] sm:$0xff]  }
  0x17   :  { %v1282_v63 = vld [vmem:[%s1626_s1 + $0x1a8] sm:$0xff]   ;;  %v1285_v2 = vld [vmem:[%s1626_s1 + $0x1f0] sm:$0xff]   ;;  %v1288_v5 = vld [vmem:[%s1626_s1 + $0x138] sm:$0xff]  }
  0x18   :  { %1084 = vmatpush3.bf16.msra.mxu0 %v1237_v22  ;;  %v1286_v3 = vld [vmem:[%s1626_s1 + $0x1b0] sm:$0xff]   ;;  %v1289_v6 = vld [vmem:[%s1626_s1 + $0x1f8] sm:$0xff]   ;;  %v1294_v10 = vld [vmem:[%s1626_s1 + $0x200] sm:$0xff]  }
  0x19   :  { %1112 = vmatpush3.bf16.msra.mxu1 %v1238_v23  ;;  %1085 = vmatprep.subr.bf16.mxu0 %v1239_v24  ;;  %v1290_v7 = vld [vmem:[%s1627_s0 + $0x10] ss:$36 sps:$4 sm:$0xff]   ;;  %v1293_v9 = vld [vmem:[%s1626_s1 + $0x1b8] sm:$0xff]   ;;  %v1298_v13 = vld [vmem:[%s1626_s1 + $0x208] sm:$0xff]  }
  0x1a   :  { %1113 = vmatprep.subr.bf16.mxu1 %v1240_v25  ;;  %v1292_v8 = vld [vmem:[%s1627_s0 + $0x14] ss:$36 sps:$4 sm:$0xff]   ;;  %v1297_v12 = vld [vmem:[%s1627_s0 + $0x1c] ss:$36 sps:$4 sm:$0xff]   ;;  %v1303_v17 = vld [vmem:[%s1627_s0 + $0x64] ss:$36 sps:$4 sm:$0xff]  }
  0x1b   :  { %v1295_v11 = vld [vmem:[%s1627_s0 + $0x18] ss:$36 sps:$4 sm:$0xff]   ;;  %v1302_v16 = vld [vmem:[%s1626_s1 + $0x210] sm:$0xff]   ;;  %v1305_v18 = vld [vmem:[%s1627_s0 + $0x60] ss:$36 sps:$4 sm:$0xff]  }
  0x1c   :  { %1086 = vmatpush3.bf16.msra.mxu0 %v1241_v26  ;;  %v1299_v14 = vld [vmem:[%s1627_s0 + $0x5c] ss:$36 sps:$4 sm:$0xff]   ;;  %v1308_v22 = vld [vmem:[%s1626_s1 + $0x228] sm:$0xff]   ;;  %v1309_v23 = vld [vmem:[%s1626_s1 + $0x230] sm:$0xff]  }
  0x1d   :  { %1114 = vmatpush3.bf16.msra.mxu1 %v1242_v27  ;;  %1087 = vmatprep.subr.bf16.mxu0 %v1243_v28  ;;  %v1301_v15 = vld [vmem:[%s1627_s0 + $0x58] ss:$36 sps:$4 sm:$0xff]   ;;  %v1307_v20 = vld [vmem:[%s1626_s1 + $0x220] sm:$0xff]   ;;  %v1312_v25 = vld [vmem:[%s1627_s0 + $0x68] ss:$36 sps:$4 sm:$0xff]  }
  0x1e   :  { %1115 = vmatprep.subr.bf16.mxu1 %v1244_v29  ;;  %v1306_v19 = vld [vmem:[%s1626_s1 + $0x218] sm:$0xff]   ;;  %v1311_v21 = vld [vmem:[%s1627_s0 + $0x20] ss:$36 sps:$4 sm:$0xff]  }
  0x1f   :  { %v1310_v24 = vld [vmem:[%s1626_s1 + $0x238] sm:$0xff]  }
  0x20   :  { %1088 = vmatpush3.bf16.msra.mxu0 %v1245_v30 }
  0x21   :  { %1116 = vmatpush3.bf16.msra.mxu1 %v1246_v31  ;;  %1129 = vmatprep.subr.bf16.mxu0 %v1253_v36 }
  0x22   :  { %1157 = vmatprep.subr.bf16.mxu1 %v1255_v38 }
  0x23   :  { %739 = vmatmul.mubr.bf16.vlgmr.msra.gmra.mrb[0].mxu0 %v1247_v32 }
  0x24   :  { %788 = vmatmul.mubr.bf16.vlgmr.msra.gmra.mrb[0].mxu1 %v1250_v34  ;;  %1130 = vmatpush3.bf16.msra.mxu0 %v1254_v37 }
  0x25   :  { %1158 = vmatpush3.bf16.msra.mxu1 %v1256_v39  ;;  %1131 = vmatprep.subr.bf16.mxu0 %v1257_v40 }
  0x26   :  { %1159 = vmatprep.subr.bf16.mxu1 %v1259_v42  ;;  %746 = vmatprep.mubr.bf16.mxu0 %v1274_v57 }
  0x27   :  { %795 = vmatprep.mubr.bf16.mxu1 %v1276_v58 }
  0x28   :  { %1132 = vmatpush3.bf16.msra.mxu0 %v1258_v41 }
  0x29   :  { %1160 = vmatpush3.bf16.msra.mxu1 %v1260_v43  ;;  %1133 = vmatprep.subr.bf16.mxu0 %v1261_v44 }
  0x2a   :  { %1161 = vmatprep.subr.bf16.mxu1 %v1263_v46 }
  0x2b   :  { %747 = vmatmul.mubr.bf16.gmra.mrb[4].mxu0 %v1279_v60 }
  0x2c   :  { %1134 = vmatpush3.bf16.msra.mxu0 %v1262_v45  ;;  %796 = vmatmul.mubr.bf16.gmra.mrb[4].mxu1 %v1280_v61 }
  0x2d   :  { %1162 = vmatpush3.bf16.msra.mxu1 %v1264_v47  ;;  %1135 = vmatprep.subr.bf16.mxu0 %v1265_v48 }
  0x2e   :  { %1163 = vmatprep.subr.bf16.mxu1 %v1267_v50  ;;  %836 = vmatprep.mubr.bf16.mxu0 %v1292_v8 }
  0x2f   :  { %885 = vmatprep.mubr.bf16.mxu1 %v1297_v12 }
  0x30   :  { %1136 = vmatpush3.bf16.msra.mxu0 %v1266_v49 }
  0x31   :  { %1164 = vmatpush3.bf16.msra.mxu1 %v1268_v51  ;;  %1137 = vmatprep.subr.bf16.mxu0 %v1269_v52 }
  0x32   :  { %1165 = vmatprep.subr.bf16.mxu1 %v1271_v54 }
  0x34   :  { %1138 = vmatpush3.bf16.msra.mxu0 %v1270_v53 }
  0x35   :  { %1166 = vmatpush3.bf16.msra.mxu1 %v1272_v55  ;;  %1139 = vmatprep.subr.bf16.mxu0 %v1273_v56 }
  0x36   :  { %1167 = vmatprep.subr.bf16.mxu1 %v1281_v62 }
  0x38   :  { %1140 = vmatpush3.bf16.msra.mxu0 %v1278_v59 }
  0x39   :  { %1168 = vmatpush3.bf16.msra.mxu1 %v1282_v63  ;;  %1141 = vmatprep.subr.bf16.mxu0 %v1283_v0 }
  0x3a   :  { %1169 = vmatprep.subr.bf16.mxu1 %v1285_v2 }
  0x3c   :  { %1142 = vmatpush3.bf16.msra.mxu0 %v1284_v1 }
  0x3d   :  { %1170 = vmatpush3.bf16.msra.mxu1 %v1286_v3  ;;  %1143 = vmatprep.subr.bf16.mxu0 %v1287_v4 }
  0x3e   :  { %1171 = vmatprep.subr.bf16.mxu1 %v1289_v6 }
  0x40   :  { %1144 = vmatpush3.bf16.msra.mxu0 %v1288_v5 }
  0x41   :  { %1172 = vmatpush3.bf16.msra.mxu1 %v1293_v9  ;;  %1195 = vmatprep.subr.bf16.mxu0 %v1294_v10 }
  0x43   :  { %837 = vmatmul.mubr.bf16.vlgmr.msra.gmra.mrb[8].mxu0 %v1290_v7 }
  0x44   :  { %1196 = vmatpush3.bf16.msra.mxu0 %v1294_v10  ;;  %886 = vmatmul.mubr.bf16.vlgmr.msra.gmra.mrb[8].mxu1 %v1295_v11 }
  0x45   :  { %1197 = vmatprep.subr.bf16.mxu0 %v1298_v13  ;;  %844 = vmatprep.mubr.bf16.mxu0 %v1299_v14 }
  0x46   :  { %893 = vmatprep.mubr.bf16.mxu1 %v1303_v17 }
  0x48   :  { %1198 = vmatpush3.bf16.msra.mxu0 %v1298_v13 }
  0x49   :  { %1199 = vmatprep.subr.bf16.mxu0 %v1302_v16 }
  0x4b   :  { %845 = vmatmul.mubr.bf16.gmra.mrb[12].mxu0 %v1301_v15 }
  0x4c   :  { %1200 = vmatpush3.bf16.msra.mxu0 %v1302_v16  ;;  %894 = vmatmul.mubr.bf16.gmra.mrb[12].mxu1 %v1305_v18 }
  0x4d   :  { %1201 = vmatprep.subr.bf16.mxu0 %v1306_v19  ;;  %1211 = vmatprep.mubr.bf16.mxu0 %v1311_v21 }
  0x50   :  { %1202 = vmatpush3.bf16.msra.mxu0 %v1306_v19 }
  0x51   :  { %1203 = vmatprep.subr.bf16.mxu0 %v1307_v20 }
  0x54   :  { %1204 = vmatpush3.bf16.msra.mxu0 %v1307_v20 }
  0x55   :  { %1205 = vmatprep.subr.bf16.mxu0 %v1308_v22 }
  0x58   :  { %1206 = vmatpush3.bf16.msra.mxu0 %v1308_v22 }
  0x59   :  { %1207 = vmatprep.subr.bf16.mxu0 %v1309_v23 }
  0x5c   :  { %1208 = vmatpush3.bf16.msra.mxu0 %v1309_v23  ;;  %v1071_v23 = vld [vmem:[%s1628_s2] ss:$0 sm:$0xff] }
  0x5d   :  { %1209 = vmatprep.subr.bf16.mxu0 %v1310_v24 }
  0x60   :  { %1210 = vmatpush3.bf16.msra.mxu0 %v1310_v24 }
  0x63   :  { %1212 = vmatmul.mubr.bf16.vlgmr.msra.gmra.mrb[16].mxu0 %v1312_v25 }
  0xf6   :  { %v1089_v26 = vpop.f32.mrb[0].mxu0 }
  0xf7   :  { %v1117_v27 = vpop.f32.mrb[0].mxu1  ;;  %v1090_v28 = vpop.f32.mrb[1].mxu0 }
  0xf8   :  { %v1091_v29 = vadd.f32 %v1090_v28, %v1089_v26  ;;  %v1118_v30 = vpop.f32.mrb[1].mxu1  ;;  %v1092_v31 = vpop.f32.mrb[2].mxu0  ;;  %v1072_v26 = vld [vmem:[%s1629_s3] ss:$0 sm:$0xff] }
  0xf9   :  { %v1119_v32 = vadd.f32 %v1118_v30, %v1117_v27  ;;  %v1120_v33 = vpop.f32.mrb[2].mxu1  ;;  %v1093_v34 = vpop.f32.mrb[3].mxu0 }
  0xfa   :  { %v1094_v35 = vadd.f32 %v1093_v34, %v1092_v31  ;;  %v1121_v36 = vpop.f32.mrb[3].mxu1 }
  0xfb   :  { %v790_v37 = vadd.f32 %v1119_v32, %v1091_v29  ;;  %v1122_v38 = vadd.f32 %v1121_v36, %v1120_v33 }
  0xfd   :  { %v793_v39 = vadd.f32 %v1122_v38, %v1094_v35 }
  0xfe   :  { %v1095_v40 = vpop.f32.mrb[4].mxu0 }
  0xff   :  { %v1123_v41 = vpop.f32.mrb[4].mxu1  ;;  %v1096_v42 = vpop.f32.mrb[5].mxu0 }
 0x100   :  { %v1124_v43 = vpop.f32.mrb[5].mxu1  ;;  %v1097_v44 = vadd.f32 %v1096_v42, %v1095_v40  ;;  %v1098_v46 = vpop.f32.mrb[6].mxu0 }
 0x101   :  { %v1125_v45 = vadd.f32 %v1124_v43, %v1123_v41  ;;  %v1126_v47 = vpop.f32.mrb[6].mxu1  ;;  %v1099_v48 = vpop.f32.mrb[7].mxu0 }
 0x102   :  { %v1127_v49 = vpop.f32.mrb[7].mxu1  ;;  %v1100_v51 = vadd.f32 %v1099_v48, %v1098_v46 }
 0x103   :  { %v798_v50 = vadd.f32 %v1125_v45, %v1097_v44  ;;  %v1128_v52 = vadd.f32 %v1127_v49, %v1126_v47 }
 0x105   :  { %v801_v53 = vadd.f32 %v1128_v52, %v1100_v51 }
 0x116   :  { %v1145_v54 = vpop.f32.mrb[8].mxu0 }
 0x117   :  { %v1146_v55 = vpop.f32.mrb[9].mxu0  ;;  %v1173_v58 = vpop.f32.mrb[8].mxu1 }
 0x118   :  { %v1147_v56 = vadd.f32 %v1146_v55, %v1145_v54  ;;  %v1148_v57 = vpop.f32.mrb[10].mxu0  ;;  %v1174_v62 = vpop.f32.mrb[9].mxu1 }
 0x119   :  { %v1149_v59 = vpop.f32.mrb[11].mxu0  ;;  %v1175_v63 = vadd.f32 %v1174_v62, %v1173_v58  ;;  %v1176_v0 = vpop.f32.mrb[10].mxu1 }
 0x11a   :  { %v839_v60 = vadd.f32 %v1147_v56, %v790_v37  ;;  %v1150_v61 = vadd.f32 %v1149_v59, %v1148_v57  ;;  %v1177_v2 = vpop.f32.mrb[11].mxu1 }
 0x11b   :  { %v1178_v3 = vadd.f32 %v1177_v2, %v1176_v0 }
 0x11c   :  { %v842_v1 = vadd.f32 %v1150_v61, %v793_v39  ;;  %v888_v4 = vadd.f32 %v1175_v63, %v839_v60 }
 0x11e   :  { %v1151_v5 = vpop.f32.mrb[12].mxu0  ;;  %v891_v7 = vadd.f32 %v1178_v3, %v842_v1 }
 0x11f   :  { %v1152_v6 = vpop.f32.mrb[13].mxu0  ;;  %v1179_v10 = vpop.f32.mrb[12].mxu1 }
 0x120   :  { %v1153_v8 = vadd.f32 %v1152_v6, %v1151_v5  ;;  %v1154_v9 = vpop.f32.mrb[14].mxu0  ;;  %v1180_v14 = vpop.f32.mrb[13].mxu1 }
 0x121   :  { %v1155_v11 = vpop.f32.mrb[15].mxu0  ;;  %v1181_v15 = vadd.f32 %v1180_v14, %v1179_v10  ;;  %v1182_v16 = vpop.f32.mrb[14].mxu1 }
 0x122   :  { %v847_v12 = vadd.f32 %v1153_v8, %v798_v50  ;;  %v1156_v13 = vadd.f32 %v1155_v11, %v1154_v9  ;;  %v1183_v18 = vpop.f32.mrb[15].mxu1 }
 0x123   :  { %v1184_v19 = vadd.f32 %v1183_v18, %v1182_v16 }
 0x124   :  { %v850_v17 = vadd.f32 %v1156_v13, %v801_v53  ;;  %v896_v20 = vadd.f32 %v1181_v15, %v847_v12 }
 0x126   :  { %v899_v21 = vadd.f32 %v1184_v19, %v850_v17 }
 0x136   :  { %v1213_v22 = vpop.f32.mrb[16].mxu0 }
 0x137   :  { %v945_v24 = vadd.f32 %v1213_v22, %v896_v20  ;;  %v936_v25 = vpop.f32.mrb[17].mxu0 }
 0x138   :  { %v937_v27 = vadd.f32 %v936_v25, %v888_v4  ;;  %v1214_v28 = vpop.f32.mrb[18].mxu0 }
 0x139   :  { %v960_v29 = vmul.f32 %v1071_v23, %v945_v24  ;;  %v948_v30 = vadd.f32 %v1214_v28, %v899_v21  ;;  %v939_v31 = vpop.f32.mrb[19].mxu0 }
 0x13a   :  { %v958_v32 = vmul.f32 %v1071_v23, %v937_v27  ;;  %v940_v33 = vadd.f32 %v939_v31, %v891_v7 }
 0x13b   :  { %v971_v34 = vadd.f32 %v1072_v26, %v960_v29  ;;  %v961_v35 = vmul.f32 %v1071_v23, %v948_v30 }
 0x13c   :  { %v969_v36 = vadd.f32 %v1072_v26, %v958_v32  ;;  %v959_v37 = vmul.f32 %v1071_v23, %v940_v33 }
 0x13d   :  { %975 = vst [vmem:[%s1630_s4 + $0x10] sm:$0xff] %v971_v34  ;;  %v972_v38 = vadd.f32 %v1072_v26, %v961_v35 }
 0x13e   :  { %973 = vst [vmem:[%s1630_s4] sm:$0xff] %v969_v36  ;;  %v970_v39 = vadd.f32 %v1072_v26, %v959_v37 }
 0x13f   :  { %976 = vst [vmem:[%s1630_s4 + $0x18] sm:$0xff] %v972_v38 }
 0x140   :  { %974 = vst [vmem:[%s1630_s4 + $0x8] sm:$0xff] %v970_v39 }

// kernel: dyn_diff_pool_forward.25
= control target key start
LH: loop header
LB: loop body
LE: loop exit
PB: predicated region body
PF: predicated region fallthrough
CT: control target
= control target key end

     0   :  { %v186_v10 = vlaneseq  ;;  %vm197_vm0 = vcmask 130112   ;;  %vm232_vm1 = vcmask 130048   ;;  %s305_s0 = inlined_call_operand.vmem [shape: f32[2,16,128], index: 0, kind: input, shape index: {}]   ;;  %s306_s1 = inlined_call_operand.vmem [shape: f32[2,16,16], index: 1, kind: output, shape index: {}]  }
   0x1   :  { %v8_v0 = vld [vmem:[%s305_s0] sm:$0xff]  ;;  %v9_v1 = vld [vmem:[%s305_s0 + $0x8] sm:$0xff]  ;;  %v10_v2 = vld [vmem:[%s305_s0 + $0x10] sm:$0xff] }
   0x2   :  { %v263_v3 = vpack.c.bf16 %v9_v1, %v8_v0  ;;  %v11_v4 = vld [vmem:[%s305_s0 + $0x18] sm:$0xff]  ;;  %253 = vmatprep.mubr.f32.mxu0 %v8_v0  ;;  %260 = vmatprep.mubr.f32.mxu1 %v10_v2  ;;  %v164_v5 = vmul.f32 %v10_v2, %v10_v2  ;;  %v162_v6 = vmul.f32 %v8_v0, %v8_v0  ;;  %v187_v11 = vand.u32 127, %v186_v10 }
   0x3   :  { %v267_v7 = vpack.c.bf16 %v11_v4, %v10_v2  ;;  %v165_v8 = vmul.f32 %v11_v4, %v11_v4  ;;  %v163_v9 = vmul.f32 %v9_v1, %v9_v1  ;;  %v189_v13 = vshrl.u32 %v186_v10, 7 }
   0x4   :  { %264 = vmatprep.subr.bf16.mxu0 %v263_v3  ;;  %170 = vadd.xlane.f32.xlu1 %v164_v5  ;;  %v192_v15 = vadd.s32 4294967288, %v187_v11 }
   0x5   :  { %268 = vmatprep.subr.bf16.mxu1 %v267_v7  ;;  %266 = vmatpush3.bf16.xpose.msra.mxu0 %v263_v3  ;;  %v190_v16 = vsub.s32 %v187_v11, %v189_v13 }
   0x6   :  { %270 = vmatpush3.bf16.xpose.msra.mxu1 %v267_v7  ;;  %166 = vadd.xlane.f32.xlu0 %v162_v6  ;;  %v195_v17 = vsub.s32 %v192_v15, %v189_v13 }
   0x8   :  { %172 = vadd.xlane.f32.xlu1 %v165_v8 }
   0xa   :  { %168 = vadd.xlane.f32.xlu0 %v163_v9 }
   0xc   :  { %254 = vmatmul.mubr.f32.vlgmr.msra.gmra.mrb[0].mxu0 %v9_v1 }
   0xd   :  { %261 = vmatmul.mubr.f32.vlgmr.msra.gmra.mrb[0].mxu1 %v11_v4 }
  0x91   :  { %v171_v14 = vpop.xlane.xlu1 %170 }
  0x92   :  { %v202_v23 = vrot.slane %v171_v14, %v190_v16 }
  0x93   :  { %v167_v12 = vpop.xlane.xlu0 %166 }
  0x94   :  { %v191_v20 = vrot.slane %v167_v12, %v190_v16 }
  0x95   :  { %v173_v19 = vpop.xlane.xlu1 %172 }
  0x96   :  { %v206_v24 = vrot.slane %v173_v19, %v195_v17 }
  0x97   :  { %v169_v18 = vpop.xlane.xlu0 %168 }
  0x98   :  { %v196_v21 = vrot.slane %v169_v18, %v195_v17  ;;  %v207_v36 = vsel %vm197_vm0, %v206_v24, %v202_v23 }
  0x9a   :  { %v198_v33 = vsel %vm197_vm0, %v196_v21, %v191_v20 }
  0xdf   :  { %v255_v22 = vpop.f32.mrb[0].mxu0 }
  0xe0   :  { %v175_v25 = vmul.f32 2.0, %v255_v22  ;;  %v262_v26 = vpop.f32.mrb[0].mxu1  ;;  %v78_v27 = vpop.f32.mrb[1].mxu0 }
  0xe1   :  { %v177_v28 = vmul.f32 2.0, %v262_v26  ;;  %v174_v29 = vmul.f32 2.0, %v78_v27  ;;  %v153_v30 = vpop.f32.mrb[1].mxu1 }
  0xe2   :  { %v179_v31 = vsub.f32 %v175_v25, %v169_v18  ;;  %v176_v32 = vmul.f32 2.0, %v153_v30 }
  0xe3   :  { %v181_v34 = vsub.f32 %v177_v28, %v173_v19  ;;  %v178_v35 = vsub.f32 %v174_v29, %v167_v12 }
  0xe4   :  { %v229_v37 = vsub.f32 %v179_v31, %v198_v33  ;;  %v180_v38 = vsub.f32 %v176_v32, %v171_v14 }
  0xe5   :  { %v231_v39 = vsub.f32 %v181_v34, %v207_v36  ;;  %v228_v40 = vsub.f32 %v178_v35, %v198_v33 }
  0xe6   :  { %234 = vst.msk [vmem:[%s306_s1 + $0x8] sm:$0xff] %vm232_vm1, %v229_v37  ;;  %v230_v41 = vsub.f32 %v180_v38, %v207_v36 }
  0xe7   :  { %236 = vst.msk [vmem:[%s306_s1 + $0x18] sm:$0xff] %vm232_vm1, %v231_v39  ;;  %233 = vst.msk [vmem:[%s306_s1] sm:$0xff] %vm232_vm1, %v228_v40 }
  0xe8   :  { %235 = vst.msk [vmem:[%s306_s1 + $0x10] sm:$0xff] %vm232_vm1, %v230_v41 }

// kernel: dyn_diff_pool_forward.26
= control target key start
LH: loop header
LB: loop body
LE: loop exit
PB: predicated region body
PF: predicated region fallthrough
CT: control target
= control target key end

     0   :  { %s2001_s21 = smov 0   ;;  %s2427_s0 = inlined_call_operand.vmem [shape: bf16[2,16,128], index: 0, kind: input, shape index: {}]   ;;  %s2428_s1 = inlined_call_operand.vmem [shape: s32[2,16,16], index: 1, kind: input, shape index: {}]   ;;  %s2429_s2 = inlined_call_operand.vmem [shape: bf16[128,64], index: 2, kind: input, shape index: {}]   ;;  %s2430_s3 = inlined_call_operand.vmem [shape: bf16[128,64], index: 3, kind: input, shape index: {}]   ;;  %s2431_s4 = inlined_call_operand.vmem [shape: f32[1,64], index: 4, kind: input, shape index: {}]   ;;  %s2432_s5 = inlined_call_operand.vmem [shape: f32[1,64], index: 5, kind: input, shape index: {}]   ;;  %s2433_s6 = inlined_call_operand.vmem [shape: f32[2,16,64], index: 6, kind: output, shape index: {}]  }
   0x1 LB: > { %s1680_s22 = sadd.s32 4294967295, %s1961_s21   ;;  %p1684_p0 = scmp.ge.s32.totalorder %s1961_s21, 1  ;;  %s1961_s21 = sphi %s2001_s21, %s16_s21  }
   0x2   : > { %p222_p1 = scmp.lt.s32.totalorder %s1961_s21, 3 }
   0x4   : > { %p223_p2 = pnand %p1684_p0, %p222_p1 }
   0x5   : > { %v1938_v0 = vld [vmem:[%s2429_s2] sm:$0xff] (!%p223_p2)   ;;  %v493_v1 = vlaneseq (!%p223_p2)  ;;  %v1963_v2 = vmov (!%p223_p2), 0.0   ;;  %v1939_v3 = vld [vmem:[%s2429_s2 + $0x8] sm:$0xff] (!%p223_p2)   ;;  %vm1964_vm0 = vmmov (!%p223_p2), 0   ;;  %p257_p3 = scmp.lt.s32.totalorder (!%p223_p2), %s1680_s22, 1  ;;  %v1940_v5 = vld [vmem:[%s2429_s2 + $0x10] sm:$0xff] (!%p223_p2)  }
   0x6   : > { %226 = sbr.rel (%p223_p2) target bundleno = 601 (0x259), region = 44  ;;  %1831 = vmatprep.subr.bf16.mxu1 (!%p223_p2), %v1963_v2  ;;  %1847 = vmatprep.mubr.msk.bf16.mxu1 (!%p223_p2), %vm1964_vm0, %v1963_v2  ;;  %v1941_v9 = vld [vmem:[%s2429_s2 + $0x18] sm:$0xff] (!%p223_p2)   ;;  %v1942_v13 = vld [vmem:[%s2429_s2 + $0x20] sm:$0xff] (!%p223_p2)   ;;  %v1943_v16 = vld [vmem:[%s2429_s2 + $0x28] sm:$0xff] (!%p223_p2)   ;;  %vm767_vm2 = vcmask (!%p223_p2), 130048  }
   0x7   : > { %1832 = vmatpush3.bf16.msra.mxu1 (!%p223_p2), %v1938_v0  ;;  %v2020_v4 = vshrl.u32 (!%p223_p2), %v493_v1, 7  ;;  %v1944_v19 = vld [vmem:[%s2429_s2 + $0x30] sm:$0xff] (!%p223_p2)   ;;  %v1945_v22 = vld [vmem:[%s2429_s2 + $0x38] sm:$0xff] (!%p223_p2)   ;;  %v1947_v26 = vld [vmem:[%s2430_s3] sm:$0xff] (!%p223_p2)   ;;  %v2120_v46 = vand.u32 (!%p223_p2), 127, %v493_v1 }
   0x8   : > { %1833 = vmatprep.subr.bf16.mxu1 (!%p223_p2), %v1963_v2  ;;  %v1948_v29 = vld [vmem:[%s2430_s3 + $0x8] sm:$0xff] (!%p223_p2)   ;;  %v1949_v32 = vld [vmem:[%s2430_s3 + $0x10] sm:$0xff] (!%p223_p2)   ;;  %v1950_v34 = vld [vmem:[%s2430_s3 + $0x18] sm:$0xff] (!%p223_p2)  }
   0x9   : > { %v2029_v6 = vsub.s32 (!%p223_p2), 0, %v2020_v4  ;;  %v506_v8 = vsub.s32 (!%p223_p2), 1, %v2020_v4  ;;  %v517_v12 = vsub.s32 (!%p223_p2), 2, %v2020_v4  ;;  %v528_v15 = vsub.s32 (!%p223_p2), 3, %v2020_v4  ;;  %v1951_v36 = vld [vmem:[%s2430_s3 + $0x20] sm:$0xff] (!%p223_p2)   ;;  %v1952_v38 = vld [vmem:[%s2430_s3 + $0x28] sm:$0xff] (!%p223_p2)  }
   0xa   : > { %v539_v18 = vsub.s32 (!%p223_p2), 4, %v2020_v4  ;;  %v550_v21 = vsub.s32 (!%p223_p2), 5, %v2020_v4  ;;  %v561_v24 = vsub.s32 (!%p223_p2), 6, %v2020_v4  ;;  %v572_v28 = vsub.s32 (!%p223_p2), 7, %v2020_v4  ;;  %v1953_v40 = vld [vmem:[%s2430_s3 + $0x30] sm:$0xff] (!%p223_p2)   ;;  %v1954_v42 = vld [vmem:[%s2430_s3 + $0x38] sm:$0xff] (!%p223_p2)  }
   0xb   : > { %1834 = vmatpush3.bf16.msra.mxu1 (!%p223_p2), %v1939_v3 }
   0xc   : > { %1835 = vmatprep.subr.bf16.mxu1 (!%p223_p2), %v1963_v2 }
   0xd   : > { %s2435_s22 = smov (!%p257_p3, %s1680_s22), 1 }
   0xe   : > { %s1776_s29 = sshll.u32 %s2435_s22, 3  ;;  %s1777_s9 = sshll.u32 %s2435_s22, 4 }
   0xf   : > { %s2035_s8 = scalar_lea.vmem %s2427_s0, %s1776_s29  ;;  %s2043_s12 = scalar_lea.vmem %s2428_s1, %s1777_s9  ;;  %1836 = vmatpush3.bf16.msra.mxu1 %v1940_v5 }
  0x10   : > { %v491_v7 = vld [vmem:[%s2043_s12] sm:$0xff]  ;;  %1837 = vmatprep.subr.bf16.mxu1 %v1963_v2  ;;  %v492_v31 = vld [vmem:[%s2043_s12 + $0x8] sm:$0xff]  ;;  %s2378_s26 = scalar_lea.vmem %s2433_s6, %s1777_s9 }
  0x11   : > { %v496_v10 = vrot.slane %v491_v7, %v2029_v6  ;;  %v507_v11 = vrot.slane %v491_v7, %v506_v8  ;;  %v518_v14 = vrot.slane %v491_v7, %v517_v12  ;;  %v529_v17 = vrot.slane %v491_v7, %v528_v15  ;;  %v1946_v25 = vld [vmem:[%s2035_s8] sm:$0xff]  }
  0x12   : > { %v540_v20 = vrot.slane %v491_v7, %v539_v18  ;;  %v551_v23 = vrot.slane %v491_v7, %v550_v21  ;;  %v562_v27 = vrot.slane %v491_v7, %v561_v24  ;;  %v573_v30 = vrot.slane %v491_v7, %v572_v28 }
  0x13   : > { %498 = vbcast.lane.b32.xlu0 %v496_v10, 256  ;;  %509 = vbcast.lane.b32.xlu1 %v507_v11, 256  ;;  %v584_v33 = vrot.slane %v492_v31, %v2029_v6  ;;  %v595_v35 = vrot.slane %v492_v31, %v506_v8  ;;  %v606_v37 = vrot.slane %v492_v31, %v517_v12 }
  0x14   : > { %1838 = vmatpush3.bf16.msra.mxu1 %v1941_v9  ;;  %v617_v39 = vrot.slane %v492_v31, %v528_v15  ;;  %v628_v41 = vrot.slane %v492_v31, %v539_v18  ;;  %v639_v43 = vrot.slane %v492_v31, %v550_v21  ;;  %v650_v44 = vrot.slane %v492_v31, %v561_v24 }
  0x15   : > { %1839 = vmatprep.subr.bf16.mxu1 %v1963_v2  ;;  %v661_v45 = vrot.slane %v492_v31, %v572_v28 }
  0x17   : > { %502 = vbcast.lane.b32.xlu0 %v496_v10, 264  ;;  %513 = vbcast.lane.b32.xlu1 %v507_v11, 264 }
  0x18   : > { %1840 = vmatpush3.bf16.msra.mxu1 %v1942_v13 }
  0x19   : > { %1841 = vmatprep.subr.bf16.mxu1 %v1963_v2 }
  0x1b   : > { %520 = vbcast.lane.b32.xlu0 %v518_v14, 256  ;;  %524 = vbcast.lane.b32.xlu1 %v518_v14, 264 }
  0x1c   : > { %1842 = vmatpush3.bf16.msra.mxu1 %v1943_v16 }
  0x1d   : > { %1843 = vmatprep.subr.bf16.mxu1 %v1963_v2 }
  0x1f   : > { %531 = vbcast.lane.b32.xlu0 %v529_v17, 256  ;;  %535 = vbcast.lane.b32.xlu1 %v529_v17, 264 }
  0x20   : > { %1844 = vmatpush3.bf16.msra.mxu1 %v1944_v19 }
  0x21   : > { %1845 = vmatprep.subr.bf16.mxu1 %v1963_v2 }
  0x23   : > { %542 = vbcast.lane.b32.xlu0 %v540_v20, 256  ;;  %546 = vbcast.lane.b32.xlu1 %v540_v20, 264 }
  0x24   : > { %1846 = vmatpush3.bf16.msra.mxu1 %v1945_v22 }
  0x25   : > { %1851 = vmatprep.subr.bf16.mxu1 %v1963_v2 }
  0x27   : > { %553 = vbcast.lane.b32.xlu0 %v551_v23, 256  ;;  %1848 = vmatmul.mubr.bf16.vlgmr.msra.gmra.mrb[0].mxu1 %v1946_v25 }
  0x28   : > { %557 = vbcast.lane.b32.xlu1 %v551_v23, 264  ;;  %1852 = vmatpush3.bf16.msra.mxu1 %v1947_v26 }
  0x29   : > { %1867 = vmatprep.mubr.msk.bf16.mxu1 %vm1964_vm0, %v1963_v2  ;;  %1853 = vmatprep.subr.bf16.mxu1 %v1963_v2 }
  0x2b   : > { %564 = vbcast.lane.b32.xlu0 %v562_v27, 256 }
  0x2c   : > { %568 = vbcast.lane.b32.xlu1 %v562_v27, 264  ;;  %1854 = vmatpush3.bf16.msra.mxu1 %v1948_v29 }
  0x2d   : > { %1855 = vmatprep.subr.bf16.mxu1 %v1963_v2 }
  0x2f   : > { %575 = vbcast.lane.b32.xlu0 %v573_v30, 256 }
  0x30   : > { %579 = vbcast.lane.b32.xlu1 %v573_v30, 264  ;;  %1856 = vmatpush3.bf16.msra.mxu1 %v1949_v32 }
  0x31   : > { %1857 = vmatprep.subr.bf16.mxu1 %v1963_v2 }
  0x33   : > { %586 = vbcast.lane.b32.xlu0 %v584_v33, 256 }
  0x34   : > { %590 = vbcast.lane.b32.xlu1 %v584_v33, 264  ;;  %1858 = vmatpush3.bf16.msra.mxu1 %v1950_v34 }
  0x35   : > { %1859 = vmatprep.subr.bf16.mxu1 %v1963_v2 }
  0x37   : > { %597 = vbcast.lane.b32.xlu0 %v595_v35, 256 }
  0x38   : > { %601 = vbcast.lane.b32.xlu1 %v595_v35, 264  ;;  %1860 = vmatpush3.bf16.msra.mxu1 %v1951_v36 }
  0x39   : > { %1861 = vmatprep.subr.bf16.mxu1 %v1963_v2 }
  0x3b   : > { %608 = vbcast.lane.b32.xlu0 %v606_v37, 256 }
  0x3c   : > { %612 = vbcast.lane.b32.xlu1 %v606_v37, 264  ;;  %1862 = vmatpush3.bf16.msra.mxu1 %v1952_v38 }
  0x3d   : > { %1863 = vmatprep.subr.bf16.mxu1 %v1963_v2 }
  0x3f   : > { %619 = vbcast.lane.b32.xlu0 %v617_v39, 256 }
  0x40   : > { %623 = vbcast.lane.b32.xlu1 %v617_v39, 264  ;;  %1864 = vmatpush3.bf16.msra.mxu1 %v1953_v40 }
  0x41   : > { %1865 = vmatprep.subr.bf16.mxu1 %v1963_v2 }
  0x43   : > { %630 = vbcast.lane.b32.xlu0 %v628_v41, 256 }
  0x44   : > { %634 = vbcast.lane.b32.xlu1 %v628_v41, 264  ;;  %1866 = vmatpush3.bf16.msra.mxu1 %v1954_v42 }
  0x47   : > { %641 = vbcast.lane.b32.xlu0 %v639_v43, 256  ;;  %1868 = vmatmul.mubr.bf16.vlgmr.msra.gmra.mrb[4].mxu1 %v1946_v25 }
  0x48   : > { %645 = vbcast.lane.b32.xlu1 %v639_v43, 264 }
  0x4b   : > { %652 = vbcast.lane.b32.xlu0 %v650_v44, 256 }
  0x4c   : > { %656 = vbcast.lane.b32.xlu1 %v650_v44, 264 }
  0x4f   : > { %663 = vbcast.lane.b32.xlu0 %v661_v45, 256 }
  0x50   : > { %667 = vbcast.lane.b32.xlu1 %v661_v45, 264 }
  0x85   : > { %v499_v47 = vpop.permute.xlu0 %498  ;;  %v510_v52 = vpop.permute.xlu1 %509 }
  0x86   : > { %vm671_vm1 = vcmp.eq.s32.totalorder %v499_v47, %v2120_v46  ;;  %vm673_vm4 = vcmp.eq.s32.totalorder %v510_v52, %v2120_v46 }
  0x87   : > { %v1708_v48 = vsel %vm671_vm1, 1.0, %v1963_v2  ;;  %v1710_v11 = vsel %vm673_vm4, 1.0, %v1963_v2 }
  0x88   : > { %1875 = vmatprep.mubr.msk.f32.mxu0 %vm767_vm2, %v1708_v48 }
  0x89   : > { %v503_v54 = vpop.permute.xlu0 %502  ;;  %v514_v55 = vpop.permute.xlu1 %513 }
  0x8a   : > { %vm672_vm3 = vcmp.eq.s32.totalorder %v503_v54, %v2120_v46  ;;  %vm674_vm5 = vcmp.eq.s32.totalorder %v514_v55, %v2120_v46 }
  0x8b   : > { %v1709_v9 = vsel %vm672_vm3, 1.0, %v1963_v2  ;;  %v1711_v13 = vsel %vm674_vm5, 1.0, %v1963_v2 }
  0x8d   : > { %v521_v56 = vpop.permute.xlu0 %520  ;;  %v525_v57 = vpop.permute.xlu1 %524 }
  0x8e   : > { %vm675_vm6 = vcmp.eq.s32.totalorder %v521_v56, %v2120_v46  ;;  %vm676_vm7 = vcmp.eq.s32.totalorder %v525_v57, %v2120_v46 }
  0x8f   : > { %v1712_v14 = vsel %vm675_vm6, 1.0, %v1963_v2  ;;  %v1713_v16 = vsel %vm676_vm7, 1.0, %v1963_v2 }
  0x91   : > { %v532_v58 = vpop.permute.xlu0 %531  ;;  %v536_v59 = vpop.permute.xlu1 %535 }
  0x92   : > { %vm677_vm8 = vcmp.eq.s32.totalorder %v532_v58, %v2120_v46  ;;  %vm678_vm9 = vcmp.eq.s32.totalorder %v536_v59, %v2120_v46 }
  0x93   : > { %v1714_v17 = vsel %vm677_vm8, 1.0, %v1963_v2  ;;  %v1715_v19 = vsel %vm678_vm9, 1.0, %v1963_v2 }
  0x95   : > { %v543_v60 = vpop.permute.xlu0 %542  ;;  %v547_v61 = vpop.permute.xlu1 %546 }
  0x96   : > { %vm679_vm10 = vcmp.eq.s32.totalorder %v543_v60, %v2120_v46  ;;  %vm680_vm11 = vcmp.eq.s32.totalorder %v547_v61, %v2120_v46 }
  0x97   : > { %v1716_v21 = vsel %vm679_vm10, 1.0, %v1963_v2  ;;  %v1717_v23 = vsel %vm680_vm11, 1.0, %v1963_v2 }
  0x99   : > { %v554_v62 = vpop.permute.xlu0 %553 }
  0x9a   : > { %v558_v0 = vpop.permute.xlu1 %557  ;;  %vm681_vm12 = vcmp.eq.s32.totalorder %v554_v62, %v2120_v46  ;;  %v1965_v62 = vmov 1966171168  }
  0x9b   : > { %v1718_v24 = vsel %vm681_vm12, 1.0, %v1963_v2  ;;  %vm682_vm13 = vcmp.eq.s32.totalorder %v558_v0, %v2120_v46 }
  0x9c   : > { %v1719_v26 = vsel %vm682_vm13, 1.0, %v1963_v2 }
  0x9d   : > { %v565_v8 = vpop.permute.xlu0 %564 }
  0x9e   : > { %v569_v10 = vpop.permute.xlu1 %568  ;;  %vm683_vm14 = vcmp.eq.s32.totalorder %v565_v8, %v2120_v46 }
  0x9f   : > { %v1720_v27 = vsel %vm683_vm14, 1.0, %v1963_v2  ;;  %vm684_vm15 = vcmp.eq.s32.totalorder %v569_v10, %v2120_v46 }
  0xa0   : > { %v1721_v29 = vsel %vm684_vm15, 1.0, %v1963_v2 }
  0xa1   : > { %v576_v12 = vpop.permute.xlu0 %575 }
  0xa2   : > { %v580_v15 = vpop.permute.xlu1 %579  ;;  %vm685_vm0 = vcmp.eq.s32.totalorder %v576_v12, %v2120_v46 }
  0xa3   : > { %v1722_v31 = vsel %vm685_vm0, 1.0, %v1963_v2  ;;  %vm686_vm1 = vcmp.eq.s32.totalorder %v580_v15, %v2120_v46 }
  0xa4   : > { %v1723_v33 = vsel %vm686_vm1, 1.0, %v1963_v2 }
  0xa5   : > { %v587_v18 = vpop.permute.xlu0 %586 }
  0xa6   : > { %v591_v20 = vpop.permute.xlu1 %590  ;;  %vm687_vm3 = vcmp.eq.s32.totalorder %v587_v18, %v2120_v46 }
  0xa7   : > { %v1724_v34 = vsel %vm687_vm3, 1.0, %v1963_v2  ;;  %vm688_vm4 = vcmp.eq.s32.totalorder %v591_v20, %v2120_v46 }
  0xa8   : > { %v1725_v36 = vsel %vm688_vm4, 1.0, %v1963_v2  ;;  %vm1588_vm4 = vcmask 1041409  }
  0xa9   : > { %v598_v22 = vpop.permute.xlu0 %597 }
  0xaa   : > { %v602_v25 = vpop.permute.xlu1 %601  ;;  %vm689_vm5 = vcmp.eq.s32.totalorder %v598_v22, %v2120_v46 }
  0xab   : > { %v1726_v37 = vsel %vm689_vm5, 1.0, %v1963_v2  ;;  %vm690_vm6 = vcmp.eq.s32.totalorder %v602_v25, %v2120_v46  ;;  %vm1590_vm5 = vcmask 1042434  }
  0xac   : > { %v1727_v39 = vsel %vm690_vm6, 1.0, %v1963_v2  ;;  %vm1592_vm6 = vcmask 1043459  }
  0xad   : > { %v609_v28 = vpop.permute.xlu0 %608 }
  0xae   : > { %v613_v30 = vpop.permute.xlu1 %612  ;;  %vm691_vm7 = vcmp.eq.s32.totalorder %v609_v28, %v2120_v46 }
  0xaf   : > { %v1728_v41 = vsel %vm691_vm7, 1.0, %v1963_v2  ;;  %vm692_vm8 = vcmp.eq.s32.totalorder %v613_v30, %v2120_v46  ;;  %vm1594_vm7 = vcmask 1044484  }
  0xb0   : > { %v1729_v43 = vsel %vm692_vm8, 1.0, %v1963_v2  ;;  %vm1596_vm8 = vcmask 1045509  }
  0xb1   : > { %v620_v32 = vpop.permute.xlu0 %619 }
  0xb2   : > { %v624_v35 = vpop.permute.xlu1 %623  ;;  %vm693_vm9 = vcmp.eq.s32.totalorder %v620_v32, %v2120_v46 }
  0xb3   : > { %v1730_v44 = vsel %vm693_vm9, 1.0, %v1963_v2  ;;  %vm694_vm10 = vcmp.eq.s32.totalorder %v624_v35, %v2120_v46  ;;  %vm1598_vm9 = vcmask 1046534  }
  0xb4   : > { %v1731_v47 = vsel %vm694_vm10, 1.0, %v1963_v2  ;;  %vm1600_vm10 = vcmask 1047559  }
  0xb5   : > { %v631_v38 = vpop.permute.xlu0 %630 }
  0xb6   : > { %v635_v40 = vpop.permute.xlu1 %634  ;;  %vm695_vm11 = vcmp.eq.s32.totalorder %v631_v38, %v2120_v46 }
  0xb7   : > { %v1732_v48 = vsel %vm695_vm11, 1.0, %v1963_v2  ;;  %vm696_vm12 = vcmp.eq.s32.totalorder %v635_v40, %v2120_v46 }
  0xb8   : > { %v1733_v52 = vsel %vm696_vm12, 1.0, %v1963_v2 }
  0xb9   : > { %v642_v42 = vpop.permute.xlu0 %641 }
  0xba   : > { %v646_v45 = vpop.permute.xlu1 %645  ;;  %vm697_vm13 = vcmp.eq.s32.totalorder %v642_v42, %v2120_v46 }
  0xbb   : > { %v1734_v54 = vsel %vm697_vm13, 1.0, %v1963_v2  ;;  %vm698_vm14 = vcmp.eq.s32.totalorder %v646_v45, %v2120_v46 }
  0xbc   : > { %v1735_v56 = vsel %vm698_vm14, 1.0, %v1963_v2 }
  0xfa   : > { %v2125_v49 = vpop.f32.mrb[0].mxu1 }
  0xfb   : > { %v1849_v50 = vpop.f32.mrb[1].mxu1 }
  0xfc   : > { %v2127_v51 = vpop.f32.mrb[2].mxu1  ;;  %v653_v50 = vpop.permute.xlu0 %652 }
  0xfd   : > { %v1850_v53 = vpop.f32.mrb[3].mxu1  ;;  %vm699_vm15 = vcmp.eq.s32.totalorder %v653_v50, %v2120_v46 }
  0xfe   : > { %v657_v53 = vpop.permute.xlu1 %656  ;;  %v1736_v57 = vsel %vm699_vm15, 1.0, %v1963_v2 }
  0xff   : > { %vm700_vm0 = vcmp.eq.s32.totalorder %v657_v53, %v2120_v46 }
 0x100   : > { %v664_v55 = vpop.permute.xlu0 %663  ;;  %v1737_v59 = vsel %vm700_vm0, 1.0, %v1963_v2 }
 0x101   : > { %vm701_vm1 = vcmp.eq.s32.totalorder %v664_v55, %v2120_v46 }
 0x102   : > { %v668_v58 = vpop.permute.xlu1 %667  ;;  %v1738_v60 = vsel %vm701_vm1, 1.0, %v1963_v2 }
 0x103   : > { %vm702_vm3 = vcmp.eq.s32.totalorder %v668_v58, %v2120_v46 }
 0x104   : > { %v1739_v61 = vsel %vm702_vm3, 1.0, %v1963_v2  ;;  %v1140_v2 = vcombine.high %v2127_v51, %v2127_v51 }
 0x11a   : > { %v484_v63 = vpop.f32.mrb[4].mxu1 }
 0x11b   : > { %v1869_v1 = vpop.f32.mrb[5].mxu1 }
 0x11c   : > { %v487_v3 = vpop.f32.mrb[6].mxu1 }
 0x11d   : > { %v1923_v5 = vpack.c.bf16 %v487_v3, %v484_v63  ;;  %v1870_v7 = vpop.f32.mrb[7].mxu1  ;;  %v1093_v63 = vunpack.c.l.s4 %v1965_v62  ;;  %v1091_v3 = vcombine.high %v2125_v49, %v2125_v49 }
 0x11f   : > { %1924 = vmatprep.subr.bf16.mxu0 %v1923_v5  ;;  %v1094_v0 = vunpack.c.0.s8 %v1093_v63 }
 0x120   : > { %1926 = vmatpush3.bf16.msra.mxu0 %v1923_v5 }
 0x121   : > { %v1097_v1 = vsub.s32 %v1094_v0, %v2020_v4 }
 0x123   : > { %1876 = vmatmul.mubr.msk.f32.vlgmr.msra.gmra.mrb[0].mxu0 %vm767_vm2, %v1709_v9  ;;  %v1098_v5 = vrot.slane %v2125_v49, %v1097_v1  ;;  %v1105_v7 = vrot.slane %v1091_v3, %v1097_v1  ;;  %v1147_v10 = vrot.slane %v2127_v51, %v1097_v1  ;;  %v2233_v49 = vld [vmem:[%s2431_s4] ss:$0 sm:$0xff] }
 0x124   : > { %1878 = vmatprep.mubr.msk.f32.mxu0 %vm767_vm2, %v1710_v11 }
 0x125   : > { %v1106_v46 = vcombine.high %v1098_v5, %v1098_v5  ;;  %v1114_v8 = vrot.slane %v1098_v5, %v1097_v1  ;;  %v1107_v9 = vcombine.high %v1105_v7, %v1105_v7  ;;  %v1121_v12 = vrot.slane %v1105_v7, %v1097_v1 }
 0x126   : > { %v1163_v15 = vrot.slane %v1147_v10, %v1097_v1 }
 0x127   : > { %1879 = vmatmul.mubr.msk.f32.gmra.mrb[2].mxu0 %vm767_vm2, %v1711_v13  ;;  %v1128_v11 = vrot.slane %v1106_v46, %v1097_v1  ;;  %v1154_v13 = vrot.slane %v1140_v2, %v1097_v1  ;;  %v1192_v4 = vrot.slane %v1114_v8, %v2029_v6  ;;  %v1137_v22 = vcombine.high %v1121_v12, %v1121_v12 }
 0x128   : > { %1881 = vmatprep.mubr.msk.f32.mxu0 %vm767_vm2, %v1712_v14  ;;  %v1136_v14 = vcombine.high %v1114_v8, %v1114_v8  ;;  %v2244_v28 = vrot.slane %v1121_v12, %v2029_v6  ;;  %v2247_v30 = vrot.slane %v1163_v15, %v2029_v6  ;;  %v1185_v40 = vcombine.high %v1163_v15, %v1163_v15 }
 0x129   : > { %v1156_v51 = vcombine.high %v1154_v13, %v1154_v13  ;;  %v1196_v25 = vrot.slane %v1128_v11, %v2029_v6 }
 0x12b   : > { %1882 = vmatmul.mubr.msk.f32.gmra.mrb[4].mxu0 %vm767_vm2, %v1713_v16  ;;  %v1135_v16 = vrot.slane %v1107_v9, %v1097_v1 }
 0x12c   : > { %1884 = vmatprep.mubr.msk.f32.mxu0 %vm767_vm2, %v1714_v17  ;;  %v1155_v17 = vcombine.high %v1147_v10, %v1147_v10 }
 0x12e   : > { %v1177_v35 = vrot.slane %v1155_v17, %v1097_v1 }
 0x12f   : > { %1885 = vmatmul.mubr.msk.f32.gmra.mrb[6].mxu0 %vm767_vm2, %v1715_v19  ;;  %v1138_v19 = vcombine.high %v1128_v11, %v1128_v11 }
 0x130   : > { %1887 = vmatprep.mubr.msk.f32.mxu0 %vm767_vm2, %v1716_v21  ;;  %v1187_v55 = vcombine.high %v1177_v35, %v1177_v35 }
 0x133   : > { %1888 = vmatmul.mubr.msk.f32.gmra.mrb[8].mxu0 %vm767_vm2, %v1717_v23  ;;  %v2238_v23 = vld [vmem:[%s2432_s5] ss:$0 sm:$0xff] }
 0x134   : > { %1890 = vmatprep.mubr.msk.f32.mxu0 %vm767_vm2, %v1718_v24 }
 0x137   : > { %1891 = vmatmul.mubr.msk.f32.gmra.mrb[10].mxu0 %vm767_vm2, %v1719_v26  ;;  %v1200_v26 = vrot.slane %v1136_v14, %v2029_v6 }
 0x138   : > { %1893 = vmatprep.mubr.msk.f32.mxu0 %vm767_vm2, %v1720_v27 }
 0x13b   : > { %1894 = vmatmul.mubr.msk.f32.gmra.mrb[12].mxu0 %vm767_vm2, %v1721_v29  ;;  %v1139_v29 = vcombine.high %v1135_v16, %v1135_v16 }
 0x13c   : > { %1896 = vmatprep.mubr.msk.f32.mxu0 %vm767_vm2, %v1722_v31 }
 0x13f   : > { %1897 = vmatmul.mubr.msk.f32.gmra.mrb[14].mxu0 %vm767_vm2, %v1723_v33  ;;  %v1204_v33 = vrot.slane %v1138_v19, %v2029_v6 }
 0x140   : > { %1899 = vmatprep.mubr.msk.f32.mxu0 %vm767_vm2, %v1724_v34  ;;  %v2252_v34 = vrot.slane %v1135_v16, %v2029_v6 }
 0x143   : > { %1900 = vmatmul.mubr.msk.f32.gmra.mrb[16].mxu0 %vm767_vm2, %v1725_v36 }
 0x144   : > { %1902 = vmatprep.mubr.msk.f32.mxu0 %vm767_vm2, %v1726_v37 }
 0x147   : > { %1903 = vmatmul.mubr.msk.f32.gmra.mrb[18].mxu0 %vm767_vm2, %v1727_v39  ;;  %v2256_v39 = vrot.slane %v1137_v22, %v2029_v6 }
 0x148   : > { %1905 = vmatprep.mubr.msk.f32.mxu0 %vm767_vm2, %v1728_v41 }
 0x14b   : > { %1906 = vmatmul.mubr.msk.f32.gmra.mrb[20].mxu0 %vm767_vm2, %v1729_v43  ;;  %v1170_v43 = vrot.slane %v1154_v13, %v1097_v1 }
 0x14c   : > { %1908 = vmatprep.mubr.msk.f32.mxu0 %vm767_vm2, %v1730_v44 }
 0x14d   : > { %v2275_v0 = vrot.slane %v1170_v43, %v2029_v6  ;;  %v1186_v9 = vcombine.high %v1170_v43, %v1170_v43 }
 0x14f   : > { %1909 = vmatmul.mubr.msk.f32.gmra.mrb[22].mxu0 %vm767_vm2, %v1731_v47  ;;  %v2261_v47 = vrot.slane %v1139_v29, %v2029_v6 }
 0x150   : > { %1911 = vmatprep.mubr.msk.f32.mxu0 %vm767_vm2, %v1732_v48  ;;  %v1184_v48 = vrot.slane %v1156_v51, %v1097_v1 }
 0x152   : > { %v2279_v7 = vrot.slane %v1184_v48, %v2029_v6  ;;  %v1188_v10 = vcombine.high %v1184_v48, %v1184_v48 }
 0x153   : > { %1912 = vmatmul.mubr.msk.f32.gmra.mrb[24].mxu0 %vm767_vm2, %v1733_v52 }
 0x154   : > { %1914 = vmatprep.mubr.msk.f32.mxu0 %vm767_vm2, %v1734_v54  ;;  %v2265_v54 = vrot.slane %v1177_v35, %v2029_v6 }
 0x157   : > { %1915 = vmatmul.mubr.msk.f32.gmra.mrb[26].mxu0 %vm767_vm2, %v1735_v56 }
 0x158   : > { %1917 = vmatprep.mubr.msk.f32.mxu0 %vm767_vm2, %v1736_v57 }
 0x15b   : > { %1918 = vmatmul.mubr.msk.f32.gmra.mrb[28].mxu0 %vm767_vm2, %v1737_v59 }
 0x15c   : > { %1920 = vmatprep.mubr.msk.f32.mxu0 %vm767_vm2, %v1738_v60  ;;  %v2270_v60 = vrot.slane %v1185_v40, %v2029_v6 }
 0x15f   : > { %1921 = vmatmul.mubr.msk.f32.gmra.mrb[30].mxu0 %vm767_vm2, %v1739_v61  ;;  %vm1411_vm2 = vcmask 523264  }
 0x1f6   : > { %v1877_v18 = vpop.f32.mrb[0].mxu0 }
 0x1f7   : > { %v1270_v20 = vadd.f32 %v1877_v18, %v1192_v4  ;;  %v930_v21 = vpop.f32.mrb[1].mxu0  ;;  %v2287_v18 = vrot.slane %v1187_v55, %v2029_v6 }
 0x1f8   : > { %v1269_v24 = vadd.f32 %v1192_v4, %v930_v21 }
 0x1f9   : > { %v1309_v27 = vmul.f32 %v2233_v49, %v1270_v20 }
 0x1fa   : > { %v1308_v31 = vmul.f32 %v2233_v49, %v1269_v24  ;;  %v1880_v32 = vpop.f32.mrb[2].mxu0 }
 0x1fb   : > { %v1348_v36 = vadd.f32 %v2238_v23, %v1309_v27  ;;  %v1272_v37 = vadd.f32 %v1880_v32, %v1196_v25  ;;  %v940_v38 = vpop.f32.mrb[3].mxu0  ;;  %v2295_v27 = vrot.slane %v1188_v10, %v2029_v6 }
 0x1fc   : > { %v1347_v41 = vadd.f32 %v2238_v23, %v1308_v31  ;;  %v1271_v42 = vadd.f32 %v1196_v25, %v940_v38 }
 0x1fd   : > { %v1380_v44 = vmax.f32 %v1348_v36, 0.0  ;;  %v1311_v45 = vmul.f32 %v2233_v49, %v1272_v37 }
 0x1fe   : > { %v1379_v50 = vmax.f32 %v1347_v41, 0.0  ;;  %v1310_v52 = vmul.f32 %v2233_v49, %v1271_v42  ;;  %v1883_v53 = vpop.f32.mrb[4].mxu0 }
 0x1ff   : > { %v1413_v56 = vsel %vm1411_vm2, %v1380_v44, -inf  ;;  %v1350_v57 = vadd.f32 %v2238_v23, %v1311_v45  ;;  %v1274_v58 = vadd.f32 %v1883_v53, %v1200_v26  ;;  %v950_v59 = vpop.f32.mrb[5].mxu0 }
 0x200   : > { %v1412_v61 = vsel %vm1411_vm2, %v1379_v50, -inf  ;;  %v1349_v62 = vadd.f32 %v2238_v23, %v1310_v52  ;;  %v1273_v63 = vadd.f32 %v1200_v26, %v950_v59  ;;  %v2292_v26 = vrot.slane %v1186_v9, %v2029_v6 }
 0x201   : > { %v1414_v1 = vmax.f32 %v1412_v61, %v1413_v56  ;;  %v1382_v3 = vmax.f32 %v1350_v57, 0.0  ;;  %v1313_v5 = vmul.f32 %v2233_v49, %v1274_v58 }
 0x202   : > { %v1381_v46 = vmax.f32 %v1349_v62, 0.0  ;;  %v1312_v8 = vmul.f32 %v2233_v49, %v1273_v63  ;;  %v1886_v2 = vpop.f32.mrb[6].mxu0 }
 0x203   : > { %v1415_v11 = vrot.slane %v1414_v1, 4  ;;  %v1422_v12 = vsel %vm1411_vm2, %v1382_v3, -inf  ;;  %v1352_v13 = vadd.f32 %v2238_v23, %v1313_v5  ;;  %v1276_v14 = vadd.f32 %v1886_v2, %v1204_v33  ;;  %v960_v15 = vpop.f32.mrb[7].mxu0 }
 0x204   : > { %v1421_v4 = vsel %vm1411_vm2, %v1381_v46, -inf  ;;  %v1351_v16 = vadd.f32 %v2238_v23, %v1312_v8  ;;  %v1275_v17 = vadd.f32 %v1204_v33, %v960_v15 }
 0x205   : > { %v1416_v19 = vmax.f32 %v1414_v1, %v1415_v11  ;;  %v1423_v20 = vmax.f32 %v1421_v4, %v1422_v12  ;;  %v1384_v21 = vmax.f32 %v1352_v13, 0.0  ;;  %v1315_v22 = vmul.f32 %v2233_v49, %v1276_v14 }
 0x206   : > { %v1383_v51 = vmax.f32 %v1351_v16, 0.0  ;;  %v1314_v24 = vmul.f32 %v2233_v49, %v1275_v17  ;;  %v1889_v25 = vpop.f32.mrb[8].mxu0 }
 0x207   : > { %v1417_v29 = vrot.slane %v1416_v19, 2  ;;  %v1424_v31 = vrot.slane %v1423_v20, 4  ;;  %v1431_v32 = vsel %vm1411_vm2, %v1384_v21, -inf  ;;  %v1354_v33 = vadd.f32 %v2238_v23, %v1315_v22  ;;  %v970_v35 = vpop.f32.mrb[9].mxu0 }
 0x208   : > { %v1430_v36 = vsel %vm1411_vm2, %v1383_v51, -inf  ;;  %v1353_v37 = vadd.f32 %v2238_v23, %v1314_v24  ;;  %v1278_v38 = vadd.f32 %v1889_v25, %v2244_v28  ;;  %v1277_v40 = vadd.f32 %v2244_v28, %v970_v35 }
 0x209   : > { %v1418_v41 = vmax.f32 %v1416_v19, %v1417_v29  ;;  %v1425_v42 = vmax.f32 %v1423_v20, %v1424_v31  ;;  %v1432_v43 = vmax.f32 %v1430_v36, %v1431_v32  ;;  %v1386_v6 = vmax.f32 %v1354_v33, 0.0 }
 0x20a   : > { %v1385_v44 = vmax.f32 %v1353_v37, 0.0  ;;  %v1317_v45 = vmul.f32 %v2233_v49, %v1278_v38  ;;  %v1316_v48 = vmul.f32 %v2233_v49, %v1277_v40  ;;  %v1892_v50 = vpop.f32.mrb[10].mxu0 }
 0x20b   : > { %v1419_v52 = vrot.slane %v1418_v41, 1  ;;  %v1426_v53 = vrot.slane %v1425_v42, 2  ;;  %v1433_v55 = vrot.slane %v1432_v43, 4  ;;  %v1440_v56 = vsel %vm1411_vm2, %v1386_v6, -inf  ;;  %v980_v57 = vpop.f32.mrb[11].mxu0 }
 0x20c   : > { %v1439_v58 = vsel %vm1411_vm2, %v1385_v44, -inf  ;;  %v1356_v28 = vadd.f32 %v2238_v23, %v1317_v45  ;;  %v1355_v59 = vadd.f32 %v2238_v23, %v1316_v48  ;;  %v1280_v61 = vadd.f32 %v1892_v50, %v2252_v34 }
 0x20d   : > { %v1420_v62 = vmax.f32 %v1418_v41, %v1419_v52  ;;  %v1427_v63 = vmax.f32 %v1425_v42, %v1426_v53  ;;  %v1434_v1 = vmax.f32 %v1432_v43, %v1433_v55  ;;  %v1441_v3 = vmax.f32 %v1439_v58, %v1440_v56 }
 0x20e   : > { %v1388_v5 = vmax.f32 %v1356_v28, 0.0  ;;  %v1387_v46 = vmax.f32 %v1355_v59, 0.0  ;;  %v1319_v8 = vmul.f32 %v2233_v49, %v1280_v61  ;;  %v1279_v2 = vadd.f32 %v2252_v34, %v980_v57  ;;  %v1895_v9 = vpop.f32.mrb[12].mxu0 }
 0x20f   : > { %v1556_v10 = vmax.f32 %v1420_v62, 0.0  ;;  %v1428_v11 = vrot.slane %v1427_v63, 1  ;;  %v1435_v12 = vrot.slane %v1434_v1, 2  ;;  %v1442_v13 = vrot.slane %v1441_v3, 4  ;;  %v990_v14 = vpop.f32.mrb[13].mxu0 }
 0x210   : > { %v1449_v15 = vsel %vm1411_vm2, %v1388_v5, -inf  ;;  %v1448_v4 = vsel %vm1411_vm2, %v1387_v46, -inf  ;;  %v1358_v16 = vadd.f32 %v2238_v23, %v1319_v8  ;;  %v1318_v17 = vmul.f32 %v2233_v49, %v1279_v2 }
 0x211   : > { %v1429_v19 = vmax.f32 %v1427_v63, %v1428_v11  ;;  %v1436_v20 = vmax.f32 %v1434_v1, %v1435_v12  ;;  %v1443_v21 = vmax.f32 %v1441_v3, %v1442_v13  ;;  %v1450_v22 = vmax.f32 %v1448_v4, %v1449_v15 }
 0x212   : > { %v1390_v34 = vmax.f32 %v1358_v16, 0.0  ;;  %v1357_v51 = vadd.f32 %v2238_v23, %v1318_v17  ;;  %v1282_v24 = vadd.f32 %v1895_v9, %v2256_v39  ;;  %v1281_v25 = vadd.f32 %v2256_v39, %v990_v14  ;;  %v1898_v29 = vpop.f32.mrb[14].mxu0 }
 0x213   : > { %v1557_v31 = vmax.f32 %v1429_v19, 0.0  ;;  %v1437_v32 = vrot.slane %v1436_v20, 1  ;;  %v1444_v33 = vrot.slane %v1443_v21, 2  ;;  %v1451_v35 = vrot.slane %v1450_v22, 4  ;;  %v1000_v36 = vpop.f32.mrb[15].mxu0 }
 0x214   : > { %v1458_v37 = vsel %vm1411_vm2, %v1390_v34, -inf  ;;  %v1389_v38 = vmax.f32 %v1357_v51, 0.0  ;;  %v1321_v40 = vmul.f32 %v2233_v49, %v1282_v24  ;;  %v1320_v41 = vmul.f32 %v2233_v49, %v1281_v25 }
 0x215   : > { %v1589_v42 = vsel %vm1588_vm4, %v1557_v31, %v1556_v10  ;;  %v1438_v43 = vmax.f32 %v1436_v20, %v1437_v32  ;;  %v1445_v6 = vmax.f32 %v1443_v21, %v1444_v33  ;;  %v1452_v44 = vmax.f32 %v1450_v22, %v1451_v35 }
 0x216   : > { %v1457_v39 = vsel %vm1411_vm2, %v1389_v38, -inf  ;;  %v1360_v45 = vadd.f32 %v2238_v23, %v1321_v40  ;;  %v1359_v48 = vadd.f32 %v2238_v23, %v1320_v41  ;;  %v1284_v50 = vadd.f32 %v1898_v29, %v2261_v47  ;;  %v1901_v52 = vpop.f32.mrb[16].mxu0 }
 0x217   : > { %v1558_v53 = vmax.f32 %v1438_v43, 0.0  ;;  %v1446_v55 = vrot.slane %v1445_v6, 1  ;;  %v1453_v56 = vrot.slane %v1452_v44, 2  ;;  %v1459_v57 = vmax.f32 %v1457_v39, %v1458_v37  ;;  %v1010_v58 = vpop.f32.mrb[17].mxu0 }
 0x218   : > { %v1392_v28 = vmax.f32 %v1360_v45, 0.0  ;;  %v1391_v59 = vmax.f32 %v1359_v48, 0.0  ;;  %v1323_v61 = vmul.f32 %v2233_v49, %v1284_v50  ;;  %v1283_v62 = vadd.f32 %v2261_v47, %v1000_v36 }
 0x219   : > { %v1591_v63 = vsel %vm1590_vm5, %v1558_v53, %v1589_v42  ;;  %v1447_v1 = vmax.f32 %v1445_v6, %v1446_v55  ;;  %v1454_v3 = vmax.f32 %v1452_v44, %v1453_v56  ;;  %v1460_v5 = vrot.slane %v1459_v57, 4 }
 0x21a   : > { %v1467_v46 = vsel %vm1411_vm2, %v1392_v28, -inf  ;;  %v1466_v8 = vsel %vm1411_vm2, %v1391_v59, -inf  ;;  %v1362_v2 = vadd.f32 %v2238_v23, %v1323_v61  ;;  %v1322_v9 = vmul.f32 %v2233_v49, %v1283_v62  ;;  %v1904_v10 = vpop.f32.mrb[18].mxu0 }
 0x21b   : > { %v1559_v11 = vmax.f32 %v1447_v1, 0.0  ;;  %v1455_v12 = vrot.slane %v1454_v3, 1  ;;  %v1461_v13 = vmax.f32 %v1459_v57, %v1460_v5  ;;  %v1468_v14 = vmax.f32 %v1466_v8, %v1467_v46  ;;  %v1020_v15 = vpop.f32.mrb[19].mxu0 }
 0x21c   : > { %v1394_v47 = vmax.f32 %v1362_v2, 0.0  ;;  %v1361_v4 = vadd.f32 %v2238_v23, %v1322_v9  ;;  %v1286_v16 = vadd.f32 %v1901_v52, %v2247_v30  ;;  %v1285_v17 = vadd.f32 %v2247_v30, %v1010_v58 }
 0x21d   : > { %v1593_v19 = vsel %vm1592_vm6, %v1559_v11, %v1591_v63  ;;  %v1456_v20 = vmax.f32 %v1454_v3, %v1455_v12  ;;  %v1462_v21 = vrot.slane %v1461_v13, 2  ;;  %v1469_v22 = vrot.slane %v1468_v14, 4 }
 0x21e   : > { %v1476_v34 = vsel %vm1411_vm2, %v1394_v47, -inf  ;;  %v1393_v51 = vmax.f32 %v1361_v4, 0.0  ;;  %v1325_v24 = vmul.f32 %v2233_v49, %v1286_v16  ;;  %v1324_v25 = vmul.f32 %v2233_v49, %v1285_v17  ;;  %v1907_v29 = vpop.f32.mrb[20].mxu0 }
 0x21f   : > { %v1560_v31 = vmax.f32 %v1456_v20, 0.0  ;;  %v1463_v32 = vmax.f32 %v1461_v13, %v1462_v21  ;;  %v1470_v33 = vmax.f32 %v1468_v14, %v1469_v22  ;;  %v1288_v35 = vadd.f32 %v1904_v10, %v2265_v54  ;;  %v1030_v36 = vpop.f32.mrb[21].mxu0 }
 0x220   : > { %v1475_v30 = vsel %vm1411_vm2, %v1393_v51, -inf  ;;  %v1364_v37 = vadd.f32 %v2238_v23, %v1325_v24  ;;  %v1363_v38 = vadd.f32 %v2238_v23, %v1324_v25  ;;  %v1287_v40 = vadd.f32 %v2265_v54, %v1020_v15 }
 0x221   : > { %v1595_v41 = vsel %vm1594_vm7, %v1560_v31, %v1593_v19  ;;  %v1464_v42 = vrot.slane %v1463_v32, 1  ;;  %v1471_v43 = vrot.slane %v1470_v33, 2  ;;  %v1477_v6 = vmax.f32 %v1475_v30, %v1476_v34 }
 0x222   : > { %v1396_v44 = vmax.f32 %v1364_v37, 0.0  ;;  %v1395_v39 = vmax.f32 %v1363_v38, 0.0  ;;  %v1327_v45 = vmul.f32 %v2233_v49, %v1288_v35  ;;  %v1326_v48 = vmul.f32 %v2233_v49, %v1287_v40  ;;  %v1910_v50 = vpop.f32.mrb[22].mxu0 }
 0x223   : > { %v1465_v52 = vmax.f32 %v1463_v32, %v1464_v42  ;;  %v1472_v53 = vmax.f32 %v1470_v33, %v1471_v43  ;;  %v1478_v55 = vrot.slane %v1477_v6, 4  ;;  %v1290_v56 = vadd.f32 %v1907_v29, %v2270_v60  ;;  %v1040_v57 = vpop.f32.mrb[23].mxu0 }
 0x224   : > { %v1485_v54 = vsel %vm1411_vm2, %v1396_v44, -inf  ;;  %v1484_v58 = vsel %vm1411_vm2, %v1395_v39, -inf  ;;  %v1366_v28 = vadd.f32 %v2238_v23, %v1327_v45  ;;  %v1365_v59 = vadd.f32 %v2238_v23, %v1326_v48 }
 0x225   : > { %v1561_v61 = vmax.f32 %v1465_v52, 0.0  ;;  %v1473_v62 = vrot.slane %v1472_v53, 1  ;;  %v1479_v63 = vmax.f32 %v1477_v6, %v1478_v55  ;;  %v1486_v1 = vmax.f32 %v1484_v58, %v1485_v54 }
 0x226   : > { %v1398_v3 = vmax.f32 %v1366_v28, 0.0  ;;  %v1397_v5 = vmax.f32 %v1365_v59, 0.0  ;;  %v1329_v46 = vmul.f32 %v2233_v49, %v1290_v56  ;;  %v1289_v8 = vadd.f32 %v2270_v60, %v1030_v36  ;;  %v1913_v2 = vpop.f32.mrb[24].mxu0 }
 0x227   : > { %v1597_v9 = vsel %vm1596_vm8, %v1561_v61, %v1595_v41  ;;  %v1474_v10 = vmax.f32 %v1472_v53, %v1473_v62  ;;  %v1480_v11 = vrot.slane %v1479_v63, 2  ;;  %v1487_v12 = vrot.slane %v1486_v1, 4  ;;  %v1050_v13 = vpop.f32.mrb[25].mxu0 }
 0x228   : > { %v1494_v14 = vsel %vm1411_vm2, %v1398_v3, -inf  ;;  %v1493_v15 = vsel %vm1411_vm2, %v1397_v5, -inf  ;;  %v1368_v47 = vadd.f32 %v2238_v23, %v1329_v46  ;;  %v1328_v4 = vmul.f32 %v2233_v49, %v1289_v8 }
 0x229   : > { %v1562_v16 = vmax.f32 %v1474_v10, 0.0  ;;  %v1481_v17 = vmax.f32 %v1479_v63, %v1480_v11  ;;  %v1488_v19 = vmax.f32 %v1486_v1, %v1487_v12  ;;  %v1495_v20 = vmax.f32 %v1493_v15, %v1494_v14 }
 0x22a   : > { %v1400_v60 = vmax.f32 %v1368_v47, 0.0  ;;  %v1367_v21 = vadd.f32 %v2238_v23, %v1328_v4  ;;  %v1292_v22 = vadd.f32 %v1910_v50, %v2287_v18  ;;  %v1291_v34 = vadd.f32 %v2287_v18, %v1040_v57  ;;  %v1916_v51 = vpop.f32.mrb[26].mxu0 }
 0x22b   : > { %v1599_v24 = vsel %vm1598_vm9, %v1562_v16, %v1597_v9  ;;  %v1482_v25 = vrot.slane %v1481_v17, 1  ;;  %v1489_v29 = vrot.slane %v1488_v19, 2  ;;  %v1496_v31 = vrot.slane %v1495_v20, 4  ;;  %v1060_v32 = vpop.f32.mrb[27].mxu0 }
 0x22c   : > { %v1503_v33 = vsel %vm1411_vm2, %v1400_v60, -inf  ;;  %v1399_v35 = vmax.f32 %v1367_v21, 0.0  ;;  %v1331_v36 = vmul.f32 %v2233_v49, %v1292_v22  ;;  %v1330_v30 = vmul.f32 %v2233_v49, %v1291_v34 }
 0x22d   : > { %v1483_v37 = vmax.f32 %v1481_v17, %v1482_v25  ;;  %v1490_v38 = vmax.f32 %v1488_v19, %v1489_v29  ;;  %v1497_v40 = vmax.f32 %v1495_v20, %v1496_v31  ;;  %v1294_v18 = vadd.f32 %v1913_v2, %v2275_v0 }
 0x22e   : > { %v1502_v41 = vsel %vm1411_vm2, %v1399_v35, -inf  ;;  %v1370_v42 = vadd.f32 %v2238_v23, %v1331_v36  ;;  %v1369_v43 = vadd.f32 %v2238_v23, %v1330_v30  ;;  %v1293_v6 = vadd.f32 %v2275_v0, %v1050_v13  ;;  %v1919_v44 = vpop.f32.mrb[28].mxu0 }
 0x22f   : > { %v1563_v39 = vmax.f32 %v1483_v37, 0.0  ;;  %v1491_v45 = vrot.slane %v1490_v38, 1  ;;  %v1498_v48 = vrot.slane %v1497_v40, 2  ;;  %v1504_v50 = vmax.f32 %v1502_v41, %v1503_v33  ;;  %v1070_v52 = vpop.f32.mrb[29].mxu0 }
 0x230   : > { %v1402_v53 = vmax.f32 %v1370_v42, 0.0  ;;  %v1401_v55 = vmax.f32 %v1369_v43, 0.0  ;;  %v1333_v56 = vmul.f32 %v2233_v49, %v1294_v18  ;;  %v1332_v57 = vmul.f32 %v2233_v49, %v1293_v6 }
 0x231   : > { %v1601_v0 = vsel %vm1600_vm10, %v1563_v39, %v1599_v24  ;;  %v1492_v54 = vmax.f32 %v1490_v38, %v1491_v45  ;;  %v1499_v58 = vmax.f32 %v1497_v40, %v1498_v48  ;;  %v1505_v28 = vrot.slane %v1504_v50, 4 }
 0x232   : > { %1611 = vst.msk [vmem:[%s2378_s26] sm:$0xff] %vm1411_vm2, %v1601_v0  ;;  %v1512_v59 = vsel %vm1411_vm2, %v1402_v53, -inf  ;;  %v1511_v61 = vsel %vm1411_vm2, %v1401_v55, -inf  ;;  %v1372_v62 = vadd.f32 %v2238_v23, %v1333_v56  ;;  %v1371_v63 = vadd.f32 %v2238_v23, %v1332_v57  ;;  %v1922_v1 = vpop.f32.mrb[30].mxu0 }
 0x233   : > { %v1564_v3 = vmax.f32 %v1492_v54, 0.0  ;;  %v1500_v5 = vrot.slane %v1499_v58, 1  ;;  %v1506_v46 = vmax.f32 %v1504_v50, %v1505_v28  ;;  %v1513_v8 = vmax.f32 %v1511_v61, %v1512_v59  ;;  %v1080_v2 = vpop.f32.mrb[31].mxu0 }
 0x234   : > { %v1404_v9 = vmax.f32 %v1372_v62, 0.0  ;;  %v1403_v10 = vmax.f32 %v1371_v63, 0.0  ;;  %v1296_v11 = vadd.f32 %v1916_v51, %v2279_v7  ;;  %v1295_v12 = vadd.f32 %v2279_v7, %v1060_v32 }
 0x235   : > { %v1501_v13 = vmax.f32 %v1499_v58, %v1500_v5  ;;  %v1507_v14 = vrot.slane %v1506_v46, 2  ;;  %v1514_v15 = vrot.slane %v1513_v8, 4  ;;  %v1298_v47 = vadd.f32 %v1919_v44, %v2292_v26 }
 0x236   : > { %v1521_v4 = vsel %vm1411_vm2, %v1404_v9, -inf  ;;  %v1520_v16 = vsel %vm1411_vm2, %v1403_v10, -inf  ;;  %v1335_v17 = vmul.f32 %v2233_v49, %v1296_v11  ;;  %v1334_v19 = vmul.f32 %v2233_v49, %v1295_v12 }
 0x237   : > { %v1565_v20 = vmax.f32 %v1501_v13, 0.0  ;;  %v1508_v60 = vmax.f32 %v1506_v46, %v1507_v14  ;;  %v1515_v21 = vmax.f32 %v1513_v8, %v1514_v15  ;;  %v1522_v22 = vmax.f32 %v1520_v16, %v1521_v4 }
 0x238   : > { %v1374_v34 = vadd.f32 %v2238_v23, %v1335_v17  ;;  %v1373_v7 = vadd.f32 %v2238_v23, %v1334_v19  ;;  %v1337_v51 = vmul.f32 %v2233_v49, %v1298_v47  ;;  %v1297_v24 = vadd.f32 %v2292_v26, %v1070_v52 }
 0x239   : > { %v1602_v25 = vsel %vm1588_vm4, %v1565_v20, %v1564_v3  ;;  %v1509_v29 = vrot.slane %v1508_v60, 1  ;;  %v1516_v31 = vrot.slane %v1515_v21, 2  ;;  %v1523_v32 = vrot.slane %v1522_v22, 4 }
 0x23a   : > { %v1406_v33 = vmax.f32 %v1374_v34, 0.0  ;;  %v1405_v35 = vmax.f32 %v1373_v7, 0.0  ;;  %v1376_v36 = vadd.f32 %v2238_v23, %v1337_v51  ;;  %v1336_v30 = vmul.f32 %v2233_v49, %v1297_v24 }
 0x23b   : > { %v1510_v37 = vmax.f32 %v1508_v60, %v1509_v29  ;;  %v1517_v38 = vmax.f32 %v1515_v21, %v1516_v31  ;;  %v1524_v40 = vmax.f32 %v1522_v22, %v1523_v32  ;;  %v1300_v18 = vadd.f32 %v1922_v1, %v2295_v27 }
 0x23c   : > { %v1530_v41 = vsel %vm1411_vm2, %v1406_v33, -inf  ;;  %v1529_v26 = vsel %vm1411_vm2, %v1405_v35, -inf  ;;  %v1408_v42 = vmax.f32 %v1376_v36, 0.0  ;;  %v1375_v43 = vadd.f32 %v2238_v23, %v1336_v30 }
 0x23d   : > { %v1566_v6 = vmax.f32 %v1510_v37, 0.0  ;;  %v1518_v44 = vrot.slane %v1517_v38, 1  ;;  %v1525_v39 = vrot.slane %v1524_v40, 2  ;;  %v1531_v45 = vmax.f32 %v1529_v26, %v1530_v41 }
 0x23e   : > { %v1539_v48 = vsel %vm1411_vm2, %v1408_v42, -inf  ;;  %v1407_v50 = vmax.f32 %v1375_v43, 0.0  ;;  %v1339_v52 = vmul.f32 %v2233_v49, %v1300_v18  ;;  %v1299_v53 = vadd.f32 %v2295_v27, %v1080_v2 }
 0x23f   : > { %v1603_v55 = vsel %vm1590_vm5, %v1566_v6, %v1602_v25  ;;  %v1519_v56 = vmax.f32 %v1517_v38, %v1518_v44  ;;  %v1526_v57 = vmax.f32 %v1524_v40, %v1525_v39  ;;  %v1532_v0 = vrot.slane %v1531_v45, 4 }
 0x240   : > { %v1538_v54 = vsel %vm1411_vm2, %v1407_v50, -inf  ;;  %v1378_v58 = vadd.f32 %v2238_v23, %v1339_v52  ;;  %v1338_v28 = vmul.f32 %v2233_v49, %v1299_v53 }
 0x241   : > { %v1567_v59 = vmax.f32 %v1519_v56, 0.0  ;;  %v1527_v61 = vrot.slane %v1526_v57, 1  ;;  %v1533_v62 = vmax.f32 %v1531_v45, %v1532_v0  ;;  %v1540_v63 = vmax.f32 %v1538_v54, %v1539_v48 }
 0x242   : > { %v1410_v1 = vmax.f32 %v1378_v58, 0.0  ;;  %v1377_v3 = vadd.f32 %v2238_v23, %v1338_v28 }
 0x243   : > { %v1604_v27 = vsel %vm1592_vm6, %v1567_v59, %v1603_v55  ;;  %v1528_v5 = vmax.f32 %v1526_v57, %v1527_v61  ;;  %v1534_v46 = vrot.slane %v1533_v62, 2  ;;  %v1541_v8 = vrot.slane %v1540_v63, 4 }
 0x244   : > { %v1548_v2 = vsel %vm1411_vm2, %v1410_v1, -inf  ;;  %v1409_v9 = vmax.f32 %v1377_v3, 0.0 }
 0x245   : > { %v1568_v10 = vmax.f32 %v1528_v5, 0.0  ;;  %v1535_v11 = vmax.f32 %v1533_v62, %v1534_v46  ;;  %v1542_v12 = vmax.f32 %v1540_v63, %v1541_v8 }
 0x246   : > { %v1547_v49 = vsel %vm1411_vm2, %v1409_v9, -inf }
 0x247   : > { %v1605_v13 = vsel %vm1594_vm7, %v1568_v10, %v1604_v27  ;;  %v1536_v14 = vrot.slane %v1535_v11, 1  ;;  %v1543_v15 = vrot.slane %v1542_v12, 2  ;;  %v1549_v47 = vmax.f32 %v1547_v49, %v1548_v2 }
 0x249   : > { %v1537_v4 = vmax.f32 %v1535_v11, %v1536_v14  ;;  %v1544_v23 = vmax.f32 %v1542_v12, %v1543_v15  ;;  %v1550_v16 = vrot.slane %v1549_v47, 4 }
 0x24b   : > { %v1569_v17 = vmax.f32 %v1537_v4, 0.0  ;;  %v1545_v19 = vrot.slane %v1544_v23, 1  ;;  %v1551_v20 = vmax.f32 %v1549_v47, %v1550_v16 }
 0x24d   : > { %v1606_v60 = vsel %vm1596_vm8, %v1569_v17, %v1605_v13  ;;  %v1546_v21 = vmax.f32 %v1544_v23, %v1545_v19  ;;  %v1552_v22 = vrot.slane %v1551_v20, 2 }
 0x24f   : > { %v1570_v34 = vmax.f32 %v1546_v21, 0.0  ;;  %v1553_v7 = vmax.f32 %v1551_v20, %v1552_v22 }
 0x251   : > { %v1607_v51 = vsel %vm1598_vm9, %v1570_v34, %v1606_v60  ;;  %v1554_v24 = vrot.slane %v1553_v7, 1 }
 0x253   : > { %v1555_v25 = vmax.f32 %v1553_v7, %v1554_v24 }
 0x255   : > { %v1571_v29 = vmax.f32 %v1555_v25, 0.0 }
 0x257   : > { %v1608_v31 = vsel %vm1600_vm10, %v1571_v29, %v1607_v51 }
 0x258   : > { %1612 = vst.msk [vmem:[%s2378_s26 + $0x8] sm:$0xff] %vm1411_vm2, %v1608_v31 }
 0x259 PF: > { %s16_s21 = sadd.s32 1, %s1961_s21  }
 0x25a   : > { %p13_p4 = scmp.ge.s32.totalorder %s16_s21, 4  }
 0x25c   :  { %15 = sbr.rel (!%p13_p4) target bundleno = 1 (0x1), region = 77 }

// kernel: dyn_diff_pool_forward.27
= control target key start
LH: loop header
LB: loop body
LE: loop exit
PB: predicated region body
PF: predicated region fallthrough
CT: control target
= control target key end

     0   :  { %s1903_s21 = smov 0   ;;  %s2384_s0 = inlined_call_operand.vmem [shape: bf16[2,16,64], index: 0, kind: input, shape index: {}]   ;;  %s2385_s1 = inlined_call_operand.vmem [shape: s32[2,16,16], index: 1, kind: input, shape index: {}]   ;;  %s2386_s2 = inlined_call_operand.vmem [shape: bf16[64,64], index: 2, kind: input, shape index: {}]   ;;  %s2387_s3 = inlined_call_operand.vmem [shape: bf16[64,64], index: 3, kind: input, shape index: {}]   ;;  %s2388_s4 = inlined_call_operand.vmem [shape: f32[1,64], index: 4, kind: input, shape index: {}]   ;;  %s2389_s5 = inlined_call_operand.vmem [shape: f32[1,64], index: 5, kind: input, shape index: {}]   ;;  %s2390_s6 = inlined_call_operand.vmem [shape: f32[2,16,64], index: 6, kind: output, shape index: {}]  }
   0x1 LB: > { %s1618_s22 = sadd.s32 4294967295, %s1863_s21   ;;  %p1622_p0 = scmp.ge.s32.totalorder %s1863_s21, 1  ;;  %s1863_s21 = sphi %s1903_s21, %s16_s21  }
   0x2   : > { %p222_p1 = scmp.lt.s32.totalorder %s1863_s21, 3 }
   0x4   : > { %p223_p2 = pnand %p1622_p0, %p222_p1 }
   0x5   : > { %v1848_v0 = vld [vmem:[%s2387_s3] sm:$0xff] (!%p223_p2)   ;;  %v432_v1 = vlaneseq (!%p223_p2)  ;;  %v1865_v2 = vmov (!%p223_p2), 0.0   ;;  %v1849_v3 = vld [vmem:[%s2387_s3 + $0x8] sm:$0xff] (!%p223_p2)   ;;  %vm1866_vm0 = vmmov (!%p223_p2), 0   ;;  %p257_p3 = scmp.lt.s32.totalorder (!%p223_p2), %s1618_s22, 1  ;;  %v1850_v6 = vld [vmem:[%s2387_s3 + $0x10] sm:$0xff] (!%p223_p2)  }
   0x6   : > { %226 = sbr.rel (%p223_p2) target bundleno = 546 (0x222), region = 44  ;;  %1767 = vmatprep.subr.bf16.mxu1 (!%p223_p2), %v1865_v2  ;;  %1755 = vmatprep.subr.bf16.mxu0 (!%p223_p2), %v1865_v2  ;;  %v1853_v5 = vld [vmem:[%s2386_s2] sm:$0xff] (!%p223_p2)   ;;  %v1851_v8 = vld [vmem:[%s2387_s3 + $0x18] sm:$0xff] (!%p223_p2)   ;;  %v1854_v9 = vld [vmem:[%s2386_s2 + $0x8] sm:$0xff] (!%p223_p2)   ;;  %vm312_vm1 = vcmask (!%p223_p2), 523264   ;;  %vm706_vm2 = vcmask (!%p223_p2), 130048  }
   0x7   : > { %1768 = vmatpush3.bf16.msra.mxu1 (!%p223_p2), %v1848_v0  ;;  %1775 = vmatprep.mubr.msk.bf16.mxu1 (!%p223_p2), %vm1866_vm0, %v1865_v2  ;;  %v1925_v4 = vshrl.u32 (!%p223_p2), %v432_v1, 7  ;;  %v1855_v16 = vld [vmem:[%s2386_s2 + $0x10] sm:$0xff] (!%p223_p2)   ;;  %v1856_v19 = vld [vmem:[%s2386_s2 + $0x18] sm:$0xff] (!%p223_p2)   ;;  %v1995_v38 = vand.u32 (!%p223_p2), 127, %v432_v1 }
   0x8   : > { %1769 = vmatprep.subr.bf16.mxu1 (!%p223_p2), %v1865_v2  ;;  %1763 = vmatprep.mubr.msk.bf16.mxu0 (!%p223_p2), %vm1866_vm0, %v1865_v2 }
   0x9   : > { %v1936_v7 = vsub.s32 (!%p223_p2), 0, %v1925_v4  ;;  %1756 = vmatpush3.bf16.msra.mxu0 (!%p223_p2), %v1853_v5  ;;  %v445_v14 = vsub.s32 (!%p223_p2), 1, %v1925_v4  ;;  %v456_v20 = vsub.s32 (!%p223_p2), 2, %v1925_v4  ;;  %v467_v23 = vsub.s32 (!%p223_p2), 3, %v1925_v4 }
   0xa   : > { %1757 = vmatprep.subr.bf16.mxu0 (!%p223_p2), %v1865_v2  ;;  %v478_v26 = vsub.s32 (!%p223_p2), 4, %v1925_v4  ;;  %v489_v29 = vsub.s32 (!%p223_p2), 5, %v1925_v4  ;;  %v500_v32 = vsub.s32 (!%p223_p2), 6, %v1925_v4  ;;  %v511_v35 = vsub.s32 (!%p223_p2), 7, %v1925_v4 }
   0xb   : > { %1770 = vmatpush3.bf16.msra.mxu1 (!%p223_p2), %v1849_v3 }
   0xc   : > { %1771 = vmatprep.subr.bf16.mxu1 (!%p223_p2), %v1865_v2 }
   0xd   : > { %s2392_s22 = smov (!%p257_p3, %s1618_s22), 1  ;;  %1758 = vmatpush3.bf16.msra.mxu0 %v1854_v9 }
   0xe   : > { %s1708_s7 = sshll.u32 %s2392_s22, 3  ;;  %s1709_s8 = sshll.u32 %s2392_s22, 4  ;;  %1759 = vmatprep.subr.bf16.mxu0 %v1865_v2 }
   0xf   : > { %s261_s11 = scalar_lea.vmem %s2384_s0, %s1708_s7  ;;  %s266_s14 = scalar_lea.vmem %s2385_s1, %s1709_s8  ;;  %1772 = vmatpush3.bf16.msra.mxu1 %v1850_v6 }
  0x10   : > { %v1954_v10 = vld [vmem:[%s266_s14] sm:$0xff]  ;;  %v1956_v11 = vld [vmem:[%s266_s14 + $0x8] sm:$0xff]  ;;  %1773 = vmatprep.subr.bf16.mxu1 %v1865_v2  ;;  %s271_s7 = scalar_lea.vmem %s2390_s6, %s1709_s8 }
  0x11   : > { %v435_v12 = vrot.slane %v1954_v10, %v1936_v7  ;;  %v523_v13 = vrot.slane %v1956_v11, %v1936_v7  ;;  %v1852_v15 = vld [vmem:[%s261_s11] sm:$0xff]   ;;  %v534_v17 = vrot.slane %v1956_v11, %v445_v14  ;;  %v446_v18 = vrot.slane %v1954_v10, %v445_v14  ;;  %1760 = vmatpush3.bf16.msra.mxu0 %v1855_v16 }
  0x12   : > { %1761 = vmatprep.subr.bf16.mxu0 %v1865_v2  ;;  %v545_v21 = vrot.slane %v1956_v11, %v456_v20  ;;  %v457_v22 = vrot.slane %v1954_v10, %v456_v20  ;;  %v556_v24 = vrot.slane %v1956_v11, %v467_v23  ;;  %v468_v25 = vrot.slane %v1954_v10, %v467_v23 }
  0x13   : > { %441 = vbcast.lane.b32.xlu1 %v435_v12, 264  ;;  %437 = vbcast.lane.b32.xlu0 %v435_v12, 256  ;;  %v567_v27 = vrot.slane %v1956_v11, %v478_v26  ;;  %v479_v28 = vrot.slane %v1954_v10, %v478_v26  ;;  %v578_v30 = vrot.slane %v1956_v11, %v489_v29 }
  0x14   : > { %1774 = vmatpush3.bf16.msra.mxu1 %v1851_v8  ;;  %v490_v31 = vrot.slane %v1954_v10, %v489_v29  ;;  %v589_v33 = vrot.slane %v1956_v11, %v500_v32  ;;  %v501_v34 = vrot.slane %v1954_v10, %v500_v32  ;;  %v600_v36 = vrot.slane %v1956_v11, %v511_v35 }
  0x15   : > { %1762 = vmatpush3.bf16.msra.mxu0 %v1856_v19  ;;  %v512_v37 = vrot.slane %v1954_v10, %v511_v35 }
  0x17   : > { %529 = vbcast.lane.b32.xlu1 %v523_v13, 264  ;;  %525 = vbcast.lane.b32.xlu0 %v523_v13, 256 }
  0x18   : > { %1776 = vmatmul.mubr.msk.bf16.vlgmr.msra.gmra.mrb[0].mxu1 %vm312_vm1, %v1852_v15  ;;  %1764 = vmatmul.mubr.msk.bf16.vlgmr.msra.gmra.mrb[0].mxu0 %vm312_vm1, %v1852_v15 }
  0x1b   : > { %536 = vbcast.lane.b32.xlu1 %v534_v17, 256  ;;  %448 = vbcast.lane.b32.xlu0 %v446_v18, 256 }
  0x1f   : > { %540 = vbcast.lane.b32.xlu1 %v534_v17, 264  ;;  %452 = vbcast.lane.b32.xlu0 %v446_v18, 264 }
  0x23   : > { %547 = vbcast.lane.b32.xlu1 %v545_v21, 256  ;;  %459 = vbcast.lane.b32.xlu0 %v457_v22, 256 }
  0x27   : > { %551 = vbcast.lane.b32.xlu1 %v545_v21, 264  ;;  %463 = vbcast.lane.b32.xlu0 %v457_v22, 264 }
  0x2b   : > { %558 = vbcast.lane.b32.xlu1 %v556_v24, 256  ;;  %470 = vbcast.lane.b32.xlu0 %v468_v25, 256 }
  0x2f   : > { %562 = vbcast.lane.b32.xlu1 %v556_v24, 264  ;;  %474 = vbcast.lane.b32.xlu0 %v468_v25, 264 }
  0x33   : > { %569 = vbcast.lane.b32.xlu1 %v567_v27, 256  ;;  %481 = vbcast.lane.b32.xlu0 %v479_v28, 256 }
  0x37   : > { %573 = vbcast.lane.b32.xlu1 %v567_v27, 264  ;;  %485 = vbcast.lane.b32.xlu0 %v479_v28, 264 }
  0x3b   : > { %580 = vbcast.lane.b32.xlu1 %v578_v30, 256  ;;  %492 = vbcast.lane.b32.xlu0 %v490_v31, 256 }
  0x3f   : > { %584 = vbcast.lane.b32.xlu1 %v578_v30, 264  ;;  %496 = vbcast.lane.b32.xlu0 %v490_v31, 264 }
  0x43   : > { %591 = vbcast.lane.b32.xlu1 %v589_v33, 256  ;;  %503 = vbcast.lane.b32.xlu0 %v501_v34, 256 }
  0x47   : > { %595 = vbcast.lane.b32.xlu1 %v589_v33, 264  ;;  %507 = vbcast.lane.b32.xlu0 %v501_v34, 264 }
  0x4b   : > { %602 = vbcast.lane.b32.xlu1 %v600_v36, 256  ;;  %514 = vbcast.lane.b32.xlu0 %v512_v37, 256 }
  0x4f   : > { %606 = vbcast.lane.b32.xlu1 %v600_v36, 264  ;;  %518 = vbcast.lane.b32.xlu0 %v512_v37, 264 }
  0x85   : > { %v438_v39 = vpop.permute.xlu0 %437  ;;  %v442_v43 = vpop.permute.xlu1 %441 }
  0x86   : > { %vm610_vm3 = vcmp.eq.s32.totalorder %v438_v39, %v1995_v38  ;;  %vm611_vm5 = vcmp.eq.s32.totalorder %v442_v43, %v1995_v38 }
  0x87   : > { %v1640_v40 = vsel %vm610_vm3, 1.0, %v1865_v2  ;;  %v1641_v9 = vsel %vm611_vm5, 1.0, %v1865_v2 }
  0x88   : > { %1783 = vmatprep.mubr.msk.f32.mxu0 %vm706_vm2, %v1640_v40 }
  0x89   : > { %v526_v41 = vpop.permute.xlu0 %525  ;;  %v530_v44 = vpop.permute.xlu1 %529 }
  0x8a   : > { %vm626_vm4 = vcmp.eq.s32.totalorder %v526_v41, %v1995_v38  ;;  %vm627_vm6 = vcmp.eq.s32.totalorder %v530_v44, %v1995_v38 }
  0x8b   : > { %v1656_v42 = vsel %vm626_vm4, 1.0, %v1865_v2  ;;  %v1657_v10 = vsel %vm627_vm6, 1.0, %v1865_v2 }
  0x8c   : > { %1807 = vmatprep.mubr.msk.f32.mxu1 %vm706_vm2, %v1656_v42 }
  0x8d   : > { %v537_v45 = vpop.permute.xlu1 %536  ;;  %v449_v46 = vpop.permute.xlu0 %448 }
  0x8e   : > { %vm628_vm7 = vcmp.eq.s32.totalorder %v537_v45, %v1995_v38  ;;  %vm612_vm8 = vcmp.eq.s32.totalorder %v449_v46, %v1995_v38 }
  0x8f   : > { %v1658_v12 = vsel %vm628_vm7, 1.0, %v1865_v2  ;;  %v1642_v13 = vsel %vm612_vm8, 1.0, %v1865_v2 }
  0x91   : > { %v541_v47 = vpop.permute.xlu1 %540  ;;  %v453_v48 = vpop.permute.xlu0 %452 }
  0x92   : > { %vm629_vm9 = vcmp.eq.s32.totalorder %v541_v47, %v1995_v38  ;;  %vm613_vm10 = vcmp.eq.s32.totalorder %v453_v48, %v1995_v38 }
  0x93   : > { %v1659_v19 = vsel %vm629_vm9, 1.0, %v1865_v2  ;;  %v1643_v20 = vsel %vm613_vm10, 1.0, %v1865_v2 }
  0x95   : > { %v548_v49 = vpop.permute.xlu1 %547  ;;  %v460_v50 = vpop.permute.xlu0 %459 }
  0x96   : > { %vm630_vm11 = vcmp.eq.s32.totalorder %v548_v49, %v1995_v38  ;;  %vm614_vm12 = vcmp.eq.s32.totalorder %v460_v50, %v1995_v38 }
  0x97   : > { %v1660_v21 = vsel %vm630_vm11, 1.0, %v1865_v2  ;;  %v1644_v22 = vsel %vm614_vm12, 1.0, %v1865_v2 }
  0x99   : > { %v552_v51 = vpop.permute.xlu1 %551  ;;  %v464_v52 = vpop.permute.xlu0 %463 }
  0x9a   : > { %vm631_vm13 = vcmp.eq.s32.totalorder %v552_v51, %v1995_v38  ;;  %vm615_vm14 = vcmp.eq.s32.totalorder %v464_v52, %v1995_v38 }
  0x9b   : > { %v1661_v23 = vsel %vm631_vm13, 1.0, %v1865_v2  ;;  %v1645_v24 = vsel %vm615_vm14, 1.0, %v1865_v2 }
  0x9d   : > { %v559_v53 = vpop.permute.xlu1 %558  ;;  %v471_v54 = vpop.permute.xlu0 %470 }
  0x9e   : > { %vm632_vm15 = vcmp.eq.s32.totalorder %v559_v53, %v1995_v38  ;;  %vm616_vm0 = vcmp.eq.s32.totalorder %v471_v54, %v1995_v38 }
  0x9f   : > { %v1662_v27 = vsel %vm632_vm15, 1.0, %v1865_v2  ;;  %v1646_v28 = vsel %vm616_vm0, 1.0, %v1865_v2 }
  0xa1   : > { %v2003_v55 = vpop.permute.xlu1 %562  ;;  %v2005_v56 = vpop.permute.xlu0 %474 }
  0xa2   : > { %vm633_vm3 = vcmp.eq.s32.totalorder %v2003_v55, %v1995_v38  ;;  %vm617_vm4 = vcmp.eq.s32.totalorder %v2005_v56, %v1995_v38 }
  0xa3   : > { %v1663_v29 = vsel %vm633_vm3, 1.0, %v1865_v2  ;;  %v1647_v30 = vsel %vm617_vm4, 1.0, %v1865_v2 }
  0xa5   : > { %v2007_v57 = vpop.permute.xlu1 %569  ;;  %v2009_v58 = vpop.permute.xlu0 %481 }
  0xa6   : > { %vm634_vm5 = vcmp.eq.s32.totalorder %v2007_v57, %v1995_v38  ;;  %vm618_vm6 = vcmp.eq.s32.totalorder %v2009_v58, %v1995_v38 }
  0xa7   : > { %v1664_v31 = vsel %vm634_vm5, 1.0, %v1865_v2  ;;  %v1648_v32 = vsel %vm618_vm6, 1.0, %v1865_v2 }
  0xa9   : > { %v2011_v59 = vpop.permute.xlu1 %573  ;;  %v2013_v60 = vpop.permute.xlu0 %485 }
  0xaa   : > { %vm635_vm7 = vcmp.eq.s32.totalorder %v2011_v59, %v1995_v38  ;;  %vm619_vm8 = vcmp.eq.s32.totalorder %v2013_v60, %v1995_v38 }
  0xab   : > { %v1665_v35 = vsel %vm635_vm7, 1.0, %v1865_v2  ;;  %v1649_v36 = vsel %vm619_vm8, 1.0, %v1865_v2  ;;  %vm1528_vm7 = vcmask 1042434   ;;  %vm1530_vm8 = vcmask 1043459  }
  0xad   : > { %v2015_v61 = vpop.permute.xlu1 %580  ;;  %v2017_v62 = vpop.permute.xlu0 %492 }
  0xae   : > { %vm636_vm9 = vcmp.eq.s32.totalorder %v2015_v61, %v1995_v38  ;;  %vm620_vm10 = vcmp.eq.s32.totalorder %v2017_v62, %v1995_v38 }
  0xaf   : > { %v1666_v37 = vsel %vm636_vm9, 1.0, %v1865_v2  ;;  %v1650_v39 = vsel %vm620_vm10, 1.0, %v1865_v2  ;;  %vm1532_vm9 = vcmask 1044484   ;;  %vm1534_vm10 = vcmask 1045509  }
  0xb1   : > { %v2019_v6 = vpop.permute.xlu1 %584  ;;  %v2021_v8 = vpop.permute.xlu0 %496 }
  0xb2   : > { %vm637_vm11 = vcmp.eq.s32.totalorder %v2019_v6, %v1995_v38  ;;  %vm621_vm12 = vcmp.eq.s32.totalorder %v2021_v8, %v1995_v38 }
  0xb3   : > { %v1667_v40 = vsel %vm637_vm11, 1.0, %v1865_v2  ;;  %v1651_v41 = vsel %vm621_vm12, 1.0, %v1865_v2  ;;  %vm1536_vm11 = vcmask 1046534   ;;  %vm1538_vm12 = vcmask 1047559  }
  0xb5   : > { %v2037_v14 = vpop.permute.xlu1 %591  ;;  %v2043_v16 = vpop.permute.xlu0 %503 }
  0xb6   : > { %vm638_vm13 = vcmp.eq.s32.totalorder %v2037_v14, %v1995_v38  ;;  %vm622_vm14 = vcmp.eq.s32.totalorder %v2043_v16, %v1995_v38 }
  0xb7   : > { %v1668_v44 = vsel %vm638_vm13, 1.0, %v1865_v2  ;;  %v1652_v45 = vsel %vm622_vm14, 1.0, %v1865_v2 }
  0xb9   : > { %v596_v25 = vpop.permute.xlu1 %595  ;;  %v508_v26 = vpop.permute.xlu0 %507 }
  0xba   : > { %vm639_vm3 = vcmp.eq.s32.totalorder %v596_v25, %v1995_v38  ;;  %vm623_vm4 = vcmp.eq.s32.totalorder %v508_v26, %v1995_v38 }
  0xbb   : > { %v1669_v48 = vsel %vm639_vm3, 1.0, %v1865_v2  ;;  %v1653_v49 = vsel %vm623_vm4, 1.0, %v1865_v2 }
  0xbd   : > { %v603_v33 = vpop.permute.xlu1 %602  ;;  %v515_v34 = vpop.permute.xlu0 %514 }
  0xbe   : > { %vm640_vm15 = vcmp.eq.s32.totalorder %v603_v33, %v1995_v38  ;;  %vm624_vm0 = vcmp.eq.s32.totalorder %v515_v34, %v1995_v38 }
  0xbf   : > { %v1670_v46 = vsel %vm640_vm15, 1.0, %v1865_v2  ;;  %v1654_v47 = vsel %vm624_vm0, 1.0, %v1865_v2 }
  0xc1   : > { %v607_v42 = vpop.permute.xlu1 %606  ;;  %v519_v43 = vpop.permute.xlu0 %518 }
  0xc2   : > { %vm641_vm5 = vcmp.eq.s32.totalorder %v607_v42, %v1995_v38  ;;  %vm625_vm6 = vcmp.eq.s32.totalorder %v519_v43, %v1995_v38  ;;  %v1867_v38 = vmov 1966171168  }
  0xc3   : > { %v1671_v50 = vsel %vm641_vm5, 1.0, %v1865_v2  ;;  %v1655_v51 = vsel %vm625_vm6, 1.0, %v1865_v2  ;;  %v1032_v52 = vunpack.c.l.s4 %v1867_v38 }
  0xc5   : > { %v1033_v53 = vunpack.c.0.s8 %v1032_v52 }
  0xc7   : > { %v1036_v54 = vsub.s32 %v1033_v53, %v1925_v4 }
  0xeb   : > { %v423_v63 = vpop.f32.mrb[0].mxu1  ;;  %v2029_v11 = vpop.f32.mrb[0].mxu0 }
  0xec   : > { %v1777_v0 = vpop.f32.mrb[1].mxu1  ;;  %v1765_v15 = vpop.f32.mrb[1].mxu0  ;;  %v1030_v55 = vcombine.high %v2029_v11, %v2029_v11  ;;  %v1037_v56 = vrot.slane %v2029_v11, %v1036_v54 }
  0xed   : > { %v426_v1 = vpop.f32.mrb[2].mxu1  ;;  %v2045_v17 = vpop.f32.mrb[2].mxu0 }
  0xee   : > { %v1831_v3 = vpack.c.bf16 %v426_v1, %v423_v63  ;;  %v1778_v5 = vpop.f32.mrb[3].mxu1  ;;  %v1766_v18 = vpop.f32.mrb[3].mxu0  ;;  %v1079_v2 = vcombine.high %v2045_v17, %v2045_v17  ;;  %v1086_v57 = vrot.slane %v2045_v17, %v1036_v54  ;;  %v1044_v58 = vrot.slane %v1030_v55, %v1036_v54 }
  0xef   : > { %v1045_v59 = vcombine.high %v1037_v56, %v1037_v56  ;;  %v1053_v62 = vrot.slane %v1037_v56, %v1036_v54 }
  0xf0   : > { %1832 = vmatprep.subr.bf16.mxu0 %v1831_v3  ;;  %1835 = vmatprep.subr.bf16.mxu1 %v1831_v3  ;;  %v1093_v60 = vrot.slane %v1079_v2, %v1036_v54  ;;  %v1094_v61 = vcombine.high %v1086_v57, %v1086_v57  ;;  %v1102_v63 = vrot.slane %v1086_v57, %v1036_v54 }
  0xf1   : > { %1834 = vmatpush3.bf16.msra.mxu0 %v1831_v3  ;;  %1836 = vmatpush3.bf16.msra.mxu1 %v1831_v3  ;;  %v1046_v0 = vcombine.high %v1044_v58, %v1044_v58  ;;  %v1067_v3 = vrot.slane %v1045_v59, %v1036_v54  ;;  %v1075_v5 = vcombine.high %v1053_v62, %v1053_v62 }
  0xf2   : > { %v1095_v1 = vcombine.high %v1093_v60, %v1093_v60  ;;  %v1116_v4 = vrot.slane %v1094_v61, %v1036_v54  ;;  %v1124_v6 = vcombine.high %v1102_v63, %v1102_v63  ;;  %v1060_v8 = vrot.slane %v1044_v58, %v1036_v54 }
  0xf3   : > { %v1131_v14 = vrot.slane %v1053_v62, %v1936_v7  ;;  %v1163_v15 = vrot.slane %v1102_v63, %v1936_v7  ;;  %v1135_v16 = vrot.slane %v1067_v3, %v1936_v7  ;;  %v2145_v18 = vrot.slane %v1075_v5, %v1936_v7 }
  0xf4   : > { %1784 = vmatmul.mubr.msk.f32.vlgmr.msra.gmra.mrb[4].mxu0 %vm706_vm2, %v1641_v9  ;;  %1808 = vmatmul.mubr.msk.f32.vlgmr.msra.gmra.mrb[4].mxu1 %vm706_vm2, %v1657_v10  ;;  %v1109_v9 = vrot.slane %v1093_v60, %v1036_v54  ;;  %v1077_v10 = vcombine.high %v1067_v3, %v1067_v3  ;;  %v1126_v11 = vcombine.high %v1116_v4, %v1116_v4 }
  0xf5   : > { %1786 = vmatprep.mubr.msk.f32.mxu0 %vm706_vm2, %v1642_v13  ;;  %1810 = vmatprep.mubr.msk.f32.mxu1 %vm706_vm2, %v1658_v12  ;;  %v1074_v12 = vrot.slane %v1046_v0, %v1036_v54  ;;  %v1123_v13 = vrot.slane %v1095_v1, %v1036_v54  ;;  %v1167_v17 = vrot.slane %v1116_v4, %v1936_v7 }
  0xf6   : > { %v2156_v25 = vrot.slane %v1077_v10, %v1936_v7  ;;  %v2159_v26 = vrot.slane %v1126_v11, %v1936_v7  ;;  %v2162_v33 = vrot.slane %v1060_v8, %v1936_v7  ;;  %v2165_v34 = vrot.slane %v1109_v9, %v1936_v7 }
  0xf8   : > { %1787 = vmatmul.mubr.msk.f32.gmra.mrb[6].mxu0 %vm706_vm2, %v1643_v20  ;;  %1811 = vmatmul.mubr.msk.f32.gmra.mrb[6].mxu1 %vm706_vm2, %v1659_v19  ;;  %v2148_v19 = vrot.slane %v1124_v6, %v1936_v7  ;;  %v1076_v20 = vcombine.high %v1060_v8, %v1060_v8 }
  0xf9   : > { %1789 = vmatprep.mubr.msk.f32.mxu0 %vm706_vm2, %v1644_v22  ;;  %1813 = vmatprep.mubr.msk.f32.mxu1 %vm706_vm2, %v1660_v21  ;;  %v1125_v21 = vcombine.high %v1109_v9, %v1109_v9 }
  0xfa   : > { %v2181_v43 = vrot.slane %v1076_v20, %v1936_v7 }
  0xfc   : > { %1790 = vmatmul.mubr.msk.f32.gmra.mrb[8].mxu0 %vm706_vm2, %v1645_v24  ;;  %1814 = vmatmul.mubr.msk.f32.gmra.mrb[8].mxu1 %vm706_vm2, %v1661_v23  ;;  %v2153_v23 = vld [vmem:[%s2388_s4] ss:$0 sm:$0xff] }
  0xfd   : > { %1792 = vmatprep.mubr.msk.f32.mxu0 %vm706_vm2, %v1646_v28  ;;  %1816 = vmatprep.mubr.msk.f32.mxu1 %vm706_vm2, %v1662_v27  ;;  %v1078_v27 = vcombine.high %v1074_v12, %v1074_v12  ;;  %v1127_v28 = vcombine.high %v1123_v13, %v1123_v13 }
 0x100   : > { %1793 = vmatmul.mubr.msk.f32.gmra.mrb[10].mxu0 %vm706_vm2, %v1647_v30  ;;  %1817 = vmatmul.mubr.msk.f32.gmra.mrb[10].mxu1 %vm706_vm2, %v1663_v29 }
 0x101   : > { %1795 = vmatprep.mubr.msk.f32.mxu0 %vm706_vm2, %v1648_v32  ;;  %1819 = vmatprep.mubr.msk.f32.mxu1 %vm706_vm2, %v1664_v31 }
 0x104   : > { %1796 = vmatmul.mubr.msk.f32.gmra.mrb[12].mxu0 %vm706_vm2, %v1649_v36  ;;  %1820 = vmatmul.mubr.msk.f32.gmra.mrb[12].mxu1 %vm706_vm2, %v1665_v35  ;;  %v2170_v35 = vld [vmem:[%s2389_s5] ss:$0 sm:$0xff] }
 0x105   : > { %1798 = vmatprep.mubr.msk.f32.mxu0 %vm706_vm2, %v1650_v39  ;;  %1822 = vmatprep.mubr.msk.f32.mxu1 %vm706_vm2, %v1666_v37  ;;  %v2173_v39 = vrot.slane %v1074_v12, %v1936_v7 }
 0x108   : > { %1799 = vmatmul.mubr.msk.f32.gmra.mrb[14].mxu0 %vm706_vm2, %v1651_v41  ;;  %1823 = vmatmul.mubr.msk.f32.gmra.mrb[14].mxu1 %vm706_vm2, %v1667_v40  ;;  %v2176_v40 = vrot.slane %v1123_v13, %v1936_v7 }
 0x109   : > { %1801 = vmatprep.mubr.msk.f32.mxu0 %vm706_vm2, %v1652_v45  ;;  %1825 = vmatprep.mubr.msk.f32.mxu1 %vm706_vm2, %v1668_v44  ;;  %v2184_v44 = vrot.slane %v1125_v21, %v1936_v7 }
 0x10c   : > { %1802 = vmatmul.mubr.msk.f32.gmra.mrb[16].mxu0 %vm706_vm2, %v1653_v49  ;;  %1826 = vmatmul.mubr.msk.f32.gmra.mrb[16].mxu1 %vm706_vm2, %v1669_v48  ;;  %v2189_v49 = vrot.slane %v1078_v27, %v1936_v7 }
 0x10d   : > { %1804 = vmatprep.mubr.msk.f32.mxu0 %vm706_vm2, %v1654_v47  ;;  %1828 = vmatprep.mubr.msk.f32.mxu1 %vm706_vm2, %v1670_v46 }
 0x110   : > { %1805 = vmatmul.mubr.msk.f32.gmra.mrb[18].mxu0 %vm706_vm2, %v1655_v51  ;;  %1829 = vmatmul.mubr.msk.f32.gmra.mrb[18].mxu1 %vm706_vm2, %v1671_v50  ;;  %v2192_v50 = vrot.slane %v1127_v28, %v1936_v7  ;;  %vm1526_vm2 = vcmask 1041409  }
 0x1c7   : > { %v1785_v22 = vpop.f32.mrb[4].mxu0  ;;  %v1809_v24 = vpop.f32.mrb[4].mxu1 }
 0x1c8   : > { %v1209_v29 = vadd.f32 %v1785_v22, %v1131_v14  ;;  %v1225_v30 = vadd.f32 %v1809_v24, %v1163_v15  ;;  %v869_v31 = vpop.f32.mrb[5].mxu0  ;;  %v949_v32 = vpop.f32.mrb[5].mxu1 }
 0x1c9   : > { %v1208_v36 = vadd.f32 %v1131_v14, %v869_v31  ;;  %v1224_v37 = vadd.f32 %v1163_v15, %v949_v32 }
 0x1ca   : > { %v1248_v41 = vmul.f32 %v2153_v23, %v1209_v29  ;;  %v1264_v42 = vmul.f32 %v2153_v23, %v1225_v30 }
 0x1cb   : > { %v1247_v45 = vmul.f32 %v2153_v23, %v1208_v36  ;;  %v1263_v46 = vmul.f32 %v2153_v23, %v1224_v37  ;;  %v1788_v47 = vpop.f32.mrb[6].mxu0  ;;  %v1812_v48 = vpop.f32.mrb[6].mxu1 }
 0x1cc   : > { %v1287_v51 = vadd.f32 %v2170_v35, %v1248_v41  ;;  %v1303_v38 = vadd.f32 %v2170_v35, %v1264_v42  ;;  %v1211_v52 = vadd.f32 %v1788_v47, %v1135_v16  ;;  %v1227_v53 = vadd.f32 %v1812_v48, %v1167_v17  ;;  %v879_v54 = vpop.f32.mrb[7].mxu0  ;;  %v959_v55 = vpop.f32.mrb[7].mxu1 }
 0x1cd   : > { %v1286_v56 = vadd.f32 %v2170_v35, %v1247_v45  ;;  %v1302_v2 = vadd.f32 %v2170_v35, %v1263_v46  ;;  %v1210_v57 = vadd.f32 %v1135_v16, %v879_v54  ;;  %v1226_v58 = vadd.f32 %v1167_v17, %v959_v55 }
 0x1ce   : > { %v1319_v59 = vmax.f32 %v1287_v51, 0.0  ;;  %v1335_v60 = vmax.f32 %v1303_v38, 0.0  ;;  %v1250_v61 = vmul.f32 %v2153_v23, %v1211_v52  ;;  %v1266_v7 = vmul.f32 %v2153_v23, %v1227_v53 }
 0x1cf   : > { %v1318_v62 = vmax.f32 %v1286_v56, 0.0  ;;  %v1334_v63 = vmax.f32 %v1302_v2, 0.0  ;;  %v1249_v0 = vmul.f32 %v2153_v23, %v1210_v57  ;;  %v1265_v1 = vmul.f32 %v2153_v23, %v1226_v58  ;;  %v1791_v3 = vpop.f32.mrb[8].mxu0  ;;  %v1815_v4 = vpop.f32.mrb[8].mxu1 }
 0x1d0   : > { %v1351_v5 = vsel %vm312_vm1, %v1319_v59, -inf  ;;  %v1423_v6 = vsel %vm312_vm1, %v1335_v60, -inf  ;;  %v1289_v8 = vadd.f32 %v2170_v35, %v1250_v61  ;;  %v1305_v9 = vadd.f32 %v2170_v35, %v1266_v7  ;;  %v889_v10 = vpop.f32.mrb[9].mxu0  ;;  %v969_v11 = vpop.f32.mrb[9].mxu1 }
 0x1d1   : > { %v1350_v12 = vsel %vm312_vm1, %v1318_v62, -inf  ;;  %v1422_v13 = vsel %vm312_vm1, %v1334_v63, -inf  ;;  %v1288_v14 = vadd.f32 %v2170_v35, %v1249_v0  ;;  %v1304_v15 = vadd.f32 %v2170_v35, %v1265_v1 }
 0x1d2   : > { %v1352_v16 = vmax.f32 %v1350_v12, %v1351_v5  ;;  %v1424_v17 = vmax.f32 %v1422_v13, %v1423_v6  ;;  %v1321_v20 = vmax.f32 %v1289_v8, 0.0  ;;  %v1337_v21 = vmax.f32 %v1305_v9, 0.0 }
 0x1d3   : > { %v1320_v22 = vmax.f32 %v1288_v14, 0.0  ;;  %v1336_v24 = vmax.f32 %v1304_v15, 0.0  ;;  %v1213_v27 = vadd.f32 %v1791_v3, %v2145_v18  ;;  %v1229_v28 = vadd.f32 %v1815_v4, %v2148_v19  ;;  %v1794_v29 = vpop.f32.mrb[10].mxu0  ;;  %v1818_v30 = vpop.f32.mrb[10].mxu1 }
 0x1d4   : > { %v1353_v31 = vrot.slane %v1352_v16, 4  ;;  %v1425_v32 = vrot.slane %v1424_v17, 4  ;;  %v1360_v36 = vsel %vm312_vm1, %v1321_v20, -inf  ;;  %v1432_v37 = vsel %vm312_vm1, %v1337_v21, -inf  ;;  %v2214_v41 = vpop.f32.mrb[11].mxu0  ;;  %v2216_v42 = vpop.f32.mrb[11].mxu1 }
 0x1d5   : > { %v1359_v45 = vsel %vm312_vm1, %v1320_v22, -inf  ;;  %v1431_v46 = vsel %vm312_vm1, %v1336_v24, -inf  ;;  %v1252_v47 = vmul.f32 %v2153_v23, %v1213_v27  ;;  %v1268_v48 = vmul.f32 %v2153_v23, %v1229_v28 }
 0x1d6   : > { %v1354_v51 = vmax.f32 %v1352_v16, %v1353_v31  ;;  %v1426_v38 = vmax.f32 %v1424_v17, %v1425_v32  ;;  %v1361_v52 = vmax.f32 %v1359_v45, %v1360_v36  ;;  %v1433_v53 = vmax.f32 %v1431_v46, %v1432_v37 }
 0x1d7   : > { %v1291_v54 = vadd.f32 %v2170_v35, %v1252_v47  ;;  %v1307_v55 = vadd.f32 %v2170_v35, %v1268_v48  ;;  %v1212_v56 = vadd.f32 %v2145_v18, %v889_v10  ;;  %v1228_v2 = vadd.f32 %v2148_v19, %v969_v11  ;;  %v2226_v57 = vpop.f32.mrb[12].mxu0  ;;  %v2228_v58 = vpop.f32.mrb[12].mxu1 }
 0x1d8   : > { %v1355_v59 = vrot.slane %v1354_v51, 2  ;;  %v1427_v60 = vrot.slane %v1426_v38, 2  ;;  %v1362_v61 = vrot.slane %v1361_v52, 4  ;;  %v1434_v7 = vrot.slane %v1433_v53, 4  ;;  %v2230_v62 = vpop.f32.mrb[13].mxu0  ;;  %v2232_v63 = vpop.f32.mrb[13].mxu1 }
 0x1d9   : > { %v1323_v0 = vmax.f32 %v1291_v54, 0.0  ;;  %v1339_v1 = vmax.f32 %v1307_v55, 0.0  ;;  %v1251_v3 = vmul.f32 %v2153_v23, %v1212_v56  ;;  %v1267_v18 = vmul.f32 %v2153_v23, %v1228_v2 }
 0x1da   : > { %v1356_v4 = vmax.f32 %v1354_v51, %v1355_v59  ;;  %v1428_v19 = vmax.f32 %v1426_v38, %v1427_v60  ;;  %v1363_v5 = vmax.f32 %v1361_v52, %v1362_v61  ;;  %v1435_v6 = vmax.f32 %v1433_v53, %v1434_v7 }
 0x1db   : > { %v1369_v8 = vsel %vm312_vm1, %v1323_v0, -inf  ;;  %v1441_v9 = vsel %vm312_vm1, %v1339_v1, -inf  ;;  %v1290_v10 = vadd.f32 %v2170_v35, %v1251_v3  ;;  %v1306_v11 = vadd.f32 %v2170_v35, %v1267_v18  ;;  %v2240_v12 = vpop.f32.mrb[14].mxu0  ;;  %v2242_v13 = vpop.f32.mrb[14].mxu1 }
 0x1dc   : > { %v1357_v14 = vrot.slane %v1356_v4, 1  ;;  %v1429_v15 = vrot.slane %v1428_v19, 1  ;;  %v1364_v16 = vrot.slane %v1363_v5, 2  ;;  %v1436_v17 = vrot.slane %v1435_v6, 2  ;;  %v2244_v20 = vpop.f32.mrb[15].mxu0  ;;  %v2246_v21 = vpop.f32.mrb[15].mxu1 }
 0x1dd   : > { %v1322_v22 = vmax.f32 %v1290_v10, 0.0  ;;  %v1338_v24 = vmax.f32 %v1306_v11, 0.0  ;;  %v1215_v27 = vadd.f32 %v1794_v29, %v2156_v25  ;;  %v1231_v28 = vadd.f32 %v1818_v30, %v2159_v26 }
 0x1de   : > { %v1358_v31 = vmax.f32 %v1356_v4, %v1357_v14  ;;  %v1430_v32 = vmax.f32 %v1428_v19, %v1429_v15  ;;  %v1365_v36 = vmax.f32 %v1363_v5, %v1364_v16  ;;  %v1437_v37 = vmax.f32 %v1435_v6, %v1436_v17 }
 0x1df   : > { %v1368_v45 = vsel %vm312_vm1, %v1322_v22, -inf  ;;  %v1440_v46 = vsel %vm312_vm1, %v1338_v24, -inf  ;;  %v1254_v47 = vmul.f32 %v2153_v23, %v1215_v27  ;;  %v1270_v48 = vmul.f32 %v2153_v23, %v1231_v28  ;;  %v2254_v51 = vpop.f32.mrb[16].mxu0  ;;  %v2256_v38 = vpop.f32.mrb[16].mxu1 }
 0x1e0   : > { %v1494_v52 = vmax.f32 %v1358_v31, 0.0  ;;  %v1502_v29 = vmax.f32 %v1430_v32, 0.0  ;;  %v1366_v53 = vrot.slane %v1365_v36, 1  ;;  %v1438_v30 = vrot.slane %v1437_v37, 1  ;;  %v2258_v54 = vpop.f32.mrb[17].mxu0  ;;  %v2260_v55 = vpop.f32.mrb[17].mxu1 }
 0x1e1   : > { %v1370_v56 = vmax.f32 %v1368_v45, %v1369_v8  ;;  %v1442_v2 = vmax.f32 %v1440_v46, %v1441_v9  ;;  %v1293_v59 = vadd.f32 %v2170_v35, %v1254_v47  ;;  %v1309_v60 = vadd.f32 %v2170_v35, %v1270_v48 }
 0x1e2   : > { %v1367_v61 = vmax.f32 %v1365_v36, %v1366_v53  ;;  %v1439_v7 = vmax.f32 %v1437_v37, %v1438_v30  ;;  %v1214_v0 = vadd.f32 %v2156_v25, %v2214_v41  ;;  %v1230_v1 = vadd.f32 %v2159_v26, %v2216_v42 }
 0x1e3   : > { %v1371_v3 = vrot.slane %v1370_v56, 4  ;;  %v1443_v18 = vrot.slane %v1442_v2, 4  ;;  %v1325_v4 = vmax.f32 %v1293_v59, 0.0  ;;  %v1341_v19 = vmax.f32 %v1309_v60, 0.0  ;;  %v2268_v5 = vpop.f32.mrb[18].mxu0  ;;  %v2270_v6 = vpop.f32.mrb[18].mxu1 }
 0x1e4   : > { %v1495_v8 = vmax.f32 %v1367_v61, 0.0  ;;  %v1503_v9 = vmax.f32 %v1439_v7, 0.0  ;;  %v1253_v10 = vmul.f32 %v2153_v23, %v1214_v0  ;;  %v1269_v11 = vmul.f32 %v2153_v23, %v1230_v1  ;;  %v2274_v14 = vpop.f32.mrb[19].mxu0  ;;  %v2276_v25 = vpop.f32.mrb[19].mxu1 }
 0x1e5   : > { %v1372_v41 = vmax.f32 %v1370_v56, %v1371_v3  ;;  %v1444_v26 = vmax.f32 %v1442_v2, %v1443_v18  ;;  %v1378_v42 = vsel %vm312_vm1, %v1325_v4, -inf  ;;  %v1450_v15 = vsel %vm312_vm1, %v1341_v19, -inf }
 0x1e6   : > { %v1527_v16 = vsel %vm1526_vm2, %v1495_v8, %v1494_v52  ;;  %v1540_v17 = vsel %vm1526_vm2, %v1503_v9, %v1502_v29  ;;  %v1292_v22 = vadd.f32 %v2170_v35, %v1253_v10  ;;  %v1308_v24 = vadd.f32 %v2170_v35, %v1269_v11 }
 0x1e7   : > { %v1373_v27 = vrot.slane %v1372_v41, 2  ;;  %v1445_v28 = vrot.slane %v1444_v26, 2  ;;  %v1217_v31 = vadd.f32 %v2226_v57, %v2162_v33  ;;  %v1233_v32 = vadd.f32 %v2228_v58, %v2165_v34 }
 0x1e8   : > { %v1324_v36 = vmax.f32 %v1292_v22, 0.0  ;;  %v1340_v37 = vmax.f32 %v1308_v24, 0.0  ;;  %v1216_v45 = vadd.f32 %v2162_v33, %v2230_v62  ;;  %v1232_v46 = vadd.f32 %v2165_v34, %v2232_v63 }
 0x1e9   : > { %v1374_v47 = vmax.f32 %v1372_v41, %v1373_v27  ;;  %v1446_v48 = vmax.f32 %v1444_v26, %v1445_v28  ;;  %v1256_v52 = vmul.f32 %v2153_v23, %v1217_v31  ;;  %v1272_v29 = vmul.f32 %v2153_v23, %v1233_v32 }
 0x1ea   : > { %v1377_v53 = vsel %vm312_vm1, %v1324_v36, -inf  ;;  %v1449_v57 = vsel %vm312_vm1, %v1340_v37, -inf  ;;  %v1255_v58 = vmul.f32 %v2153_v23, %v1216_v45  ;;  %v1271_v30 = vmul.f32 %v2153_v23, %v1232_v46 }
 0x1eb   : > { %v1375_v56 = vrot.slane %v1374_v47, 1  ;;  %v1447_v2 = vrot.slane %v1446_v48, 1  ;;  %v1379_v33 = vmax.f32 %v1377_v53, %v1378_v42  ;;  %v1451_v62 = vmax.f32 %v1449_v57, %v1450_v15 }
 0x1ec   : > { %v1295_v34 = vadd.f32 %v2170_v35, %v1256_v52  ;;  %v1311_v63 = vadd.f32 %v2170_v35, %v1272_v29  ;;  %v1294_v59 = vadd.f32 %v2170_v35, %v1255_v58  ;;  %v1310_v60 = vadd.f32 %v2170_v35, %v1271_v30 }
 0x1ed   : > { %v1376_v61 = vmax.f32 %v1374_v47, %v1375_v56  ;;  %v1448_v7 = vmax.f32 %v1446_v48, %v1447_v2  ;;  %v1380_v0 = vrot.slane %v1379_v33, 4  ;;  %v1452_v1 = vrot.slane %v1451_v62, 4 }
 0x1ee   : > { %v1327_v3 = vmax.f32 %v1295_v34, 0.0  ;;  %v1343_v18 = vmax.f32 %v1311_v63, 0.0  ;;  %v1326_v4 = vmax.f32 %v1294_v59, 0.0  ;;  %v1342_v19 = vmax.f32 %v1310_v60, 0.0 }
 0x1ef   : > { %v1496_v8 = vmax.f32 %v1376_v61, 0.0  ;;  %v1504_v9 = vmax.f32 %v1448_v7, 0.0  ;;  %v1381_v10 = vmax.f32 %v1379_v33, %v1380_v0  ;;  %v1453_v11 = vmax.f32 %v1451_v62, %v1452_v1 }
 0x1f0   : > { %v1387_v41 = vsel %vm312_vm1, %v1327_v3, -inf  ;;  %v1459_v26 = vsel %vm312_vm1, %v1343_v18, -inf  ;;  %v1386_v42 = vsel %vm312_vm1, %v1326_v4, -inf  ;;  %v1458_v15 = vsel %vm312_vm1, %v1342_v19, -inf }
 0x1f1   : > { %v1529_v22 = vsel %vm1528_vm7, %v1496_v8, %v1527_v16  ;;  %v1541_v24 = vsel %vm1528_vm7, %v1504_v9, %v1540_v17  ;;  %v1382_v27 = vrot.slane %v1381_v10, 2  ;;  %v1454_v28 = vrot.slane %v1453_v11, 2 }
 0x1f2   : > { %v1388_v31 = vmax.f32 %v1386_v42, %v1387_v41  ;;  %v1460_v32 = vmax.f32 %v1458_v15, %v1459_v26  ;;  %v1219_v36 = vadd.f32 %v2240_v12, %v2173_v39  ;;  %v1235_v37 = vadd.f32 %v2242_v13, %v2176_v40 }
 0x1f3   : > { %v1383_v45 = vmax.f32 %v1381_v10, %v1382_v27  ;;  %v1455_v46 = vmax.f32 %v1453_v11, %v1454_v28  ;;  %v1218_v47 = vadd.f32 %v2173_v39, %v2244_v20  ;;  %v1234_v16 = vadd.f32 %v2176_v40, %v2246_v21 }
 0x1f4   : > { %v1389_v48 = vrot.slane %v1388_v31, 4  ;;  %v1461_v17 = vrot.slane %v1460_v32, 4  ;;  %v1258_v52 = vmul.f32 %v2153_v23, %v1219_v36  ;;  %v1274_v29 = vmul.f32 %v2153_v23, %v1235_v37 }
 0x1f5   : > { %v1384_v53 = vrot.slane %v1383_v45, 1  ;;  %v1456_v57 = vrot.slane %v1455_v46, 1  ;;  %v1257_v12 = vmul.f32 %v2153_v23, %v1218_v47  ;;  %v1273_v13 = vmul.f32 %v2153_v23, %v1234_v16 }
 0x1f6   : > { %v1390_v58 = vmax.f32 %v1388_v31, %v1389_v48  ;;  %v1462_v30 = vmax.f32 %v1460_v32, %v1461_v17  ;;  %v1297_v56 = vadd.f32 %v2170_v35, %v1258_v52  ;;  %v1313_v39 = vadd.f32 %v2170_v35, %v1274_v29 }
 0x1f7   : > { %v1385_v20 = vmax.f32 %v1383_v45, %v1384_v53  ;;  %v1457_v40 = vmax.f32 %v1455_v46, %v1456_v57  ;;  %v1296_v21 = vadd.f32 %v2170_v35, %v1257_v12  ;;  %v1312_v2 = vadd.f32 %v2170_v35, %v1273_v13 }
 0x1f8   : > { %v1391_v33 = vrot.slane %v1390_v58, 2  ;;  %v1463_v62 = vrot.slane %v1462_v30, 2  ;;  %v1329_v34 = vmax.f32 %v1297_v56, 0.0  ;;  %v1345_v63 = vmax.f32 %v1313_v39, 0.0 }
 0x1f9   : > { %v1497_v59 = vmax.f32 %v1385_v20, 0.0  ;;  %v1505_v60 = vmax.f32 %v1457_v40, 0.0  ;;  %v1328_v61 = vmax.f32 %v1296_v21, 0.0  ;;  %v1344_v7 = vmax.f32 %v1312_v2, 0.0 }
 0x1fa   : > { %v1392_v0 = vmax.f32 %v1390_v58, %v1391_v33  ;;  %v1464_v1 = vmax.f32 %v1462_v30, %v1463_v62  ;;  %v1396_v3 = vsel %vm312_vm1, %v1329_v34, -inf  ;;  %v1468_v18 = vsel %vm312_vm1, %v1345_v63, -inf }
 0x1fb   : > { %v1531_v4 = vsel %vm1530_vm8, %v1497_v59, %v1529_v22  ;;  %v1542_v19 = vsel %vm1530_vm8, %v1505_v60, %v1541_v24  ;;  %v1395_v8 = vsel %vm312_vm1, %v1328_v61, -inf  ;;  %v1467_v9 = vsel %vm312_vm1, %v1344_v7, -inf }
 0x1fc   : > { %v1393_v10 = vrot.slane %v1392_v0, 1  ;;  %v1465_v11 = vrot.slane %v1464_v1, 1  ;;  %v1397_v41 = vmax.f32 %v1395_v8, %v1396_v3  ;;  %v1469_v26 = vmax.f32 %v1467_v9, %v1468_v18 }
 0x1fd   : > { %v1221_v42 = vadd.f32 %v2254_v51, %v2181_v43  ;;  %v1237_v15 = vadd.f32 %v2256_v38, %v2184_v44  ;;  %v1220_v27 = vadd.f32 %v2181_v43, %v2258_v54  ;;  %v1236_v22 = vadd.f32 %v2184_v44, %v2260_v55 }
 0x1fe   : > { %v1394_v24 = vmax.f32 %v1392_v0, %v1393_v10  ;;  %v1466_v28 = vmax.f32 %v1464_v1, %v1465_v11  ;;  %v1398_v31 = vrot.slane %v1397_v41, 4  ;;  %v1470_v32 = vrot.slane %v1469_v26, 4 }
 0x1ff   : > { %v1260_v36 = vmul.f32 %v2153_v23, %v1221_v42  ;;  %v1276_v37 = vmul.f32 %v2153_v23, %v1237_v15  ;;  %v1259_v45 = vmul.f32 %v2153_v23, %v1220_v27  ;;  %v1275_v51 = vmul.f32 %v2153_v23, %v1236_v22 }
 0x200   : > { %v1498_v46 = vmax.f32 %v1394_v24, 0.0  ;;  %v1506_v38 = vmax.f32 %v1466_v28, 0.0  ;;  %v1399_v47 = vmax.f32 %v1397_v41, %v1398_v31  ;;  %v1471_v16 = vmax.f32 %v1469_v26, %v1470_v32 }
 0x201   : > { %v1299_v43 = vadd.f32 %v2170_v35, %v1260_v36  ;;  %v1315_v44 = vadd.f32 %v2170_v35, %v1276_v37  ;;  %v1298_v54 = vadd.f32 %v2170_v35, %v1259_v45  ;;  %v1314_v55 = vadd.f32 %v2170_v35, %v1275_v51 }
 0x202   : > { %v1533_v48 = vsel %vm1532_vm9, %v1498_v46, %v1531_v4  ;;  %v1543_v17 = vsel %vm1532_vm9, %v1506_v38, %v1542_v19  ;;  %v1400_v52 = vrot.slane %v1399_v47, 2  ;;  %v1472_v29 = vrot.slane %v1471_v16, 2 }
 0x203   : > { %v1331_v53 = vmax.f32 %v1299_v43, 0.0  ;;  %v1347_v57 = vmax.f32 %v1315_v44, 0.0  ;;  %v1330_v12 = vmax.f32 %v1298_v54, 0.0  ;;  %v1346_v13 = vmax.f32 %v1314_v55, 0.0 }
 0x204   : > { %v1401_v58 = vmax.f32 %v1399_v47, %v1400_v52  ;;  %v1473_v30 = vmax.f32 %v1471_v16, %v1472_v29  ;;  %v1223_v56 = vadd.f32 %v2268_v5, %v2189_v49  ;;  %v1239_v39 = vadd.f32 %v2270_v6, %v2192_v50 }
 0x205   : > { %v1405_v20 = vsel %vm312_vm1, %v1331_v53, -inf  ;;  %v1477_v40 = vsel %vm312_vm1, %v1347_v57, -inf  ;;  %v1404_v21 = vsel %vm312_vm1, %v1330_v12, -inf  ;;  %v1476_v2 = vsel %vm312_vm1, %v1346_v13, -inf }
 0x206   : > { %v1402_v33 = vrot.slane %v1401_v58, 1  ;;  %v1474_v62 = vrot.slane %v1473_v30, 1  ;;  %v1406_v34 = vmax.f32 %v1404_v21, %v1405_v20  ;;  %v1478_v63 = vmax.f32 %v1476_v2, %v1477_v40 }
 0x207   : > { %v1262_v59 = vmul.f32 %v2153_v23, %v1223_v56  ;;  %v1278_v60 = vmul.f32 %v2153_v23, %v1239_v39  ;;  %v1222_v5 = vadd.f32 %v2189_v49, %v2274_v14  ;;  %v1238_v6 = vadd.f32 %v2192_v50, %v2276_v25 }
 0x208   : > { %v1403_v61 = vmax.f32 %v1401_v58, %v1402_v33  ;;  %v1475_v7 = vmax.f32 %v1473_v30, %v1474_v62  ;;  %v1407_v0 = vrot.slane %v1406_v34, 4  ;;  %v1479_v1 = vrot.slane %v1478_v63, 4 }
 0x209   : > { %v1301_v3 = vadd.f32 %v2170_v35, %v1262_v59  ;;  %v1317_v18 = vadd.f32 %v2170_v35, %v1278_v60  ;;  %v1261_v4 = vmul.f32 %v2153_v23, %v1222_v5  ;;  %v1277_v19 = vmul.f32 %v2153_v23, %v1238_v6 }
 0x20a   : > { %v1499_v8 = vmax.f32 %v1403_v61, 0.0  ;;  %v1507_v9 = vmax.f32 %v1475_v7, 0.0  ;;  %v1408_v10 = vmax.f32 %v1406_v34, %v1407_v0  ;;  %v1480_v11 = vmax.f32 %v1478_v63, %v1479_v1 }
 0x20b   : > { %v1333_v49 = vmax.f32 %v1301_v3, 0.0  ;;  %v1349_v14 = vmax.f32 %v1317_v18, 0.0  ;;  %v1300_v50 = vadd.f32 %v2170_v35, %v1261_v4  ;;  %v1316_v25 = vadd.f32 %v2170_v35, %v1277_v19 }
 0x20c   : > { %v1535_v41 = vsel %vm1534_vm10, %v1499_v8, %v1533_v48  ;;  %v1544_v26 = vsel %vm1534_vm10, %v1507_v9, %v1543_v17  ;;  %v1409_v42 = vrot.slane %v1408_v10, 2  ;;  %v1481_v15 = vrot.slane %v1480_v11, 2 }
 0x20d   : > { %v1414_v27 = vsel %vm312_vm1, %v1333_v49, -inf  ;;  %v1486_v23 = vsel %vm312_vm1, %v1349_v14, -inf  ;;  %v1332_v22 = vmax.f32 %v1300_v50, 0.0  ;;  %v1348_v24 = vmax.f32 %v1316_v25, 0.0 }
 0x20e   : > { %v1410_v28 = vmax.f32 %v1408_v10, %v1409_v42  ;;  %v1482_v31 = vmax.f32 %v1480_v11, %v1481_v15 }
 0x20f   : > { %v1413_v32 = vsel %vm312_vm1, %v1332_v22, -inf  ;;  %v1485_v36 = vsel %vm312_vm1, %v1348_v24, -inf }
 0x210   : > { %v1411_v37 = vrot.slane %v1410_v28, 1  ;;  %v1483_v35 = vrot.slane %v1482_v31, 1  ;;  %v1415_v45 = vmax.f32 %v1413_v32, %v1414_v27  ;;  %v1487_v51 = vmax.f32 %v1485_v36, %v1486_v23 }
 0x212   : > { %v1412_v46 = vmax.f32 %v1410_v28, %v1411_v37  ;;  %v1484_v38 = vmax.f32 %v1482_v31, %v1483_v35  ;;  %v1416_v47 = vrot.slane %v1415_v45, 4  ;;  %v1488_v16 = vrot.slane %v1487_v51, 4 }
 0x214   : > { %v1500_v43 = vmax.f32 %v1412_v46, 0.0  ;;  %v1508_v44 = vmax.f32 %v1484_v38, 0.0  ;;  %v1417_v54 = vmax.f32 %v1415_v45, %v1416_v47  ;;  %v1489_v55 = vmax.f32 %v1487_v51, %v1488_v16 }
 0x216   : > { %v1537_v48 = vsel %vm1536_vm11, %v1500_v43, %v1535_v41  ;;  %v1545_v17 = vsel %vm1536_vm11, %v1508_v44, %v1544_v26  ;;  %v1418_v52 = vrot.slane %v1417_v54, 2  ;;  %v1490_v29 = vrot.slane %v1489_v55, 2 }
 0x218   : > { %v1419_v53 = vmax.f32 %v1417_v54, %v1418_v52  ;;  %v1491_v57 = vmax.f32 %v1489_v55, %v1490_v29 }
 0x21a   : > { %v1420_v12 = vrot.slane %v1419_v53, 1  ;;  %v1492_v13 = vrot.slane %v1491_v57, 1 }
 0x21c   : > { %v1421_v58 = vmax.f32 %v1419_v53, %v1420_v12  ;;  %v1493_v30 = vmax.f32 %v1491_v57, %v1492_v13 }
 0x21e   : > { %v1501_v56 = vmax.f32 %v1421_v58, 0.0  ;;  %v1509_v39 = vmax.f32 %v1493_v30, 0.0 }
 0x220   : > { %v1539_v20 = vsel %vm1538_vm12, %v1501_v56, %v1537_v48  ;;  %v1546_v40 = vsel %vm1538_vm12, %v1509_v39, %v1545_v17 }
 0x221   : > { %1549 = vst.msk [vmem:[%s271_s7] sm:$0xff] %vm312_vm1, %v1539_v20  ;;  %1550 = vst.msk [vmem:[%s271_s7 + $0x8] sm:$0xff] %vm312_vm1, %v1546_v40 }
 0x222 PF: > { %s16_s21 = sadd.s32 1, %s1863_s21  }
 0x223   : > { %p13_p4 = scmp.ge.s32.totalorder %s16_s21, 4  }
 0x225   :  { %15 = sbr.rel (!%p13_p4) target bundleno = 1 (0x1), region = 77 }

// kernel: dyn_diff_pool_forward.28
= control target key start
LH: loop header
LB: loop body
LE: loop exit
PB: predicated region body
PF: predicated region fallthrough
CT: control target
= control target key end

     0   :  { %s1903_s21 = smov 0   ;;  %s2384_s0 = inlined_call_operand.vmem [shape: bf16[2,16,64], index: 0, kind: input, shape index: {}]   ;;  %s2385_s1 = inlined_call_operand.vmem [shape: s32[2,16,16], index: 1, kind: input, shape index: {}]   ;;  %s2386_s2 = inlined_call_operand.vmem [shape: bf16[64,16], index: 2, kind: input, shape index: {}]   ;;  %s2387_s3 = inlined_call_operand.vmem [shape: bf16[64,16], index: 3, kind: input, shape index: {}]   ;;  %s2388_s4 = inlined_call_operand.vmem [shape: f32[1,16], index: 4, kind: input, shape index: {}]   ;;  %s2389_s5 = inlined_call_operand.vmem [shape: f32[1,16], index: 5, kind: input, shape index: {}]   ;;  %s2390_s6 = inlined_call_operand.vmem [shape: f32[2,16,16], index: 6, kind: output, shape index: {}]  }
   0x1 LB: > { %s1618_s22 = sadd.s32 4294967295, %s1863_s21   ;;  %p1622_p0 = scmp.ge.s32.totalorder %s1863_s21, 1  ;;  %s1863_s21 = sphi %s1903_s21, %s16_s21  }
   0x2   : > { %p222_p1 = scmp.lt.s32.totalorder %s1863_s21, 3 }
   0x4   : > { %p223_p2 = pnand %p1622_p0, %p222_p1 }
   0x5   : > { %v1848_v0 = vld [vmem:[%s2387_s3] sm:$0xff] (!%p223_p2)   ;;  %v432_v1 = vlaneseq (!%p223_p2)  ;;  %v1865_v2 = vmov (!%p223_p2), 0.0   ;;  %v1849_v3 = vld [vmem:[%s2387_s3 + $0x8] sm:$0xff] (!%p223_p2)   ;;  %vm1866_vm0 = vmmov (!%p223_p2), 0   ;;  %p257_p3 = scmp.lt.s32.totalorder (!%p223_p2), %s1618_s22, 1  ;;  %v1850_v6 = vld [vmem:[%s2387_s3 + $0x10] sm:$0xff] (!%p223_p2)  }
   0x6   : > { %226 = sbr.rel (%p223_p2) target bundleno = 546 (0x222), region = 44  ;;  %1767 = vmatprep.subr.bf16.mxu1 (!%p223_p2), %v1865_v2  ;;  %1755 = vmatprep.subr.bf16.mxu0 (!%p223_p2), %v1865_v2  ;;  %v1853_v5 = vld [vmem:[%s2386_s2] sm:$0xff] (!%p223_p2)   ;;  %v1851_v8 = vld [vmem:[%s2387_s3 + $0x18] sm:$0xff] (!%p223_p2)   ;;  %v1854_v9 = vld [vmem:[%s2386_s2 + $0x8] sm:$0xff] (!%p223_p2)   ;;  %vm312_vm1 = vcmask (!%p223_p2), 523264   ;;  %vm706_vm2 = vcmask (!%p223_p2), 130048  }
   0x7   : > { %1768 = vmatpush3.bf16.msra.mxu1 (!%p223_p2), %v1848_v0  ;;  %1775 = vmatprep.mubr.msk.bf16.mxu1 (!%p223_p2), %vm1866_vm0, %v1865_v2  ;;  %v1925_v4 = vshrl.u32 (!%p223_p2), %v432_v1, 7  ;;  %v1855_v16 = vld [vmem:[%s2386_s2 + $0x10] sm:$0xff] (!%p223_p2)   ;;  %v1856_v19 = vld [vmem:[%s2386_s2 + $0x18] sm:$0xff] (!%p223_p2)   ;;  %v1995_v38 = vand.u32 (!%p223_p2), 127, %v432_v1 }
   0x8   : > { %1769 = vmatprep.subr.bf16.mxu1 (!%p223_p2), %v1865_v2  ;;  %1763 = vmatprep.mubr.msk.bf16.mxu0 (!%p223_p2), %vm1866_vm0, %v1865_v2 }
   0x9   : > { %v1936_v7 = vsub.s32 (!%p223_p2), 0, %v1925_v4  ;;  %1756 = vmatpush3.bf16.msra.mxu0 (!%p223_p2), %v1853_v5  ;;  %v445_v14 = vsub.s32 (!%p223_p2), 1, %v1925_v4  ;;  %v456_v20 = vsub.s32 (!%p223_p2), 2, %v1925_v4  ;;  %v467_v23 = vsub.s32 (!%p223_p2), 3, %v1925_v4 }
   0xa   : > { %1757 = vmatprep.subr.bf16.mxu0 (!%p223_p2), %v1865_v2  ;;  %v478_v26 = vsub.s32 (!%p223_p2), 4, %v1925_v4  ;;  %v489_v29 = vsub.s32 (!%p223_p2), 5, %v1925_v4  ;;  %v500_v32 = vsub.s32 (!%p223_p2), 6, %v1925_v4  ;;  %v511_v35 = vsub.s32 (!%p223_p2), 7, %v1925_v4 }
   0xb   : > { %1770 = vmatpush3.bf16.msra.mxu1 (!%p223_p2), %v1849_v3 }
   0xc   : > { %1771 = vmatprep.subr.bf16.mxu1 (!%p223_p2), %v1865_v2 }
   0xd   : > { %s2392_s22 = smov (!%p257_p3, %s1618_s22), 1  ;;  %1758 = vmatpush3.bf16.msra.mxu0 %v1854_v9 }
   0xe   : > { %s1708_s7 = sshll.u32 %s2392_s22, 3  ;;  %s1709_s8 = sshll.u32 %s2392_s22, 4  ;;  %1759 = vmatprep.subr.bf16.mxu0 %v1865_v2 }
   0xf   : > { %s261_s11 = scalar_lea.vmem %s2384_s0, %s1708_s7  ;;  %s266_s14 = scalar_lea.vmem %s2385_s1, %s1709_s8  ;;  %1772 = vmatpush3.bf16.msra.mxu1 %v1850_v6 }
  0x10   : > { %v1954_v10 = vld [vmem:[%s266_s14] sm:$0xff]  ;;  %v1956_v11 = vld [vmem:[%s266_s14 + $0x8] sm:$0xff]  ;;  %1773 = vmatprep.subr.bf16.mxu1 %v1865_v2  ;;  %s271_s7 = scalar_lea.vmem %s2390_s6, %s1709_s8 }
  0x11   : > { %v435_v12 = vrot.slane %v1954_v10, %v1936_v7  ;;  %v523_v13 = vrot.slane %v1956_v11, %v1936_v7  ;;  %v1852_v15 = vld [vmem:[%s261_s11] sm:$0xff]   ;;  %v534_v17 = vrot.slane %v1956_v11, %v445_v14  ;;  %v446_v18 = vrot.slane %v1954_v10, %v445_v14  ;;  %1760 = vmatpush3.bf16.msra.mxu0 %v1855_v16 }
  0x12   : > { %1761 = vmatprep.subr.bf16.mxu0 %v1865_v2  ;;  %v545_v21 = vrot.slane %v1956_v11, %v456_v20  ;;  %v457_v22 = vrot.slane %v1954_v10, %v456_v20  ;;  %v556_v24 = vrot.slane %v1956_v11, %v467_v23  ;;  %v468_v25 = vrot.slane %v1954_v10, %v467_v23 }
  0x13   : > { %441 = vbcast.lane.b32.xlu1 %v435_v12, 264  ;;  %437 = vbcast.lane.b32.xlu0 %v435_v12, 256  ;;  %v567_v27 = vrot.slane %v1956_v11, %v478_v26  ;;  %v479_v28 = vrot.slane %v1954_v10, %v478_v26  ;;  %v578_v30 = vrot.slane %v1956_v11, %v489_v29 }
  0x14   : > { %1774 = vmatpush3.bf16.msra.mxu1 %v1851_v8  ;;  %v490_v31 = vrot.slane %v1954_v10, %v489_v29  ;;  %v589_v33 = vrot.slane %v1956_v11, %v500_v32  ;;  %v501_v34 = vrot.slane %v1954_v10, %v500_v32  ;;  %v600_v36 = vrot.slane %v1956_v11, %v511_v35 }
  0x15   : > { %1762 = vmatpush3.bf16.msra.mxu0 %v1856_v19  ;;  %v512_v37 = vrot.slane %v1954_v10, %v511_v35 }
  0x17   : > { %529 = vbcast.lane.b32.xlu1 %v523_v13, 264  ;;  %525 = vbcast.lane.b32.xlu0 %v523_v13, 256 }
  0x18   : > { %1776 = vmatmul.mubr.msk.bf16.vlgmr.msra.gmra.mrb[0].mxu1 %vm312_vm1, %v1852_v15  ;;  %1764 = vmatmul.mubr.msk.bf16.vlgmr.msra.gmra.mrb[0].mxu0 %vm312_vm1, %v1852_v15 }
  0x1b   : > { %536 = vbcast.lane.b32.xlu1 %v534_v17, 256  ;;  %448 = vbcast.lane.b32.xlu0 %v446_v18, 256 }
  0x1f   : > { %540 = vbcast.lane.b32.xlu1 %v534_v17, 264  ;;  %452 = vbcast.lane.b32.xlu0 %v446_v18, 264 }
  0x23   : > { %547 = vbcast.lane.b32.xlu1 %v545_v21, 256  ;;  %459 = vbcast.lane.b32.xlu0 %v457_v22, 256 }
  0x27   : > { %551 = vbcast.lane.b32.xlu1 %v545_v21, 264  ;;  %463 = vbcast.lane.b32.xlu0 %v457_v22, 264 }
  0x2b   : > { %558 = vbcast.lane.b32.xlu1 %v556_v24, 256  ;;  %470 = vbcast.lane.b32.xlu0 %v468_v25, 256 }
  0x2f   : > { %562 = vbcast.lane.b32.xlu1 %v556_v24, 264  ;;  %474 = vbcast.lane.b32.xlu0 %v468_v25, 264 }
  0x33   : > { %569 = vbcast.lane.b32.xlu1 %v567_v27, 256  ;;  %481 = vbcast.lane.b32.xlu0 %v479_v28, 256 }
  0x37   : > { %573 = vbcast.lane.b32.xlu1 %v567_v27, 264  ;;  %485 = vbcast.lane.b32.xlu0 %v479_v28, 264 }
  0x3b   : > { %580 = vbcast.lane.b32.xlu1 %v578_v30, 256  ;;  %492 = vbcast.lane.b32.xlu0 %v490_v31, 256 }
  0x3f   : > { %584 = vbcast.lane.b32.xlu1 %v578_v30, 264  ;;  %496 = vbcast.lane.b32.xlu0 %v490_v31, 264 }
  0x43   : > { %591 = vbcast.lane.b32.xlu1 %v589_v33, 256  ;;  %503 = vbcast.lane.b32.xlu0 %v501_v34, 256 }
  0x47   : > { %595 = vbcast.lane.b32.xlu1 %v589_v33, 264  ;;  %507 = vbcast.lane.b32.xlu0 %v501_v34, 264 }
  0x4b   : > { %602 = vbcast.lane.b32.xlu1 %v600_v36, 256  ;;  %514 = vbcast.lane.b32.xlu0 %v512_v37, 256 }
  0x4f   : > { %606 = vbcast.lane.b32.xlu1 %v600_v36, 264  ;;  %518 = vbcast.lane.b32.xlu0 %v512_v37, 264 }
  0x85   : > { %v438_v39 = vpop.permute.xlu0 %437  ;;  %v442_v43 = vpop.permute.xlu1 %441 }
  0x86   : > { %vm610_vm3 = vcmp.eq.s32.totalorder %v438_v39, %v1995_v38  ;;  %vm611_vm5 = vcmp.eq.s32.totalorder %v442_v43, %v1995_v38 }
  0x87   : > { %v1640_v40 = vsel %vm610_vm3, 1.0, %v1865_v2  ;;  %v1641_v9 = vsel %vm611_vm5, 1.0, %v1865_v2 }
  0x88   : > { %1783 = vmatprep.mubr.msk.f32.mxu0 %vm706_vm2, %v1640_v40 }
  0x89   : > { %v526_v41 = vpop.permute.xlu0 %525  ;;  %v530_v44 = vpop.permute.xlu1 %529 }
  0x8a   : > { %vm626_vm4 = vcmp.eq.s32.totalorder %v526_v41, %v1995_v38  ;;  %vm627_vm6 = vcmp.eq.s32.totalorder %v530_v44, %v1995_v38 }
  0x8b   : > { %v1656_v42 = vsel %vm626_vm4, 1.0, %v1865_v2  ;;  %v1657_v10 = vsel %vm627_vm6, 1.0, %v1865_v2 }
  0x8c   : > { %1807 = vmatprep.mubr.msk.f32.mxu1 %vm706_vm2, %v1656_v42 }
  0x8d   : > { %v537_v45 = vpop.permute.xlu1 %536  ;;  %v449_v46 = vpop.permute.xlu0 %448 }
  0x8e   : > { %vm628_vm7 = vcmp.eq.s32.totalorder %v537_v45, %v1995_v38  ;;  %vm612_vm8 = vcmp.eq.s32.totalorder %v449_v46, %v1995_v38 }
  0x8f   : > { %v1658_v12 = vsel %vm628_vm7, 1.0, %v1865_v2  ;;  %v1642_v13 = vsel %vm612_vm8, 1.0, %v1865_v2 }
  0x91   : > { %v541_v47 = vpop.permute.xlu1 %540  ;;  %v453_v48 = vpop.permute.xlu0 %452 }
  0x92   : > { %vm629_vm9 = vcmp.eq.s32.totalorder %v541_v47, %v1995_v38  ;;  %vm613_vm10 = vcmp.eq.s32.totalorder %v453_v48, %v1995_v38 }
  0x93   : > { %v1659_v19 = vsel %vm629_vm9, 1.0, %v1865_v2  ;;  %v1643_v20 = vsel %vm613_vm10, 1.0, %v1865_v2 }
  0x95   : > { %v548_v49 = vpop.permute.xlu1 %547  ;;  %v460_v50 = vpop.permute.xlu0 %459 }
  0x96   : > { %vm630_vm11 = vcmp.eq.s32.totalorder %v548_v49, %v1995_v38  ;;  %vm614_vm12 = vcmp.eq.s32.totalorder %v460_v50, %v1995_v38 }
  0x97   : > { %v1660_v21 = vsel %vm630_vm11, 1.0, %v1865_v2  ;;  %v1644_v22 = vsel %vm614_vm12, 1.0, %v1865_v2 }
  0x99   : > { %v552_v51 = vpop.permute.xlu1 %551  ;;  %v464_v52 = vpop.permute.xlu0 %463 }
  0x9a   : > { %vm631_vm13 = vcmp.eq.s32.totalorder %v552_v51, %v1995_v38  ;;  %vm615_vm14 = vcmp.eq.s32.totalorder %v464_v52, %v1995_v38 }
  0x9b   : > { %v1661_v23 = vsel %vm631_vm13, 1.0, %v1865_v2  ;;  %v1645_v24 = vsel %vm615_vm14, 1.0, %v1865_v2 }
  0x9d   : > { %v559_v53 = vpop.permute.xlu1 %558  ;;  %v471_v54 = vpop.permute.xlu0 %470 }
  0x9e   : > { %vm632_vm15 = vcmp.eq.s32.totalorder %v559_v53, %v1995_v38  ;;  %vm616_vm0 = vcmp.eq.s32.totalorder %v471_v54, %v1995_v38 }
  0x9f   : > { %v1662_v27 = vsel %vm632_vm15, 1.0, %v1865_v2  ;;  %v1646_v28 = vsel %vm616_vm0, 1.0, %v1865_v2 }
  0xa1   : > { %v2003_v55 = vpop.permute.xlu1 %562  ;;  %v2005_v56 = vpop.permute.xlu0 %474 }
  0xa2   : > { %vm633_vm1 = vcmp.eq.s32.totalorder %v2003_v55, %v1995_v38  ;;  %vm617_vm3 = vcmp.eq.s32.totalorder %v2005_v56, %v1995_v38 }
  0xa3   : > { %v1663_v29 = vsel %vm633_vm1, 1.0, %v1865_v2  ;;  %v1647_v30 = vsel %vm617_vm3, 1.0, %v1865_v2 }
  0xa5   : > { %v2007_v57 = vpop.permute.xlu1 %569  ;;  %v2009_v58 = vpop.permute.xlu0 %481 }
  0xa6   : > { %vm634_vm4 = vcmp.eq.s32.totalorder %v2007_v57, %v1995_v38  ;;  %vm618_vm5 = vcmp.eq.s32.totalorder %v2009_v58, %v1995_v38 }
  0xa7   : > { %v1664_v31 = vsel %vm634_vm4, 1.0, %v1865_v2  ;;  %v1648_v32 = vsel %vm618_vm5, 1.0, %v1865_v2  ;;  %vm1526_vm5 = vcmask 1041409  }
  0xa9   : > { %v2011_v59 = vpop.permute.xlu1 %573  ;;  %v2013_v60 = vpop.permute.xlu0 %485 }
  0xaa   : > { %vm635_vm6 = vcmp.eq.s32.totalorder %v2011_v59, %v1995_v38  ;;  %vm619_vm7 = vcmp.eq.s32.totalorder %v2013_v60, %v1995_v38 }
  0xab   : > { %v1665_v35 = vsel %vm635_vm6, 1.0, %v1865_v2  ;;  %v1649_v36 = vsel %vm619_vm7, 1.0, %v1865_v2  ;;  %vm1528_vm6 = vcmask 1042434   ;;  %vm1530_vm7 = vcmask 1043459  }
  0xad   : > { %v2015_v61 = vpop.permute.xlu1 %580  ;;  %v2017_v62 = vpop.permute.xlu0 %492 }
  0xae   : > { %vm636_vm8 = vcmp.eq.s32.totalorder %v2015_v61, %v1995_v38  ;;  %vm620_vm9 = vcmp.eq.s32.totalorder %v2017_v62, %v1995_v38 }
  0xaf   : > { %v1666_v37 = vsel %vm636_vm8, 1.0, %v1865_v2  ;;  %v1650_v39 = vsel %vm620_vm9, 1.0, %v1865_v2  ;;  %vm1532_vm8 = vcmask 1044484   ;;  %vm1534_vm9 = vcmask 1045509  }
  0xb1   : > { %v2019_v6 = vpop.permute.xlu1 %584  ;;  %v2021_v8 = vpop.permute.xlu0 %496 }
  0xb2   : > { %vm637_vm10 = vcmp.eq.s32.totalorder %v2019_v6, %v1995_v38  ;;  %vm621_vm11 = vcmp.eq.s32.totalorder %v2021_v8, %v1995_v38 }
  0xb3   : > { %v1667_v40 = vsel %vm637_vm10, 1.0, %v1865_v2  ;;  %v1651_v41 = vsel %vm621_vm11, 1.0, %v1865_v2  ;;  %vm1536_vm10 = vcmask 1046534   ;;  %vm1538_vm11 = vcmask 1047559  }
  0xb5   : > { %v2037_v14 = vpop.permute.xlu1 %591  ;;  %v2043_v16 = vpop.permute.xlu0 %503 }
  0xb6   : > { %vm638_vm12 = vcmp.eq.s32.totalorder %v2037_v14, %v1995_v38  ;;  %vm622_vm13 = vcmp.eq.s32.totalorder %v2043_v16, %v1995_v38 }
  0xb7   : > { %v1668_v44 = vsel %vm638_vm12, 1.0, %v1865_v2  ;;  %v1652_v45 = vsel %vm622_vm13, 1.0, %v1865_v2 }
  0xb9   : > { %v596_v25 = vpop.permute.xlu1 %595  ;;  %v508_v26 = vpop.permute.xlu0 %507 }
  0xba   : > { %vm639_vm0 = vcmp.eq.s32.totalorder %v596_v25, %v1995_v38  ;;  %vm623_vm1 = vcmp.eq.s32.totalorder %v508_v26, %v1995_v38 }
  0xbb   : > { %v1669_v48 = vsel %vm639_vm0, 1.0, %v1865_v2  ;;  %v1653_v49 = vsel %vm623_vm1, 1.0, %v1865_v2 }
  0xbd   : > { %v603_v33 = vpop.permute.xlu1 %602  ;;  %v515_v34 = vpop.permute.xlu0 %514 }
  0xbe   : > { %vm640_vm14 = vcmp.eq.s32.totalorder %v603_v33, %v1995_v38  ;;  %vm624_vm15 = vcmp.eq.s32.totalorder %v515_v34, %v1995_v38 }
  0xbf   : > { %v1670_v46 = vsel %vm640_vm14, 1.0, %v1865_v2  ;;  %v1654_v47 = vsel %vm624_vm15, 1.0, %v1865_v2 }
  0xc1   : > { %v607_v42 = vpop.permute.xlu1 %606  ;;  %v519_v43 = vpop.permute.xlu0 %518 }
  0xc2   : > { %vm641_vm3 = vcmp.eq.s32.totalorder %v607_v42, %v1995_v38  ;;  %vm625_vm4 = vcmp.eq.s32.totalorder %v519_v43, %v1995_v38  ;;  %v1867_v38 = vmov 1966171168  }
  0xc3   : > { %v1671_v50 = vsel %vm641_vm3, 1.0, %v1865_v2  ;;  %v1655_v51 = vsel %vm625_vm4, 1.0, %v1865_v2  ;;  %v1032_v52 = vunpack.c.l.s4 %v1867_v38 }
  0xc5   : > { %v1033_v53 = vunpack.c.0.s8 %v1032_v52 }
  0xc7   : > { %v1036_v54 = vsub.s32 %v1033_v53, %v1925_v4 }
  0xeb   : > { %v423_v63 = vpop.f32.mrb[0].mxu1  ;;  %v2029_v11 = vpop.f32.mrb[0].mxu0 }
  0xec   : > { %v1777_v0 = vpop.f32.mrb[1].mxu1  ;;  %v1765_v15 = vpop.f32.mrb[1].mxu0  ;;  %v1030_v55 = vcombine.high %v2029_v11, %v2029_v11  ;;  %v1037_v56 = vrot.slane %v2029_v11, %v1036_v54 }
  0xed   : > { %v426_v1 = vpop.f32.mrb[2].mxu1  ;;  %v2045_v17 = vpop.f32.mrb[2].mxu0 }
  0xee   : > { %v1831_v3 = vpack.c.bf16 %v426_v1, %v423_v63  ;;  %v1778_v5 = vpop.f32.mrb[3].mxu1  ;;  %v1766_v18 = vpop.f32.mrb[3].mxu0  ;;  %v1079_v2 = vcombine.high %v2045_v17, %v2045_v17  ;;  %v1086_v57 = vrot.slane %v2045_v17, %v1036_v54  ;;  %v1044_v58 = vrot.slane %v1030_v55, %v1036_v54 }
  0xef   : > { %v1045_v59 = vcombine.high %v1037_v56, %v1037_v56  ;;  %v1053_v62 = vrot.slane %v1037_v56, %v1036_v54 }
  0xf0   : > { %1832 = vmatprep.subr.bf16.mxu0 %v1831_v3  ;;  %1835 = vmatprep.subr.bf16.mxu1 %v1831_v3  ;;  %v1093_v60 = vrot.slane %v1079_v2, %v1036_v54  ;;  %v1094_v61 = vcombine.high %v1086_v57, %v1086_v57  ;;  %v1102_v63 = vrot.slane %v1086_v57, %v1036_v54 }
  0xf1   : > { %1834 = vmatpush3.bf16.msra.mxu0 %v1831_v3  ;;  %1836 = vmatpush3.bf16.msra.mxu1 %v1831_v3  ;;  %v1046_v0 = vcombine.high %v1044_v58, %v1044_v58  ;;  %v1067_v3 = vrot.slane %v1045_v59, %v1036_v54  ;;  %v1075_v5 = vcombine.high %v1053_v62, %v1053_v62 }
  0xf2   : > { %v1095_v1 = vcombine.high %v1093_v60, %v1093_v60  ;;  %v1116_v4 = vrot.slane %v1094_v61, %v1036_v54  ;;  %v1124_v6 = vcombine.high %v1102_v63, %v1102_v63  ;;  %v1060_v8 = vrot.slane %v1044_v58, %v1036_v54 }
  0xf3   : > { %v1131_v14 = vrot.slane %v1053_v62, %v1936_v7  ;;  %v1163_v15 = vrot.slane %v1102_v63, %v1936_v7  ;;  %v1135_v16 = vrot.slane %v1067_v3, %v1936_v7  ;;  %v2145_v18 = vrot.slane %v1075_v5, %v1936_v7 }
  0xf4   : > { %1784 = vmatmul.mubr.msk.f32.vlgmr.msra.gmra.mrb[4].mxu0 %vm706_vm2, %v1641_v9  ;;  %1808 = vmatmul.mubr.msk.f32.vlgmr.msra.gmra.mrb[4].mxu1 %vm706_vm2, %v1657_v10  ;;  %v1109_v9 = vrot.slane %v1093_v60, %v1036_v54  ;;  %v1077_v10 = vcombine.high %v1067_v3, %v1067_v3  ;;  %v1126_v11 = vcombine.high %v1116_v4, %v1116_v4 }
  0xf5   : > { %1786 = vmatprep.mubr.msk.f32.mxu0 %vm706_vm2, %v1642_v13  ;;  %1810 = vmatprep.mubr.msk.f32.mxu1 %vm706_vm2, %v1658_v12  ;;  %v1074_v12 = vrot.slane %v1046_v0, %v1036_v54  ;;  %v1123_v13 = vrot.slane %v1095_v1, %v1036_v54  ;;  %v1167_v17 = vrot.slane %v1116_v4, %v1936_v7 }
  0xf6   : > { %v2156_v25 = vrot.slane %v1077_v10, %v1936_v7  ;;  %v2159_v26 = vrot.slane %v1126_v11, %v1936_v7  ;;  %v2162_v33 = vrot.slane %v1060_v8, %v1936_v7  ;;  %v2165_v34 = vrot.slane %v1109_v9, %v1936_v7 }
  0xf8   : > { %1787 = vmatmul.mubr.msk.f32.gmra.mrb[6].mxu0 %vm706_vm2, %v1643_v20  ;;  %1811 = vmatmul.mubr.msk.f32.gmra.mrb[6].mxu1 %vm706_vm2, %v1659_v19  ;;  %v2148_v19 = vrot.slane %v1124_v6, %v1936_v7  ;;  %v1076_v20 = vcombine.high %v1060_v8, %v1060_v8 }
  0xf9   : > { %1789 = vmatprep.mubr.msk.f32.mxu0 %vm706_vm2, %v1644_v22  ;;  %1813 = vmatprep.mubr.msk.f32.mxu1 %vm706_vm2, %v1660_v21  ;;  %v1125_v21 = vcombine.high %v1109_v9, %v1109_v9 }
  0xfa   : > { %v2181_v43 = vrot.slane %v1076_v20, %v1936_v7 }
  0xfc   : > { %1790 = vmatmul.mubr.msk.f32.gmra.mrb[8].mxu0 %vm706_vm2, %v1645_v24  ;;  %1814 = vmatmul.mubr.msk.f32.gmra.mrb[8].mxu1 %vm706_vm2, %v1661_v23  ;;  %v2153_v23 = vld [vmem:[%s2388_s4] ss:$0 sm:$0xff] }
  0xfd   : > { %1792 = vmatprep.mubr.msk.f32.mxu0 %vm706_vm2, %v1646_v28  ;;  %1816 = vmatprep.mubr.msk.f32.mxu1 %vm706_vm2, %v1662_v27  ;;  %v1078_v27 = vcombine.high %v1074_v12, %v1074_v12  ;;  %v1127_v28 = vcombine.high %v1123_v13, %v1123_v13 }
 0x100   : > { %1793 = vmatmul.mubr.msk.f32.gmra.mrb[10].mxu0 %vm706_vm2, %v1647_v30  ;;  %1817 = vmatmul.mubr.msk.f32.gmra.mrb[10].mxu1 %vm706_vm2, %v1663_v29 }
 0x101   : > { %1795 = vmatprep.mubr.msk.f32.mxu0 %vm706_vm2, %v1648_v32  ;;  %1819 = vmatprep.mubr.msk.f32.mxu1 %vm706_vm2, %v1664_v31 }
 0x104   : > { %1796 = vmatmul.mubr.msk.f32.gmra.mrb[12].mxu0 %vm706_vm2, %v1649_v36  ;;  %1820 = vmatmul.mubr.msk.f32.gmra.mrb[12].mxu1 %vm706_vm2, %v1665_v35  ;;  %v2170_v35 = vld [vmem:[%s2389_s5] ss:$0 sm:$0xff] }
 0x105   : > { %1798 = vmatprep.mubr.msk.f32.mxu0 %vm706_vm2, %v1650_v39  ;;  %1822 = vmatprep.mubr.msk.f32.mxu1 %vm706_vm2, %v1666_v37  ;;  %v2173_v39 = vrot.slane %v1074_v12, %v1936_v7 }
 0x108   : > { %1799 = vmatmul.mubr.msk.f32.gmra.mrb[14].mxu0 %vm706_vm2, %v1651_v41  ;;  %1823 = vmatmul.mubr.msk.f32.gmra.mrb[14].mxu1 %vm706_vm2, %v1667_v40  ;;  %v2176_v40 = vrot.slane %v1123_v13, %v1936_v7 }
 0x109   : > { %1801 = vmatprep.mubr.msk.f32.mxu0 %vm706_vm2, %v1652_v45  ;;  %1825 = vmatprep.mubr.msk.f32.mxu1 %vm706_vm2, %v1668_v44  ;;  %v2184_v44 = vrot.slane %v1125_v21, %v1936_v7 }
 0x10c   : > { %1802 = vmatmul.mubr.msk.f32.gmra.mrb[16].mxu0 %vm706_vm2, %v1653_v49  ;;  %1826 = vmatmul.mubr.msk.f32.gmra.mrb[16].mxu1 %vm706_vm2, %v1669_v48  ;;  %v2189_v49 = vrot.slane %v1078_v27, %v1936_v7 }
 0x10d   : > { %1804 = vmatprep.mubr.msk.f32.mxu0 %vm706_vm2, %v1654_v47  ;;  %1828 = vmatprep.mubr.msk.f32.mxu1 %vm706_vm2, %v1670_v46 }
 0x110   : > { %1805 = vmatmul.mubr.msk.f32.gmra.mrb[18].mxu0 %vm706_vm2, %v1655_v51  ;;  %1829 = vmatmul.mubr.msk.f32.gmra.mrb[18].mxu1 %vm706_vm2, %v1671_v50  ;;  %v2192_v50 = vrot.slane %v1127_v28, %v1936_v7 }
 0x1c7   : > { %v1785_v22 = vpop.f32.mrb[4].mxu0  ;;  %v1809_v24 = vpop.f32.mrb[4].mxu1 }
 0x1c8   : > { %v1209_v29 = vadd.f32 %v1785_v22, %v1131_v14  ;;  %v1225_v30 = vadd.f32 %v1809_v24, %v1163_v15  ;;  %v869_v31 = vpop.f32.mrb[5].mxu0  ;;  %v949_v32 = vpop.f32.mrb[5].mxu1 }
 0x1c9   : > { %v1208_v36 = vadd.f32 %v1131_v14, %v869_v31  ;;  %v1224_v37 = vadd.f32 %v1163_v15, %v949_v32 }
 0x1ca   : > { %v1248_v41 = vmul.f32 %v2153_v23, %v1209_v29  ;;  %v1264_v42 = vmul.f32 %v2153_v23, %v1225_v30 }
 0x1cb   : > { %v1247_v45 = vmul.f32 %v2153_v23, %v1208_v36  ;;  %v1263_v46 = vmul.f32 %v2153_v23, %v1224_v37  ;;  %v1788_v47 = vpop.f32.mrb[6].mxu0  ;;  %v1812_v48 = vpop.f32.mrb[6].mxu1 }
 0x1cc   : > { %v1287_v51 = vadd.f32 %v2170_v35, %v1248_v41  ;;  %v1303_v38 = vadd.f32 %v2170_v35, %v1264_v42  ;;  %v1211_v52 = vadd.f32 %v1788_v47, %v1135_v16  ;;  %v1227_v53 = vadd.f32 %v1812_v48, %v1167_v17  ;;  %v879_v54 = vpop.f32.mrb[7].mxu0  ;;  %v959_v55 = vpop.f32.mrb[7].mxu1 }
 0x1cd   : > { %v1286_v56 = vadd.f32 %v2170_v35, %v1247_v45  ;;  %v1302_v2 = vadd.f32 %v2170_v35, %v1263_v46  ;;  %v1210_v57 = vadd.f32 %v1135_v16, %v879_v54  ;;  %v1226_v58 = vadd.f32 %v1167_v17, %v959_v55 }
 0x1ce   : > { %v1319_v59 = vmax.f32 %v1287_v51, 0.0  ;;  %v1335_v60 = vmax.f32 %v1303_v38, 0.0  ;;  %v1250_v61 = vmul.f32 %v2153_v23, %v1211_v52  ;;  %v1266_v7 = vmul.f32 %v2153_v23, %v1227_v53 }
 0x1cf   : > { %v1318_v62 = vmax.f32 %v1286_v56, 0.0  ;;  %v1334_v63 = vmax.f32 %v1302_v2, 0.0  ;;  %v1249_v0 = vmul.f32 %v2153_v23, %v1210_v57  ;;  %v1265_v1 = vmul.f32 %v2153_v23, %v1226_v58  ;;  %v1791_v3 = vpop.f32.mrb[8].mxu0  ;;  %v1815_v4 = vpop.f32.mrb[8].mxu1 }
 0x1d0   : > { %v1351_v5 = vsel %vm706_vm2, %v1319_v59, -inf  ;;  %v1423_v6 = vsel %vm706_vm2, %v1335_v60, -inf  ;;  %v1289_v8 = vadd.f32 %v2170_v35, %v1250_v61  ;;  %v1305_v9 = vadd.f32 %v2170_v35, %v1266_v7  ;;  %v889_v10 = vpop.f32.mrb[9].mxu0  ;;  %v969_v11 = vpop.f32.mrb[9].mxu1 }
 0x1d1   : > { %v1350_v12 = vsel %vm706_vm2, %v1318_v62, -inf  ;;  %v1422_v13 = vsel %vm706_vm2, %v1334_v63, -inf  ;;  %v1288_v14 = vadd.f32 %v2170_v35, %v1249_v0  ;;  %v1304_v15 = vadd.f32 %v2170_v35, %v1265_v1 }
 0x1d2   : > { %v1352_v16 = vmax.f32 %v1350_v12, %v1351_v5  ;;  %v1424_v17 = vmax.f32 %v1422_v13, %v1423_v6  ;;  %v1321_v20 = vmax.f32 %v1289_v8, 0.0  ;;  %v1337_v21 = vmax.f32 %v1305_v9, 0.0 }
 0x1d3   : > { %v1320_v22 = vmax.f32 %v1288_v14, 0.0  ;;  %v1336_v24 = vmax.f32 %v1304_v15, 0.0  ;;  %v1213_v27 = vadd.f32 %v1791_v3, %v2145_v18  ;;  %v1229_v28 = vadd.f32 %v1815_v4, %v2148_v19  ;;  %v1794_v29 = vpop.f32.mrb[10].mxu0  ;;  %v1818_v30 = vpop.f32.mrb[10].mxu1 }
 0x1d4   : > { %v1353_v31 = vrot.slane %v1352_v16, 4  ;;  %v1425_v32 = vrot.slane %v1424_v17, 4  ;;  %v1360_v36 = vsel %vm706_vm2, %v1321_v20, -inf  ;;  %v1432_v37 = vsel %vm706_vm2, %v1337_v21, -inf  ;;  %v2214_v41 = vpop.f32.mrb[11].mxu0  ;;  %v2216_v42 = vpop.f32.mrb[11].mxu1 }
 0x1d5   : > { %v1359_v45 = vsel %vm706_vm2, %v1320_v22, -inf  ;;  %v1431_v46 = vsel %vm706_vm2, %v1336_v24, -inf  ;;  %v1252_v47 = vmul.f32 %v2153_v23, %v1213_v27  ;;  %v1268_v48 = vmul.f32 %v2153_v23, %v1229_v28 }
 0x1d6   : > { %v1354_v51 = vmax.f32 %v1352_v16, %v1353_v31  ;;  %v1426_v38 = vmax.f32 %v1424_v17, %v1425_v32  ;;  %v1361_v52 = vmax.f32 %v1359_v45, %v1360_v36  ;;  %v1433_v53 = vmax.f32 %v1431_v46, %v1432_v37 }
 0x1d7   : > { %v1291_v54 = vadd.f32 %v2170_v35, %v1252_v47  ;;  %v1307_v55 = vadd.f32 %v2170_v35, %v1268_v48  ;;  %v1212_v56 = vadd.f32 %v2145_v18, %v889_v10  ;;  %v1228_v2 = vadd.f32 %v2148_v19, %v969_v11  ;;  %v2226_v57 = vpop.f32.mrb[12].mxu0  ;;  %v2228_v58 = vpop.f32.mrb[12].mxu1 }
 0x1d8   : > { %v1355_v59 = vrot.slane %v1354_v51, 2  ;;  %v1427_v60 = vrot.slane %v1426_v38, 2  ;;  %v1362_v61 = vrot.slane %v1361_v52, 4  ;;  %v1434_v7 = vrot.slane %v1433_v53, 4  ;;  %v2230_v62 = vpop.f32.mrb[13].mxu0  ;;  %v2232_v63 = vpop.f32.mrb[13].mxu1 }
 0x1d9   : > { %v1323_v0 = vmax.f32 %v1291_v54, 0.0  ;;  %v1339_v1 = vmax.f32 %v1307_v55, 0.0  ;;  %v1251_v3 = vmul.f32 %v2153_v23, %v1212_v56  ;;  %v1267_v18 = vmul.f32 %v2153_v23, %v1228_v2 }
 0x1da   : > { %v1356_v4 = vmax.f32 %v1354_v51, %v1355_v59  ;;  %v1428_v19 = vmax.f32 %v1426_v38, %v1427_v60  ;;  %v1363_v5 = vmax.f32 %v1361_v52, %v1362_v61  ;;  %v1435_v6 = vmax.f32 %v1433_v53, %v1434_v7 }
 0x1db   : > { %v1369_v8 = vsel %vm706_vm2, %v1323_v0, -inf  ;;  %v1441_v9 = vsel %vm706_vm2, %v1339_v1, -inf  ;;  %v1290_v10 = vadd.f32 %v2170_v35, %v1251_v3  ;;  %v1306_v11 = vadd.f32 %v2170_v35, %v1267_v18  ;;  %v2240_v12 = vpop.f32.mrb[14].mxu0  ;;  %v2242_v13 = vpop.f32.mrb[14].mxu1 }
 0x1dc   : > { %v1357_v14 = vrot.slane %v1356_v4, 1  ;;  %v1429_v15 = vrot.slane %v1428_v19, 1  ;;  %v1364_v16 = vrot.slane %v1363_v5, 2  ;;  %v1436_v17 = vrot.slane %v1435_v6, 2  ;;  %v2244_v20 = vpop.f32.mrb[15].mxu0  ;;  %v2246_v21 = vpop.f32.mrb[15].mxu1 }
 0x1dd   : > { %v1322_v22 = vmax.f32 %v1290_v10, 0.0  ;;  %v1338_v24 = vmax.f32 %v1306_v11, 0.0  ;;  %v1215_v27 = vadd.f32 %v1794_v29, %v2156_v25  ;;  %v1231_v28 = vadd.f32 %v1818_v30, %v2159_v26 }
 0x1de   : > { %v1358_v31 = vmax.f32 %v1356_v4, %v1357_v14  ;;  %v1430_v32 = vmax.f32 %v1428_v19, %v1429_v15  ;;  %v1365_v36 = vmax.f32 %v1363_v5, %v1364_v16  ;;  %v1437_v37 = vmax.f32 %v1435_v6, %v1436_v17 }
 0x1df   : > { %v1368_v45 = vsel %vm706_vm2, %v1322_v22, -inf  ;;  %v1440_v46 = vsel %vm706_vm2, %v1338_v24, -inf  ;;  %v1254_v47 = vmul.f32 %v2153_v23, %v1215_v27  ;;  %v1270_v48 = vmul.f32 %v2153_v23, %v1231_v28  ;;  %v2254_v51 = vpop.f32.mrb[16].mxu0  ;;  %v2256_v38 = vpop.f32.mrb[16].mxu1 }
 0x1e0   : > { %v1494_v52 = vmax.f32 %v1358_v31, 0.0  ;;  %v1502_v29 = vmax.f32 %v1430_v32, 0.0  ;;  %v1366_v53 = vrot.slane %v1365_v36, 1  ;;  %v1438_v30 = vrot.slane %v1437_v37, 1  ;;  %v2258_v54 = vpop.f32.mrb[17].mxu0  ;;  %v2260_v55 = vpop.f32.mrb[17].mxu1 }
 0x1e1   : > { %v1370_v56 = vmax.f32 %v1368_v45, %v1369_v8  ;;  %v1442_v2 = vmax.f32 %v1440_v46, %v1441_v9  ;;  %v1293_v59 = vadd.f32 %v2170_v35, %v1254_v47  ;;  %v1309_v60 = vadd.f32 %v2170_v35, %v1270_v48 }
 0x1e2   : > { %v1367_v61 = vmax.f32 %v1365_v36, %v1366_v53  ;;  %v1439_v7 = vmax.f32 %v1437_v37, %v1438_v30  ;;  %v1214_v0 = vadd.f32 %v2156_v25, %v2214_v41  ;;  %v1230_v1 = vadd.f32 %v2159_v26, %v2216_v42 }
 0x1e3   : > { %v1371_v3 = vrot.slane %v1370_v56, 4  ;;  %v1443_v18 = vrot.slane %v1442_v2, 4  ;;  %v1325_v4 = vmax.f32 %v1293_v59, 0.0  ;;  %v1341_v19 = vmax.f32 %v1309_v60, 0.0  ;;  %v2268_v5 = vpop.f32.mrb[18].mxu0  ;;  %v2270_v6 = vpop.f32.mrb[18].mxu1 }
 0x1e4   : > { %v1495_v8 = vmax.f32 %v1367_v61, 0.0  ;;  %v1503_v9 = vmax.f32 %v1439_v7, 0.0  ;;  %v1253_v10 = vmul.f32 %v2153_v23, %v1214_v0  ;;  %v1269_v11 = vmul.f32 %v2153_v23, %v1230_v1  ;;  %v2274_v14 = vpop.f32.mrb[19].mxu0  ;;  %v2276_v25 = vpop.f32.mrb[19].mxu1 }
 0x1e5   : > { %v1372_v41 = vmax.f32 %v1370_v56, %v1371_v3  ;;  %v1444_v26 = vmax.f32 %v1442_v2, %v1443_v18  ;;  %v1378_v42 = vsel %vm706_vm2, %v1325_v4, -inf  ;;  %v1450_v15 = vsel %vm706_vm2, %v1341_v19, -inf }
 0x1e6   : > { %v1527_v16 = vsel %vm1526_vm5, %v1495_v8, %v1494_v52  ;;  %v1540_v17 = vsel %vm1526_vm5, %v1503_v9, %v1502_v29  ;;  %v1292_v22 = vadd.f32 %v2170_v35, %v1253_v10  ;;  %v1308_v24 = vadd.f32 %v2170_v35, %v1269_v11 }
 0x1e7   : > { %v1373_v27 = vrot.slane %v1372_v41, 2  ;;  %v1445_v28 = vrot.slane %v1444_v26, 2  ;;  %v1217_v31 = vadd.f32 %v2226_v57, %v2162_v33  ;;  %v1233_v32 = vadd.f32 %v2228_v58, %v2165_v34 }
 0x1e8   : > { %v1324_v36 = vmax.f32 %v1292_v22, 0.0  ;;  %v1340_v37 = vmax.f32 %v1308_v24, 0.0  ;;  %v1216_v45 = vadd.f32 %v2162_v33, %v2230_v62  ;;  %v1232_v46 = vadd.f32 %v2165_v34, %v2232_v63 }
 0x1e9   : > { %v1374_v47 = vmax.f32 %v1372_v41, %v1373_v27  ;;  %v1446_v48 = vmax.f32 %v1444_v26, %v1445_v28  ;;  %v1256_v52 = vmul.f32 %v2153_v23, %v1217_v31  ;;  %v1272_v29 = vmul.f32 %v2153_v23, %v1233_v32 }
 0x1ea   : > { %v1377_v53 = vsel %vm706_vm2, %v1324_v36, -inf  ;;  %v1449_v57 = vsel %vm706_vm2, %v1340_v37, -inf  ;;  %v1255_v58 = vmul.f32 %v2153_v23, %v1216_v45  ;;  %v1271_v30 = vmul.f32 %v2153_v23, %v1232_v46 }
 0x1eb   : > { %v1375_v56 = vrot.slane %v1374_v47, 1  ;;  %v1447_v2 = vrot.slane %v1446_v48, 1  ;;  %v1379_v33 = vmax.f32 %v1377_v53, %v1378_v42  ;;  %v1451_v62 = vmax.f32 %v1449_v57, %v1450_v15 }
 0x1ec   : > { %v1295_v34 = vadd.f32 %v2170_v35, %v1256_v52  ;;  %v1311_v63 = vadd.f32 %v2170_v35, %v1272_v29  ;;  %v1294_v59 = vadd.f32 %v2170_v35, %v1255_v58  ;;  %v1310_v60 = vadd.f32 %v2170_v35, %v1271_v30 }
 0x1ed   : > { %v1376_v61 = vmax.f32 %v1374_v47, %v1375_v56  ;;  %v1448_v7 = vmax.f32 %v1446_v48, %v1447_v2  ;;  %v1380_v0 = vrot.slane %v1379_v33, 4  ;;  %v1452_v1 = vrot.slane %v1451_v62, 4 }
 0x1ee   : > { %v1327_v3 = vmax.f32 %v1295_v34, 0.0  ;;  %v1343_v18 = vmax.f32 %v1311_v63, 0.0  ;;  %v1326_v4 = vmax.f32 %v1294_v59, 0.0  ;;  %v1342_v19 = vmax.f32 %v1310_v60, 0.0 }
 0x1ef   : > { %v1496_v8 = vmax.f32 %v1376_v61, 0.0  ;;  %v1504_v9 = vmax.f32 %v1448_v7, 0.0  ;;  %v1381_v10 = vmax.f32 %v1379_v33, %v1380_v0  ;;  %v1453_v11 = vmax.f32 %v1451_v62, %v1452_v1 }
 0x1f0   : > { %v1387_v41 = vsel %vm706_vm2, %v1327_v3, -inf  ;;  %v1459_v26 = vsel %vm706_vm2, %v1343_v18, -inf  ;;  %v1386_v42 = vsel %vm706_vm2, %v1326_v4, -inf  ;;  %v1458_v15 = vsel %vm706_vm2, %v1342_v19, -inf }
 0x1f1   : > { %v1529_v22 = vsel %vm1528_vm6, %v1496_v8, %v1527_v16  ;;  %v1541_v24 = vsel %vm1528_vm6, %v1504_v9, %v1540_v17  ;;  %v1382_v27 = vrot.slane %v1381_v10, 2  ;;  %v1454_v28 = vrot.slane %v1453_v11, 2 }
 0x1f2   : > { %v1388_v31 = vmax.f32 %v1386_v42, %v1387_v41  ;;  %v1460_v32 = vmax.f32 %v1458_v15, %v1459_v26  ;;  %v1219_v36 = vadd.f32 %v2240_v12, %v2173_v39  ;;  %v1235_v37 = vadd.f32 %v2242_v13, %v2176_v40 }
 0x1f3   : > { %v1383_v45 = vmax.f32 %v1381_v10, %v1382_v27  ;;  %v1455_v46 = vmax.f32 %v1453_v11, %v1454_v28  ;;  %v1218_v47 = vadd.f32 %v2173_v39, %v2244_v20  ;;  %v1234_v16 = vadd.f32 %v2176_v40, %v2246_v21 }
 0x1f4   : > { %v1389_v48 = vrot.slane %v1388_v31, 4  ;;  %v1461_v17 = vrot.slane %v1460_v32, 4  ;;  %v1258_v52 = vmul.f32 %v2153_v23, %v1219_v36  ;;  %v1274_v29 = vmul.f32 %v2153_v23, %v1235_v37 }
 0x1f5   : > { %v1384_v53 = vrot.slane %v1383_v45, 1  ;;  %v1456_v57 = vrot.slane %v1455_v46, 1  ;;  %v1257_v12 = vmul.f32 %v2153_v23, %v1218_v47  ;;  %v1273_v13 = vmul.f32 %v2153_v23, %v1234_v16 }
 0x1f6   : > { %v1390_v58 = vmax.f32 %v1388_v31, %v1389_v48  ;;  %v1462_v30 = vmax.f32 %v1460_v32, %v1461_v17  ;;  %v1297_v56 = vadd.f32 %v2170_v35, %v1258_v52  ;;  %v1313_v39 = vadd.f32 %v2170_v35, %v1274_v29 }
 0x1f7   : > { %v1385_v20 = vmax.f32 %v1383_v45, %v1384_v53  ;;  %v1457_v40 = vmax.f32 %v1455_v46, %v1456_v57  ;;  %v1296_v21 = vadd.f32 %v2170_v35, %v1257_v12  ;;  %v1312_v2 = vadd.f32 %v2170_v35, %v1273_v13 }
 0x1f8   : > { %v1391_v33 = vrot.slane %v1390_v58, 2  ;;  %v1463_v62 = vrot.slane %v1462_v30, 2  ;;  %v1329_v34 = vmax.f32 %v1297_v56, 0.0  ;;  %v1345_v63 = vmax.f32 %v1313_v39, 0.0 }
 0x1f9   : > { %v1497_v59 = vmax.f32 %v1385_v20, 0.0  ;;  %v1505_v60 = vmax.f32 %v1457_v40, 0.0  ;;  %v1328_v61 = vmax.f32 %v1296_v21, 0.0  ;;  %v1344_v7 = vmax.f32 %v1312_v2, 0.0 }
 0x1fa   : > { %v1392_v0 = vmax.f32 %v1390_v58, %v1391_v33  ;;  %v1464_v1 = vmax.f32 %v1462_v30, %v1463_v62  ;;  %v1396_v3 = vsel %vm706_vm2, %v1329_v34, -inf  ;;  %v1468_v18 = vsel %vm706_vm2, %v1345_v63, -inf }
 0x1fb   : > { %v1531_v4 = vsel %vm1530_vm7, %v1497_v59, %v1529_v22  ;;  %v1542_v19 = vsel %vm1530_vm7, %v1505_v60, %v1541_v24  ;;  %v1395_v8 = vsel %vm706_vm2, %v1328_v61, -inf  ;;  %v1467_v9 = vsel %vm706_vm2, %v1344_v7, -inf }
 0x1fc   : > { %v1393_v10 = vrot.slane %v1392_v0, 1  ;;  %v1465_v11 = vrot.slane %v1464_v1, 1  ;;  %v1397_v41 = vmax.f32 %v1395_v8, %v1396_v3  ;;  %v1469_v26 = vmax.f32 %v1467_v9, %v1468_v18 }
 0x1fd   : > { %v1221_v42 = vadd.f32 %v2254_v51, %v2181_v43  ;;  %v1237_v15 = vadd.f32 %v2256_v38, %v2184_v44  ;;  %v1220_v27 = vadd.f32 %v2181_v43, %v2258_v54  ;;  %v1236_v22 = vadd.f32 %v2184_v44, %v2260_v55 }
 0x1fe   : > { %v1394_v24 = vmax.f32 %v1392_v0, %v1393_v10  ;;  %v1466_v28 = vmax.f32 %v1464_v1, %v1465_v11  ;;  %v1398_v31 = vrot.slane %v1397_v41, 4  ;;  %v1470_v32 = vrot.slane %v1469_v26, 4 }
 0x1ff   : > { %v1260_v36 = vmul.f32 %v2153_v23, %v1221_v42  ;;  %v1276_v37 = vmul.f32 %v2153_v23, %v1237_v15  ;;  %v1259_v45 = vmul.f32 %v2153_v23, %v1220_v27  ;;  %v1275_v51 = vmul.f32 %v2153_v23, %v1236_v22 }
 0x200   : > { %v1498_v46 = vmax.f32 %v1394_v24, 0.0  ;;  %v1506_v38 = vmax.f32 %v1466_v28, 0.0  ;;  %v1399_v47 = vmax.f32 %v1397_v41, %v1398_v31  ;;  %v1471_v16 = vmax.f32 %v1469_v26, %v1470_v32 }
 0x201   : > { %v1299_v43 = vadd.f32 %v2170_v35, %v1260_v36  ;;  %v1315_v44 = vadd.f32 %v2170_v35, %v1276_v37  ;;  %v1298_v54 = vadd.f32 %v2170_v35, %v1259_v45  ;;  %v1314_v55 = vadd.f32 %v2170_v35, %v1275_v51 }
 0x202   : > { %v1533_v48 = vsel %vm1532_vm8, %v1498_v46, %v1531_v4  ;;  %v1543_v17 = vsel %vm1532_vm8, %v1506_v38, %v1542_v19  ;;  %v1400_v52 = vrot.slane %v1399_v47, 2  ;;  %v1472_v29 = vrot.slane %v1471_v16, 2 }
 0x203   : > { %v1331_v53 = vmax.f32 %v1299_v43, 0.0  ;;  %v1347_v57 = vmax.f32 %v1315_v44, 0.0  ;;  %v1330_v12 = vmax.f32 %v1298_v54, 0.0  ;;  %v1346_v13 = vmax.f32 %v1314_v55, 0.0 }
 0x204   : > { %v1401_v58 = vmax.f32 %v1399_v47, %v1400_v52  ;;  %v1473_v30 = vmax.f32 %v1471_v16, %v1472_v29  ;;  %v1223_v56 = vadd.f32 %v2268_v5, %v2189_v49  ;;  %v1239_v39 = vadd.f32 %v2270_v6, %v2192_v50 }
 0x205   : > { %v1405_v20 = vsel %vm706_vm2, %v1331_v53, -inf  ;;  %v1477_v40 = vsel %vm706_vm2, %v1347_v57, -inf  ;;  %v1404_v21 = vsel %vm706_vm2, %v1330_v12, -inf  ;;  %v1476_v2 = vsel %vm706_vm2, %v1346_v13, -inf }
 0x206   : > { %v1402_v33 = vrot.slane %v1401_v58, 1  ;;  %v1474_v62 = vrot.slane %v1473_v30, 1  ;;  %v1406_v34 = vmax.f32 %v1404_v21, %v1405_v20  ;;  %v1478_v63 = vmax.f32 %v1476_v2, %v1477_v40 }
 0x207   : > { %v1262_v59 = vmul.f32 %v2153_v23, %v1223_v56  ;;  %v1278_v60 = vmul.f32 %v2153_v23, %v1239_v39  ;;  %v1222_v5 = vadd.f32 %v2189_v49, %v2274_v14  ;;  %v1238_v6 = vadd.f32 %v2192_v50, %v2276_v25 }
 0x208   : > { %v1403_v61 = vmax.f32 %v1401_v58, %v1402_v33  ;;  %v1475_v7 = vmax.f32 %v1473_v30, %v1474_v62  ;;  %v1407_v0 = vrot.slane %v1406_v34, 4  ;;  %v1479_v1 = vrot.slane %v1478_v63, 4 }
 0x209   : > { %v1301_v3 = vadd.f32 %v2170_v35, %v1262_v59  ;;  %v1317_v18 = vadd.f32 %v2170_v35, %v1278_v60  ;;  %v1261_v4 = vmul.f32 %v2153_v23, %v1222_v5  ;;  %v1277_v19 = vmul.f32 %v2153_v23, %v1238_v6 }
 0x20a   : > { %v1499_v8 = vmax.f32 %v1403_v61, 0.0  ;;  %v1507_v9 = vmax.f32 %v1475_v7, 0.0  ;;  %v1408_v10 = vmax.f32 %v1406_v34, %v1407_v0  ;;  %v1480_v11 = vmax.f32 %v1478_v63, %v1479_v1 }
 0x20b   : > { %v1333_v49 = vmax.f32 %v1301_v3, 0.0  ;;  %v1349_v14 = vmax.f32 %v1317_v18, 0.0  ;;  %v1300_v50 = vadd.f32 %v2170_v35, %v1261_v4  ;;  %v1316_v25 = vadd.f32 %v2170_v35, %v1277_v19 }
 0x20c   : > { %v1535_v41 = vsel %vm1534_vm9, %v1499_v8, %v1533_v48  ;;  %v1544_v26 = vsel %vm1534_vm9, %v1507_v9, %v1543_v17  ;;  %v1409_v42 = vrot.slane %v1408_v10, 2  ;;  %v1481_v15 = vrot.slane %v1480_v11, 2 }
 0x20d   : > { %v1414_v27 = vsel %vm706_vm2, %v1333_v49, -inf  ;;  %v1486_v23 = vsel %vm706_vm2, %v1349_v14, -inf  ;;  %v1332_v22 = vmax.f32 %v1300_v50, 0.0  ;;  %v1348_v24 = vmax.f32 %v1316_v25, 0.0 }
 0x20e   : > { %v1410_v28 = vmax.f32 %v1408_v10, %v1409_v42  ;;  %v1482_v31 = vmax.f32 %v1480_v11, %v1481_v15 }
 0x20f   : > { %v1413_v32 = vsel %vm706_vm2, %v1332_v22, -inf  ;;  %v1485_v36 = vsel %vm706_vm2, %v1348_v24, -inf }
 0x210   : > { %v1411_v37 = vrot.slane %v1410_v28, 1  ;;  %v1483_v35 = vrot.slane %v1482_v31, 1  ;;  %v1415_v45 = vmax.f32 %v1413_v32, %v1414_v27  ;;  %v1487_v51 = vmax.f32 %v1485_v36, %v1486_v23 }
 0x212   : > { %v1412_v46 = vmax.f32 %v1410_v28, %v1411_v37  ;;  %v1484_v38 = vmax.f32 %v1482_v31, %v1483_v35  ;;  %v1416_v47 = vrot.slane %v1415_v45, 4  ;;  %v1488_v16 = vrot.slane %v1487_v51, 4 }
 0x214   : > { %v1500_v43 = vmax.f32 %v1412_v46, 0.0  ;;  %v1508_v44 = vmax.f32 %v1484_v38, 0.0  ;;  %v1417_v54 = vmax.f32 %v1415_v45, %v1416_v47  ;;  %v1489_v55 = vmax.f32 %v1487_v51, %v1488_v16 }
 0x216   : > { %v1537_v48 = vsel %vm1536_vm10, %v1500_v43, %v1535_v41  ;;  %v1545_v17 = vsel %vm1536_vm10, %v1508_v44, %v1544_v26  ;;  %v1418_v52 = vrot.slane %v1417_v54, 2  ;;  %v1490_v29 = vrot.slane %v1489_v55, 2 }
 0x218   : > { %v1419_v53 = vmax.f32 %v1417_v54, %v1418_v52  ;;  %v1491_v57 = vmax.f32 %v1489_v55, %v1490_v29 }
 0x21a   : > { %v1420_v12 = vrot.slane %v1419_v53, 1  ;;  %v1492_v13 = vrot.slane %v1491_v57, 1 }
 0x21c   : > { %v1421_v58 = vmax.f32 %v1419_v53, %v1420_v12  ;;  %v1493_v30 = vmax.f32 %v1491_v57, %v1492_v13 }
 0x21e   : > { %v1501_v56 = vmax.f32 %v1421_v58, 0.0  ;;  %v1509_v39 = vmax.f32 %v1493_v30, 0.0 }
 0x220   : > { %v1539_v20 = vsel %vm1538_vm11, %v1501_v56, %v1537_v48  ;;  %v1546_v40 = vsel %vm1538_vm11, %v1509_v39, %v1545_v17 }
 0x221   : > { %1549 = vst.msk [vmem:[%s271_s7] sm:$0xff] %vm706_vm2, %v1539_v20  ;;  %1550 = vst.msk [vmem:[%s271_s7 + $0x8] sm:$0xff] %vm706_vm2, %v1546_v40 }
 0x222 PF: > { %s16_s21 = sadd.s32 1, %s1863_s21  }
 0x223   : > { %p13_p4 = scmp.ge.s32.totalorder %s16_s21, 4  }
 0x225   :  { %15 = sbr.rel (!%p13_p4) target bundleno = 1 (0x1), region = 77 }

// kernel: dyn_diff_pool_forward.32
= control target key start
LH: loop header
LB: loop body
LE: loop exit
PB: predicated region body
PF: predicated region fallthrough
CT: control target
= control target key end

     0   :  { %s1068_s21 = smov 0   ;;  %s1130_s0 = inlined_call_operand.vmem [shape: f32[2,16,64], index: 0, kind: input, shape index: {}]   ;;  %s1131_s1 = inlined_call_operand.vmem [shape: f32[2,16,16], index: 1, kind: input, shape index: {}]   ;;  %s1132_s2 = inlined_call_operand.vmem [shape: f32[2,16,16], index: 2, kind: input, shape index: {}]   ;;  %s1133_s3 = inlined_call_operand.vmem [shape: f32[2,16,64], index: 3, kind: output, shape index: {0}]   ;;  %s1134_s4 = inlined_call_operand.vmem [shape: f32[2,16,16], index: 4, kind: output, shape index: {1}]   ;;  %s1135_s5 = inlined_call_operand.vmem [shape: f32[2,1,1], index: 5, kind: output, shape index: {2}]   ;;  %s1136_s6 = inlined_call_operand.vmem [shape: f32[2,1,1], index: 6, kind: output, shape index: {3}]  }
   0x1 LB: > { %s910_s22 = sadd.s32 4294967295, %s1031_s21   ;;  %p914_p0 = scmp.ge.s32.totalorder %s1031_s21, 1  ;;  %s1031_s21 = sphi %s1068_s21, %s17_s21  }
   0x2   : > { %p239_p1 = scmp.lt.s32.totalorder %s1031_s21, 3 }
   0x4   : > { %p240_p2 = pnand %p914_p0, %p239_p1 }
   0x5   : > { %p290_p3 = scmp.lt.s32.totalorder (!%p240_p2), %s910_s22, 1  ;;  %vm327_vm0 = vcmask (!%p240_p2), 130048   ;;  %vm463_vm1 = vcmask (!%p240_p2), 523264   ;;  %vm722_vm2 = vcmask (!%p240_p2), 0  }
   0x6   : > { %243 = sbr.rel (%p240_p2) target bundleno = 900 (0x384), region = 32 }
   0xd   : > { %s1138_s22 = smov (!%p290_p3, %s910_s22), 1 }
   0xe   : > { %s1079_s23 = sshll.u32 %s1138_s22, 4  ;;  %s317_s17 = scalar_lea.vmem %s1135_s5, %s1138_s22 }
   0xf   : > { %s304_s26 = scalar_lea.vmem %s1132_s2, %s1079_s23  ;;  %s294_s29 = scalar_lea.vmem %s1130_s0, %s1079_s23 }
  0x10   : > { %v325_v0 = vld [vmem:[%s304_s26] sm:$0xff]  ;;  %v326_v1 = vld [vmem:[%s304_s26 + $0x8] sm:$0xff]  ;;  %s299_s8 = scalar_lea.vmem %s1131_s1, %s1079_s23  ;;  %s309_s11 = scalar_lea.vmem %s1133_s3, %s1079_s23 }
  0x11   : > { %v328_v2 = vsel %vm327_vm0, %v325_v0, -inf  ;;  %v331_v3 = vsel %vm327_vm0, %v326_v1, -inf  ;;  %v321_v14 = vld [vmem:[%s294_s29] sm:$0xff]  ;;  %v322_v15 = vld [vmem:[%s294_s29 + $0x8] sm:$0xff]  ;;  %s314_s14 = scalar_lea.vmem %s1134_s4, %s1079_s23  ;;  %s320_s24 = scalar_lea.vmem %s1136_s6, %s1138_s22 }
  0x12   : > { %329 = vmax.xlane.f32.xlu0 %v328_v2  ;;  %v984_v16 = vpack.c.bf16 %v322_v15, %v321_v14  ;;  %v323_v21 = vld [vmem:[%s299_s8] sm:$0xff]  ;;  %v324_v22 = vld [vmem:[%s299_s8 + $0x8] sm:$0xff] }
  0x13   : > { %v988_v23 = vpack.c.bf16 %v324_v22, %v323_v21 }
  0x14   : > { %985 = vmatprep.subr.bf16.mxu0 %v984_v16 }
  0x15   : > { %987 = vmatpush3.bf16.msra.mxu0 %v984_v16  ;;  %989 = vmatprep.subr.bf16.mxu1 %v988_v23 }
  0x16   : > { %332 = vmax.xlane.f32.xlu0 %v331_v3  ;;  %991 = vmatpush3.bf16.msra.mxu1 %v988_v23 }
  0x9f   : > { %v330_v4 = vpop.xlane.xlu0 %329 }
  0xa0   : > { %v334_v5 = vsub.f32 %v325_v0, %v330_v4 }
  0xa2   : > { %v336_v6 = vmul.f32 1.442695, %v334_v5 }
  0xa3   : > { %v333_v7 = vpop.xlane.xlu0 %332 }
  0xa4   : > { %1013 = vpow2.f32 %v336_v6  ;;  %v335_v8 = vsub.f32 %v326_v1, %v333_v7 }
  0xa6   : > { %v338_v9 = vmul.f32 1.442695, %v335_v8 }
  0xa8   : > { %1015 = vpow2.f32 %v338_v9 }
  0xae   : > { %v1014_v10 = vpop.eup %1013 }
  0xaf   : > { %v340_v11 = vsel %vm327_vm0, %v1014_v10, 0.0 }
  0xb0   : > { %341 = vadd.xlane.f32.xlu1 %v340_v11 }
  0xb2   : > { %v1016_v12 = vpop.eup %1015 }
  0xb3   : > { %v343_v13 = vsel %vm327_vm0, %v1016_v12, 0.0 }
  0xb4   : > { %344 = vadd.xlane.f32.xlu1 %v343_v13 }
 0x13d   : > { %v342_v17 = vpop.xlane.xlu1 %341 }
 0x13e   : > { %1017 = vrcp.f32 %v342_v17 }
 0x141   : > { %v345_v18 = vpop.xlane.xlu1 %344 }
 0x142   : > { %1019 = vrcp.f32 %v345_v18 }
 0x148   : > { %v1018_v19 = vpop.eup %1017 }
 0x149   : > { %v347_v20 = vmul.f32 %v1018_v19, %v1014_v10 }
 0x14b   : > { %350 = vxpose.xlu0.b32.start [1/2] (short) (narrow) %v347_v20, 16  ;;  %v726_v31 = vadd.f32 1e-15, %v347_v20  ;;  %v724_v47 = vsub.f32 0.0, %v347_v20 }
 0x14c   : > { %v1020_v24 = vpop.eup %1019 }
 0x14d   : > { %v349_v25 = vmul.f32 %v1020_v24, %v1016_v12 }
 0x14f   : > { %351 = vxpose.xlu0.b32.end [2/2] (short) (narrow) %v349_v25, 16  ;;  %v992_v26 = vpack.c.bf16 %v349_v25, %v347_v20  ;;  %v727_v30 = vadd.f32 1e-15, %v349_v25  ;;  %v725_v43 = vsub.f32 0.0, %v349_v25 }
 0x151   : > { %993 = vmatprep.subr.bf16.mxu0 %v992_v26  ;;  %1021 = vlog2.f32 %v727_v30 }
 0x152   : > { %1023 = vlog2.f32 %v726_v31 }
 0x15b   : > { %v1022_v36 = vpop.eup %1021 }
 0x15c   : > { %v1024_v37 = vpop.eup %1023  ;;  %v731_v39 = vmul.f32 0.6931472, %v1022_v36 }
 0x15d   : > { %v729_v44 = vmul.f32 0.6931472, %v1024_v37 }
 0x15e   : > { %v733_v48 = vmul.f32 %v731_v39, %v725_v43 }
 0x15f   : > { %v732_v51 = vmul.f32 %v729_v44, %v724_v47 }
 0x160   : > { %v735_v53 = vsel %vm327_vm0, %v733_v48, 0.0 }
 0x161   : > { %v734_v54 = vsel %vm327_vm0, %v732_v51, 0.0 }
 0x162   : > { %v736_v55 = vadd.f32 %v735_v53, %v734_v54 }
 0x1cb   : > { %v366_v27 = vpop.trf.xlu0 }
 0x1cc   : > { %960 = vmatprep.mubr.msk.f32.mxu0 %vm327_vm0, %v366_v27  ;;  %967 = vmatprep.mubr.msk.f32.mxu1 %vm327_vm0, %v366_v27 }
 0x1cf   : > { %v367_v28 = vpop.trf.xlu0 }
 0x1d0   : > { %v996_v29 = vpack.c.bf16 %v367_v28, %v366_v27  ;;  %961 = vmatmul.mubr.msk.f32.vlgmr.msra.gmra.mrb[0].mxu0 %vm327_vm0, %v367_v28  ;;  %968 = vmatmul.mubr.msk.f32.vlgmr.msra.gmra.mrb[0].mxu1 %vm327_vm0, %v367_v28 }
 0x1d1   : > { %995 = vmatpush3.bf16.msra.mxu0 %v992_v26  ;;  %981 = vmatprep.mubr.msk.f32.mxu1 %vm327_vm0, %v347_v20 }
 0x1d2   : > { %997 = vmatprep.subr.bf16.mxu1 %v996_v29 }
 0x1d3   : > { %999 = vmatpush3.bf16.msra.mxu1 %v996_v29 }
 0x1d6   : > { %982 = vmatmul.mubr.msk.f32.vlgmr.msra.gmra.mrb[2].mxu1 %vm327_vm0, %v349_v25 }
 0x2a3   : > { %v962_v32 = vpop.f32.mrb[0].mxu0  ;;  %v969_v33 = vpop.f32.mrb[0].mxu1 }
 0x2a4   : > { %465 = vst.msk [vmem:[%s309_s11 + $0x8] sm:$0xff] %vm463_vm1, %v962_v32  ;;  %v454_v34 = vpop.f32.mrb[1].mxu0  ;;  %v532_v35 = vpop.f32.mrb[1].mxu1 }
 0x2a5   : > { %464 = vst.msk [vmem:[%s309_s11] sm:$0xff] %vm463_vm1, %v454_v34  ;;  %974 = vmatprep.mubr.msk.f32.mxu0 %vm327_vm0, %v532_v35 }
 0x2a6   : > { %975 = vmatmul.mubr.msk.f32.vlgmr.msra.gmra.mrb[2].mxu0 %vm327_vm0, %v969_v33 }
 0x2a9   : > { %v983_v38 = vpop.f32.mrb[2].mxu1 }
 0x2aa   : > { %v706_v40 = vsub.f32 %v324_v22, %v983_v38  ;;  %v696_v41 = vpop.f32.mrb[3].mxu1 }
 0x2ab   : > { %v705_v42 = vsub.f32 %v323_v21, %v696_v41 }
 0x2ac   : > { %v708_v45 = vmul.f32 %v706_v40, %v706_v40 }
 0x2ad   : > { %v707_v46 = vmul.f32 %v705_v42, %v705_v42 }
 0x2ae   : > { %v710_v49 = vsel %vm327_vm0, %v708_v45, 0.0 }
 0x2af   : > { %v709_v50 = vsel %vm327_vm0, %v707_v46, 0.0 }
 0x2b0   : > { %v711_v52 = vadd.f32 %v710_v49, %v709_v50 }
 0x2b2   : > { %712 = vadd.xlane.f32.xlu1 %v711_v52 }
 0x2b6   : > { %737 = vadd.xlane.f32.xlu1 %v736_v55 }
 0x33f   : > { %v713_v56 = vpop.xlane.xlu1 %712 }
 0x340   : > { %v714_v57 = vrot.slane %v713_v56, 4 }
 0x342   : > { %v715_v58 = vadd.f32 %v714_v57, %v713_v56 }
 0x343   : > { %v738_v59 = vpop.xlane.xlu1 %737 }
 0x344   : > { %v716_v60 = vrot.slane %v715_v58, 2  ;;  %v739_v61 = vrot.slane %v738_v59, 4 }
 0x346   : > { %v740_v62 = vadd.f32 %v739_v61, %v738_v59  ;;  %v717_v63 = vadd.f32 %v716_v60, %v715_v58 }
 0x348   : > { %v741_v0 = vrot.slane %v740_v62, 2  ;;  %v718_v1 = vrot.slane %v717_v63, 1 }
 0x34a   : > { %v742_v2 = vadd.f32 %v741_v0, %v740_v62  ;;  %v719_v3 = vadd.f32 %v718_v1, %v717_v63 }
 0x34c   : > { %1000 = vpush %v719_v3  ;;  %v743_v4 = vrot.slane %v742_v2, 1 }
 0x34e   : > { %v744_v5 = vadd.f32 %v743_v4, %v742_v2 }
 0x350   : > { %1002 = vpush %v744_v5 }
 0x379   : > { %v976_v6 = vpop.f32.mrb[2].mxu0 }
 0x37a   : > { %623 = vst.msk [vmem:[%s314_s14 + $0x8] sm:$0xff] %vm327_vm0, %v976_v6  ;;  %v613_v7 = vpop.f32.mrb[3].mxu0 }
 0x37b   : > { %622 = vst.msk [vmem:[%s314_s14] sm:$0xff] %vm327_vm0, %v613_v7 }
 0x37d   : > { %s1001_s18 = spop %1000 }
 0x37e   : > { %v721_v8 = vstv %s1001_s18 }
 0x37f   : > { %723 = vst.msk [vmem:[%s317_s17] sm:$0x1] %vm722_vm2, %v721_v8 }
 0x381   : > { %s1003_s25 = spop %1002 }
 0x382   : > { %v746_v9 = vstv %s1003_s25 }
 0x383   : > { %747 = vst.msk [vmem:[%s320_s24] sm:$0x1] %vm722_vm2, %v746_v9 }
 0x384 PF: > { %s17_s21 = sadd.s32 1, %s1031_s21  }
 0x385   : > { %p14_p4 = scmp.ge.s32.totalorder %s17_s21, 4  }
 0x387   :  { %16 = sbr.rel (!%p14_p4) target bundleno = 1 (0x1), region = 104 }

// kernel: dyn_diff_pool_forward.33
= control target key start
LH: loop header
LB: loop body
LE: loop exit
PB: predicated region body
PF: predicated region fallthrough
CT: control target
= control target key end

     0   :  { %vm12_vm0 = vcmask 523264   ;;  %v203_v15 = vlaneseq  ;;  %vm214_vm2 = vcmask 130112   ;;  %vm249_vm3 = vcmask 130048   ;;  %s356_s0 = inlined_call_operand.vmem [shape: f32[2,16,64], index: 0, kind: input, shape index: {}]   ;;  %s357_s1 = inlined_call_operand.vmem [shape: f32[2,16,16], index: 1, kind: output, shape index: {}]  }
   0x1   :  { %v8_v0 = vld [vmem:[%s356_s0] sm:$0xff]  ;;  %v9_v1 = vld [vmem:[%s356_s0 + $0x8] sm:$0xff]  ;;  %vm318_vm1 = vmpackc.low %vm12_vm0, %vm12_vm0 }
   0x2   :  { %v288_v3 = vpack.c.bf16 %v9_v1, %v8_v0  ;;  %v10_v4 = vld [vmem:[%s356_s0 + $0x10] sm:$0xff]  ;;  %v11_v5 = vld [vmem:[%s356_s0 + $0x18] sm:$0xff]  ;;  %278 = vmatprep.mubr.msk.f32.mxu0 %vm12_vm0, %v8_v0  ;;  %v175_v6 = vmul.f32 %v8_v0, %v8_v0  ;;  %v176_v11 = vmul.f32 %v9_v1, %v9_v1  ;;  %v204_v16 = vand.u32 127, %v203_v15 }
   0x3   :  { %v294_v7 = vpack.c.bf16 %v11_v5, %v10_v4  ;;  %285 = vmatprep.mubr.msk.f32.mxu1 %vm12_vm0, %v10_v4  ;;  %v177_v8 = vmul.f32 %v10_v4, %v10_v4  ;;  %v178_v9 = vmul.f32 %v11_v5, %v11_v5  ;;  %v206_v18 = vshrl.u32 %v203_v15, 7 }
   0x4   :  { %290 = vmatprep.subr.msk.bf16.mxu0 %vm318_vm1, %v288_v3  ;;  %v179_v10 = vsel %vm12_vm0, %v175_v6, 0.0  ;;  %v182_v14 = vsel %vm12_vm0, %v176_v11, 0.0  ;;  %v209_v20 = vadd.s32 4294967288, %v204_v16 }
   0x5   :  { %296 = vmatprep.subr.msk.bf16.mxu1 %vm318_vm1, %v294_v7  ;;  %293 = vmatpush3.bf16.xpose.msk.msra.mxu0 %vm318_vm1, %v288_v3  ;;  %v185_v12 = vsel %vm12_vm0, %v177_v8, 0.0  ;;  %v188_v13 = vsel %vm12_vm0, %v178_v9, 0.0  ;;  %v207_v21 = vsub.s32 %v204_v16, %v206_v18 }
   0x6   :  { %299 = vmatpush3.bf16.xpose.msk.msra.mxu1 %vm318_vm1, %v294_v7  ;;  %186 = vadd.xlane.f32.xlu1 %v185_v12  ;;  %v212_v22 = vsub.s32 %v209_v20, %v206_v18 }
   0x7   :  { %180 = vadd.xlane.f32.xlu0 %v179_v10 }
   0xa   :  { %189 = vadd.xlane.f32.xlu1 %v188_v13 }
   0xb   :  { %183 = vadd.xlane.f32.xlu0 %v182_v14 }
   0xc   :  { %279 = vmatmul.mubr.msk.f32.vlgmr.msra.gmra.mrb[0].mxu0 %vm12_vm0, %v9_v1 }
   0xd   :  { %286 = vmatmul.mubr.msk.f32.vlgmr.msra.gmra.mrb[0].mxu1 %vm12_vm0, %v11_v5 }
  0x93   :  { %v187_v19 = vpop.xlane.xlu1 %186 }
  0x94   :  { %v181_v17 = vpop.xlane.xlu0 %180  ;;  %v219_v28 = vrot.slane %v187_v19, %v207_v21 }
  0x95   :  { %v208_v25 = vrot.slane %v181_v17, %v207_v21 }
  0x97   :  { %v190_v24 = vpop.xlane.xlu1 %189 }
  0x98   :  { %v184_v23 = vpop.xlane.xlu0 %183  ;;  %v223_v29 = vrot.slane %v190_v24, %v212_v22 }
  0x99   :  { %v213_v26 = vrot.slane %v184_v23, %v212_v22 }
  0x9a   :  { %v224_v41 = vsel %vm214_vm2, %v223_v29, %v219_v28 }
  0x9b   :  { %v215_v38 = vsel %vm214_vm2, %v213_v26, %v208_v25 }
  0xdf   :  { %v280_v27 = vpop.f32.mrb[0].mxu0 }
  0xe0   :  { %v192_v30 = vmul.f32 2.0, %v280_v27  ;;  %v287_v31 = vpop.f32.mrb[0].mxu1  ;;  %v85_v32 = vpop.f32.mrb[1].mxu0 }
  0xe1   :  { %v194_v33 = vmul.f32 2.0, %v287_v31  ;;  %v191_v34 = vmul.f32 2.0, %v85_v32  ;;  %v166_v35 = vpop.f32.mrb[1].mxu1 }
  0xe2   :  { %v196_v36 = vsub.f32 %v192_v30, %v184_v23  ;;  %v193_v37 = vmul.f32 2.0, %v166_v35 }
  0xe3   :  { %v198_v39 = vsub.f32 %v194_v33, %v190_v24  ;;  %v195_v40 = vsub.f32 %v191_v34, %v181_v17 }
  0xe4   :  { %v246_v42 = vsub.f32 %v196_v36, %v215_v38  ;;  %v197_v43 = vsub.f32 %v193_v37, %v187_v19 }
  0xe5   :  { %v248_v44 = vsub.f32 %v198_v39, %v224_v41  ;;  %v245_v45 = vsub.f32 %v195_v40, %v215_v38 }
  0xe6   :  { %251 = vst.msk [vmem:[%s357_s1 + $0x8] sm:$0xff] %vm249_vm3, %v246_v42  ;;  %v247_v46 = vsub.f32 %v197_v43, %v224_v41 }
  0xe7   :  { %253 = vst.msk [vmem:[%s357_s1 + $0x18] sm:$0xff] %vm249_vm3, %v248_v44  ;;  %250 = vst.msk [vmem:[%s357_s1] sm:$0xff] %vm249_vm3, %v245_v45 }
  0xe8   :  { %252 = vst.msk [vmem:[%s357_s1 + $0x10] sm:$0xff] %vm249_vm3, %v247_v46 }

// kernel: dyn_diff_pool_forward.40
= control target key start
LH: loop header
LB: loop body
LE: loop exit
PB: predicated region body
PF: predicated region fallthrough
CT: control target
= control target key end

     0   :  { %12 = vsyncpa [#allocation3], 0  ;;  %s1274_s0 = inlined_call_operand.vmem [shape: f32[2,16,64], index: 0, kind: input, shape index: {}]   ;;  %s1275_s1 = inlined_call_operand.vmem [shape: f32[2,16,16], index: 1, kind: input, shape index: {}]   ;;  %s1276_s2 = inlined_call_operand.vmem [shape: f32[2,16,4], index: 2, kind: input, shape index: {}]   ;;  %s1277_s3 = inlined_call_operand.vmem [shape: f32[2,4,64], index: 3, kind: output, shape index: {0}]   ;;  %s1278_s4 = inlined_call_operand.hbm [shape: f32[2,4,4], index: 4, kind: output, shape index: {1}]   ;;  %s1279_s5 = inlined_call_operand.vmem [shape: f32[2,1,1], index: 5, kind: output, shape index: {2}]   ;;  %s1280_s6 = inlined_call_operand.vmem [shape: f32[2,1,1], index: 6, kind: output, shape index: {3}]  }
   0x1   :  { %14 = vsyncpa [#allocation3 + $0x1], 0  ;;  %s1137_s21 = smov 0   ;;  %s1139_s22 = smov 0  }
   0x2   :  { %s1141_s23 = smov 0   ;;  %s1143_s24 = smov 0  }
   0x3 LB: > { %s1158_s25 = sadd.s32 4294967295, %s1096_s24   ;;  %s904_s26 = sadd.s32 4294967294, %s1096_s24   ;;  %s1096_s24 = sphi %s1143_s24, %s1286_s24   ;;  %s1092_s23 = sphi %s1141_s23, %s1285_s23   ;;  %s1088_s22 = sphi %s1139_s22, %s1284_s22   ;;  %s1084_s21 = sphi %s1137_s21, %s1283_s21  }
   0x4   : > { %s1162_s27 = sadd.s32 1, %s1096_s24   ;;  %s131_s28 = sadd.s32 1, %s1092_s23 }
   0x5   : > { %s128_s29 = ssub.s32 %s1096_s24, %s1162_s27  ;;  %p141_p0 = scmp.ne.s32.totalorder %s1092_s23, %s1088_s22 }
   0x6   : > { %p129_p1 = scmp.eq.s32.totalorder %s128_s29, 0  ;;  %p142_p2 = scmp.eq.s32.totalorder %s1158_s25, 1 }
   0x7   : > { %p147_p3 = scmp.ne.s32.totalorder %s1088_s22, %s1084_s21  ;;  %p148_p4 = scmp.eq.s32.totalorder %s904_s26, 1 }
   0x8   : > { %s1173_s30 = scalar_select %p129_p1, %s1092_s23, %s131_s28  }
   0x9   : > { %p1175_p5 = por %p142_p2, %p141_p0  ;;  %p1179_p6 = por %p148_p4, %p147_p3 }
   0xa   : > { %p907_p7 = scmp.ge.s32.totalorder %s1096_s24, 1  ;;  %p242_p8 = scmp.lt.s32.totalorder %s1096_s24, 3 }
   0xc   : > { %p243_p9 = pnand %p907_p7, %p242_p8 }
   0xd   : > { %p292_p10 = scmp.lt.s32.totalorder (!%p243_p9), %s1158_s25, 1  ;;  %vm323_vm0 = vcmask (!%p243_p9), 31744   ;;  %v1098_v14 = vmov (!%p243_p9), 0.0|0.0   ;;  %vm1099_vm1 = vmmov (!%p243_p9), 0   ;;  %v1100_v20 = vmov (!%p243_p9), 0.0   ;;  %s923_s12 = sshll.u32 (!%p243_p9), %s1158_s25, 6 }
   0xe   : > { %246 = sbr.rel (%p243_p9) target bundleno = 911 (0x38f), region = 32  ;;  %967 = vmatprep.subr.bf16.mxu0 (!%p243_p9), %v1098_v14  ;;  %970 = vmatprep.subr.bf16.mxu1 (!%p243_p9), %v1098_v14  ;;  %vm378_vm2 = vcmask (!%p243_p9), 130048   ;;  %vm605_vm3 = vcmask (!%p243_p9), 1043456   ;;  %vm452_vm4 = vcmask (!%p243_p9), 519168   ;;  %vm597_vm5 = vcmask (!%p243_p9), 27648   ;;  %s1224_s17 = scalar_lea.hbm (!%p243_p9), %s1278_s4, %s923_s12 }
   0xf   : > { %945 = vmatprep.mubr.msk.f32.mxu0 (!%p243_p9), %vm1099_vm1, %v1100_v20  ;;  %952 = vmatprep.mubr.msk.f32.mxu1 (!%p243_p9), %vm1099_vm1, %v1100_v20 }
  0x15   : > { %s1187_s9 = scalar_select %p292_p10, %s1158_s25, 1 }
  0x16   : > { %s1101_s25 = smov [#allocation2]  }
  0x17   : > { %s926_s10 = sshll.u32 %s1187_s9, 4  ;;  %s915_s20 = sshll.u32 %s1187_s9, 2 }
  0x18   : > { %s306_s13 = scalar_lea.vmem %s1276_s2, %s926_s10  ;;  %s296_s16 = scalar_lea.vmem %s1274_s0, %s926_s10 }
  0x19   : > { %v321_v0 = vld [vmem:[%s306_s13] sm:$0xff]  ;;  %v322_v1 = vld [vmem:[%s306_s13 + $0x8] sm:$0xff]  ;;  %s301_s19 = scalar_lea.vmem %s1275_s1, %s926_s10  ;;  %s310_s29 = scalar_lea.vmem %s1277_s3, %s915_s20 }
  0x1a   : > { %v324_v2 = vsel %vm323_vm0, %v321_v0, -inf  ;;  %v327_v3 = vsel %vm323_vm0, %v322_v1, -inf  ;;  %v317_v15 = vld [vmem:[%s296_s16] sm:$0xff]  ;;  %v318_v16 = vld [vmem:[%s296_s16 + $0x8] sm:$0xff]  ;;  %s279_s10 = sand.u32 1, %s1088_s22   ;;  %s1038_s20 = sshll.u32 %s1101_s25, 4  ;;  %s1039_s20 = int_to_ptr.vmem [resolvable:$false] %s1038_s20 }
  0x1b   : > { %325 = vmax.xlane.f32.xlu0 %v324_v2  ;;  %v319_v17 = vld [vmem:[%s301_s19] sm:$0xff]  ;;  %v968_v18 = vpack.c.bf16 %v318_v16, %v317_v15  ;;  %v320_v19 = vld [vmem:[%s301_s19 + $0x8] sm:$0xff]  ;;  %s908_s11 = sshll.u32 %s279_s10, 2  ;;  %s731_s18 = scalar_lea.sflag [#allocation3], %s279_s10 }
  0x1c   : > { %v971_v21 = vpack.c.bf16 %v320_v19, %v319_v17  ;;  %s281_s13 = scalar_lea.vmem [#allocation2], %s908_s11  ;;  %s1040_s26 = scalar_lea.vmem %s1039_s20, 128 }
  0x1d   : > { %969 = vmatpush3.bf16.msra.mxu0 %v968_v18  ;;  %s753_s14 = sshll.u32 %s281_s13, 4  ;;  %s1226_s14 = int_to_ptr.vmem [resolvable:$true] %s753_s14 }
  0x1e   : > { %972 = vmatpush3.bf16.msra.mxu1 %v971_v21  ;;  %973 = vmatprep.subr.bf16.mxu0 %v1098_v14  ;;  %s1034_s19 = scalar_lea.vmem %s1226_s14, 64  ;;  %p1041_p0 = scmp.lt.s32.totalorder %s1226_s14, %s1039_s20 }
  0x1f   : > { %328 = vmax.xlane.f32.xlu0 %v327_v3  ;;  %p1035_p11 = scmp.ne.s32.totalorder %s1226_s14, %s1034_s19  ;;  %p1042_p1 = scmp.lt.s32.totalorder %s1040_s26, %s1034_s19 }
  0x21   : > { %p1036_p12 = pnand %p1035_p11, %p1175_p5  ;;  %p1043_p2 = por %p1042_p1, %p1041_p0 }
  0x23   : > { %p1037_p13 = pneg %p1036_p12 }
  0x25   : > { %p1044_p3 = pnand %p1043_p2, %p1037_p13 }
  0xa8   : > { %v326_v4 = vpop.xlane.xlu0 %325 }
  0xa9   : > { %v330_v5 = vsub.f32 %v321_v0, %v326_v4 }
  0xab   : > { %v332_v6 = vmul.f32 1.442695, %v330_v5 }
  0xac   : > { %v329_v7 = vpop.xlane.xlu0 %328 }
  0xad   : > { %1022 = vpow2.f32 %v332_v6  ;;  %v331_v8 = vsub.f32 %v322_v1, %v329_v7 }
  0xaf   : > { %v334_v9 = vmul.f32 1.442695, %v331_v8 }
  0xb1   : > { %1024 = vpow2.f32 %v334_v9 }
  0xb7   : > { %v1023_v10 = vpop.eup %1022 }
  0xb8   : > { %v336_v11 = vsel %vm323_vm0, %v1023_v10, 0.0 }
  0xb9   : > { %337 = vadd.xlane.f32.xlu1 %v336_v11 }
  0xbb   : > { %v1025_v12 = vpop.eup %1024 }
  0xbc   : > { %v339_v13 = vsel %vm323_vm0, %v1025_v12, 0.0 }
  0xbd   : > { %340 = vadd.xlane.f32.xlu1 %v339_v13 }
 0x146   : > { %v338_v22 = vpop.xlane.xlu1 %337 }
 0x147   : > { %1026 = vrcp.f32 %v338_v22 }
 0x14a   : > { %v341_v23 = vpop.xlane.xlu1 %340 }
 0x14b   : > { %1028 = vrcp.f32 %v341_v23 }
 0x151   : > { %v1027_v24 = vpop.eup %1026 }
 0x152   : > { %v343_v25 = vmul.f32 %v1027_v24, %v1023_v10 }
 0x154   : > { %346 = vxpose.xlu0.b32.start [1/2] (short) (narrow) %v343_v25, 8  ;;  %v704_v31 = vadd.f32 1e-15, %v343_v25  ;;  %v702_v47 = vsub.f32 0.0, %v343_v25 }
 0x155   : > { %v1029_v26 = vpop.eup %1028 }
 0x156   : > { %v345_v27 = vmul.f32 %v1029_v26, %v1025_v12 }
 0x158   : > { %347 = vxpose.xlu0.b32.end [2/2] (short) (narrow) %v345_v27, 8  ;;  %v974_v29 = vpack.c.bf16 %v345_v27, %v343_v25  ;;  %v705_v30 = vadd.f32 1e-15, %v345_v27  ;;  %v703_v43 = vsub.f32 0.0, %v345_v27 }
 0x15a   : > { %1030 = vlog2.f32 %v705_v30 }
 0x15b   : > { %1032 = vlog2.f32 %v704_v31 }
 0x164   : > { %v1031_v34 = vpop.eup %1030 }
 0x165   : > { %v1033_v37 = vpop.eup %1032  ;;  %v709_v39 = vmul.f32 0.6931472, %v1031_v34 }
 0x166   : > { %v707_v44 = vmul.f32 0.6931472, %v1033_v37 }
 0x167   : > { %v711_v48 = vmul.f32 %v709_v39, %v703_v43 }
 0x168   : > { %v710_v51 = vmul.f32 %v707_v44, %v702_v47 }
 0x169   : > { %v713_v53 = vsel %vm323_vm0, %v711_v48, 0.0 }
 0x16a   : > { %v712_v54 = vsel %vm323_vm0, %v710_v51, 0.0 }
 0x16b   : > { %v714_v55 = vadd.f32 %v713_v53, %v712_v54 }
 0x1d4   : > { %v362_v28 = vpop.trf.xlu0 }
 0x1d5   : > { %946 = vmatmul.mubr.msk.f32.vlgmr.msra.gmra.mrb[0].mxu0 %vm378_vm2, %v362_v28  ;;  %953 = vmatmul.mubr.msk.f32.vlgmr.msra.gmra.mrb[0].mxu1 %vm378_vm2, %v362_v28 }
 0x1d6   : > { %975 = vmatpush3.bf16.msra.mxu0 %v974_v29  ;;  %962 = vmatprep.subr.msk.mxu1 %vm605_vm3, %v362_v28 }
 0x1d7   : > { %963 = vmatpush3.msk.msra.mxu1 %vm605_vm3, %v362_v28  ;;  %964 = vmatprep.mubr.msk.f32.mxu1 %vm323_vm0, %v343_v25 }
 0x1d8   : > { %959 = vmatprep.mubr.msk.f32.mxu0 %vm1099_vm1, %v1100_v20 }
 0x1d9   : > { %965 = vmatmul.mubr.msk.f32.vlgmr.msra.gmra.mrb[2].mxu1 %vm323_vm0, %v345_v27 }
 0x2a8   : > { %v448_v32 = vpop.f32.mrb[0].mxu0  ;;  %v520_v33 = vpop.f32.mrb[0].mxu1 }
 0x2a9   : > { %453 = vst.msk [vmem:[%s310_s29] sm:$0xf] %vm452_vm4, %v448_v32  ;;  %v947_v35 = vpop.f32.mrb[1].mxu0  ;;  %v954_v36 = vpop.f32.mrb[1].mxu1  ;;  %960 = vmatmul.mubr.msk.f32.vlgmr.msra.gmra.mrb[2].mxu0 %vm378_vm2, %v520_v33 }
 0x2ac   : > { %v966_v38 = vpop.f32.mrb[2].mxu1 }
 0x2ad   : > { %v684_v40 = vsub.f32 %v320_v19, %v966_v38  ;;  %v674_v41 = vpop.f32.mrb[3].mxu1 }
 0x2ae   : > { %v683_v42 = vsub.f32 %v319_v17, %v674_v41 }
 0x2af   : > { %v686_v45 = vmul.f32 %v684_v40, %v684_v40 }
 0x2b0   : > { %v685_v46 = vmul.f32 %v683_v42, %v683_v42 }
 0x2b1   : > { %v688_v49 = vsel %vm378_vm2, %v686_v45, 0.0 }
 0x2b2   : > { %v687_v50 = vsel %vm378_vm2, %v685_v46, 0.0 }
 0x2b3   : > { %v689_v52 = vadd.f32 %v688_v49, %v687_v50 }
 0x2b5   : > { %690 = vadd.xlane.f32.xlu1 %v689_v52 }
 0x2b9   : > { %715 = vadd.xlane.f32.xlu1 %v714_v55 }
 0x342   : > { %v691_v56 = vpop.xlane.xlu1 %690 }
 0x343   : > { %v692_v57 = vrot.slane %v691_v56, 4 }
 0x345   : > { %v693_v58 = vadd.f32 %v692_v57, %v691_v56 }
 0x346   : > { %v716_v59 = vpop.xlane.xlu1 %715 }
 0x347   : > { %v694_v60 = vrot.slane %v693_v58, 2  ;;  %v717_v61 = vrot.slane %v716_v59, 4 }
 0x349   : > { %v718_v62 = vadd.f32 %v717_v61, %v716_v59  ;;  %v695_v63 = vadd.f32 %v694_v60, %v693_v58 }
 0x34b   : > { %v719_v0 = vrot.slane %v718_v62, 2  ;;  %v696_v1 = vrot.slane %v695_v63, 1 }
 0x34d   : > { %v720_v2 = vadd.f32 %v719_v0, %v718_v62  ;;  %v697_v3 = vadd.f32 %v696_v1, %v695_v63 }
 0x34f   : > { %976 = vpush %v697_v3  ;;  %v721_v4 = vrot.slane %v720_v2, 1 }
 0x351   : > { %v722_v5 = vadd.f32 %v721_v4, %v720_v2 }
 0x353   : > { %978 = vpush %v722_v5 }
 0x37c   : > { %v593_v6 = vpop.f32.mrb[2].mxu0 }
 0x37d   : > { %598 = vst.msk [vmem:[%s281_s13] sm:$0xf] %vm597_vm5, %v593_v6  ;;  %v961_v7 = vpop.f32.mrb[3].mxu0 }
 0x37e   : > { %1047 = shalt.err (!%p1044_p3)
}
 0x37f   : > { %s1048_s28 = scalar_lea.hbm %s1224_s17, 64  ;;  %s1052_s11 = scalar_lea.hbm %s1278_s4, 128 }
 0x380   : > { %p1049_p4 = scmp.ne.s32.totalorder %s1224_s17, %s1048_s28  ;;  %p1053_p9 = scmp.lt.u32.totalorder %s1224_s17, %s1278_s4 }
 0x381   : > { %p1054_p10 = scmp.lt.u32.totalorder %s1052_s11, %s1048_s28  ;;  %p1056_p12 = scmp.lt.u32.totalorder %s1048_s28, %s1224_s17 }
 0x382   : > { %p1050_p7 = pnand %p1049_p4, %p1175_p5 }
 0x383   : > { %p1055_p11 = por %p1054_p10, %p1053_p9 }
 0x384   : > { %p1051_p8 = pneg %p1050_p7 }
 0x385   : > { %p1057_p13 = por %p1056_p12, %p1055_p11 }
 0x387   : > { %p1058_p0 = pnand %p1057_p13, %p1051_p8 }
 0x389   : > { %1061 = shalt.err (!%p1058_p0)
}
 0x38a   : > { %980 = dma.vmem_to_hbm [thread:$0]  (%p1175_p5), %s1226_s14, 64, %s1224_s17, %s731_s18   ;;  %vm700_vm6 = vcmask 0  }
 0x38b   : > { %s313_s19 = scalar_lea.vmem %s1279_s5, %s1187_s9  ;;  %s977_s25 = spop %976 }
 0x38c   : > { %v699_v8 = vstv %s977_s25  ;;  %s316_s28 = scalar_lea.vmem %s1280_s6, %s1187_s9  ;;  %s979_s29 = spop %978 }
 0x38d   : > { %701 = vst.msk [vmem:[%s313_s19] sm:$0x1] %vm700_vm6, %v699_v8  ;;  %v724_v9 = vstv %s979_s29 }
 0x38e   : > { %725 = vst.msk [vmem:[%s316_s28] sm:$0x1] %vm700_vm6, %v724_v9 }
 0x38f PF: > { %p986_p5 = scmp.ge.s32.totalorder %s1096_s24, 2  ;;  %s778_s7 = sand.u32 1, %s1084_s21  }
 0x390   : > { %s779_s14 = scalar_lea.sflag [#allocation3], %s778_s7 }
 0x391   : > { %p983_p1 = pnand %p986_p5, %p1179_p6 }
 0x393   : > { %1079 = dma.done.wait (!%p983_p1), %s779_s14, 64  }
 0x394   : > { %1081 = vsyncadd (!%p983_p1), %s779_s14, 4294967232  ;;  %p17_p2 = scmp.ge.s32.totalorder %s1162_s27, 4   ;;  %s1283_s21 = smov %s1088_s22 }
 0x395   : > { %s1284_s22 = smov %s1092_s23  ;;  %s1285_s23 = smov %s1173_s30 }
 0x396   : > { %s1286_s24 = smov %s1162_s27  ;;  %19 = sbr.rel (!%p17_p2) target bundleno = 3 (0x3), region = 109 }
 0x39d   :  { %796 = vsyncpa [#allocation3], 1 }
 0x39e   :  { %798 = vsyncpa [#allocation3 + $0x1], 1 }

// kernel: dyn_diff_pool_forward.36
= control target key start
LH: loop header
LB: loop body
LE: loop exit
PB: predicated region body
PF: predicated region fallthrough
CT: control target
= control target key end

     0   :  { %s1904_s21 = smov 0   ;;  %s2385_s0 = inlined_call_operand.vmem [shape: bf16[2,16,64], index: 0, kind: input, shape index: {}]   ;;  %s2386_s1 = inlined_call_operand.vmem [shape: s32[2,16,16], index: 1, kind: input, shape index: {}]   ;;  %s2387_s2 = inlined_call_operand.vmem [shape: bf16[64,4], index: 2, kind: input, shape index: {}]   ;;  %s2388_s3 = inlined_call_operand.vmem [shape: bf16[64,4], index: 3, kind: input, shape index: {}]   ;;  %s2389_s4 = inlined_call_operand.vmem [shape: f32[1,4], index: 4, kind: input, shape index: {}]   ;;  %s2390_s5 = inlined_call_operand.vmem [shape: f32[1,4], index: 5, kind: input, shape index: {}]   ;;  %s2391_s6 = inlined_call_operand.vmem [shape: f32[2,16,4], index: 6, kind: output, shape index: {}]  }
   0x1 LB: > { %s1619_s22 = sadd.s32 4294967295, %s1864_s21   ;;  %p1623_p0 = scmp.ge.s32.totalorder %s1864_s21, 1  ;;  %s1864_s21 = sphi %s1904_s21, %s16_s21  }
   0x2   : > { %p222_p1 = scmp.lt.s32.totalorder %s1864_s21, 3 }
   0x4   : > { %p223_p2 = pnand %p1623_p0, %p222_p1 }
   0x5   : > { %v1849_v0 = vld [vmem:[%s2388_s3] sm:$0xff] (!%p223_p2)   ;;  %v432_v1 = vlaneseq (!%p223_p2)  ;;  %v1866_v2 = vmov (!%p223_p2), 0.0   ;;  %v1850_v3 = vld [vmem:[%s2388_s3 + $0x8] sm:$0xff] (!%p223_p2)   ;;  %vm1867_vm0 = vmmov (!%p223_p2), 0   ;;  %p257_p3 = scmp.lt.s32.totalorder (!%p223_p2), %s1619_s22, 1  ;;  %v1851_v6 = vld [vmem:[%s2388_s3 + $0x10] sm:$0xff] (!%p223_p2)  }
   0x6   : > { %226 = sbr.rel (%p223_p2) target bundleno = 546 (0x222), region = 44  ;;  %1768 = vmatprep.subr.bf16.mxu1 (!%p223_p2), %v1866_v2  ;;  %1756 = vmatprep.subr.bf16.mxu0 (!%p223_p2), %v1866_v2  ;;  %v1854_v5 = vld [vmem:[%s2387_s2] sm:$0xff] (!%p223_p2)   ;;  %v1852_v8 = vld [vmem:[%s2388_s3 + $0x18] sm:$0xff] (!%p223_p2)   ;;  %v1855_v9 = vld [vmem:[%s2387_s2 + $0x8] sm:$0xff] (!%p223_p2)   ;;  %vm312_vm1 = vcmask (!%p223_p2), 523264   ;;  %vm706_vm2 = vcmask (!%p223_p2), 130048  }
   0x7   : > { %1769 = vmatpush3.bf16.msra.mxu1 (!%p223_p2), %v1849_v0  ;;  %1776 = vmatprep.mubr.msk.bf16.mxu1 (!%p223_p2), %vm1867_vm0, %v1866_v2  ;;  %v1926_v4 = vshrl.u32 (!%p223_p2), %v432_v1, 7  ;;  %v1856_v16 = vld [vmem:[%s2387_s2 + $0x10] sm:$0xff] (!%p223_p2)   ;;  %v1857_v19 = vld [vmem:[%s2387_s2 + $0x18] sm:$0xff] (!%p223_p2)   ;;  %v1996_v38 = vand.u32 (!%p223_p2), 127, %v432_v1 }
   0x8   : > { %1770 = vmatprep.subr.bf16.mxu1 (!%p223_p2), %v1866_v2  ;;  %1764 = vmatprep.mubr.msk.bf16.mxu0 (!%p223_p2), %vm1867_vm0, %v1866_v2 }
   0x9   : > { %v1937_v7 = vsub.s32 (!%p223_p2), 0, %v1926_v4  ;;  %1757 = vmatpush3.bf16.msra.mxu0 (!%p223_p2), %v1854_v5  ;;  %v445_v14 = vsub.s32 (!%p223_p2), 1, %v1926_v4  ;;  %v456_v20 = vsub.s32 (!%p223_p2), 2, %v1926_v4  ;;  %v467_v23 = vsub.s32 (!%p223_p2), 3, %v1926_v4 }
   0xa   : > { %1758 = vmatprep.subr.bf16.mxu0 (!%p223_p2), %v1866_v2  ;;  %v478_v26 = vsub.s32 (!%p223_p2), 4, %v1926_v4  ;;  %v489_v29 = vsub.s32 (!%p223_p2), 5, %v1926_v4  ;;  %v500_v32 = vsub.s32 (!%p223_p2), 6, %v1926_v4  ;;  %v511_v35 = vsub.s32 (!%p223_p2), 7, %v1926_v4 }
   0xb   : > { %1771 = vmatpush3.bf16.msra.mxu1 (!%p223_p2), %v1850_v3 }
   0xc   : > { %1772 = vmatprep.subr.bf16.mxu1 (!%p223_p2), %v1866_v2 }
   0xd   : > { %s2393_s22 = smov (!%p257_p3, %s1619_s22), 1  ;;  %1759 = vmatpush3.bf16.msra.mxu0 %v1855_v9 }
   0xe   : > { %s1709_s7 = sshll.u32 %s2393_s22, 3  ;;  %s1710_s8 = sshll.u32 %s2393_s22, 4  ;;  %1760 = vmatprep.subr.bf16.mxu0 %v1866_v2 }
   0xf   : > { %s261_s11 = scalar_lea.vmem %s2385_s0, %s1709_s7  ;;  %s266_s14 = scalar_lea.vmem %s2386_s1, %s1710_s8  ;;  %1773 = vmatpush3.bf16.msra.mxu1 %v1851_v6 }
  0x10   : > { %v1955_v10 = vld [vmem:[%s266_s14] sm:$0xff]  ;;  %v1957_v11 = vld [vmem:[%s266_s14 + $0x8] sm:$0xff]  ;;  %1774 = vmatprep.subr.bf16.mxu1 %v1866_v2  ;;  %s271_s7 = scalar_lea.vmem %s2391_s6, %s1710_s8 }
  0x11   : > { %v435_v12 = vrot.slane %v1955_v10, %v1937_v7  ;;  %v523_v13 = vrot.slane %v1957_v11, %v1937_v7  ;;  %v1853_v15 = vld [vmem:[%s261_s11] sm:$0xff]   ;;  %v534_v17 = vrot.slane %v1957_v11, %v445_v14  ;;  %v446_v18 = vrot.slane %v1955_v10, %v445_v14  ;;  %1761 = vmatpush3.bf16.msra.mxu0 %v1856_v16 }
  0x12   : > { %1762 = vmatprep.subr.bf16.mxu0 %v1866_v2  ;;  %v545_v21 = vrot.slane %v1957_v11, %v456_v20  ;;  %v457_v22 = vrot.slane %v1955_v10, %v456_v20  ;;  %v556_v24 = vrot.slane %v1957_v11, %v467_v23  ;;  %v468_v25 = vrot.slane %v1955_v10, %v467_v23 }
  0x13   : > { %441 = vbcast.lane.b32.xlu1 %v435_v12, 264  ;;  %437 = vbcast.lane.b32.xlu0 %v435_v12, 256  ;;  %v567_v27 = vrot.slane %v1957_v11, %v478_v26  ;;  %v479_v28 = vrot.slane %v1955_v10, %v478_v26  ;;  %v578_v30 = vrot.slane %v1957_v11, %v489_v29 }
  0x14   : > { %1775 = vmatpush3.bf16.msra.mxu1 %v1852_v8  ;;  %v490_v31 = vrot.slane %v1955_v10, %v489_v29  ;;  %v589_v33 = vrot.slane %v1957_v11, %v500_v32  ;;  %v501_v34 = vrot.slane %v1955_v10, %v500_v32  ;;  %v600_v36 = vrot.slane %v1957_v11, %v511_v35 }
  0x15   : > { %1763 = vmatpush3.bf16.msra.mxu0 %v1857_v19  ;;  %v512_v37 = vrot.slane %v1955_v10, %v511_v35 }
  0x17   : > { %529 = vbcast.lane.b32.xlu1 %v523_v13, 264  ;;  %525 = vbcast.lane.b32.xlu0 %v523_v13, 256 }
  0x18   : > { %1777 = vmatmul.mubr.msk.bf16.vlgmr.msra.gmra.mrb[0].mxu1 %vm312_vm1, %v1853_v15  ;;  %1765 = vmatmul.mubr.msk.bf16.vlgmr.msra.gmra.mrb[0].mxu0 %vm312_vm1, %v1853_v15 }
  0x1b   : > { %536 = vbcast.lane.b32.xlu1 %v534_v17, 256  ;;  %448 = vbcast.lane.b32.xlu0 %v446_v18, 256 }
  0x1f   : > { %540 = vbcast.lane.b32.xlu1 %v534_v17, 264  ;;  %452 = vbcast.lane.b32.xlu0 %v446_v18, 264 }
  0x23   : > { %547 = vbcast.lane.b32.xlu1 %v545_v21, 256  ;;  %459 = vbcast.lane.b32.xlu0 %v457_v22, 256 }
  0x27   : > { %551 = vbcast.lane.b32.xlu1 %v545_v21, 264  ;;  %463 = vbcast.lane.b32.xlu0 %v457_v22, 264 }
  0x2b   : > { %558 = vbcast.lane.b32.xlu1 %v556_v24, 256  ;;  %470 = vbcast.lane.b32.xlu0 %v468_v25, 256 }
  0x2f   : > { %562 = vbcast.lane.b32.xlu1 %v556_v24, 264  ;;  %474 = vbcast.lane.b32.xlu0 %v468_v25, 264 }
  0x33   : > { %569 = vbcast.lane.b32.xlu1 %v567_v27, 256  ;;  %481 = vbcast.lane.b32.xlu0 %v479_v28, 256 }
  0x37   : > { %573 = vbcast.lane.b32.xlu1 %v567_v27, 264  ;;  %485 = vbcast.lane.b32.xlu0 %v479_v28, 264 }
  0x3b   : > { %580 = vbcast.lane.b32.xlu1 %v578_v30, 256  ;;  %492 = vbcast.lane.b32.xlu0 %v490_v31, 256 }
  0x3f   : > { %584 = vbcast.lane.b32.xlu1 %v578_v30, 264  ;;  %496 = vbcast.lane.b32.xlu0 %v490_v31, 264 }
  0x43   : > { %591 = vbcast.lane.b32.xlu1 %v589_v33, 256  ;;  %503 = vbcast.lane.b32.xlu0 %v501_v34, 256 }
  0x47   : > { %595 = vbcast.lane.b32.xlu1 %v589_v33, 264  ;;  %507 = vbcast.lane.b32.xlu0 %v501_v34, 264 }
  0x4b   : > { %602 = vbcast.lane.b32.xlu1 %v600_v36, 256  ;;  %514 = vbcast.lane.b32.xlu0 %v512_v37, 256 }
  0x4f   : > { %606 = vbcast.lane.b32.xlu1 %v600_v36, 264  ;;  %518 = vbcast.lane.b32.xlu0 %v512_v37, 264 }
  0x85   : > { %v438_v39 = vpop.permute.xlu0 %437  ;;  %v442_v43 = vpop.permute.xlu1 %441 }
  0x86   : > { %vm610_vm3 = vcmp.eq.s32.totalorder %v438_v39, %v1996_v38  ;;  %vm611_vm5 = vcmp.eq.s32.totalorder %v442_v43, %v1996_v38 }
  0x87   : > { %v1641_v40 = vsel %vm610_vm3, 1.0, %v1866_v2  ;;  %v1642_v9 = vsel %vm611_vm5, 1.0, %v1866_v2 }
  0x88   : > { %1784 = vmatprep.mubr.msk.f32.mxu0 %vm706_vm2, %v1641_v40 }
  0x89   : > { %v526_v41 = vpop.permute.xlu0 %525  ;;  %v530_v44 = vpop.permute.xlu1 %529 }
  0x8a   : > { %vm626_vm4 = vcmp.eq.s32.totalorder %v526_v41, %v1996_v38  ;;  %vm627_vm6 = vcmp.eq.s32.totalorder %v530_v44, %v1996_v38 }
  0x8b   : > { %v1657_v42 = vsel %vm626_vm4, 1.0, %v1866_v2  ;;  %v1658_v10 = vsel %vm627_vm6, 1.0, %v1866_v2 }
  0x8c   : > { %1808 = vmatprep.mubr.msk.f32.mxu1 %vm706_vm2, %v1657_v42 }
  0x8d   : > { %v537_v45 = vpop.permute.xlu1 %536  ;;  %v449_v46 = vpop.permute.xlu0 %448 }
  0x8e   : > { %vm628_vm7 = vcmp.eq.s32.totalorder %v537_v45, %v1996_v38  ;;  %vm612_vm8 = vcmp.eq.s32.totalorder %v449_v46, %v1996_v38 }
  0x8f   : > { %v1659_v12 = vsel %vm628_vm7, 1.0, %v1866_v2  ;;  %v1643_v13 = vsel %vm612_vm8, 1.0, %v1866_v2 }
  0x91   : > { %v541_v47 = vpop.permute.xlu1 %540  ;;  %v453_v48 = vpop.permute.xlu0 %452 }
  0x92   : > { %vm629_vm9 = vcmp.eq.s32.totalorder %v541_v47, %v1996_v38  ;;  %vm613_vm10 = vcmp.eq.s32.totalorder %v453_v48, %v1996_v38 }
  0x93   : > { %v1660_v19 = vsel %vm629_vm9, 1.0, %v1866_v2  ;;  %v1644_v20 = vsel %vm613_vm10, 1.0, %v1866_v2 }
  0x95   : > { %v548_v49 = vpop.permute.xlu1 %547  ;;  %v460_v50 = vpop.permute.xlu0 %459 }
  0x96   : > { %vm630_vm11 = vcmp.eq.s32.totalorder %v548_v49, %v1996_v38  ;;  %vm614_vm12 = vcmp.eq.s32.totalorder %v460_v50, %v1996_v38 }
  0x97   : > { %v1661_v21 = vsel %vm630_vm11, 1.0, %v1866_v2  ;;  %v1645_v22 = vsel %vm614_vm12, 1.0, %v1866_v2 }
  0x99   : > { %v552_v51 = vpop.permute.xlu1 %551  ;;  %v464_v52 = vpop.permute.xlu0 %463 }
  0x9a   : > { %vm631_vm13 = vcmp.eq.s32.totalorder %v552_v51, %v1996_v38  ;;  %vm615_vm14 = vcmp.eq.s32.totalorder %v464_v52, %v1996_v38 }
  0x9b   : > { %v1662_v23 = vsel %vm631_vm13, 1.0, %v1866_v2  ;;  %v1646_v24 = vsel %vm615_vm14, 1.0, %v1866_v2 }
  0x9d   : > { %v559_v53 = vpop.permute.xlu1 %558  ;;  %v471_v54 = vpop.permute.xlu0 %470 }
  0x9e   : > { %vm632_vm15 = vcmp.eq.s32.totalorder %v559_v53, %v1996_v38  ;;  %vm616_vm0 = vcmp.eq.s32.totalorder %v471_v54, %v1996_v38 }
  0x9f   : > { %v1663_v27 = vsel %vm632_vm15, 1.0, %v1866_v2  ;;  %v1647_v28 = vsel %vm616_vm0, 1.0, %v1866_v2 }
  0xa1   : > { %v2004_v55 = vpop.permute.xlu1 %562  ;;  %v2006_v56 = vpop.permute.xlu0 %474 }
  0xa2   : > { %vm633_vm1 = vcmp.eq.s32.totalorder %v2004_v55, %v1996_v38  ;;  %vm617_vm3 = vcmp.eq.s32.totalorder %v2006_v56, %v1996_v38 }
  0xa3   : > { %v1664_v29 = vsel %vm633_vm1, 1.0, %v1866_v2  ;;  %v1648_v30 = vsel %vm617_vm3, 1.0, %v1866_v2 }
  0xa5   : > { %v2008_v57 = vpop.permute.xlu1 %569  ;;  %v2010_v58 = vpop.permute.xlu0 %481 }
  0xa6   : > { %vm634_vm4 = vcmp.eq.s32.totalorder %v2008_v57, %v1996_v38  ;;  %vm618_vm5 = vcmp.eq.s32.totalorder %v2010_v58, %v1996_v38 }
  0xa7   : > { %v1665_v31 = vsel %vm634_vm4, 1.0, %v1866_v2  ;;  %v1649_v32 = vsel %vm618_vm5, 1.0, %v1866_v2  ;;  %vm1527_vm5 = vcmask 1041409  }
  0xa9   : > { %v2012_v59 = vpop.permute.xlu1 %573  ;;  %v2014_v60 = vpop.permute.xlu0 %485 }
  0xaa   : > { %vm635_vm6 = vcmp.eq.s32.totalorder %v2012_v59, %v1996_v38  ;;  %vm619_vm7 = vcmp.eq.s32.totalorder %v2014_v60, %v1996_v38 }
  0xab   : > { %v1666_v35 = vsel %vm635_vm6, 1.0, %v1866_v2  ;;  %v1650_v36 = vsel %vm619_vm7, 1.0, %v1866_v2  ;;  %vm1529_vm6 = vcmask 1042434   ;;  %vm1531_vm7 = vcmask 1043459  }
  0xad   : > { %v2016_v61 = vpop.permute.xlu1 %580  ;;  %v2018_v62 = vpop.permute.xlu0 %492 }
  0xae   : > { %vm636_vm8 = vcmp.eq.s32.totalorder %v2016_v61, %v1996_v38  ;;  %vm620_vm9 = vcmp.eq.s32.totalorder %v2018_v62, %v1996_v38 }
  0xaf   : > { %v1667_v37 = vsel %vm636_vm8, 1.0, %v1866_v2  ;;  %v1651_v39 = vsel %vm620_vm9, 1.0, %v1866_v2  ;;  %vm1533_vm8 = vcmask 1044484   ;;  %vm1535_vm9 = vcmask 1045509  }
  0xb1   : > { %v2020_v6 = vpop.permute.xlu1 %584  ;;  %v2022_v8 = vpop.permute.xlu0 %496 }
  0xb2   : > { %vm637_vm10 = vcmp.eq.s32.totalorder %v2020_v6, %v1996_v38  ;;  %vm621_vm11 = vcmp.eq.s32.totalorder %v2022_v8, %v1996_v38 }
  0xb3   : > { %v1668_v40 = vsel %vm637_vm10, 1.0, %v1866_v2  ;;  %v1652_v41 = vsel %vm621_vm11, 1.0, %v1866_v2  ;;  %vm1537_vm10 = vcmask 1046534   ;;  %vm1539_vm11 = vcmask 1047559  }
  0xb5   : > { %v2038_v14 = vpop.permute.xlu1 %591  ;;  %v2044_v16 = vpop.permute.xlu0 %503 }
  0xb6   : > { %vm638_vm12 = vcmp.eq.s32.totalorder %v2038_v14, %v1996_v38  ;;  %vm622_vm13 = vcmp.eq.s32.totalorder %v2044_v16, %v1996_v38 }
  0xb7   : > { %v1669_v44 = vsel %vm638_vm12, 1.0, %v1866_v2  ;;  %v1653_v45 = vsel %vm622_vm13, 1.0, %v1866_v2 }
  0xb9   : > { %v596_v25 = vpop.permute.xlu1 %595  ;;  %v508_v26 = vpop.permute.xlu0 %507 }
  0xba   : > { %vm639_vm0 = vcmp.eq.s32.totalorder %v596_v25, %v1996_v38  ;;  %vm623_vm1 = vcmp.eq.s32.totalorder %v508_v26, %v1996_v38 }
  0xbb   : > { %v1670_v48 = vsel %vm639_vm0, 1.0, %v1866_v2  ;;  %v1654_v49 = vsel %vm623_vm1, 1.0, %v1866_v2 }
  0xbd   : > { %v603_v33 = vpop.permute.xlu1 %602  ;;  %v515_v34 = vpop.permute.xlu0 %514 }
  0xbe   : > { %vm640_vm14 = vcmp.eq.s32.totalorder %v603_v33, %v1996_v38  ;;  %vm624_vm15 = vcmp.eq.s32.totalorder %v515_v34, %v1996_v38 }
  0xbf   : > { %v1671_v46 = vsel %vm640_vm14, 1.0, %v1866_v2  ;;  %v1655_v47 = vsel %vm624_vm15, 1.0, %v1866_v2 }
  0xc1   : > { %v607_v42 = vpop.permute.xlu1 %606  ;;  %v519_v43 = vpop.permute.xlu0 %518 }
  0xc2   : > { %vm641_vm3 = vcmp.eq.s32.totalorder %v607_v42, %v1996_v38  ;;  %vm625_vm4 = vcmp.eq.s32.totalorder %v519_v43, %v1996_v38  ;;  %v1868_v38 = vmov 1966171168  }
  0xc3   : > { %v1672_v50 = vsel %vm641_vm3, 1.0, %v1866_v2  ;;  %v1656_v51 = vsel %vm625_vm4, 1.0, %v1866_v2  ;;  %v1032_v52 = vunpack.c.l.s4 %v1868_v38 }
  0xc5   : > { %v1033_v53 = vunpack.c.0.s8 %v1032_v52 }
  0xc7   : > { %v1036_v54 = vsub.s32 %v1033_v53, %v1926_v4 }
  0xeb   : > { %v423_v63 = vpop.f32.mrb[0].mxu1  ;;  %v2030_v11 = vpop.f32.mrb[0].mxu0 }
  0xec   : > { %v1778_v0 = vpop.f32.mrb[1].mxu1  ;;  %v1766_v15 = vpop.f32.mrb[1].mxu0  ;;  %v1030_v55 = vcombine.high %v2030_v11, %v2030_v11  ;;  %v1037_v56 = vrot.slane %v2030_v11, %v1036_v54 }
  0xed   : > { %v426_v1 = vpop.f32.mrb[2].mxu1  ;;  %v2046_v17 = vpop.f32.mrb[2].mxu0 }
  0xee   : > { %v1832_v3 = vpack.c.bf16 %v426_v1, %v423_v63  ;;  %v1779_v5 = vpop.f32.mrb[3].mxu1  ;;  %v1767_v18 = vpop.f32.mrb[3].mxu0  ;;  %v1079_v2 = vcombine.high %v2046_v17, %v2046_v17  ;;  %v1086_v57 = vrot.slane %v2046_v17, %v1036_v54  ;;  %v1044_v58 = vrot.slane %v1030_v55, %v1036_v54 }
  0xef   : > { %v1045_v59 = vcombine.high %v1037_v56, %v1037_v56  ;;  %v1053_v62 = vrot.slane %v1037_v56, %v1036_v54 }
  0xf0   : > { %1833 = vmatprep.subr.bf16.mxu0 %v1832_v3  ;;  %1836 = vmatprep.subr.bf16.mxu1 %v1832_v3  ;;  %v1093_v60 = vrot.slane %v1079_v2, %v1036_v54  ;;  %v1094_v61 = vcombine.high %v1086_v57, %v1086_v57  ;;  %v1102_v63 = vrot.slane %v1086_v57, %v1036_v54 }
  0xf1   : > { %1835 = vmatpush3.bf16.msra.mxu0 %v1832_v3  ;;  %1837 = vmatpush3.bf16.msra.mxu1 %v1832_v3  ;;  %v1046_v0 = vcombine.high %v1044_v58, %v1044_v58  ;;  %v1067_v3 = vrot.slane %v1045_v59, %v1036_v54  ;;  %v1075_v5 = vcombine.high %v1053_v62, %v1053_v62 }
  0xf2   : > { %v1095_v1 = vcombine.high %v1093_v60, %v1093_v60  ;;  %v1116_v4 = vrot.slane %v1094_v61, %v1036_v54  ;;  %v1124_v6 = vcombine.high %v1102_v63, %v1102_v63  ;;  %v1060_v8 = vrot.slane %v1044_v58, %v1036_v54 }
  0xf3   : > { %v1131_v14 = vrot.slane %v1053_v62, %v1937_v7  ;;  %v1163_v15 = vrot.slane %v1102_v63, %v1937_v7  ;;  %v1135_v16 = vrot.slane %v1067_v3, %v1937_v7  ;;  %v2146_v18 = vrot.slane %v1075_v5, %v1937_v7 }
  0xf4   : > { %1785 = vmatmul.mubr.msk.f32.vlgmr.msra.gmra.mrb[4].mxu0 %vm706_vm2, %v1642_v9  ;;  %1809 = vmatmul.mubr.msk.f32.vlgmr.msra.gmra.mrb[4].mxu1 %vm706_vm2, %v1658_v10  ;;  %v1109_v9 = vrot.slane %v1093_v60, %v1036_v54  ;;  %v1077_v10 = vcombine.high %v1067_v3, %v1067_v3  ;;  %v1126_v11 = vcombine.high %v1116_v4, %v1116_v4 }
  0xf5   : > { %1787 = vmatprep.mubr.msk.f32.mxu0 %vm706_vm2, %v1643_v13  ;;  %1811 = vmatprep.mubr.msk.f32.mxu1 %vm706_vm2, %v1659_v12  ;;  %v1074_v12 = vrot.slane %v1046_v0, %v1036_v54  ;;  %v1123_v13 = vrot.slane %v1095_v1, %v1036_v54  ;;  %v1167_v17 = vrot.slane %v1116_v4, %v1937_v7 }
  0xf6   : > { %v2157_v25 = vrot.slane %v1077_v10, %v1937_v7  ;;  %v2160_v26 = vrot.slane %v1126_v11, %v1937_v7  ;;  %v2163_v33 = vrot.slane %v1060_v8, %v1937_v7  ;;  %v2166_v34 = vrot.slane %v1109_v9, %v1937_v7 }
  0xf8   : > { %1788 = vmatmul.mubr.msk.f32.gmra.mrb[6].mxu0 %vm706_vm2, %v1644_v20  ;;  %1812 = vmatmul.mubr.msk.f32.gmra.mrb[6].mxu1 %vm706_vm2, %v1660_v19  ;;  %v2149_v19 = vrot.slane %v1124_v6, %v1937_v7  ;;  %v1076_v20 = vcombine.high %v1060_v8, %v1060_v8 }
  0xf9   : > { %1790 = vmatprep.mubr.msk.f32.mxu0 %vm706_vm2, %v1645_v22  ;;  %1814 = vmatprep.mubr.msk.f32.mxu1 %vm706_vm2, %v1661_v21  ;;  %v1125_v21 = vcombine.high %v1109_v9, %v1109_v9 }
  0xfa   : > { %v2182_v43 = vrot.slane %v1076_v20, %v1937_v7 }
  0xfc   : > { %1791 = vmatmul.mubr.msk.f32.gmra.mrb[8].mxu0 %vm706_vm2, %v1646_v24  ;;  %1815 = vmatmul.mubr.msk.f32.gmra.mrb[8].mxu1 %vm706_vm2, %v1662_v23  ;;  %v2154_v23 = vld [vmem:[%s2389_s4] ss:$0 sm:$0xff] }
  0xfd   : > { %1793 = vmatprep.mubr.msk.f32.mxu0 %vm706_vm2, %v1647_v28  ;;  %1817 = vmatprep.mubr.msk.f32.mxu1 %vm706_vm2, %v1663_v27  ;;  %v1078_v27 = vcombine.high %v1074_v12, %v1074_v12  ;;  %v1127_v28 = vcombine.high %v1123_v13, %v1123_v13 }
 0x100   : > { %1794 = vmatmul.mubr.msk.f32.gmra.mrb[10].mxu0 %vm706_vm2, %v1648_v30  ;;  %1818 = vmatmul.mubr.msk.f32.gmra.mrb[10].mxu1 %vm706_vm2, %v1664_v29 }
 0x101   : > { %1796 = vmatprep.mubr.msk.f32.mxu0 %vm706_vm2, %v1649_v32  ;;  %1820 = vmatprep.mubr.msk.f32.mxu1 %vm706_vm2, %v1665_v31 }
 0x104   : > { %1797 = vmatmul.mubr.msk.f32.gmra.mrb[12].mxu0 %vm706_vm2, %v1650_v36  ;;  %1821 = vmatmul.mubr.msk.f32.gmra.mrb[12].mxu1 %vm706_vm2, %v1666_v35  ;;  %v2171_v35 = vld [vmem:[%s2390_s5] ss:$0 sm:$0xff] }
 0x105   : > { %1799 = vmatprep.mubr.msk.f32.mxu0 %vm706_vm2, %v1651_v39  ;;  %1823 = vmatprep.mubr.msk.f32.mxu1 %vm706_vm2, %v1667_v37  ;;  %v2174_v39 = vrot.slane %v1074_v12, %v1937_v7 }
 0x108   : > { %1800 = vmatmul.mubr.msk.f32.gmra.mrb[14].mxu0 %vm706_vm2, %v1652_v41  ;;  %1824 = vmatmul.mubr.msk.f32.gmra.mrb[14].mxu1 %vm706_vm2, %v1668_v40  ;;  %v2177_v40 = vrot.slane %v1123_v13, %v1937_v7 }
 0x109   : > { %1802 = vmatprep.mubr.msk.f32.mxu0 %vm706_vm2, %v1653_v45  ;;  %1826 = vmatprep.mubr.msk.f32.mxu1 %vm706_vm2, %v1669_v44  ;;  %v2185_v44 = vrot.slane %v1125_v21, %v1937_v7 }
 0x10c   : > { %1803 = vmatmul.mubr.msk.f32.gmra.mrb[16].mxu0 %vm706_vm2, %v1654_v49  ;;  %1827 = vmatmul.mubr.msk.f32.gmra.mrb[16].mxu1 %vm706_vm2, %v1670_v48  ;;  %v2190_v49 = vrot.slane %v1078_v27, %v1937_v7 }
 0x10d   : > { %1805 = vmatprep.mubr.msk.f32.mxu0 %vm706_vm2, %v1655_v47  ;;  %1829 = vmatprep.mubr.msk.f32.mxu1 %vm706_vm2, %v1671_v46 }
 0x110   : > { %1806 = vmatmul.mubr.msk.f32.gmra.mrb[18].mxu0 %vm706_vm2, %v1656_v51  ;;  %1830 = vmatmul.mubr.msk.f32.gmra.mrb[18].mxu1 %vm706_vm2, %v1672_v50  ;;  %vm1350_vm2 = vcmask 31744   ;;  %v2193_v50 = vrot.slane %v1127_v28, %v1937_v7 }
 0x1c7   : > { %v1786_v22 = vpop.f32.mrb[4].mxu0  ;;  %v1810_v24 = vpop.f32.mrb[4].mxu1 }
 0x1c8   : > { %v1209_v29 = vadd.f32 %v1786_v22, %v1131_v14  ;;  %v1225_v30 = vadd.f32 %v1810_v24, %v1163_v15  ;;  %v869_v31 = vpop.f32.mrb[5].mxu0  ;;  %v949_v32 = vpop.f32.mrb[5].mxu1 }
 0x1c9   : > { %v1208_v36 = vadd.f32 %v1131_v14, %v869_v31  ;;  %v1224_v37 = vadd.f32 %v1163_v15, %v949_v32 }
 0x1ca   : > { %v1248_v41 = vmul.f32 %v2154_v23, %v1209_v29  ;;  %v1264_v42 = vmul.f32 %v2154_v23, %v1225_v30 }
 0x1cb   : > { %v1247_v45 = vmul.f32 %v2154_v23, %v1208_v36  ;;  %v1263_v46 = vmul.f32 %v2154_v23, %v1224_v37  ;;  %v1789_v47 = vpop.f32.mrb[6].mxu0  ;;  %v1813_v48 = vpop.f32.mrb[6].mxu1 }
 0x1cc   : > { %v1287_v51 = vadd.f32 %v2171_v35, %v1248_v41  ;;  %v1303_v38 = vadd.f32 %v2171_v35, %v1264_v42  ;;  %v1211_v52 = vadd.f32 %v1789_v47, %v1135_v16  ;;  %v1227_v53 = vadd.f32 %v1813_v48, %v1167_v17  ;;  %v879_v54 = vpop.f32.mrb[7].mxu0  ;;  %v959_v55 = vpop.f32.mrb[7].mxu1 }
 0x1cd   : > { %v1286_v56 = vadd.f32 %v2171_v35, %v1247_v45  ;;  %v1302_v2 = vadd.f32 %v2171_v35, %v1263_v46  ;;  %v1210_v57 = vadd.f32 %v1135_v16, %v879_v54  ;;  %v1226_v58 = vadd.f32 %v1167_v17, %v959_v55 }
 0x1ce   : > { %v1319_v59 = vmax.f32 %v1287_v51, 0.0  ;;  %v1335_v60 = vmax.f32 %v1303_v38, 0.0  ;;  %v1250_v61 = vmul.f32 %v2154_v23, %v1211_v52  ;;  %v1266_v7 = vmul.f32 %v2154_v23, %v1227_v53 }
 0x1cf   : > { %v1318_v62 = vmax.f32 %v1286_v56, 0.0  ;;  %v1334_v63 = vmax.f32 %v1302_v2, 0.0  ;;  %v1249_v0 = vmul.f32 %v2154_v23, %v1210_v57  ;;  %v1265_v1 = vmul.f32 %v2154_v23, %v1226_v58  ;;  %v1792_v3 = vpop.f32.mrb[8].mxu0  ;;  %v1816_v4 = vpop.f32.mrb[8].mxu1 }
 0x1d0   : > { %v1352_v5 = vsel %vm1350_vm2, %v1319_v59, -inf  ;;  %v1424_v6 = vsel %vm1350_vm2, %v1335_v60, -inf  ;;  %v1289_v8 = vadd.f32 %v2171_v35, %v1250_v61  ;;  %v1305_v9 = vadd.f32 %v2171_v35, %v1266_v7  ;;  %v889_v10 = vpop.f32.mrb[9].mxu0  ;;  %v969_v11 = vpop.f32.mrb[9].mxu1 }
 0x1d1   : > { %v1351_v12 = vsel %vm1350_vm2, %v1318_v62, -inf  ;;  %v1423_v13 = vsel %vm1350_vm2, %v1334_v63, -inf  ;;  %v1288_v14 = vadd.f32 %v2171_v35, %v1249_v0  ;;  %v1304_v15 = vadd.f32 %v2171_v35, %v1265_v1 }
 0x1d2   : > { %v1353_v16 = vmax.f32 %v1351_v12, %v1352_v5  ;;  %v1425_v17 = vmax.f32 %v1423_v13, %v1424_v6  ;;  %v1321_v20 = vmax.f32 %v1289_v8, 0.0  ;;  %v1337_v21 = vmax.f32 %v1305_v9, 0.0 }
 0x1d3   : > { %v1320_v22 = vmax.f32 %v1288_v14, 0.0  ;;  %v1336_v24 = vmax.f32 %v1304_v15, 0.0  ;;  %v1213_v27 = vadd.f32 %v1792_v3, %v2146_v18  ;;  %v1229_v28 = vadd.f32 %v1816_v4, %v2149_v19  ;;  %v1795_v29 = vpop.f32.mrb[10].mxu0  ;;  %v1819_v30 = vpop.f32.mrb[10].mxu1 }
 0x1d4   : > { %v1354_v31 = vrot.slane %v1353_v16, 4  ;;  %v1426_v32 = vrot.slane %v1425_v17, 4  ;;  %v1361_v36 = vsel %vm1350_vm2, %v1321_v20, -inf  ;;  %v1433_v37 = vsel %vm1350_vm2, %v1337_v21, -inf  ;;  %v2215_v41 = vpop.f32.mrb[11].mxu0  ;;  %v2217_v42 = vpop.f32.mrb[11].mxu1 }
 0x1d5   : > { %v1360_v45 = vsel %vm1350_vm2, %v1320_v22, -inf  ;;  %v1432_v46 = vsel %vm1350_vm2, %v1336_v24, -inf  ;;  %v1252_v47 = vmul.f32 %v2154_v23, %v1213_v27  ;;  %v1268_v48 = vmul.f32 %v2154_v23, %v1229_v28 }
 0x1d6   : > { %v1355_v51 = vmax.f32 %v1353_v16, %v1354_v31  ;;  %v1427_v38 = vmax.f32 %v1425_v17, %v1426_v32  ;;  %v1362_v52 = vmax.f32 %v1360_v45, %v1361_v36  ;;  %v1434_v53 = vmax.f32 %v1432_v46, %v1433_v37 }
 0x1d7   : > { %v1291_v54 = vadd.f32 %v2171_v35, %v1252_v47  ;;  %v1307_v55 = vadd.f32 %v2171_v35, %v1268_v48  ;;  %v1212_v56 = vadd.f32 %v2146_v18, %v889_v10  ;;  %v1228_v2 = vadd.f32 %v2149_v19, %v969_v11  ;;  %v2227_v57 = vpop.f32.mrb[12].mxu0  ;;  %v2229_v58 = vpop.f32.mrb[12].mxu1 }
 0x1d8   : > { %v1356_v59 = vrot.slane %v1355_v51, 2  ;;  %v1428_v60 = vrot.slane %v1427_v38, 2  ;;  %v1363_v61 = vrot.slane %v1362_v52, 4  ;;  %v1435_v7 = vrot.slane %v1434_v53, 4  ;;  %v2231_v62 = vpop.f32.mrb[13].mxu0  ;;  %v2233_v63 = vpop.f32.mrb[13].mxu1 }
 0x1d9   : > { %v1323_v0 = vmax.f32 %v1291_v54, 0.0  ;;  %v1339_v1 = vmax.f32 %v1307_v55, 0.0  ;;  %v1251_v3 = vmul.f32 %v2154_v23, %v1212_v56  ;;  %v1267_v18 = vmul.f32 %v2154_v23, %v1228_v2 }
 0x1da   : > { %v1357_v4 = vmax.f32 %v1355_v51, %v1356_v59  ;;  %v1429_v19 = vmax.f32 %v1427_v38, %v1428_v60  ;;  %v1364_v5 = vmax.f32 %v1362_v52, %v1363_v61  ;;  %v1436_v6 = vmax.f32 %v1434_v53, %v1435_v7 }
 0x1db   : > { %v1370_v8 = vsel %vm1350_vm2, %v1323_v0, -inf  ;;  %v1442_v9 = vsel %vm1350_vm2, %v1339_v1, -inf  ;;  %v1290_v10 = vadd.f32 %v2171_v35, %v1251_v3  ;;  %v1306_v11 = vadd.f32 %v2171_v35, %v1267_v18  ;;  %v2241_v12 = vpop.f32.mrb[14].mxu0  ;;  %v2243_v13 = vpop.f32.mrb[14].mxu1 }
 0x1dc   : > { %v1358_v14 = vrot.slane %v1357_v4, 1  ;;  %v1430_v15 = vrot.slane %v1429_v19, 1  ;;  %v1365_v16 = vrot.slane %v1364_v5, 2  ;;  %v1437_v17 = vrot.slane %v1436_v6, 2  ;;  %v2245_v20 = vpop.f32.mrb[15].mxu0  ;;  %v2247_v21 = vpop.f32.mrb[15].mxu1 }
 0x1dd   : > { %v1322_v22 = vmax.f32 %v1290_v10, 0.0  ;;  %v1338_v24 = vmax.f32 %v1306_v11, 0.0  ;;  %v1215_v27 = vadd.f32 %v1795_v29, %v2157_v25  ;;  %v1231_v28 = vadd.f32 %v1819_v30, %v2160_v26 }
 0x1de   : > { %v1359_v31 = vmax.f32 %v1357_v4, %v1358_v14  ;;  %v1431_v32 = vmax.f32 %v1429_v19, %v1430_v15  ;;  %v1366_v36 = vmax.f32 %v1364_v5, %v1365_v16  ;;  %v1438_v37 = vmax.f32 %v1436_v6, %v1437_v17 }
 0x1df   : > { %v1369_v45 = vsel %vm1350_vm2, %v1322_v22, -inf  ;;  %v1441_v46 = vsel %vm1350_vm2, %v1338_v24, -inf  ;;  %v1254_v47 = vmul.f32 %v2154_v23, %v1215_v27  ;;  %v1270_v48 = vmul.f32 %v2154_v23, %v1231_v28  ;;  %v2255_v51 = vpop.f32.mrb[16].mxu0  ;;  %v2257_v38 = vpop.f32.mrb[16].mxu1 }
 0x1e0   : > { %v1495_v52 = vmax.f32 %v1359_v31, 0.0  ;;  %v1503_v29 = vmax.f32 %v1431_v32, 0.0  ;;  %v1367_v53 = vrot.slane %v1366_v36, 1  ;;  %v1439_v30 = vrot.slane %v1438_v37, 1  ;;  %v2259_v54 = vpop.f32.mrb[17].mxu0  ;;  %v2261_v55 = vpop.f32.mrb[17].mxu1 }
 0x1e1   : > { %v1371_v56 = vmax.f32 %v1369_v45, %v1370_v8  ;;  %v1443_v2 = vmax.f32 %v1441_v46, %v1442_v9  ;;  %v1293_v59 = vadd.f32 %v2171_v35, %v1254_v47  ;;  %v1309_v60 = vadd.f32 %v2171_v35, %v1270_v48 }
 0x1e2   : > { %v1368_v61 = vmax.f32 %v1366_v36, %v1367_v53  ;;  %v1440_v7 = vmax.f32 %v1438_v37, %v1439_v30  ;;  %v1214_v0 = vadd.f32 %v2157_v25, %v2215_v41  ;;  %v1230_v1 = vadd.f32 %v2160_v26, %v2217_v42 }
 0x1e3   : > { %v1372_v3 = vrot.slane %v1371_v56, 4  ;;  %v1444_v18 = vrot.slane %v1443_v2, 4  ;;  %v1325_v4 = vmax.f32 %v1293_v59, 0.0  ;;  %v1341_v19 = vmax.f32 %v1309_v60, 0.0  ;;  %v2269_v5 = vpop.f32.mrb[18].mxu0  ;;  %v2271_v6 = vpop.f32.mrb[18].mxu1 }
 0x1e4   : > { %v1496_v8 = vmax.f32 %v1368_v61, 0.0  ;;  %v1504_v9 = vmax.f32 %v1440_v7, 0.0  ;;  %v1253_v10 = vmul.f32 %v2154_v23, %v1214_v0  ;;  %v1269_v11 = vmul.f32 %v2154_v23, %v1230_v1  ;;  %v2275_v14 = vpop.f32.mrb[19].mxu0  ;;  %v2277_v25 = vpop.f32.mrb[19].mxu1 }
 0x1e5   : > { %v1373_v41 = vmax.f32 %v1371_v56, %v1372_v3  ;;  %v1445_v26 = vmax.f32 %v1443_v2, %v1444_v18  ;;  %v1379_v42 = vsel %vm1350_vm2, %v1325_v4, -inf  ;;  %v1451_v15 = vsel %vm1350_vm2, %v1341_v19, -inf }
 0x1e6   : > { %v1528_v16 = vsel %vm1527_vm5, %v1496_v8, %v1495_v52  ;;  %v1541_v17 = vsel %vm1527_vm5, %v1504_v9, %v1503_v29  ;;  %v1292_v22 = vadd.f32 %v2171_v35, %v1253_v10  ;;  %v1308_v24 = vadd.f32 %v2171_v35, %v1269_v11 }
 0x1e7   : > { %v1374_v27 = vrot.slane %v1373_v41, 2  ;;  %v1446_v28 = vrot.slane %v1445_v26, 2  ;;  %v1217_v31 = vadd.f32 %v2227_v57, %v2163_v33  ;;  %v1233_v32 = vadd.f32 %v2229_v58, %v2166_v34 }
 0x1e8   : > { %v1324_v36 = vmax.f32 %v1292_v22, 0.0  ;;  %v1340_v37 = vmax.f32 %v1308_v24, 0.0  ;;  %v1216_v45 = vadd.f32 %v2163_v33, %v2231_v62  ;;  %v1232_v46 = vadd.f32 %v2166_v34, %v2233_v63 }
 0x1e9   : > { %v1375_v47 = vmax.f32 %v1373_v41, %v1374_v27  ;;  %v1447_v48 = vmax.f32 %v1445_v26, %v1446_v28  ;;  %v1256_v52 = vmul.f32 %v2154_v23, %v1217_v31  ;;  %v1272_v29 = vmul.f32 %v2154_v23, %v1233_v32 }
 0x1ea   : > { %v1378_v53 = vsel %vm1350_vm2, %v1324_v36, -inf  ;;  %v1450_v57 = vsel %vm1350_vm2, %v1340_v37, -inf  ;;  %v1255_v58 = vmul.f32 %v2154_v23, %v1216_v45  ;;  %v1271_v30 = vmul.f32 %v2154_v23, %v1232_v46 }
 0x1eb   : > { %v1376_v56 = vrot.slane %v1375_v47, 1  ;;  %v1448_v2 = vrot.slane %v1447_v48, 1  ;;  %v1380_v33 = vmax.f32 %v1378_v53, %v1379_v42  ;;  %v1452_v62 = vmax.f32 %v1450_v57, %v1451_v15 }
 0x1ec   : > { %v1295_v34 = vadd.f32 %v2171_v35, %v1256_v52  ;;  %v1311_v63 = vadd.f32 %v2171_v35, %v1272_v29  ;;  %v1294_v59 = vadd.f32 %v2171_v35, %v1255_v58  ;;  %v1310_v60 = vadd.f32 %v2171_v35, %v1271_v30 }
 0x1ed   : > { %v1377_v61 = vmax.f32 %v1375_v47, %v1376_v56  ;;  %v1449_v7 = vmax.f32 %v1447_v48, %v1448_v2  ;;  %v1381_v0 = vrot.slane %v1380_v33, 4  ;;  %v1453_v1 = vrot.slane %v1452_v62, 4 }
 0x1ee   : > { %v1327_v3 = vmax.f32 %v1295_v34, 0.0  ;;  %v1343_v18 = vmax.f32 %v1311_v63, 0.0  ;;  %v1326_v4 = vmax.f32 %v1294_v59, 0.0  ;;  %v1342_v19 = vmax.f32 %v1310_v60, 0.0 }
 0x1ef   : > { %v1497_v8 = vmax.f32 %v1377_v61, 0.0  ;;  %v1505_v9 = vmax.f32 %v1449_v7, 0.0  ;;  %v1382_v10 = vmax.f32 %v1380_v33, %v1381_v0  ;;  %v1454_v11 = vmax.f32 %v1452_v62, %v1453_v1 }
 0x1f0   : > { %v1388_v41 = vsel %vm1350_vm2, %v1327_v3, -inf  ;;  %v1460_v26 = vsel %vm1350_vm2, %v1343_v18, -inf  ;;  %v1387_v42 = vsel %vm1350_vm2, %v1326_v4, -inf  ;;  %v1459_v15 = vsel %vm1350_vm2, %v1342_v19, -inf }
 0x1f1   : > { %v1530_v22 = vsel %vm1529_vm6, %v1497_v8, %v1528_v16  ;;  %v1542_v24 = vsel %vm1529_vm6, %v1505_v9, %v1541_v17  ;;  %v1383_v27 = vrot.slane %v1382_v10, 2  ;;  %v1455_v28 = vrot.slane %v1454_v11, 2 }
 0x1f2   : > { %v1389_v31 = vmax.f32 %v1387_v42, %v1388_v41  ;;  %v1461_v32 = vmax.f32 %v1459_v15, %v1460_v26  ;;  %v1219_v36 = vadd.f32 %v2241_v12, %v2174_v39  ;;  %v1235_v37 = vadd.f32 %v2243_v13, %v2177_v40 }
 0x1f3   : > { %v1384_v45 = vmax.f32 %v1382_v10, %v1383_v27  ;;  %v1456_v46 = vmax.f32 %v1454_v11, %v1455_v28  ;;  %v1218_v47 = vadd.f32 %v2174_v39, %v2245_v20  ;;  %v1234_v16 = vadd.f32 %v2177_v40, %v2247_v21 }
 0x1f4   : > { %v1390_v48 = vrot.slane %v1389_v31, 4  ;;  %v1462_v17 = vrot.slane %v1461_v32, 4  ;;  %v1258_v52 = vmul.f32 %v2154_v23, %v1219_v36  ;;  %v1274_v29 = vmul.f32 %v2154_v23, %v1235_v37 }
 0x1f5   : > { %v1385_v53 = vrot.slane %v1384_v45, 1  ;;  %v1457_v57 = vrot.slane %v1456_v46, 1  ;;  %v1257_v12 = vmul.f32 %v2154_v23, %v1218_v47  ;;  %v1273_v13 = vmul.f32 %v2154_v23, %v1234_v16 }
 0x1f6   : > { %v1391_v58 = vmax.f32 %v1389_v31, %v1390_v48  ;;  %v1463_v30 = vmax.f32 %v1461_v32, %v1462_v17  ;;  %v1297_v56 = vadd.f32 %v2171_v35, %v1258_v52  ;;  %v1313_v39 = vadd.f32 %v2171_v35, %v1274_v29 }
 0x1f7   : > { %v1386_v20 = vmax.f32 %v1384_v45, %v1385_v53  ;;  %v1458_v40 = vmax.f32 %v1456_v46, %v1457_v57  ;;  %v1296_v21 = vadd.f32 %v2171_v35, %v1257_v12  ;;  %v1312_v2 = vadd.f32 %v2171_v35, %v1273_v13 }
 0x1f8   : > { %v1392_v33 = vrot.slane %v1391_v58, 2  ;;  %v1464_v62 = vrot.slane %v1463_v30, 2  ;;  %v1329_v34 = vmax.f32 %v1297_v56, 0.0  ;;  %v1345_v63 = vmax.f32 %v1313_v39, 0.0 }
 0x1f9   : > { %v1498_v59 = vmax.f32 %v1386_v20, 0.0  ;;  %v1506_v60 = vmax.f32 %v1458_v40, 0.0  ;;  %v1328_v61 = vmax.f32 %v1296_v21, 0.0  ;;  %v1344_v7 = vmax.f32 %v1312_v2, 0.0 }
 0x1fa   : > { %v1393_v0 = vmax.f32 %v1391_v58, %v1392_v33  ;;  %v1465_v1 = vmax.f32 %v1463_v30, %v1464_v62  ;;  %v1397_v3 = vsel %vm1350_vm2, %v1329_v34, -inf  ;;  %v1469_v18 = vsel %vm1350_vm2, %v1345_v63, -inf }
 0x1fb   : > { %v1532_v4 = vsel %vm1531_vm7, %v1498_v59, %v1530_v22  ;;  %v1543_v19 = vsel %vm1531_vm7, %v1506_v60, %v1542_v24  ;;  %v1396_v8 = vsel %vm1350_vm2, %v1328_v61, -inf  ;;  %v1468_v9 = vsel %vm1350_vm2, %v1344_v7, -inf }
 0x1fc   : > { %v1394_v10 = vrot.slane %v1393_v0, 1  ;;  %v1466_v11 = vrot.slane %v1465_v1, 1  ;;  %v1398_v41 = vmax.f32 %v1396_v8, %v1397_v3  ;;  %v1470_v26 = vmax.f32 %v1468_v9, %v1469_v18 }
 0x1fd   : > { %v1221_v42 = vadd.f32 %v2255_v51, %v2182_v43  ;;  %v1237_v15 = vadd.f32 %v2257_v38, %v2185_v44  ;;  %v1220_v27 = vadd.f32 %v2182_v43, %v2259_v54  ;;  %v1236_v22 = vadd.f32 %v2185_v44, %v2261_v55 }
 0x1fe   : > { %v1395_v24 = vmax.f32 %v1393_v0, %v1394_v10  ;;  %v1467_v28 = vmax.f32 %v1465_v1, %v1466_v11  ;;  %v1399_v31 = vrot.slane %v1398_v41, 4  ;;  %v1471_v32 = vrot.slane %v1470_v26, 4 }
 0x1ff   : > { %v1260_v36 = vmul.f32 %v2154_v23, %v1221_v42  ;;  %v1276_v37 = vmul.f32 %v2154_v23, %v1237_v15  ;;  %v1259_v45 = vmul.f32 %v2154_v23, %v1220_v27  ;;  %v1275_v51 = vmul.f32 %v2154_v23, %v1236_v22 }
 0x200   : > { %v1499_v46 = vmax.f32 %v1395_v24, 0.0  ;;  %v1507_v38 = vmax.f32 %v1467_v28, 0.0  ;;  %v1400_v47 = vmax.f32 %v1398_v41, %v1399_v31  ;;  %v1472_v16 = vmax.f32 %v1470_v26, %v1471_v32 }
 0x201   : > { %v1299_v43 = vadd.f32 %v2171_v35, %v1260_v36  ;;  %v1315_v44 = vadd.f32 %v2171_v35, %v1276_v37  ;;  %v1298_v54 = vadd.f32 %v2171_v35, %v1259_v45  ;;  %v1314_v55 = vadd.f32 %v2171_v35, %v1275_v51 }
 0x202   : > { %v1534_v48 = vsel %vm1533_vm8, %v1499_v46, %v1532_v4  ;;  %v1544_v17 = vsel %vm1533_vm8, %v1507_v38, %v1543_v19  ;;  %v1401_v52 = vrot.slane %v1400_v47, 2  ;;  %v1473_v29 = vrot.slane %v1472_v16, 2 }
 0x203   : > { %v1331_v53 = vmax.f32 %v1299_v43, 0.0  ;;  %v1347_v57 = vmax.f32 %v1315_v44, 0.0  ;;  %v1330_v12 = vmax.f32 %v1298_v54, 0.0  ;;  %v1346_v13 = vmax.f32 %v1314_v55, 0.0 }
 0x204   : > { %v1402_v58 = vmax.f32 %v1400_v47, %v1401_v52  ;;  %v1474_v30 = vmax.f32 %v1472_v16, %v1473_v29  ;;  %v1223_v56 = vadd.f32 %v2269_v5, %v2190_v49  ;;  %v1239_v39 = vadd.f32 %v2271_v6, %v2193_v50 }
 0x205   : > { %v1406_v20 = vsel %vm1350_vm2, %v1331_v53, -inf  ;;  %v1478_v40 = vsel %vm1350_vm2, %v1347_v57, -inf  ;;  %v1405_v21 = vsel %vm1350_vm2, %v1330_v12, -inf  ;;  %v1477_v2 = vsel %vm1350_vm2, %v1346_v13, -inf }
 0x206   : > { %v1403_v33 = vrot.slane %v1402_v58, 1  ;;  %v1475_v62 = vrot.slane %v1474_v30, 1  ;;  %v1407_v34 = vmax.f32 %v1405_v21, %v1406_v20  ;;  %v1479_v63 = vmax.f32 %v1477_v2, %v1478_v40 }
 0x207   : > { %v1262_v59 = vmul.f32 %v2154_v23, %v1223_v56  ;;  %v1278_v60 = vmul.f32 %v2154_v23, %v1239_v39  ;;  %v1222_v5 = vadd.f32 %v2190_v49, %v2275_v14  ;;  %v1238_v6 = vadd.f32 %v2193_v50, %v2277_v25 }
 0x208   : > { %v1404_v61 = vmax.f32 %v1402_v58, %v1403_v33  ;;  %v1476_v7 = vmax.f32 %v1474_v30, %v1475_v62  ;;  %v1408_v0 = vrot.slane %v1407_v34, 4  ;;  %v1480_v1 = vrot.slane %v1479_v63, 4 }
 0x209   : > { %v1301_v3 = vadd.f32 %v2171_v35, %v1262_v59  ;;  %v1317_v18 = vadd.f32 %v2171_v35, %v1278_v60  ;;  %v1261_v4 = vmul.f32 %v2154_v23, %v1222_v5  ;;  %v1277_v19 = vmul.f32 %v2154_v23, %v1238_v6 }
 0x20a   : > { %v1500_v8 = vmax.f32 %v1404_v61, 0.0  ;;  %v1508_v9 = vmax.f32 %v1476_v7, 0.0  ;;  %v1409_v10 = vmax.f32 %v1407_v34, %v1408_v0  ;;  %v1481_v11 = vmax.f32 %v1479_v63, %v1480_v1 }
 0x20b   : > { %v1333_v49 = vmax.f32 %v1301_v3, 0.0  ;;  %v1349_v14 = vmax.f32 %v1317_v18, 0.0  ;;  %v1300_v50 = vadd.f32 %v2171_v35, %v1261_v4  ;;  %v1316_v25 = vadd.f32 %v2171_v35, %v1277_v19 }
 0x20c   : > { %v1536_v41 = vsel %vm1535_vm9, %v1500_v8, %v1534_v48  ;;  %v1545_v26 = vsel %vm1535_vm9, %v1508_v9, %v1544_v17  ;;  %v1410_v42 = vrot.slane %v1409_v10, 2  ;;  %v1482_v15 = vrot.slane %v1481_v11, 2 }
 0x20d   : > { %v1415_v27 = vsel %vm1350_vm2, %v1333_v49, -inf  ;;  %v1487_v23 = vsel %vm1350_vm2, %v1349_v14, -inf  ;;  %v1332_v22 = vmax.f32 %v1300_v50, 0.0  ;;  %v1348_v24 = vmax.f32 %v1316_v25, 0.0 }
 0x20e   : > { %v1411_v28 = vmax.f32 %v1409_v10, %v1410_v42  ;;  %v1483_v31 = vmax.f32 %v1481_v11, %v1482_v15 }
 0x20f   : > { %v1414_v32 = vsel %vm1350_vm2, %v1332_v22, -inf  ;;  %v1486_v36 = vsel %vm1350_vm2, %v1348_v24, -inf }
 0x210   : > { %v1412_v37 = vrot.slane %v1411_v28, 1  ;;  %v1484_v35 = vrot.slane %v1483_v31, 1  ;;  %v1416_v45 = vmax.f32 %v1414_v32, %v1415_v27  ;;  %v1488_v51 = vmax.f32 %v1486_v36, %v1487_v23 }
 0x212   : > { %v1413_v46 = vmax.f32 %v1411_v28, %v1412_v37  ;;  %v1485_v38 = vmax.f32 %v1483_v31, %v1484_v35  ;;  %v1417_v47 = vrot.slane %v1416_v45, 4  ;;  %v1489_v16 = vrot.slane %v1488_v51, 4 }
 0x214   : > { %v1501_v43 = vmax.f32 %v1413_v46, 0.0  ;;  %v1509_v44 = vmax.f32 %v1485_v38, 0.0  ;;  %v1418_v54 = vmax.f32 %v1416_v45, %v1417_v47  ;;  %v1490_v55 = vmax.f32 %v1488_v51, %v1489_v16 }
 0x216   : > { %v1538_v48 = vsel %vm1537_vm10, %v1501_v43, %v1536_v41  ;;  %v1546_v17 = vsel %vm1537_vm10, %v1509_v44, %v1545_v26  ;;  %v1419_v52 = vrot.slane %v1418_v54, 2  ;;  %v1491_v29 = vrot.slane %v1490_v55, 2 }
 0x218   : > { %v1420_v53 = vmax.f32 %v1418_v54, %v1419_v52  ;;  %v1492_v57 = vmax.f32 %v1490_v55, %v1491_v29 }
 0x21a   : > { %v1421_v12 = vrot.slane %v1420_v53, 1  ;;  %v1493_v13 = vrot.slane %v1492_v57, 1 }
 0x21c   : > { %v1422_v58 = vmax.f32 %v1420_v53, %v1421_v12  ;;  %v1494_v30 = vmax.f32 %v1492_v57, %v1493_v13 }
 0x21e   : > { %v1502_v56 = vmax.f32 %v1422_v58, 0.0  ;;  %v1510_v39 = vmax.f32 %v1494_v30, 0.0 }
 0x220   : > { %v1540_v20 = vsel %vm1539_vm11, %v1502_v56, %v1538_v48  ;;  %v1547_v40 = vsel %vm1539_vm11, %v1510_v39, %v1546_v17 }
 0x221   : > { %1550 = vst.msk [vmem:[%s271_s7] sm:$0xff] %vm1350_vm2, %v1540_v20  ;;  %1551 = vst.msk [vmem:[%s271_s7 + $0x8] sm:$0xff] %vm1350_vm2, %v1547_v40 }
 0x222 PF: > { %s16_s21 = sadd.s32 1, %s1864_s21  }
 0x223   : > { %p13_p4 = scmp.ge.s32.totalorder %s16_s21, 4  }
 0x225   :  { %15 = sbr.rel (!%p13_p4) target bundleno = 1 (0x1), region = 77 }

// kernel: dyn_diff_pool_forward.41
= control target key start
LH: loop header
LB: loop body
LE: loop exit
PB: predicated region body
PF: predicated region fallthrough
CT: control target
= control target key end

     0   :  { %vm10_vm0 = vcmask 523264   ;;  %v219_v0 = vmov 0.0   ;;  %vm159_vm1 = vcmask 519168   ;;  %vm220_vm2 = vmmov 0   ;;  %s247_s0 = inlined_call_operand.vmem [shape: f32[2,4,64], index: 0, kind: input, shape index: {}]   ;;  %s248_s1 = inlined_call_operand.vmem [shape: f32[2,4,4], index: 1, kind: output, shape index: {}]  }
   0x1   :  { %207 = vmatprep.subr.mxu0 %v219_v0  ;;  %212 = vmatprep.subr.mxu1 %v219_v0  ;;  %v8_v1 = vld [vmem:[%s247_s0] sm:$0xf]  ;;  %v9_v2 = vld [vmem:[%s247_s0 + $0x4] sm:$0xf]  ;;  %v172_v7 = vlaneseq  ;;  %vm192_vm3 = vcmask 27648  }
   0x2   :  { %208 = vmatpush3.xpose.msk.msra.mxu0 %vm10_vm0, %v8_v1  ;;  %213 = vmatpush3.xpose.msk.msra.mxu1 %vm10_vm0, %v9_v2  ;;  %v157_v3 = vmul.f32 %v8_v1, %v8_v1  ;;  %v158_v4 = vmul.f32 %v9_v2, %v9_v2 }
   0x3   :  { %209 = vmatprep.mubr.msk.f32.mxu0 %vm220_vm2, %v219_v0  ;;  %214 = vmatprep.mubr.msk.f32.mxu1 %vm220_vm2, %v219_v0  ;;  %v173_v9 = vand.u32 127, %v172_v7  ;;  %v175_v10 = vshrl.u32 %v172_v7, 7 }
   0x4   :  { %v160_v5 = vsel %vm159_vm1, %v157_v3, 0.0  ;;  %v163_v6 = vsel %vm159_vm1, %v158_v4, 0.0 }
   0x5   :  { %210 = vmatmul.mubr.msk.f32.vlgmr.msra.gmra.mrb[0].mxu0 %vm10_vm0, %v8_v1  ;;  %215 = vmatmul.mubr.msk.f32.vlgmr.msra.gmra.mrb[0].mxu1 %vm10_vm0, %v9_v2  ;;  %v176_v12 = vsub.s32 %v173_v9, %v175_v10 }
   0x6   :  { %161 = vadd.xlane.f32.xlu0 %v160_v5 }
   0xa   :  { %164 = vadd.xlane.f32.xlu0 %v163_v6 }
  0x93   :  { %v162_v8 = vpop.xlane.xlu0 %161 }
  0x94   :  { %v177_v20 = vrot.slane %v162_v8, %v176_v12 }
  0x97   :  { %v165_v11 = vpop.xlane.xlu0 %164 }
  0x98   :  { %v181_v19 = vrot.slane %v165_v11, %v176_v12 }
  0xd8   :  { %v80_v13 = vpop.f32.mrb[0].mxu0  ;;  %v153_v14 = vpop.f32.mrb[0].mxu1 }
  0xd9   :  { %v166_v15 = vmul.f32 2.0, %v80_v13  ;;  %v167_v16 = vmul.f32 2.0, %v153_v14  ;;  %v211_v17 = vpop.f32.mrb[1].mxu0  ;;  %v216_v18 = vpop.f32.mrb[1].mxu1 }
  0xdb   :  { %v168_v21 = vsub.f32 %v166_v15, %v162_v8  ;;  %v169_v22 = vsub.f32 %v167_v16, %v165_v11 }
  0xdd   :  { %v190_v23 = vsub.f32 %v168_v21, %v177_v20  ;;  %v191_v24 = vsub.f32 %v169_v22, %v181_v19 }
  0xdf   :  { %193 = vst.msk [vmem:[%s248_s1] sm:$0xf] %vm192_vm3, %v190_v23  ;;  %194 = vst.msk [vmem:[%s248_s1 + $0x4] sm:$0xf] %vm192_vm3, %v191_v24 }

// kernel: dyn_diff_pool_forward.42
= control target key start
LH: loop header
LB: loop body
LE: loop exit
PB: predicated region body
PF: predicated region fallthrough
CT: control target
= control target key end

     0   :  { %s874_s21 = smov 0   ;;  %s967_s0 = inlined_call_operand.vmem [shape: bf16[2,4,64], index: 0, kind: input, shape index: {}]   ;;  %s968_s1 = inlined_call_operand.vmem [shape: s32[2,4,4], index: 1, kind: input, shape index: {}]   ;;  %s969_s2 = inlined_call_operand.vmem [shape: bf16[64,64], index: 2, kind: input, shape index: {}]   ;;  %s970_s3 = inlined_call_operand.vmem [shape: bf16[64,64], index: 3, kind: input, shape index: {}]   ;;  %s971_s4 = inlined_call_operand.vmem [shape: f32[1,64], index: 4, kind: input, shape index: {}]   ;;  %s972_s5 = inlined_call_operand.vmem [shape: f32[1,64], index: 5, kind: input, shape index: {}]   ;;  %s973_s6 = inlined_call_operand.vmem [shape: f32[2,4,64], index: 6, kind: output, shape index: {}]  }
   0x1 LB: > { %s738_s22 = sadd.s32 4294967295, %s834_s21   ;;  %p742_p0 = scmp.ge.s32.totalorder %s834_s21, 1  ;;  %s834_s21 = sphi %s874_s21, %s16_s21  }
   0x2   : > { %p220_p1 = scmp.lt.s32.totalorder %s834_s21, 3 }
   0x4   : > { %p221_p2 = pnand %p742_p0, %p220_p1 }
   0x5   : > { %v820_v0 = vld [vmem:[%s970_s3] sm:$0xff] (!%p221_p2)   ;;  %v415_v1 = vlaneseq (!%p221_p2)  ;;  %v836_v2 = vmov (!%p221_p2), 0.0   ;;  %v821_v3 = vld [vmem:[%s970_s3 + $0x8] sm:$0xff] (!%p221_p2)   ;;  %vm837_vm0 = vmmov (!%p221_p2), 0   ;;  %p252_p3 = scmp.lt.s32.totalorder (!%p221_p2), %s738_s22, 1  ;;  %v822_v6 = vld [vmem:[%s970_s3 + $0x10] sm:$0xff] (!%p221_p2)  }
   0x6   : > { %224 = sbr.rel (%p221_p2) target bundleno = 480 (0x1e0), region = 44  ;;  %792 = vmatprep.subr.bf16.mxu1 (!%p221_p2), %v836_v2  ;;  %780 = vmatprep.subr.bf16.mxu0 (!%p221_p2), %v836_v2  ;;  %v824_v5 = vld [vmem:[%s969_s2] sm:$0xff] (!%p221_p2)   ;;  %v825_v12 = vld [vmem:[%s969_s2 + $0x8] sm:$0xff] (!%p221_p2)   ;;  %v823_v15 = vld [vmem:[%s970_s3 + $0x18] sm:$0xff] (!%p221_p2)   ;;  %vm298_vm1 = vcmask (!%p221_p2), 523264   ;;  %vm463_vm4 = vcmask (!%p221_p2), 31744  }
   0x7   : > { %793 = vmatpush3.bf16.msra.mxu1 (!%p221_p2), %v820_v0  ;;  %800 = vmatprep.mubr.msk.bf16.mxu1 (!%p221_p2), %vm837_vm0, %v836_v2  ;;  %v895_v4 = vshrl.u32 (!%p221_p2), %v415_v1, 7  ;;  %v826_v18 = vld [vmem:[%s969_s2 + $0x10] sm:$0xff] (!%p221_p2)   ;;  %v827_v20 = vld [vmem:[%s969_s2 + $0x18] sm:$0xff] (!%p221_p2)   ;;  %v444_v21 = vand.u32 (!%p221_p2), 127, %v415_v1  ;;  %vm468_vm7 = vcmask (!%p221_p2), 1043456   ;;  %vm628_vm8 = vcmask (!%p221_p2), 519168  }
   0x8   : > { %794 = vmatprep.subr.bf16.mxu1 (!%p221_p2), %v836_v2  ;;  %788 = vmatprep.mubr.msk.bf16.mxu0 (!%p221_p2), %vm837_vm0, %v836_v2  ;;  %v838_v40 = vmov (!%p221_p2), 1966171168   ;;  %v763_v53 = vld [vmem:[%s971_s4] ss:$0 sm:$0xff] (!%p221_p2)  ;;  %vm665_vm9 = vcmask (!%p221_p2), 1041409   ;;  %vm667_vm10 = vcmask (!%p221_p2), 1042434  }
   0x9   : > { %v905_v7 = vsub.s32 (!%p221_p2), 0, %v895_v4  ;;  %v431_v8 = vsub.s32 (!%p221_p2), 2, %v895_v4  ;;  %v424_v9 = vsub.s32 (!%p221_p2), 1, %v895_v4  ;;  %781 = vmatpush3.bf16.msra.mxu0 (!%p221_p2), %v824_v5  ;;  %v438_v11 = vsub.s32 (!%p221_p2), 3, %v895_v4  ;;  %v764_v58 = vld [vmem:[%s972_s5] ss:$0 sm:$0xff] (!%p221_p2) }
   0xa   : > { %782 = vmatprep.subr.bf16.mxu0 (!%p221_p2), %v836_v2  ;;  %v555_v41 = vunpack.c.l.s4 (!%p221_p2), %v838_v40  ;;  %vm669_vm11 = vcmask (!%p221_p2), 1043459  }
   0xb   : > { %795 = vmatpush3.bf16.msra.mxu1 (!%p221_p2), %v821_v3 }
   0xc   : > { %796 = vmatprep.subr.bf16.mxu1 (!%p221_p2), %v836_v2  ;;  %v556_v42 = vunpack.c.0.s8 (!%p221_p2), %v555_v41 }
   0xd   : > { %s975_s22 = smov (!%p252_p3, %s738_s22), 1  ;;  %783 = vmatpush3.bf16.msra.mxu0 %v825_v12 }
   0xe   : > { %s744_s7 = sshll.u32 %s975_s22, 2  ;;  %s743_s11 = sshll.u32 %s975_s22, 1  ;;  %784 = vmatprep.subr.bf16.mxu0 %v836_v2  ;;  %v559_v43 = vsub.s32 %v556_v42, %v895_v4 }
   0xf   : > { %s259_s10 = scalar_lea.vmem %s968_s1, %s744_s7  ;;  %797 = vmatpush3.bf16.msra.mxu1 %v822_v6  ;;  %s255_s18 = scalar_lea.vmem %s967_s0, %s743_s11 }
  0x10   : > { %v414_v10 = vld [vmem:[%s259_s10] sm:$0xf]  ;;  %798 = vmatprep.subr.bf16.mxu1 %v836_v2  ;;  %s263_s8 = scalar_lea.vmem %s973_s6, %s744_s7 }
  0x11   : > { %v418_v13 = vrot.slane %v414_v10, %v905_v7  ;;  %v432_v14 = vrot.slane %v414_v10, %v431_v8  ;;  %v425_v16 = vrot.slane %v414_v10, %v424_v9  ;;  %v439_v17 = vrot.slane %v414_v10, %v438_v11  ;;  %v265_v19 = vld [vmem:[%s255_s18] sm:$0x3]  ;;  %785 = vmatpush3.bf16.msra.mxu0 %v826_v18 }
  0x12   : > { %786 = vmatprep.subr.bf16.mxu0 %v836_v2 }
  0x13   : > { %420 = vbcast.lane.b32.xlu0 %v418_v13, 256  ;;  %434 = vbcast.lane.b32.xlu1 %v432_v14, 256 }
  0x14   : > { %799 = vmatpush3.bf16.msra.mxu1 %v823_v15 }
  0x15   : > { %787 = vmatpush3.bf16.msra.mxu0 %v827_v20 }
  0x17   : > { %427 = vbcast.lane.b32.xlu0 %v425_v16, 256  ;;  %441 = vbcast.lane.b32.xlu1 %v439_v17, 256 }
  0x18   : > { %801 = vmatmul.mubr.msk.bf16.vlgmr.msra.gmra.mrb[0].mxu1 %vm298_vm1, %v265_v19  ;;  %789 = vmatmul.mubr.msk.bf16.vlgmr.msra.gmra.mrb[0].mxu0 %vm298_vm1, %v265_v19 }
  0x85   : > { %v421_v22 = vpop.permute.xlu0 %420  ;;  %v435_v27 = vpop.permute.xlu1 %434 }
  0x86   : > { %vm445_vm2 = vcmp.eq.s32.totalorder %v421_v22, %v444_v21  ;;  %vm447_vm5 = vcmp.eq.s32.totalorder %v435_v27, %v444_v21 }
  0x87   : > { %v756_v23 = vsel %vm445_vm2, 1.0, %v836_v2  ;;  %v758_v29 = vsel %vm447_vm5, 1.0, %v836_v2 }
  0x89   : > { %v428_v24 = vpop.permute.xlu0 %427  ;;  %v442_v28 = vpop.permute.xlu1 %441 }
  0x8a   : > { %vm446_vm3 = vcmp.eq.s32.totalorder %v428_v24, %v444_v21  ;;  %vm448_vm6 = vcmp.eq.s32.totalorder %v442_v28, %v444_v21 }
  0x8b   : > { %v757_v25 = vsel %vm446_vm3, 1.0, %v836_v2  ;;  %v759_v30 = vsel %vm448_vm6, 1.0, %v836_v2 }
  0x8c   : > { %v461_v26 = vcombine.low %v756_v23, %v757_v25  ;;  %v462_v32 = vcombine.low %v758_v29, %v759_v30 }
  0x8e   : > { %806 = vmatprep.mubr.msk.f32.mxu0 %vm463_vm4, %v461_v26 }
  0xeb   : > { %v408_v31 = vpop.f32.mrb[0].mxu1  ;;  %v336_v36 = vpop.f32.mrb[0].mxu0 }
  0xec   : > { %v802_v33 = vpop.f32.mrb[1].mxu1  ;;  %804 = vmatprep.subr.msk.mxu0 %vm468_vm7, %v408_v31  ;;  %v790_v37 = vpop.f32.mrb[1].mxu0  ;;  %v560_v44 = vrot.slane %v336_v36, %v559_v43 }
  0xed   : > { %v411_v34 = vpop.f32.mrb[2].mxu1  ;;  %805 = vmatpush3.msk.msra.mxu0 %vm468_vm7, %v408_v31  ;;  %v339_v38 = vpop.f32.mrb[2].mxu0 }
  0xee   : > { %v803_v35 = vpop.f32.mrb[3].mxu1  ;;  %807 = vmatmul.mubr.msk.f32.vlgmr.msra.gmra.mrb[4].mxu0 %vm463_vm4, %v462_v32  ;;  %v791_v39 = vpop.f32.mrb[3].mxu0  ;;  %v561_v45 = vcombine.high %v560_v44, %v560_v44  ;;  %v568_v46 = vrot.slane %v560_v44, %v559_v43 }
  0xf0   : > { %v575_v47 = vrot.slane %v561_v45, %v559_v43  ;;  %v576_v48 = vcombine.high %v568_v46, %v568_v46  ;;  %v581_v54 = vrot.slane %v568_v46, %v905_v7 }
  0xf2   : > { %v577_v49 = vcombine.high %v575_v47, %v575_v47  ;;  %v589_v50 = vrot.slane %v576_v48, %v905_v7  ;;  %v585_v60 = vrot.slane %v575_v47, %v905_v7 }
  0xf4   : > { %v593_v51 = vrot.slane %v577_v49, %v905_v7 }
 0x1c1   : > { %v808_v52 = vpop.f32.mrb[4].mxu0 }
 0x1c2   : > { %v550_v55 = vcombine.high %v808_v52, %v808_v52  ;;  %v600_v56 = vadd.f32 %v808_v52, %v589_v50  ;;  %v538_v57 = vpop.f32.mrb[5].mxu0 }
 0x1c3   : > { %v549_v59 = vcombine.high %v538_v57, %v538_v57  ;;  %v598_v61 = vadd.f32 %v581_v54, %v538_v57 }
 0x1c4   : > { %v601_v62 = vadd.f32 %v593_v51, %v550_v55  ;;  %v611_v63 = vmul.f32 %v763_v53, %v600_v56 }
 0x1c5   : > { %v599_v0 = vadd.f32 %v585_v60, %v549_v59  ;;  %v609_v1 = vmul.f32 %v763_v53, %v598_v61 }
 0x1c6   : > { %v612_v2 = vmul.f32 %v763_v53, %v601_v62  ;;  %v622_v3 = vadd.f32 %v764_v58, %v611_v63 }
 0x1c7   : > { %v610_v4 = vmul.f32 %v763_v53, %v599_v0  ;;  %v620_v5 = vadd.f32 %v764_v58, %v609_v1 }
 0x1c8   : > { %v623_v6 = vadd.f32 %v764_v58, %v612_v2  ;;  %v626_v8 = vmax.f32 %v622_v3, 0.0 }
 0x1c9   : > { %v621_v9 = vadd.f32 %v764_v58, %v610_v4  ;;  %v624_v10 = vmax.f32 %v620_v5, 0.0 }
 0x1ca   : > { %v627_v11 = vmax.f32 %v623_v6, 0.0  ;;  %v643_v12 = vsel %vm628_vm8, %v626_v8, -inf }
 0x1cb   : > { %v644_v13 = vrot.slane %v643_v12, 4  ;;  %v625_v14 = vmax.f32 %v621_v9, 0.0  ;;  %v629_v7 = vsel %vm628_vm8, %v624_v10, -inf }
 0x1cc   : > { %v650_v15 = vsel %vm628_vm8, %v627_v11, -inf  ;;  %v630_v16 = vrot.slane %v629_v7, 4 }
 0x1cd   : > { %v645_v17 = vmax.f32 %v643_v12, %v644_v13  ;;  %v651_v18 = vrot.slane %v650_v15, 4  ;;  %v636_v19 = vsel %vm628_vm8, %v625_v14, -inf }
 0x1ce   : > { %v631_v20 = vmax.f32 %v629_v7, %v630_v16  ;;  %v637_v21 = vrot.slane %v636_v19, 4 }
 0x1cf   : > { %v646_v22 = vrot.slane %v645_v17, 2  ;;  %v652_v23 = vmax.f32 %v650_v15, %v651_v18 }
 0x1d0   : > { %v632_v24 = vrot.slane %v631_v20, 2  ;;  %v638_v25 = vmax.f32 %v636_v19, %v637_v21 }
 0x1d1   : > { %v647_v26 = vmax.f32 %v645_v17, %v646_v22  ;;  %v653_v27 = vrot.slane %v652_v23, 2 }
 0x1d2   : > { %v633_v28 = vmax.f32 %v631_v20, %v632_v24  ;;  %v639_v29 = vrot.slane %v638_v25, 2 }
 0x1d3   : > { %v648_v30 = vrot.slane %v647_v26, 1  ;;  %v654_v31 = vmax.f32 %v652_v23, %v653_v27 }
 0x1d4   : > { %v634_v32 = vrot.slane %v633_v28, 1  ;;  %v640_v33 = vmax.f32 %v638_v25, %v639_v29 }
 0x1d5   : > { %v655_v34 = vrot.slane %v654_v31, 1  ;;  %v649_v37 = vmax.f32 %v647_v26, %v648_v30 }
 0x1d6   : > { %v635_v35 = vmax.f32 %v633_v28, %v634_v32  ;;  %v641_v36 = vrot.slane %v640_v33, 1 }
 0x1d7   : > { %v656_v38 = vmax.f32 %v654_v31, %v655_v34  ;;  %v659_v42 = vmax.f32 %v649_v37, 0.0 }
 0x1d8   : > { %v642_v39 = vmax.f32 %v640_v33, %v641_v36  ;;  %v657_v40 = vmax.f32 %v635_v35, 0.0 }
 0x1d9   : > { %v660_v43 = vmax.f32 %v656_v38, 0.0 }
 0x1da   : > { %v658_v41 = vmax.f32 %v642_v39, 0.0 }
 0x1dc   : > { %v666_v44 = vsel %vm665_vm9, %v658_v41, %v657_v40 }
 0x1dd   : > { %v668_v45 = vsel %vm667_vm10, %v659_v42, %v666_v44 }
 0x1de   : > { %v670_v46 = vsel %vm669_vm11, %v660_v43, %v668_v45 }
 0x1df   : > { %672 = vst.msk [vmem:[%s263_s8] sm:$0xf] %vm628_vm8, %v670_v46 }
 0x1e0 PF: > { %s16_s21 = sadd.s32 1, %s834_s21  }
 0x1e1   : > { %p13_p4 = scmp.ge.s32.totalorder %s16_s21, 4  }
 0x1e3   :  { %15 = sbr.rel (!%p13_p4) target bundleno = 1 (0x1), region = 77 }

// kernel: dyn_diff_pool_forward.45
= control target key start
LH: loop header
LB: loop body
LE: loop exit
PB: predicated region body
PF: predicated region fallthrough
CT: control target
= control target key end

     0   :  { %v366_v3 = vmov 0.0|0.0   ;;  %vm367_vm0 = vmmov 0   ;;  %v368_v6 = vmov 0.0   ;;  %vm23_vm1 = vcmask 519168   ;;  %s475_s0 = inlined_call_operand.vmem [shape: f32[2,4,64], index: 0, kind: input, shape index: {}]   ;;  %s476_s1 = inlined_call_operand.vmem [shape: f32[64,64], index: 1, kind: input, shape index: {}]   ;;  %s477_s2 = inlined_call_operand.vmem [shape: f32[1,64], index: 2, kind: input, shape index: {}]   ;;  %s478_s3 = inlined_call_operand.vmem [shape: f32[64,9], index: 3, kind: input, shape index: {}]   ;;  %s479_s4 = inlined_call_operand.vmem [shape: f32[1,9], index: 4, kind: input, shape index: {}]   ;;  %s480_s5 = inlined_call_operand.hbm [shape: f32[2,9], index: 5, kind: output, shape index: {}]  }
   0x1   :  { %v41_v0 = vld [vmem:[%s476_s1] sm:$0xff]  ;;  %v42_v1 = vld [vmem:[%s476_s1 + $0x8] sm:$0xff]  ;;  %v43_v2 = vld [vmem:[%s476_s1 + $0x10] sm:$0xff]  ;;  %310 = vmatprep.subr.bf16.mxu0 %v366_v3  ;;  %288 = vmatprep.mubr.msk.f32.mxu0 %vm367_vm0, %v368_v6 }
   0x2   :  { %v311_v4 = vpack.c.bf16 %v42_v1, %v41_v0  ;;  %v44_v5 = vld [vmem:[%s476_s1 + $0x18] sm:$0xff]  ;;  %v45_v7 = vld [vmem:[%s476_s1 + $0x20] sm:$0xff]  ;;  %322 = vmatprep.subr.bf16.mxu1 %v366_v3  ;;  %307 = vmatprep.mubr.msk.f32.mxu1 %vm367_vm0, %v368_v6  ;;  %v135_v13 = vld [vmem:[%s478_s3 + $0x8] sm:$0xff] }
   0x3   :  { %v21_v8 = vld [vmem:[%s475_s0] sm:$0xf]  ;;  %v314_v9 = vpack.c.bf16 %v44_v5, %v43_v2  ;;  %v22_v10 = vld [vmem:[%s475_s0 + $0x4] sm:$0xf]  ;;  %v46_v14 = vld [vmem:[%s476_s1 + $0x28] sm:$0xff] }
   0x4   :  { %312 = vmatpush3.bf16.msra.mxu0 %v311_v4  ;;  %v24_v11 = vsel %vm23_vm1, %v21_v8, 0.0  ;;  %v134_v12 = vld [vmem:[%s478_s3] sm:$0xff]  ;;  %v31_v16 = vsel %vm23_vm1, %v22_v10, 0.0  ;;  %v136_v18 = vld [vmem:[%s478_s3 + $0x10] sm:$0xff]  ;;  %v137_v19 = vld [vmem:[%s478_s3 + $0x18] sm:$0xff] }
   0x5   :  { %313 = vmatprep.subr.bf16.mxu0 %v366_v3  ;;  %v25_v15 = vrot.slane %v24_v11, 4  ;;  %v323_v17 = vpack.c.bf16 %v135_v13, %v134_v12  ;;  %v32_v20 = vrot.slane %v31_v16, 4 }
   0x6   :  { %10 = vsyncpa [#allocation3], 0  ;;  %v326_v22 = vpack.c.bf16 %v137_v19, %v136_v18  ;;  %v317_v23 = vpack.c.bf16 %v46_v14, %v45_v7  ;;  %v138_v25 = vld [vmem:[%s478_s3 + $0x20] sm:$0xff]  ;;  %v139_v26 = vld [vmem:[%s478_s3 + $0x28] sm:$0xff]  ;;  %vm58_vm2 = vcmask 1041409   ;;  %vm60_vm3 = vcmask 523264  }
   0x7   :  { %v26_v21 = vadd.f32 %v25_v15, %v24_v11  ;;  %324 = vmatpush3.bf16.msra.mxu1 %v323_v17  ;;  %v33_v24 = vadd.f32 %v32_v20, %v31_v16  ;;  %v47_v27 = vld [vmem:[%s476_s1 + $0x30] sm:$0xff]  ;;  %v48_v28 = vld [vmem:[%s476_s1 + $0x38] sm:$0xff]  ;;  %v329_v32 = vpack.c.bf16 %v139_v26, %v138_v25  ;;  %v250_v45 = vld [vmem:[%s477_s2] ss:$0 sm:$0xff]  ;;  %vm222_vm4 = vcmask 66560   ;;  %s369_s2 = smov [#allocation2]  }
   0x8   :  { %315 = vmatpush3.bf16.msra.mxu0 %v314_v9  ;;  %325 = vmatprep.subr.bf16.mxu1 %v366_v3  ;;  %v320_v33 = vpack.c.bf16 %v48_v28, %v47_v27  ;;  %v140_v42 = vld [vmem:[%s478_s3 + $0x30] sm:$0xff]  ;;  %v141_v43 = vld [vmem:[%s478_s3 + $0x38] sm:$0xff]  ;;  %v252_v50 = vld [vmem:[%s479_s4] ss:$0 sm:$0xff]  ;;  %s242_s3 = sshll.u32 %s369_s2, 4  ;;  %s243_s3 = int_to_ptr.vmem [resolvable:$true] %s242_s3 }
   0x9   :  { %316 = vmatprep.subr.bf16.mxu0 %v366_v3  ;;  %v27_v29 = vrot.slane %v26_v21, 2  ;;  %v34_v30 = vrot.slane %v33_v24, 2  ;;  %v332_v44 = vpack.c.bf16 %v141_v43, %v140_v42  ;;  %s342_s4 = scalar_lea.vmem %s243_s3, 32  ;;  %p347_p1 = scmp.lt.s32.totalorder %s243_s3, %s243_s3 }
   0xa   :  { %p343_p0 = scmp.ne.s32.totalorder %s243_s3, %s342_s4  ;;  %p348_p2 = scmp.lt.s32.totalorder %s342_s4, %s342_s4 }
   0xb   :  { %v28_v31 = vadd.f32 %v27_v29, %v26_v21  ;;  %327 = vmatpush3.bf16.msra.mxu1 %v326_v22  ;;  %v35_v34 = vadd.f32 %v34_v30, %v33_v24 }
   0xc   :  { %318 = vmatpush3.bf16.msra.mxu0 %v317_v23  ;;  %328 = vmatprep.subr.bf16.mxu1 %v366_v3  ;;  %p349_p3 = por %p348_p2, %p347_p1 }
   0xd   :  { %319 = vmatprep.subr.bf16.mxu0 %v366_v3  ;;  %v29_v35 = vrot.slane %v28_v31, 1  ;;  %v36_v36 = vrot.slane %v35_v34, 1 }
   0xe   :  { %p350_p4 = pnand %p349_p3, %p343_p0 }
   0xf   :  { %v30_v37 = vadd.f32 %v29_v35, %v28_v31  ;;  %330 = vmatpush3.bf16.msra.mxu1 %v329_v32  ;;  %v37_v38 = vadd.f32 %v36_v36, %v35_v34 }
  0x10   :  { %321 = vmatpush3.bf16.msra.mxu0 %v320_v33  ;;  %331 = vmatprep.subr.bf16.mxu1 %v366_v3 }
  0x11   :  { %v39_v39 = vmul.f32 0.25, %v30_v37  ;;  %v40_v40 = vmul.f32 0.25, %v37_v38 }
  0x13   :  { %v59_v41 = vsel %vm58_vm2, %v40_v40, %v39_v39  ;;  %333 = vmatpush3.bf16.msra.mxu1 %v332_v44 }
  0x14   :  { %289 = vmatmul.mubr.msk.f32.vlgmr.msra.gmra.mrb[0].mxu0 %vm60_vm3, %v59_v41 }
  0xe7   :  { %v129_v46 = vpop.f32.mrb[0].mxu0 }
  0xe8   :  { %v130_v47 = vadd.f32 %v250_v45, %v129_v46  ;;  %v290_v48 = vpop.f32.mrb[1].mxu0 }
  0xea   :  { %v133_v49 = vmax.f32 %v130_v47, 0.0 }
  0xec   :  { %308 = vmatmul.mubr.msk.f32.vlgmr.msra.gmra.mrb[0].mxu1 %vm60_vm3, %v133_v49 }
 0x1bf   :  { %v218_v51 = vpop.f32.mrb[0].mxu1 }
 0x1c0   :  { %v219_v52 = vadd.f32 %v252_v50, %v218_v51  ;;  %v309_v53 = vpop.f32.mrb[1].mxu1 }
 0x1c2   :  { %v223_v54 = vsel %vm222_vm4, %v219_v52, -inf }
 0x1c3   :  { %224 = vmax.xlane.f32.xlu0 %v223_v54 }
 0x250   :  { %v225_v55 = vpop.xlane.xlu0 %224 }
 0x251   :  { %v226_v56 = vsub.f32 %v219_v52, %v225_v55 }
 0x253   :  { %v227_v57 = vmul.f32 1.442695, %v226_v56 }
 0x255   :  { %338 = vpow2.f32 %v227_v57 }
 0x25f   :  { %v339_v58 = vpop.eup %338 }
 0x260   :  { %v229_v59 = vsel %vm222_vm4, %v339_v58, 0.0 }
 0x261   :  { %230 = vadd.xlane.f32.xlu0 %v229_v59 }
 0x2ee   :  { %v231_v60 = vpop.xlane.xlu0 %230 }
 0x2ef   :  { %340 = vlog2.f32 %v231_v60 }
 0x2f9   :  { %v341_v61 = vpop.eup %340 }
 0x2fa   :  { %v233_v62 = vmul.f32 0.6931472, %v341_v61 }
 0x2fc   :  { %v234_v63 = vsub.f32 %v226_v56, %v233_v62 }
 0x2fe   :  { %235 = vst.msk [vmem:[#allocation2] sm:$0x3] %vm222_vm4, %v234_v63 }
 0x2ff   :  { %353 = shalt.err (!%p350_p4)
}
 0x300   :  { %s354_s8 = scalar_lea.hbm %s480_s5, 32 }
 0x301   :  { %p355_p5 = scmp.ne.s32.totalorder %s480_s5, %s354_s8  ;;  %p358_p6 = scmp.lt.u32.totalorder %s354_s8, %s480_s5 }
 0x303   :  { %p360_p7 = pnand %p358_p6, %p355_p5 }
 0x305   :  { %363 = shalt.err (!%p360_p7)
}
 0x306   :  { %245 = dma.vmem_to_hbm [thread:$0]  %s243_s3, 32, %s480_s5, [#allocation3]  }
 0x307   :  { %364 = dma.done.wait [#allocation3], 32  }
 0x308   :  { %365 = vsyncadd [#allocation3], 4294967264 }
 0x309   :  { %249 = vsyncpa [#allocation3], 1 }

</bundles_post_ra>
